<compile_context>
chip_gen: v6e
topology: v6e:2x2x1
jax: 0.10.0
libtpu: 0.0.40
codegen_flags: <defaults>
</compile_context>

<pallas_src>
import functools

import numpy as np
import jax
import jax.numpy as jnp
from jax import lax
from jax.experimental import pallas as pl
from jax.experimental.pallas import tpu as pltpu

_SELU_ALPHA = 1.6732632423543772848170429916717
_SELU_SCALE = 1.0507009873554804934193349852946
_BN_EPS = 1e-5


def _round_up(v, m):
    return -(-v // m) * m


# -----------------------------------------------------------------------------
# Fused Pallas kernel: both blocks of all three branches in one grid step
# -----------------------------------------------------------------------------
def _i2cmse_kernel(x_ref, mask_ref, w1_ref, w2_ref, o_ref, taps_ref, *,
                   K_max, Cxp, C2p):
    """Layout: channels on sublanes, flattened (batch, time) on lanes (BN=B*N).

    x_ref    : [Cxp, BN]  f32   input (zero-padded rows)
    mask_ref : [K_max, BN] f32  per-tap 'same'-padding / sample-boundary masks
    w1_ref   : [C2p, K_max*Cxp] bf16  fused block-1 weights (3 branches stacked)
    w2_ref   : [Cout, K_max*C2p] bf16 fused block-2 weights (3 branches stacked)
    o_ref    : [Cout, BN]  f32  BN(batch stats) + SELU output
    taps_ref : [K_max*C2p, BN] bf16 scratch, reused by block 1 and block 2
    """
    f32 = jnp.float32
    pad_max = (K_max - 1) // 2
    BN = x_ref.shape[-1]
    cdt = taps_ref.dtype

    def build_taps(src, stride):
        # src: [stride, BN] f32. Write K_max shifted+masked copies into scratch.
        for k in range(K_max):
            d = k - pad_max
            if d == 0:
                tap = src
            else:
                # tap[:, l] = src[:, l + d] for valid lanes, else 0
                tap = pltpu.roll(src, (-d) % BN, 1) * mask_ref[k:k + 1, :]
            taps_ref[k * stride:(k + 1) * stride, :] = tap.astype(cdt)

    # ---- block 1 (ac_flag=False), all 3 branches: one MXU contraction -------
    build_taps(x_ref[...].astype(f32), Cxp)
    h = jnp.dot(w1_ref[...], taps_ref[:K_max * Cxp, :],
                preferred_element_type=f32)                  # [C2p, BN] f32

    # ---- block 2 (ac_flag=True), all 3 branches: one MXU contraction --------
    build_taps(h, C2p)
    out = jnp.dot(w2_ref[...], taps_ref[...], preferred_element_type=f32)

    # ---- BatchNorm1d (training-mode batch stats, weight=1, bias=0) + SELU ----
    mean = jnp.mean(out, axis=1, keepdims=True)              # stats over (B, N)
    xc = out - mean
    var = jnp.mean(xc * xc, axis=1, keepdims=True)           # biased variance
    xn = xc * lax.rsqrt(var + _BN_EPS)
    neg = _SELU_ALPHA * (jnp.exp(jnp.minimum(xn, 0.0)) - 1.0)  # inf-safe
    o_ref[...] = (_SELU_SCALE * jnp.where(xn > 0, xn, neg)).astype(o_ref.dtype)


# -----------------------------------------------------------------------------
# Parameter construction (kaiming-normal like PyTorch init) and fused packing
# -----------------------------------------------------------------------------
def _kaiming_normal(key, shape):
    # PyTorch Conv1d weight shape: [out, in/groups, K]; fan_in = in/groups * K
    fan_in = shape[1] * shape[2]
    std = (2.0 / fan_in) ** 0.5
    return np.asarray(std * jax.random.normal(key, shape, dtype=jnp.float32))


def init_i2cmse_params(key, in_planes, groups=11, b_sizes=(5, 11, 21),
                       expansion=2):
    g = groups
    e = expansion
    nb = len(b_sizes)
    gw = in_planes // g                  # group width of block 1
    gw2 = gw * e                         # group width of block 2
    C1 = gw * (g - 1)                    # intra channels of x
    Cin = in_planes
    Cb = in_planes * e                   # channels produced per branch (44)
    K_max = max(b_sizes)
    pad_max = (K_max - 1) // 2
    Cxp = _round_up(Cin, 16)             # sublane/tile-aligned input row count
    C2p = _round_up(nb * Cb, 16)         # sublane/tile-aligned block-1 out rows

    # Fused weights: one dense matmul LHS per block, branches stacked on rows.
    W1 = np.zeros((C2p, K_max, Cxp), np.float32)
    W2 = np.zeros((nb * Cb, K_max, C2p), np.float32)

    keys = jax.random.split(key, 6 * nb)
    for b, K in enumerate(b_sizes):
        k = keys[6 * b:6 * b + 6]
        off = (K_max - K) // 2
        r0 = b * Cb

        # ---- block 1: in_planes, expansion=e, ac_flag=False ----
        w1_i1 = _kaiming_normal(k[0], (gw * e, C1, 1))[:, :, 0]          # [4,20]
        w1_i2 = _kaiming_normal(k[1], (gw * e, gw * (e + 1), 1))[:, :, 0]  # [4,6]
        w1_in = _kaiming_normal(k[2], (C1 * e, gw, K))                   # [40,2,K]
        opg1 = gw * e
        for gi in range(g - 1):  # grouped intra conv: block-diagonal, centred taps
            blk = np.transpose(w1_in[gi * opg1:(gi + 1) * opg1], (0, 2, 1))
            W1[r0 + gi * opg1: r0 + (gi + 1) * opg1, off:off + K,
               gi * gw:(gi + 1) * gw] = blk
        # inter path composed: inter2(cat(inter_prev, inter1(intra_prev)))
        ri = r0 + C1 * e
        W1[ri:ri + gw * e, pad_max, 0:C1] = w1_i2[:, gw:] @ w1_i1
        W1[ri:ri + gw * e, pad_max, C1:C1 + gw] = w1_i2[:, :gw]

        # ---- block 2: in_planes*e, expansion=1, ac_flag=True ----
        w2_i1 = _kaiming_normal(k[3], (gw2, (g - 1) * gw2, 1))[:, :, 0]  # [4,40]
        w2_i2 = _kaiming_normal(k[4], (gw2, gw2 * 2, 1))[:, :, 0]        # [4,8]
        w2_in = _kaiming_normal(k[5], ((g - 1) * gw2, gw2, K))           # [40,4,K]
        for gi in range(g - 1):
            blk = np.transpose(w2_in[gi * gw2:(gi + 1) * gw2], (0, 2, 1))
            W2[r0 + gi * gw2: r0 + (gi + 1) * gw2, off:off + K,
               r0 + gi * gw2: r0 + (gi + 1) * gw2] = blk
        ri2 = r0 + (g - 1) * gw2
        W2[ri2:ri2 + gw2, pad_max, r0: r0 + (g - 1) * gw2] = w2_i2[:, gw2:] @ w2_i1
        W2[ri2:ri2 + gw2, pad_max, r0 + (g - 1) * gw2: r0 + Cb] = w2_i2[:, :gw2]

    return {
        "w1": jnp.asarray(W1.reshape(C2p, K_max * Cxp), jnp.bfloat16),
        "w2": jnp.asarray(W2.reshape(nb * Cb, K_max * C2p), jnp.bfloat16),
    }


# -----------------------------------------------------------------------------
# Forward
# -----------------------------------------------------------------------------
def i2cmse_forward(x, params, *, in_planes, groups=11, expansion=2,
                   b_sizes=(5, 11, 21)):
    B, Cin, N = x.shape
    assert Cin == in_planes and in_planes % groups == 0
    nb = len(b_sizes)
    BN = B * N
    K_max = max(b_sizes)
    pad_max = (K_max - 1) // 2
    gw = in_planes // groups
    gwe = gw * expansion
    Cb = in_planes * expansion
    Cout = nb * Cb
    Cxp = _round_up(Cin, 16)
    C2p = _round_up(Cout, 16)

    # Lane-dense layout: [C, B*N] (channels on sublanes, batch folded into lanes)
    x_l = jnp.transpose(x, (1, 0, 2)).reshape(Cin, BN).astype(jnp.float32)
    if Cxp > Cin:
        x_l = jnp.concatenate(
            [x_l, jnp.zeros((Cxp - Cin, BN), jnp.float32)], axis=0)

    # Precomputed 'same'-padding / per-sample-boundary masks, one row per tap.
    n = np.tile(np.arange(N), B)
    masks = np.stack(
        [((n + (k - pad_max) >= 0) & (n + (k - pad_max) < N)).astype(np.float32)
         for k in range(K_max)], axis=0)
    masks = jnp.asarray(masks)

    kernel = functools.partial(_i2cmse_kernel, K_max=K_max, Cxp=Cxp, C2p=C2p)

    out2d = pl.pallas_call(
        kernel,
        out_shape=jax.ShapeDtypeStruct((Cout, BN), jnp.float32),
        grid=(1,),
        in_specs=[
            pl.BlockSpec((Cxp, BN), lambda i: (0, 0)),
            pl.BlockSpec((K_max, BN), lambda i: (0, 0)),
            pl.BlockSpec(tuple(params["w1"].shape), lambda i: (0, 0)),
            pl.BlockSpec(tuple(params["w2"].shape), lambda i: (0, 0)),
        ],
        out_specs=pl.BlockSpec((Cout, BN), lambda i: (0, 0)),
        scratch_shapes=[pltpu.VMEM((K_max * C2p, BN), jnp.bfloat16)],
        compiler_params=pltpu.CompilerParams(
            dimension_semantics=("arbitrary",),
            vmem_limit_bytes=32 * 1024 * 1024,
        ),
    )(x_l, masks, params["w1"], params["w2"])

    # Per-group interleave of the three branches: one reshape/transpose/reshape.
    out = out2d.reshape(nb, groups, gwe, B, N)
    out = jnp.transpose(out, (3, 1, 0, 2, 4)).reshape(B, Cout, N)
    return out


# -----------------------------------------------------------------------------
# Demo
# -----------------------------------------------------------------------------
if __name__ == "__main__":
    B = 2
    IN_PLANES = 22          # divisible by groups=11 -> group_width = 2
    N = 64                  # B*N = 128 -> fully lane-dense
    GROUPS = 11
    EXPANSION = 2
    B_SIZES = (5, 11, 21)

    key = jax.random.PRNGKey(0)
    kx, kp = jax.random.split(key)
    x = jax.random.normal(kx, (B, IN_PLANES, N), dtype=jnp.float32)
    params = init_i2cmse_params(kp, IN_PLANES, groups=GROUPS,
                                b_sizes=B_SIZES, expansion=EXPANSION)

    fwd = jax.jit(functools.partial(i2cmse_forward,
                                    in_planes=IN_PLANES,
                                    groups=GROUPS,
                                    expansion=EXPANSION,
                                    b_sizes=B_SIZES))
    out = fwd(x, params)
    jax.block_until_ready(out)

    expected_channels = 3 * IN_PLANES * EXPANSION   # 3 branches x (e * in_planes)
    assert out.shape == (B, expected_channels, N), out.shape
    assert bool(jnp.all(jnp.isfinite(out)))
    print("KERNEL_OK")
</pallas_src>

<mosaic_0001>
module attributes {stable_mosaic.version = 11 : i64} {
  func.func @_i2cmse_kernel(%arg0: i32, %arg1: memref<32x128xf32, #tpu.memory_space<vmem>>, %arg2: memref<21x128xf32, #tpu.memory_space<vmem>>, %arg3: memref<144x672xbf16, #tpu.memory_space<vmem>>, %arg4: memref<132x3024xbf16, #tpu.memory_space<vmem>>, %arg5: memref<132x128xf32, #tpu.memory_space<vmem>>, %arg6: memref<3024x128xbf16, #tpu.memory_space<vmem>>) attributes {dimension_semantics = [#tpu.dimension_semantics<arbitrary>], iteration_bounds = array<i64: 1>, scalar_prefetch = 0 : i64, scratch_operands = 1 : i64, tpu.core_type = #tpu.core_type<tc>, window_params = [{pipeline_mode = #tpu.pipeline_mode<synchronous>, transform_indices = @transform_0, window_bounds = array<i64: 32, 128>}, {pipeline_mode = #tpu.pipeline_mode<synchronous>, transform_indices = @transform_1, window_bounds = array<i64: 21, 128>}, {pipeline_mode = #tpu.pipeline_mode<synchronous>, transform_indices = @transform_2, window_bounds = array<i64: 144, 672>}, {pipeline_mode = #tpu.pipeline_mode<synchronous>, transform_indices = @transform_3, window_bounds = array<i64: 132, 3024>}, {pipeline_mode = #tpu.pipeline_mode<synchronous>, transform_indices = @transform_4, window_bounds = array<i64: 132, 128>}]} {
    %c0 = arith.constant 0 : index
    %c0_0 = arith.constant 0 : index
    %0 = vector.load %arg1[%c0, %c0_0] : memref<32x128xf32, #tpu.memory_space<vmem>>, vector<32x128xf32>
    %c10_i32 = arith.constant 10 : i32
    %1 = tpu.dynamic_rotate %0 by %c10_i32 dim 1 : vector<32x128xf32>, i32 -> vector<32x128xf32>
    %c0_1 = arith.constant 0 : index
    %c0_2 = arith.constant 0 : index
    %2 = vector.load %arg2[%c0_1, %c0_2] : memref<21x128xf32, #tpu.memory_space<vmem>>, vector<1x128xf32>
    %3 = vector.broadcast %2 : vector<1x128xf32> to vector<32x128xf32>
    %4 = arith.mulf %1, %3 : vector<32x128xf32>
    %5 = arith.truncf %4 : vector<32x128xf32> to vector<32x128xbf16>
    %c0_3 = arith.constant 0 : index
    %c0_4 = arith.constant 0 : index
    %6 = vector.load %arg6[%c0_3, %c0_4] : memref<3024x128xbf16, #tpu.memory_space<vmem>>, vector<32x128xbf16>
    tpu.vector_store %arg6[%c0_3, %c0_4], %5 {strides = array<i32>} : memref<3024x128xbf16, #tpu.memory_space<vmem>>, vector<32x128xbf16>,
    %c9_i32 = arith.constant 9 : i32
    %7 = tpu.dynamic_rotate %0 by %c9_i32 dim 1 : vector<32x128xf32>, i32 -> vector<32x128xf32>
    %c1 = arith.constant 1 : index
    %c0_5 = arith.constant 0 : index
    %8 = vector.load %arg2[%c1, %c0_5] : memref<21x128xf32, #tpu.memory_space<vmem>>, vector<1x128xf32>
    %9 = vector.broadcast %8 : vector<1x128xf32> to vector<32x128xf32>
    %10 = arith.mulf %7, %9 : vector<32x128xf32>
    %11 = arith.truncf %10 : vector<32x128xf32> to vector<32x128xbf16>
    %c32 = arith.constant 32 : index
    %c0_6 = arith.constant 0 : index
    %12 = vector.load %arg6[%c32, %c0_6] : memref<3024x128xbf16, #tpu.memory_space<vmem>>, vector<32x128xbf16>
    tpu.vector_store %arg6[%c32, %c0_6], %11 {strides = array<i32>} : memref<3024x128xbf16, #tpu.memory_space<vmem>>, vector<32x128xbf16>,
    %c8_i32 = arith.constant 8 : i32
    %13 = tpu.dynamic_rotate %0 by %c8_i32 dim 1 : vector<32x128xf32>, i32 -> vector<32x128xf32>
    %c2 = arith.constant 2 : index
    %c0_7 = arith.constant 0 : index
    %14 = vector.load %arg2[%c2, %c0_7] : memref<21x128xf32, #tpu.memory_space<vmem>>, vector<1x128xf32>
    %15 = vector.broadcast %14 : vector<1x128xf32> to vector<32x128xf32>
    %16 = arith.mulf %13, %15 : vector<32x128xf32>
    %17 = arith.truncf %16 : vector<32x128xf32> to vector<32x128xbf16>
    %c64 = arith.constant 64 : index
    %c0_8 = arith.constant 0 : index
    %18 = vector.load %arg6[%c64, %c0_8] : memref<3024x128xbf16, #tpu.memory_space<vmem>>, vector<32x128xbf16>
    tpu.vector_store %arg6[%c64, %c0_8], %17 {strides = array<i32>} : memref<3024x128xbf16, #tpu.memory_space<vmem>>, vector<32x128xbf16>,
    %c7_i32 = arith.constant 7 : i32
    %19 = tpu.dynamic_rotate %0 by %c7_i32 dim 1 : vector<32x128xf32>, i32 -> vector<32x128xf32>
    %c3 = arith.constant 3 : index
    %c0_9 = arith.constant 0 : index
    %20 = vector.load %arg2[%c3, %c0_9] : memref<21x128xf32, #tpu.memory_space<vmem>>, vector<1x128xf32>
    %21 = vector.broadcast %20 : vector<1x128xf32> to vector<32x128xf32>
    %22 = arith.mulf %19, %21 : vector<32x128xf32>
    %23 = arith.truncf %22 : vector<32x128xf32> to vector<32x128xbf16>
    %c96 = arith.constant 96 : index
    %c0_10 = arith.constant 0 : index
    %24 = vector.load %arg6[%c96, %c0_10] : memref<3024x128xbf16, #tpu.memory_space<vmem>>, vector<32x128xbf16>
    tpu.vector_store %arg6[%c96, %c0_10], %23 {strides = array<i32>} : memref<3024x128xbf16, #tpu.memory_space<vmem>>, vector<32x128xbf16>,
    %c6_i32 = arith.constant 6 : i32
    %25 = tpu.dynamic_rotate %0 by %c6_i32 dim 1 : vector<32x128xf32>, i32 -> vector<32x128xf32>
    %c4 = arith.constant 4 : index
    %c0_11 = arith.constant 0 : index
    %26 = vector.load %arg2[%c4, %c0_11] : memref<21x128xf32, #tpu.memory_space<vmem>>, vector<1x128xf32>
    %27 = vector.broadcast %26 : vector<1x128xf32> to vector<32x128xf32>
    %28 = arith.mulf %25, %27 : vector<32x128xf32>
    %29 = arith.truncf %28 : vector<32x128xf32> to vector<32x128xbf16>
    %c128 = arith.constant 128 : index
    %c0_12 = arith.constant 0 : index
    %30 = vector.load %arg6[%c128, %c0_12] : memref<3024x128xbf16, #tpu.memory_space<vmem>>, vector<32x128xbf16>
    tpu.vector_store %arg6[%c128, %c0_12], %29 {strides = array<i32>} : memref<3024x128xbf16, #tpu.memory_space<vmem>>, vector<32x128xbf16>,
    %c5_i32 = arith.constant 5 : i32
    %31 = tpu.dynamic_rotate %0 by %c5_i32 dim 1 : vector<32x128xf32>, i32 -> vector<32x128xf32>
    %c5 = arith.constant 5 : index
    %c0_13 = arith.constant 0 : index
    %32 = vector.load %arg2[%c5, %c0_13] : memref<21x128xf32, #tpu.memory_space<vmem>>, vector<1x128xf32>
    %33 = vector.broadcast %32 : vector<1x128xf32> to vector<32x128xf32>
    %34 = arith.mulf %31, %33 : vector<32x128xf32>
    %35 = arith.truncf %34 : vector<32x128xf32> to vector<32x128xbf16>
    %c160 = arith.constant 160 : index
    %c0_14 = arith.constant 0 : index
    %36 = vector.load %arg6[%c160, %c0_14] : memref<3024x128xbf16, #tpu.memory_space<vmem>>, vector<32x128xbf16>
    tpu.vector_store %arg6[%c160, %c0_14], %35 {strides = array<i32>} : memref<3024x128xbf16, #tpu.memory_space<vmem>>, vector<32x128xbf16>,
    %c4_i32 = arith.constant 4 : i32
    %37 = tpu.dynamic_rotate %0 by %c4_i32 dim 1 : vector<32x128xf32>, i32 -> vector<32x128xf32>
    %c6 = arith.constant 6 : index
    %c0_15 = arith.constant 0 : index
    %38 = vector.load %arg2[%c6, %c0_15] : memref<21x128xf32, #tpu.memory_space<vmem>>, vector<1x128xf32>
    %39 = vector.broadcast %38 : vector<1x128xf32> to vector<32x128xf32>
    %40 = arith.mulf %37, %39 : vector<32x128xf32>
    %41 = arith.truncf %40 : vector<32x128xf32> to vector<32x128xbf16>
    %c192 = arith.constant 192 : index
    %c0_16 = arith.constant 0 : index
    %42 = vector.load %arg6[%c192, %c0_16] : memref<3024x128xbf16, #tpu.memory_space<vmem>>, vector<32x128xbf16>
    tpu.vector_store %arg6[%c192, %c0_16], %41 {strides = array<i32>} : memref<3024x128xbf16, #tpu.memory_space<vmem>>, vector<32x128xbf16>,
    %c3_i32 = arith.constant 3 : i32
    %43 = tpu.dynamic_rotate %0 by %c3_i32 dim 1 : vector<32x128xf32>, i32 -> vector<32x128xf32>
    %c7 = arith.constant 7 : index
    %c0_17 = arith.constant 0 : index
    %44 = vector.load %arg2[%c7, %c0_17] : memref<21x128xf32, #tpu.memory_space<vmem>>, vector<1x128xf32>
    %45 = vector.broadcast %44 : vector<1x128xf32> to vector<32x128xf32>
    %46 = arith.mulf %43, %45 : vector<32x128xf32>
    %47 = arith.truncf %46 : vector<32x128xf32> to vector<32x128xbf16>
    %c224 = arith.constant 224 : index
    %c0_18 = arith.constant 0 : index
    %48 = vector.load %arg6[%c224, %c0_18] : memref<3024x128xbf16, #tpu.memory_space<vmem>>, vector<32x128xbf16>
    tpu.vector_store %arg6[%c224, %c0_18], %47 {strides = array<i32>} : memref<3024x128xbf16, #tpu.memory_space<vmem>>, vector<32x128xbf16>,
    %c2_i32 = arith.constant 2 : i32
    %49 = tpu.dynamic_rotate %0 by %c2_i32 dim 1 : vector<32x128xf32>, i32 -> vector<32x128xf32>
    %c8 = arith.constant 8 : index
    %c0_19 = arith.constant 0 : index
    %50 = vector.load %arg2[%c8, %c0_19] : memref<21x128xf32, #tpu.memory_space<vmem>>, vector<1x128xf32>
    %51 = vector.broadcast %50 : vector<1x128xf32> to vector<32x128xf32>
    %52 = arith.mulf %49, %51 : vector<32x128xf32>
    %53 = arith.truncf %52 : vector<32x128xf32> to vector<32x128xbf16>
    %c256 = arith.constant 256 : index
    %c0_20 = arith.constant 0 : index
    %54 = vector.load %arg6[%c256, %c0_20] : memref<3024x128xbf16, #tpu.memory_space<vmem>>, vector<32x128xbf16>
    tpu.vector_store %arg6[%c256, %c0_20], %53 {strides = array<i32>} : memref<3024x128xbf16, #tpu.memory_space<vmem>>, vector<32x128xbf16>,
    %c1_i32 = arith.constant 1 : i32
    %55 = tpu.dynamic_rotate %0 by %c1_i32 dim 1 : vector<32x128xf32>, i32 -> vector<32x128xf32>
    %c9 = arith.constant 9 : index
    %c0_21 = arith.constant 0 : index
    %56 = vector.load %arg2[%c9, %c0_21] : memref<21x128xf32, #tpu.memory_space<vmem>>, vector<1x128xf32>
    %57 = vector.broadcast %56 : vector<1x128xf32> to vector<32x128xf32>
    %58 = arith.mulf %55, %57 : vector<32x128xf32>
    %59 = arith.truncf %58 : vector<32x128xf32> to vector<32x128xbf16>
    %c288 = arith.constant 288 : index
    %c0_22 = arith.constant 0 : index
    %60 = vector.load %arg6[%c288, %c0_22] : memref<3024x128xbf16, #tpu.memory_space<vmem>>, vector<32x128xbf16>
    tpu.vector_store %arg6[%c288, %c0_22], %59 {strides = array<i32>} : memref<3024x128xbf16, #tpu.memory_space<vmem>>, vector<32x128xbf16>,
    %61 = arith.truncf %0 : vector<32x128xf32> to vector<32x128xbf16>
    %c320 = arith.constant 320 : index
    %c0_23 = arith.constant 0 : index
    %62 = vector.load %arg6[%c320, %c0_23] : memref<3024x128xbf16, #tpu.memory_space<vmem>>, vector<32x128xbf16>
    tpu.vector_store %arg6[%c320, %c0_23], %61 {strides = array<i32>} : memref<3024x128xbf16, #tpu.memory_space<vmem>>, vector<32x128xbf16>,
    %c127_i32 = arith.constant 127 : i32
    %63 = tpu.dynamic_rotate %0 by %c127_i32 dim 1 : vector<32x128xf32>, i32 -> vector<32x128xf32>
    %c11 = arith.constant 11 : index
    %c0_24 = arith.constant 0 : index
    %64 = vector.load %arg2[%c11, %c0_24] : memref<21x128xf32, #tpu.memory_space<vmem>>, vector<1x128xf32>
    %65 = vector.broadcast %64 : vector<1x128xf32> to vector<32x128xf32>
    %66 = arith.mulf %63, %65 : vector<32x128xf32>
    %67 = arith.truncf %66 : vector<32x128xf32> to vector<32x128xbf16>
    %c352 = arith.constant 352 : index
    %c0_25 = arith.constant 0 : index
    %68 = vector.load %arg6[%c352, %c0_25] : memref<3024x128xbf16, #tpu.memory_space<vmem>>, vector<32x128xbf16>
    tpu.vector_store %arg6[%c352, %c0_25], %67 {strides = array<i32>} : memref<3024x128xbf16, #tpu.memory_space<vmem>>, vector<32x128xbf16>,
    %c126_i32 = arith.constant 126 : i32
    %69 = tpu.dynamic_rotate %0 by %c126_i32 dim 1 : vector<32x128xf32>, i32 -> vector<32x128xf32>
    %c12 = arith.constant 12 : index
    %c0_26 = arith.constant 0 : index
    %70 = vector.load %arg2[%c12, %c0_26] : memref<21x128xf32, #tpu.memory_space<vmem>>, vector<1x128xf32>
    %71 = vector.broadcast %70 : vector<1x128xf32> to vector<32x128xf32>
    %72 = arith.mulf %69, %71 : vector<32x128xf32>
    %73 = arith.truncf %72 : vector<32x128xf32> to vector<32x128xbf16>
    %c384 = arith.constant 384 : index
    %c0_27 = arith.constant 0 : index
    %74 = vector.load %arg6[%c384, %c0_27] : memref<3024x128xbf16, #tpu.memory_space<vmem>>, vector<32x128xbf16>
    tpu.vector_store %arg6[%c384, %c0_27], %73 {strides = array<i32>} : memref<3024x128xbf16, #tpu.memory_space<vmem>>, vector<32x128xbf16>,
    %c125_i32 = arith.constant 125 : i32
    %75 = tpu.dynamic_rotate %0 by %c125_i32 dim 1 : vector<32x128xf32>, i32 -> vector<32x128xf32>
    %c13 = arith.constant 13 : index
    %c0_28 = arith.constant 0 : index
    %76 = vector.load %arg2[%c13, %c0_28] : memref<21x128xf32, #tpu.memory_space<vmem>>, vector<1x128xf32>
    %77 = vector.broadcast %76 : vector<1x128xf32> to vector<32x128xf32>
    %78 = arith.mulf %75, %77 : vector<32x128xf32>
    %79 = arith.truncf %78 : vector<32x128xf32> to vector<32x128xbf16>
    %c416 = arith.constant 416 : index
    %c0_29 = arith.constant 0 : index
    %80 = vector.load %arg6[%c416, %c0_29] : memref<3024x128xbf16, #tpu.memory_space<vmem>>, vector<32x128xbf16>
    tpu.vector_store %arg6[%c416, %c0_29], %79 {strides = array<i32>} : memref<3024x128xbf16, #tpu.memory_space<vmem>>, vector<32x128xbf16>,
    %c124_i32 = arith.constant 124 : i32
    %81 = tpu.dynamic_rotate %0 by %c124_i32 dim 1 : vector<32x128xf32>, i32 -> vector<32x128xf32>
    %c14 = arith.constant 14 : index
    %c0_30 = arith.constant 0 : index
    %82 = vector.load %arg2[%c14, %c0_30] : memref<21x128xf32, #tpu.memory_space<vmem>>, vector<1x128xf32>
    %83 = vector.broadcast %82 : vector<1x128xf32> to vector<32x128xf32>
    %84 = arith.mulf %81, %83 : vector<32x128xf32>
    %85 = arith.truncf %84 : vector<32x128xf32> to vector<32x128xbf16>
    %c448 = arith.constant 448 : index
    %c0_31 = arith.constant 0 : index
    %86 = vector.load %arg6[%c448, %c0_31] : memref<3024x128xbf16, #tpu.memory_space<vmem>>, vector<32x128xbf16>
    tpu.vector_store %arg6[%c448, %c0_31], %85 {strides = array<i32>} : memref<3024x128xbf16, #tpu.memory_space<vmem>>, vector<32x128xbf16>,
    %c123_i32 = arith.constant 123 : i32
    %87 = tpu.dynamic_rotate %0 by %c123_i32 dim 1 : vector<32x128xf32>, i32 -> vector<32x128xf32>
    %c15 = arith.constant 15 : index
    %c0_32 = arith.constant 0 : index
    %88 = vector.load %arg2[%c15, %c0_32] : memref<21x128xf32, #tpu.memory_space<vmem>>, vector<1x128xf32>
    %89 = vector.broadcast %88 : vector<1x128xf32> to vector<32x128xf32>
    %90 = arith.mulf %87, %89 : vector<32x128xf32>
    %91 = arith.truncf %90 : vector<32x128xf32> to vector<32x128xbf16>
    %c480 = arith.constant 480 : index
    %c0_33 = arith.constant 0 : index
    %92 = vector.load %arg6[%c480, %c0_33] : memref<3024x128xbf16, #tpu.memory_space<vmem>>, vector<32x128xbf16>
    tpu.vector_store %arg6[%c480, %c0_33], %91 {strides = array<i32>} : memref<3024x128xbf16, #tpu.memory_space<vmem>>, vector<32x128xbf16>,
    %c122_i32 = arith.constant 122 : i32
    %93 = tpu.dynamic_rotate %0 by %c122_i32 dim 1 : vector<32x128xf32>, i32 -> vector<32x128xf32>
    %c16 = arith.constant 16 : index
    %c0_34 = arith.constant 0 : index
    %94 = vector.load %arg2[%c16, %c0_34] : memref<21x128xf32, #tpu.memory_space<vmem>>, vector<1x128xf32>
    %95 = vector.broadcast %94 : vector<1x128xf32> to vector<32x128xf32>
    %96 = arith.mulf %93, %95 : vector<32x128xf32>
    %97 = arith.truncf %96 : vector<32x128xf32> to vector<32x128xbf16>
    %c512 = arith.constant 512 : index
    %c0_35 = arith.constant 0 : index
    %98 = vector.load %arg6[%c512, %c0_35] : memref<3024x128xbf16, #tpu.memory_space<vmem>>, vector<32x128xbf16>
    tpu.vector_store %arg6[%c512, %c0_35], %97 {strides = array<i32>} : memref<3024x128xbf16, #tpu.memory_space<vmem>>, vector<32x128xbf16>,
    %c121_i32 = arith.constant 121 : i32
    %99 = tpu.dynamic_rotate %0 by %c121_i32 dim 1 : vector<32x128xf32>, i32 -> vector<32x128xf32>
    %c17 = arith.constant 17 : index
    %c0_36 = arith.constant 0 : index
    %100 = vector.load %arg2[%c17, %c0_36] : memref<21x128xf32, #tpu.memory_space<vmem>>, vector<1x128xf32>
    %101 = vector.broadcast %100 : vector<1x128xf32> to vector<32x128xf32>
    %102 = arith.mulf %99, %101 : vector<32x128xf32>
    %103 = arith.truncf %102 : vector<32x128xf32> to vector<32x128xbf16>
    %c544 = arith.constant 544 : index
    %c0_37 = arith.constant 0 : index
    %104 = vector.load %arg6[%c544, %c0_37] : memref<3024x128xbf16, #tpu.memory_space<vmem>>, vector<32x128xbf16>
    tpu.vector_store %arg6[%c544, %c0_37], %103 {strides = array<i32>} : memref<3024x128xbf16, #tpu.memory_space<vmem>>, vector<32x128xbf16>,
    %c120_i32 = arith.constant 120 : i32
    %105 = tpu.dynamic_rotate %0 by %c120_i32 dim 1 : vector<32x128xf32>, i32 -> vector<32x128xf32>
    %c18 = arith.constant 18 : index
    %c0_38 = arith.constant 0 : index
    %106 = vector.load %arg2[%c18, %c0_38] : memref<21x128xf32, #tpu.memory_space<vmem>>, vector<1x128xf32>
    %107 = vector.broadcast %106 : vector<1x128xf32> to vector<32x128xf32>
    %108 = arith.mulf %105, %107 : vector<32x128xf32>
    %109 = arith.truncf %108 : vector<32x128xf32> to vector<32x128xbf16>
    %c576 = arith.constant 576 : index
    %c0_39 = arith.constant 0 : index
    %110 = vector.load %arg6[%c576, %c0_39] : memref<3024x128xbf16, #tpu.memory_space<vmem>>, vector<32x128xbf16>
    tpu.vector_store %arg6[%c576, %c0_39], %109 {strides = array<i32>} : memref<3024x128xbf16, #tpu.memory_space<vmem>>, vector<32x128xbf16>,
    %c119_i32 = arith.constant 119 : i32
    %111 = tpu.dynamic_rotate %0 by %c119_i32 dim 1 : vector<32x128xf32>, i32 -> vector<32x128xf32>
    %c19 = arith.constant 19 : index
    %c0_40 = arith.constant 0 : index
    %112 = vector.load %arg2[%c19, %c0_40] : memref<21x128xf32, #tpu.memory_space<vmem>>, vector<1x128xf32>
    %113 = vector.broadcast %112 : vector<1x128xf32> to vector<32x128xf32>
    %114 = arith.mulf %111, %113 : vector<32x128xf32>
    %115 = arith.truncf %114 : vector<32x128xf32> to vector<32x128xbf16>
    %c608 = arith.constant 608 : index
    %c0_41 = arith.constant 0 : index
    %116 = vector.load %arg6[%c608, %c0_41] : memref<3024x128xbf16, #tpu.memory_space<vmem>>, vector<32x128xbf16>
    tpu.vector_store %arg6[%c608, %c0_41], %115 {strides = array<i32>} : memref<3024x128xbf16, #tpu.memory_space<vmem>>, vector<32x128xbf16>,
    %c118_i32 = arith.constant 118 : i32
    %117 = tpu.dynamic_rotate %0 by %c118_i32 dim 1 : vector<32x128xf32>, i32 -> vector<32x128xf32>
    %c20 = arith.constant 20 : index
    %c0_42 = arith.constant 0 : index
    %118 = vector.load %arg2[%c20, %c0_42] : memref<21x128xf32, #tpu.memory_space<vmem>>, vector<1x128xf32>
    %119 = vector.broadcast %118 : vector<1x128xf32> to vector<32x128xf32>
    %120 = arith.mulf %117, %119 : vector<32x128xf32>
    %121 = arith.truncf %120 : vector<32x128xf32> to vector<32x128xbf16>
    %c640 = arith.constant 640 : index
    %c0_43 = arith.constant 0 : index
    %122 = vector.load %arg6[%c640, %c0_43] : memref<3024x128xbf16, #tpu.memory_space<vmem>>, vector<32x128xbf16>
    tpu.vector_store %arg6[%c640, %c0_43], %121 {strides = array<i32>} : memref<3024x128xbf16, #tpu.memory_space<vmem>>, vector<32x128xbf16>,
    %c0_44 = arith.constant 0 : index
    %c0_45 = arith.constant 0 : index
    %123 = vector.load %arg3[%c0_44, %c0_45] : memref<144x672xbf16, #tpu.memory_space<vmem>>, vector<144x672xbf16>
    %c0_46 = arith.constant 0 : index
    %c0_47 = arith.constant 0 : index
    %124 = vector.load %arg6[%c0_46, %c0_47] : memref<3024x128xbf16, #tpu.memory_space<vmem>>, vector<672x128xbf16>
    %cst = arith.constant dense<0.000000e+00> : vector<144x128xf32>
    %125 = tpu.matmul %123, %124, %cst {dimension_numbers = #tpu.dot_dimension_numbers<[1], [0], [0], [1], [0, 0, 1, 1], [], []>} : vector<144x672xbf16>, vector<672x128xbf16>, vector<144x128xf32> -> vector<144x128xf32>
    %c10_i32_48 = arith.constant 10 : i32
    %126 = tpu.dynamic_rotate %125 by %c10_i32_48 dim 1 : vector<144x128xf32>, i32 -> vector<144x128xf32>
    %c0_49 = arith.constant 0 : index
    %c0_50 = arith.constant 0 : index
    %127 = vector.load %arg2[%c0_49, %c0_50] : memref<21x128xf32, #tpu.memory_space<vmem>>, vector<1x128xf32>
    %128 = vector.broadcast %127 : vector<1x128xf32> to vector<144x128xf32>
    %129 = arith.mulf %126, %128 : vector<144x128xf32>
    %130 = arith.truncf %129 : vector<144x128xf32> to vector<144x128xbf16>
    %c0_51 = arith.constant 0 : index
    %c0_52 = arith.constant 0 : index
    %131 = vector.load %arg6[%c0_51, %c0_52] : memref<3024x128xbf16, #tpu.memory_space<vmem>>, vector<144x128xbf16>
    tpu.vector_store %arg6[%c0_51, %c0_52], %130 {strides = array<i32>} : memref<3024x128xbf16, #tpu.memory_space<vmem>>, vector<144x128xbf16>,
    %c9_i32_53 = arith.constant 9 : i32
    %132 = tpu.dynamic_rotate %125 by %c9_i32_53 dim 1 : vector<144x128xf32>, i32 -> vector<144x128xf32>
    %c1_54 = arith.constant 1 : index
    %c0_55 = arith.constant 0 : index
    %133 = vector.load %arg2[%c1_54, %c0_55] : memref<21x128xf32, #tpu.memory_space<vmem>>, vector<1x128xf32>
    %134 = vector.broadcast %133 : vector<1x128xf32> to vector<144x128xf32>
    %135 = arith.mulf %132, %134 : vector<144x128xf32>
    %136 = arith.truncf %135 : vector<144x128xf32> to vector<144x128xbf16>
    %c144 = arith.constant 144 : index
    %c0_56 = arith.constant 0 : index
    %137 = vector.load %arg6[%c144, %c0_56] : memref<3024x128xbf16, #tpu.memory_space<vmem>>, vector<144x128xbf16>
    tpu.vector_store %arg6[%c144, %c0_56], %136 {strides = array<i32>} : memref<3024x128xbf16, #tpu.memory_space<vmem>>, vector<144x128xbf16>,
    %c8_i32_57 = arith.constant 8 : i32
    %138 = tpu.dynamic_rotate %125 by %c8_i32_57 dim 1 : vector<144x128xf32>, i32 -> vector<144x128xf32>
    %c2_58 = arith.constant 2 : index
    %c0_59 = arith.constant 0 : index
    %139 = vector.load %arg2[%c2_58, %c0_59] : memref<21x128xf32, #tpu.memory_space<vmem>>, vector<1x128xf32>
    %140 = vector.broadcast %139 : vector<1x128xf32> to vector<144x128xf32>
    %141 = arith.mulf %138, %140 : vector<144x128xf32>
    %142 = arith.truncf %141 : vector<144x128xf32> to vector<144x128xbf16>
    %c288_60 = arith.constant 288 : index
    %c0_61 = arith.constant 0 : index
    %143 = vector.load %arg6[%c288_60, %c0_61] : memref<3024x128xbf16, #tpu.memory_space<vmem>>, vector<144x128xbf16>
    tpu.vector_store %arg6[%c288_60, %c0_61], %142 {strides = array<i32>} : memref<3024x128xbf16, #tpu.memory_space<vmem>>, vector<144x128xbf16>,
    %c7_i32_62 = arith.constant 7 : i32
    %144 = tpu.dynamic_rotate %125 by %c7_i32_62 dim 1 : vector<144x128xf32>, i32 -> vector<144x128xf32>
    %c3_63 = arith.constant 3 : index
    %c0_64 = arith.constant 0 : index
    %145 = vector.load %arg2[%c3_63, %c0_64] : memref<21x128xf32, #tpu.memory_space<vmem>>, vector<1x128xf32>
    %146 = vector.broadcast %145 : vector<1x128xf32> to vector<144x128xf32>
    %147 = arith.mulf %144, %146 : vector<144x128xf32>
    %148 = arith.truncf %147 : vector<144x128xf32> to vector<144x128xbf16>
    %c432 = arith.constant 432 : index
    %c0_65 = arith.constant 0 : index
    %149 = vector.load %arg6[%c432, %c0_65] : memref<3024x128xbf16, #tpu.memory_space<vmem>>, vector<144x128xbf16>
    tpu.vector_store %arg6[%c432, %c0_65], %148 {strides = array<i32>} : memref<3024x128xbf16, #tpu.memory_space<vmem>>, vector<144x128xbf16>,
    %c6_i32_66 = arith.constant 6 : i32
    %150 = tpu.dynamic_rotate %125 by %c6_i32_66 dim 1 : vector<144x128xf32>, i32 -> vector<144x128xf32>
    %c4_67 = arith.constant 4 : index
    %c0_68 = arith.constant 0 : index
    %151 = vector.load %arg2[%c4_67, %c0_68] : memref<21x128xf32, #tpu.memory_space<vmem>>, vector<1x128xf32>
    %152 = vector.broadcast %151 : vector<1x128xf32> to vector<144x128xf32>
    %153 = arith.mulf %150, %152 : vector<144x128xf32>
    %154 = arith.truncf %153 : vector<144x128xf32> to vector<144x128xbf16>
    %c576_69 = arith.constant 576 : index
    %c0_70 = arith.constant 0 : index
    %155 = vector.load %arg6[%c576_69, %c0_70] : memref<3024x128xbf16, #tpu.memory_space<vmem>>, vector<144x128xbf16>
    tpu.vector_store %arg6[%c576_69, %c0_70], %154 {strides = array<i32>} : memref<3024x128xbf16, #tpu.memory_space<vmem>>, vector<144x128xbf16>,
    %c5_i32_71 = arith.constant 5 : i32
    %156 = tpu.dynamic_rotate %125 by %c5_i32_71 dim 1 : vector<144x128xf32>, i32 -> vector<144x128xf32>
    %c5_72 = arith.constant 5 : index
    %c0_73 = arith.constant 0 : index
    %157 = vector.load %arg2[%c5_72, %c0_73] : memref<21x128xf32, #tpu.memory_space<vmem>>, vector<1x128xf32>
    %158 = vector.broadcast %157 : vector<1x128xf32> to vector<144x128xf32>
    %159 = arith.mulf %156, %158 : vector<144x128xf32>
    %160 = arith.truncf %159 : vector<144x128xf32> to vector<144x128xbf16>
    %c720 = arith.constant 720 : index
    %c0_74 = arith.constant 0 : index
    %161 = vector.load %arg6[%c720, %c0_74] : memref<3024x128xbf16, #tpu.memory_space<vmem>>, vector<144x128xbf16>
    tpu.vector_store %arg6[%c720, %c0_74], %160 {strides = array<i32>} : memref<3024x128xbf16, #tpu.memory_space<vmem>>, vector<144x128xbf16>,
    %c4_i32_75 = arith.constant 4 : i32
    %162 = tpu.dynamic_rotate %125 by %c4_i32_75 dim 1 : vector<144x128xf32>, i32 -> vector<144x128xf32>
    %c6_76 = arith.constant 6 : index
    %c0_77 = arith.constant 0 : index
    %163 = vector.load %arg2[%c6_76, %c0_77] : memref<21x128xf32, #tpu.memory_space<vmem>>, vector<1x128xf32>
    %164 = vector.broadcast %163 : vector<1x128xf32> to vector<144x128xf32>
    %165 = arith.mulf %162, %164 : vector<144x128xf32>
    %166 = arith.truncf %165 : vector<144x128xf32> to vector<144x128xbf16>
    %c864 = arith.constant 864 : index
    %c0_78 = arith.constant 0 : index
    %167 = vector.load %arg6[%c864, %c0_78] : memref<3024x128xbf16, #tpu.memory_space<vmem>>, vector<144x128xbf16>
    tpu.vector_store %arg6[%c864, %c0_78], %166 {strides = array<i32>} : memref<3024x128xbf16, #tpu.memory_space<vmem>>, vector<144x128xbf16>,
    %c3_i32_79 = arith.constant 3 : i32
    %168 = tpu.dynamic_rotate %125 by %c3_i32_79 dim 1 : vector<144x128xf32>, i32 -> vector<144x128xf32>
    %c7_80 = arith.constant 7 : index
    %c0_81 = arith.constant 0 : index
    %169 = vector.load %arg2[%c7_80, %c0_81] : memref<21x128xf32, #tpu.memory_space<vmem>>, vector<1x128xf32>
    %170 = vector.broadcast %169 : vector<1x128xf32> to vector<144x128xf32>
    %171 = arith.mulf %168, %170 : vector<144x128xf32>
    %172 = arith.truncf %171 : vector<144x128xf32> to vector<144x128xbf16>
    %c1008 = arith.constant 1008 : index
    %c0_82 = arith.constant 0 : index
    %173 = vector.load %arg6[%c1008, %c0_82] : memref<3024x128xbf16, #tpu.memory_space<vmem>>, vector<144x128xbf16>
    tpu.vector_store %arg6[%c1008, %c0_82], %172 {strides = array<i32>} : memref<3024x128xbf16, #tpu.memory_space<vmem>>, vector<144x128xbf16>,
    %c2_i32_83 = arith.constant 2 : i32
    %174 = tpu.dynamic_rotate %125 by %c2_i32_83 dim 1 : vector<144x128xf32>, i32 -> vector<144x128xf32>
    %c8_84 = arith.constant 8 : index
    %c0_85 = arith.constant 0 : index
    %175 = vector.load %arg2[%c8_84, %c0_85] : memref<21x128xf32, #tpu.memory_space<vmem>>, vector<1x128xf32>
    %176 = vector.broadcast %175 : vector<1x128xf32> to vector<144x128xf32>
    %177 = arith.mulf %174, %176 : vector<144x128xf32>
    %178 = arith.truncf %177 : vector<144x128xf32> to vector<144x128xbf16>
    %c1152 = arith.constant 1152 : index
    %c0_86 = arith.constant 0 : index
    %179 = vector.load %arg6[%c1152, %c0_86] : memref<3024x128xbf16, #tpu.memory_space<vmem>>, vector<144x128xbf16>
    tpu.vector_store %arg6[%c1152, %c0_86], %178 {strides = array<i32>} : memref<3024x128xbf16, #tpu.memory_space<vmem>>, vector<144x128xbf16>,
    %c1_i32_87 = arith.constant 1 : i32
    %180 = tpu.dynamic_rotate %125 by %c1_i32_87 dim 1 : vector<144x128xf32>, i32 -> vector<144x128xf32>
    %c9_88 = arith.constant 9 : index
    %c0_89 = arith.constant 0 : index
    %181 = vector.load %arg2[%c9_88, %c0_89] : memref<21x128xf32, #tpu.memory_space<vmem>>, vector<1x128xf32>
    %182 = vector.broadcast %181 : vector<1x128xf32> to vector<144x128xf32>
    %183 = arith.mulf %180, %182 : vector<144x128xf32>
    %184 = arith.truncf %183 : vector<144x128xf32> to vector<144x128xbf16>
    %c1296 = arith.constant 1296 : index
    %c0_90 = arith.constant 0 : index
    %185 = vector.load %arg6[%c1296, %c0_90] : memref<3024x128xbf16, #tpu.memory_space<vmem>>, vector<144x128xbf16>
    tpu.vector_store %arg6[%c1296, %c0_90], %184 {strides = array<i32>} : memref<3024x128xbf16, #tpu.memory_space<vmem>>, vector<144x128xbf16>,
    %186 = arith.truncf %125 : vector<144x128xf32> to vector<144x128xbf16>
    %c1440 = arith.constant 1440 : index
    %c0_91 = arith.constant 0 : index
    %187 = vector.load %arg6[%c1440, %c0_91] : memref<3024x128xbf16, #tpu.memory_space<vmem>>, vector<144x128xbf16>
    tpu.vector_store %arg6[%c1440, %c0_91], %186 {strides = array<i32>} : memref<3024x128xbf16, #tpu.memory_space<vmem>>, vector<144x128xbf16>,
    %c127_i32_92 = arith.constant 127 : i32
    %188 = tpu.dynamic_rotate %125 by %c127_i32_92 dim 1 : vector<144x128xf32>, i32 -> vector<144x128xf32>
    %c11_93 = arith.constant 11 : index
    %c0_94 = arith.constant 0 : index
    %189 = vector.load %arg2[%c11_93, %c0_94] : memref<21x128xf32, #tpu.memory_space<vmem>>, vector<1x128xf32>
    %190 = vector.broadcast %189 : vector<1x128xf32> to vector<144x128xf32>
    %191 = arith.mulf %188, %190 : vector<144x128xf32>
    %192 = arith.truncf %191 : vector<144x128xf32> to vector<144x128xbf16>
    %c1584 = arith.constant 1584 : index
    %c0_95 = arith.constant 0 : index
    %193 = vector.load %arg6[%c1584, %c0_95] : memref<3024x128xbf16, #tpu.memory_space<vmem>>, vector<144x128xbf16>
    tpu.vector_store %arg6[%c1584, %c0_95], %192 {strides = array<i32>} : memref<3024x128xbf16, #tpu.memory_space<vmem>>, vector<144x128xbf16>,
    %c126_i32_96 = arith.constant 126 : i32
    %194 = tpu.dynamic_rotate %125 by %c126_i32_96 dim 1 : vector<144x128xf32>, i32 -> vector<144x128xf32>
    %c12_97 = arith.constant 12 : index
    %c0_98 = arith.constant 0 : index
    %195 = vector.load %arg2[%c12_97, %c0_98] : memref<21x128xf32, #tpu.memory_space<vmem>>, vector<1x128xf32>
    %196 = vector.broadcast %195 : vector<1x128xf32> to vector<144x128xf32>
    %197 = arith.mulf %194, %196 : vector<144x128xf32>
    %198 = arith.truncf %197 : vector<144x128xf32> to vector<144x128xbf16>
    %c1728 = arith.constant 1728 : index
    %c0_99 = arith.constant 0 : index
    %199 = vector.load %arg6[%c1728, %c0_99] : memref<3024x128xbf16, #tpu.memory_space<vmem>>, vector<144x128xbf16>
    tpu.vector_store %arg6[%c1728, %c0_99], %198 {strides = array<i32>} : memref<3024x128xbf16, #tpu.memory_space<vmem>>, vector<144x128xbf16>,
    %c125_i32_100 = arith.constant 125 : i32
    %200 = tpu.dynamic_rotate %125 by %c125_i32_100 dim 1 : vector<144x128xf32>, i32 -> vector<144x128xf32>
    %c13_101 = arith.constant 13 : index
    %c0_102 = arith.constant 0 : index
    %201 = vector.load %arg2[%c13_101, %c0_102] : memref<21x128xf32, #tpu.memory_space<vmem>>, vector<1x128xf32>
    %202 = vector.broadcast %201 : vector<1x128xf32> to vector<144x128xf32>
    %203 = arith.mulf %200, %202 : vector<144x128xf32>
    %204 = arith.truncf %203 : vector<144x128xf32> to vector<144x128xbf16>
    %c1872 = arith.constant 1872 : index
    %c0_103 = arith.constant 0 : index
    %205 = vector.load %arg6[%c1872, %c0_103] : memref<3024x128xbf16, #tpu.memory_space<vmem>>, vector<144x128xbf16>
    tpu.vector_store %arg6[%c1872, %c0_103], %204 {strides = array<i32>} : memref<3024x128xbf16, #tpu.memory_space<vmem>>, vector<144x128xbf16>,
    %c124_i32_104 = arith.constant 124 : i32
    %206 = tpu.dynamic_rotate %125 by %c124_i32_104 dim 1 : vector<144x128xf32>, i32 -> vector<144x128xf32>
    %c14_105 = arith.constant 14 : index
    %c0_106 = arith.constant 0 : index
    %207 = vector.load %arg2[%c14_105, %c0_106] : memref<21x128xf32, #tpu.memory_space<vmem>>, vector<1x128xf32>
    %208 = vector.broadcast %207 : vector<1x128xf32> to vector<144x128xf32>
    %209 = arith.mulf %206, %208 : vector<144x128xf32>
    %210 = arith.truncf %209 : vector<144x128xf32> to vector<144x128xbf16>
    %c2016 = arith.constant 2016 : index
    %c0_107 = arith.constant 0 : index
    %211 = vector.load %arg6[%c2016, %c0_107] : memref<3024x128xbf16, #tpu.memory_space<vmem>>, vector<144x128xbf16>
    tpu.vector_store %arg6[%c2016, %c0_107], %210 {strides = array<i32>} : memref<3024x128xbf16, #tpu.memory_space<vmem>>, vector<144x128xbf16>,
    %c123_i32_108 = arith.constant 123 : i32
    %212 = tpu.dynamic_rotate %125 by %c123_i32_108 dim 1 : vector<144x128xf32>, i32 -> vector<144x128xf32>
    %c15_109 = arith.constant 15 : index
    %c0_110 = arith.constant 0 : index
    %213 = vector.load %arg2[%c15_109, %c0_110] : memref<21x128xf32, #tpu.memory_space<vmem>>, vector<1x128xf32>
    %214 = vector.broadcast %213 : vector<1x128xf32> to vector<144x128xf32>
    %215 = arith.mulf %212, %214 : vector<144x128xf32>
    %216 = arith.truncf %215 : vector<144x128xf32> to vector<144x128xbf16>
    %c2160 = arith.constant 2160 : index
    %c0_111 = arith.constant 0 : index
    %217 = vector.load %arg6[%c2160, %c0_111] : memref<3024x128xbf16, #tpu.memory_space<vmem>>, vector<144x128xbf16>
    tpu.vector_store %arg6[%c2160, %c0_111], %216 {strides = array<i32>} : memref<3024x128xbf16, #tpu.memory_space<vmem>>, vector<144x128xbf16>,
    %c122_i32_112 = arith.constant 122 : i32
    %218 = tpu.dynamic_rotate %125 by %c122_i32_112 dim 1 : vector<144x128xf32>, i32 -> vector<144x128xf32>
    %c16_113 = arith.constant 16 : index
    %c0_114 = arith.constant 0 : index
    %219 = vector.load %arg2[%c16_113, %c0_114] : memref<21x128xf32, #tpu.memory_space<vmem>>, vector<1x128xf32>
    %220 = vector.broadcast %219 : vector<1x128xf32> to vector<144x128xf32>
    %221 = arith.mulf %218, %220 : vector<144x128xf32>
    %222 = arith.truncf %221 : vector<144x128xf32> to vector<144x128xbf16>
    %c2304 = arith.constant 2304 : index
    %c0_115 = arith.constant 0 : index
    %223 = vector.load %arg6[%c2304, %c0_115] : memref<3024x128xbf16, #tpu.memory_space<vmem>>, vector<144x128xbf16>
    tpu.vector_store %arg6[%c2304, %c0_115], %222 {strides = array<i32>} : memref<3024x128xbf16, #tpu.memory_space<vmem>>, vector<144x128xbf16>,
    %c121_i32_116 = arith.constant 121 : i32
    %224 = tpu.dynamic_rotate %125 by %c121_i32_116 dim 1 : vector<144x128xf32>, i32 -> vector<144x128xf32>
    %c17_117 = arith.constant 17 : index
    %c0_118 = arith.constant 0 : index
    %225 = vector.load %arg2[%c17_117, %c0_118] : memref<21x128xf32, #tpu.memory_space<vmem>>, vector<1x128xf32>
    %226 = vector.broadcast %225 : vector<1x128xf32> to vector<144x128xf32>
    %227 = arith.mulf %224, %226 : vector<144x128xf32>
    %228 = arith.truncf %227 : vector<144x128xf32> to vector<144x128xbf16>
    %c2448 = arith.constant 2448 : index
    %c0_119 = arith.constant 0 : index
    %229 = vector.load %arg6[%c2448, %c0_119] : memref<3024x128xbf16, #tpu.memory_space<vmem>>, vector<144x128xbf16>
    tpu.vector_store %arg6[%c2448, %c0_119], %228 {strides = array<i32>} : memref<3024x128xbf16, #tpu.memory_space<vmem>>, vector<144x128xbf16>,
    %c120_i32_120 = arith.constant 120 : i32
    %230 = tpu.dynamic_rotate %125 by %c120_i32_120 dim 1 : vector<144x128xf32>, i32 -> vector<144x128xf32>
    %c18_121 = arith.constant 18 : index
    %c0_122 = arith.constant 0 : index
    %231 = vector.load %arg2[%c18_121, %c0_122] : memref<21x128xf32, #tpu.memory_space<vmem>>, vector<1x128xf32>
    %232 = vector.broadcast %231 : vector<1x128xf32> to vector<144x128xf32>
    %233 = arith.mulf %230, %232 : vector<144x128xf32>
    %234 = arith.truncf %233 : vector<144x128xf32> to vector<144x128xbf16>
    %c2592 = arith.constant 2592 : index
    %c0_123 = arith.constant 0 : index
    %235 = vector.load %arg6[%c2592, %c0_123] : memref<3024x128xbf16, #tpu.memory_space<vmem>>, vector<144x128xbf16>
    tpu.vector_store %arg6[%c2592, %c0_123], %234 {strides = array<i32>} : memref<3024x128xbf16, #tpu.memory_space<vmem>>, vector<144x128xbf16>,
    %c119_i32_124 = arith.constant 119 : i32
    %236 = tpu.dynamic_rotate %125 by %c119_i32_124 dim 1 : vector<144x128xf32>, i32 -> vector<144x128xf32>
    %c19_125 = arith.constant 19 : index
    %c0_126 = arith.constant 0 : index
    %237 = vector.load %arg2[%c19_125, %c0_126] : memref<21x128xf32, #tpu.memory_space<vmem>>, vector<1x128xf32>
    %238 = vector.broadcast %237 : vector<1x128xf32> to vector<144x128xf32>
    %239 = arith.mulf %236, %238 : vector<144x128xf32>
    %240 = arith.truncf %239 : vector<144x128xf32> to vector<144x128xbf16>
    %c2736 = arith.constant 2736 : index
    %c0_127 = arith.constant 0 : index
    %241 = vector.load %arg6[%c2736, %c0_127] : memref<3024x128xbf16, #tpu.memory_space<vmem>>, vector<144x128xbf16>
    tpu.vector_store %arg6[%c2736, %c0_127], %240 {strides = array<i32>} : memref<3024x128xbf16, #tpu.memory_space<vmem>>, vector<144x128xbf16>,
    %c118_i32_128 = arith.constant 118 : i32
    %242 = tpu.dynamic_rotate %125 by %c118_i32_128 dim 1 : vector<144x128xf32>, i32 -> vector<144x128xf32>
    %c20_129 = arith.constant 20 : index
    %c0_130 = arith.constant 0 : index
    %243 = vector.load %arg2[%c20_129, %c0_130] : memref<21x128xf32, #tpu.memory_space<vmem>>, vector<1x128xf32>
    %244 = vector.broadcast %243 : vector<1x128xf32> to vector<144x128xf32>
    %245 = arith.mulf %242, %244 : vector<144x128xf32>
    %246 = arith.truncf %245 : vector<144x128xf32> to vector<144x128xbf16>
    %c2880 = arith.constant 2880 : index
    %c0_131 = arith.constant 0 : index
    %247 = vector.load %arg6[%c2880, %c0_131] : memref<3024x128xbf16, #tpu.memory_space<vmem>>, vector<144x128xbf16>
    tpu.vector_store %arg6[%c2880, %c0_131], %246 {strides = array<i32>} : memref<3024x128xbf16, #tpu.memory_space<vmem>>, vector<144x128xbf16>,
    %c0_132 = arith.constant 0 : index
    %c0_133 = arith.constant 0 : index
    %248 = vector.load %arg4[%c0_132, %c0_133] : memref<132x3024xbf16, #tpu.memory_space<vmem>>, vector<132x3024xbf16>
    %c0_134 = arith.constant 0 : index
    %c0_135 = arith.constant 0 : index
    %249 = vector.load %arg6[%c0_134, %c0_135] : memref<3024x128xbf16, #tpu.memory_space<vmem>>, vector<3024x128xbf16>
    %cst_136 = arith.constant dense<0.000000e+00> : vector<132x128xf32>
    %250 = tpu.matmul %248, %249, %cst_136 {dimension_numbers = #tpu.dot_dimension_numbers<[1], [0], [0], [1], [0, 0, 1, 1], [], []>} : vector<132x3024xbf16>, vector<3024x128xbf16>, vector<132x128xf32> -> vector<132x128xf32>
    %cst_137 = arith.constant dense<0.000000e+00> : vector<132xf32>
    %251 = vector.multi_reduction <add>, %250, %cst_137 [1] : vector<132x128xf32> to vector<132xf32>
    %252 = vector.shape_cast %251 : vector<132xf32> to vector<132x1xf32>
    %cst_138 = arith.constant 1.280000e+02 : f32
    %253 = vector.broadcast %cst_138 : f32 to vector<132x1xf32>
    %254 = arith.divf %252, %253 : vector<132x1xf32>
    %255 = vector.broadcast %254 : vector<132x1xf32> to vector<132x128xf32>
    %256 = arith.subf %250, %255 : vector<132x128xf32>
    %257 = arith.mulf %256, %256 : vector<132x128xf32>
    %cst_139 = arith.constant dense<0.000000e+00> : vector<132xf32>
    %258 = vector.multi_reduction <add>, %257, %cst_139 [1] : vector<132x128xf32> to vector<132xf32>
    %259 = vector.shape_cast %258 : vector<132xf32> to vector<132x1xf32>
    %cst_140 = arith.constant 1.280000e+02 : f32
    %260 = vector.broadcast %cst_140 : f32 to vector<132x1xf32>
    %261 = arith.divf %259, %260 : vector<132x1xf32>
    %cst_141 = arith.constant 9.99999974E-6 : f32
    %262 = vector.broadcast %cst_141 : f32 to vector<132x1xf32>
    %263 = arith.addf %261, %262 : vector<132x1xf32>
    %264 = math.rsqrt %263 : vector<132x1xf32>
    %265 = vector.broadcast %264 : vector<132x1xf32> to vector<132x128xf32>
    %266 = arith.mulf %256, %265 : vector<132x128xf32>
    %cst_142 = arith.constant 0.000000e+00 : f32
    %267 = vector.broadcast %cst_142 : f32 to vector<132x128xf32>
    %268 = arith.minimumf %266, %267 : vector<132x128xf32>
    %269 = math.exp %268 : vector<132x128xf32>
    %cst_143 = arith.constant 1.000000e+00 : f32
    %270 = vector.broadcast %cst_143 : f32 to vector<132x128xf32>
    %271 = arith.subf %269, %270 : vector<132x128xf32>
    %cst_144 = arith.constant 1.67326319 : f32
    %272 = vector.broadcast %cst_144 : f32 to vector<132x128xf32>
    %273 = arith.mulf %272, %271 : vector<132x128xf32>
    %cst_145 = arith.constant 0.000000e+00 : f32
    %274 = vector.broadcast %cst_145 : f32 to vector<132x128xf32>
    %275 = arith.cmpf ogt, %266, %274 : vector<132x128xf32>
    %276 = arith.select %275, %266, %273 : vector<132x128xi1>, vector<132x128xf32>
    %cst_146 = arith.constant 1.05070102 : f32
    %277 = vector.broadcast %cst_146 : f32 to vector<132x128xf32>
    %278 = arith.mulf %277, %276 : vector<132x128xf32>
    %c0_147 = arith.constant 0 : index
    %c0_148 = arith.constant 0 : index
    %279 = vector.load %arg5[%c0_147, %c0_148] : memref<132x128xf32, #tpu.memory_space<vmem>>, vector<132x128xf32>
    tpu.vector_store %arg5[%c0_147, %c0_148], %278 {strides = array<i32>} : memref<132x128xf32, #tpu.memory_space<vmem>>, vector<132x128xf32>,
    return
  }
  func.func @transform_0(%arg0: i32) -> (i32, i32) {
    %c0_i32 = arith.constant 0 : i32
    %c0_i32_0 = arith.constant 0 : i32
    %c0_i32_1 = arith.constant 0 : i32
    return %c0_i32, %c0_i32_0 : i32, i32
  }
  func.func @transform_1(%arg0: i32) -> (i32, i32) {
    %c0_i32 = arith.constant 0 : i32
    %c0_i32_0 = arith.constant 0 : i32
    %c0_i32_1 = arith.constant 0 : i32
    return %c0_i32, %c0_i32_0 : i32, i32
  }
  func.func @transform_2(%arg0: i32) -> (i32, i32) {
    %c0_i32 = arith.constant 0 : i32
    %c0_i32_0 = arith.constant 0 : i32
    %c0_i32_1 = arith.constant 0 : i32
    return %c0_i32, %c0_i32_0 : i32, i32
  }
  func.func @transform_3(%arg0: i32) -> (i32, i32) {
    %c0_i32 = arith.constant 0 : i32
    %c0_i32_0 = arith.constant 0 : i32
    %c0_i32_1 = arith.constant 0 : i32
    return %c0_i32, %c0_i32_0 : i32, i32
  }
  func.func @transform_4(%arg0: i32) -> (i32, i32) {
    %c0_i32 = arith.constant 0 : i32
    %c0_i32_0 = arith.constant 0 : i32
    %c0_i32_1 = arith.constant 0 : i32
    return %c0_i32, %c0_i32_0 : i32, i32
  }
}

</mosaic_0001>

<bundles_post_ra>
// kernel: i2cmse_forward.1
= control target key start
LH: loop header
LB: loop body
LE: loop exit
PB: predicated region body
PF: predicated region fallthrough
CT: control target
= control target key end

     0   :  { %9 = vsyncpa [#allocation4], 0  ;;  %s16205_s0 = inlined_call_operand.vmem [shape: f32[32,128], index: 0, kind: input, shape index: {}]   ;;  %s16206_s1 = inlined_call_operand.vmem [shape: f32[21,128], index: 1, kind: input, shape index: {}]   ;;  %s16207_s2 = inlined_call_operand.hbm [shape: bf16[144,672], index: 2, kind: input, shape index: {}]   ;;  %s16208_s3 = inlined_call_operand.hbm [shape: bf16[132,3024], index: 3, kind: input, shape index: {}]   ;;  %s16209_s4 = inlined_call_operand.vmem [shape: f32[132,128], index: 4, kind: output, shape index: {}]  }
   0x1   :  { %10 = vsyncpa [#allocation6], 0  ;;  %s13554_s15 = smov [#allocation3]  }
   0x2   :  { %s20_s16 = sshll.u32 %s13554_s15, 4  ;;  %s21_s16 = int_to_ptr.vmem [resolvable:$true] %s20_s16 }
   0x3   :  { %s13518_s17 = scalar_lea.vmem %s21_s16, 6912  ;;  %p13523_p1 = scmp.lt.s32.totalorder %s21_s16, %s21_s16 }
   0x4   :  { %p13519_p0 = scmp.ne.s32.totalorder %s21_s16, %s13518_s17  ;;  %p13524_p2 = scmp.lt.s32.totalorder %s13518_s17, %s13518_s17 }
   0x6   :  { %p13525_p3 = por %p13524_p2, %p13523_p1 }
   0x8   :  { %p13526_p4 = pnand %p13525_p3, %p13519_p0 }
   0xa   :  { %13529 = shalt.err (!%p13526_p4)
}
   0xb   :  { %s13555_s18 = smov 384   ;;  %s13556_s19 = smov 24  }
   0xc   :  { %26 = dma.hbm_to_vmem [thread:$0]  %s16207_s2, 6912, %s21_s16, [#allocation4], %s13555_s18, %s13555_s18, %s13556_s19  }
   0xd   :  { %s13557_s22 = smov [#allocation5]  }
   0xe   :  { %s32_s23 = sshll.u32 %s13557_s22, 4  ;;  %s33_s23 = int_to_ptr.vmem [resolvable:$true] %s32_s23 }
   0xf   :  { %s13538_s24 = scalar_lea.vmem %s33_s23, 26112  ;;  %p13543_p6 = scmp.lt.s32.totalorder %s33_s23, %s33_s23 }
  0x10   :  { %p13539_p5 = scmp.ne.s32.totalorder %s33_s23, %s13538_s24  ;;  %p13544_p7 = scmp.lt.s32.totalorder %s13538_s24, %s13538_s24 }
  0x12   :  { %p13545_p8 = por %p13544_p7, %p13543_p6 }
  0x14   :  { %p13546_p9 = pnand %p13545_p8, %p13539_p5 }
  0x16   :  { %13549 = shalt.err (!%p13546_p9)
}
  0x17   :  { %s13558_s25 = smov 1536   ;;  %s13559_s26 = smov 96  }
  0x18   :  { %38 = dma.hbm_to_vmem [thread:$0]  %s16208_s3, 26112, %s33_s23, [#allocation6], %s13558_s25, %s13558_s25, %s13559_s26  }
  0x19   :  { %13550 = dma.done.wait [#allocation4], 6912  }
  0x1a   :  { %13551 = vsyncadd [#allocation4], 4294960384 }
  0x1b   :  { %13552 = dma.done.wait [#allocation6], 26112  }
  0x1c   :  { %13553 = vsyncadd [#allocation6], 4294941184  ;;  %v13615_v0 = vld [vmem:[%s16205_s0 + $0x10] sm:$0xff]  ;;  %s13560_s30 = smov 7   ;;  %s13561_s5 = smov 3   ;;  %v13624_v1 = vld [vmem:[%s16205_s0 + $0x18] sm:$0xff] }
  0x1d   :  { %165 = vrot.lane.b32.xlu1 %v13615_v0, %s13560_s30  ;;  %313 = vrot.lane.b32.xlu0 %v13615_v0, %s13561_s5  ;;  %v13629_v2 = vld [vmem:[%s16205_s0 + $0x8] sm:$0xff]  ;;  %v13634_v3 = vld [vmem:[%s16205_s0] sm:$0xff]  ;;  %s13562_s0 = smov 4   ;;  %s13563_s11 = smov 8   ;;  %v13111_v5 = vld [vmem:[#allocation3 + $0xf4] ss:$24 sps:$4 sm:$0xff]   ;;  %v10859_v6 = vpack.c.bf16 %v13624_v1, %v13615_v0 }
  0x1e   :  { %s13564_s12 = smov 5   ;;  %s13565_s13 = smov 9   ;;  %v13106_v4 = vld [vmem:[#allocation3 + $0x4] ss:$24 sps:$4 sm:$0xff]   ;;  %1561 = vmatprep.mubr.bf16.mxu1 %v13111_v5  ;;  %v10854_v7 = vpack.c.bf16 %v13629_v2, %v13634_v3  ;;  %v9266_v10 = vld [vmem:[%s16206_s1 + $0x3] ss:$0 sm:$0xff] }
  0x1f   :  { %s13566_s14 = smov 6   ;;  %s13567_s15 = smov 10   ;;  %1521 = vmatprep.mubr.bf16.mxu0 %v13106_v4  ;;  %11926 = vst [vmem:[#allocation2 + $0xa8] sm:$0xff] %v10859_v6   ;;  %v9286_v11 = vld [vmem:[%s16206_s1 + $0x7] ss:$0 sm:$0xff]  ;;  %vm1461_vm0 = vcmask 261120  }
  0x20   :  { %s13568_s16 = smov 119   ;;  %s13569_s17 = smov 123   ;;  %11925 = vst [vmem:[#allocation2 + $0xa0] sm:$0xff] %v10854_v7   ;;  %v9281_v29 = vld [vmem:[%s16206_s1 + $0x6] ss:$0 sm:$0xff]  ;;  %vm7625_vm1 = vcmask 654336  }
  0x21   :  { %167 = vrot.lane.b32.xlu1 %v13624_v1, %s13560_s30  ;;  %315 = vrot.lane.b32.xlu0 %v13624_v1, %s13561_s5  ;;  %s13570_s18 = smov 127   ;;  %s13571_s19 = smov 120   ;;  %v9261_v37 = vld [vmem:[%s16206_s1 + $0x2] ss:$0 sm:$0xff]  ;;  %v9276_v56 = vld [vmem:[%s16206_s1 + $0x5] ss:$0 sm:$0xff] }
  0x22   :  { %s13572_s20 = smov 124   ;;  %s13573_s21 = smov 121   ;;  %v9256_v63 = vld [vmem:[%s16206_s1 + $0x1] ss:$0 sm:$0xff]  ;;  %vm8933_vm2 = vcmask 1043456  }
  0x23   :  { %s13574_s22 = smov 125   ;;  %s13575_s23 = smov 1  }
  0x24   :  { %s13576_s28 = smov 122   ;;  %s13577_s6 = smov 126  }
  0x25   :  { %311 = vrot.lane.b32.xlu1 %v13629_v2, %s13561_s5  ;;  %309 = vrot.lane.b32.xlu0 %v13634_v3, %s13561_s5  ;;  %s13578_s8 = smov 2   ;;  %s13579_s26 = smov 118  }
  0x29   :  { %163 = vrot.lane.b32.xlu1 %v13629_v2, %s13560_s30  ;;  %161 = vrot.lane.b32.xlu0 %v13634_v3, %s13560_s30 }
  0x2d   :  { %278 = vrot.lane.b32.xlu1 %v13624_v1, %s13562_s0  ;;  %276 = vrot.lane.b32.xlu0 %v13615_v0, %s13562_s0 }
  0x31   :  { %130 = vrot.lane.b32.xlu1 %v13624_v1, %s13563_s11  ;;  %128 = vrot.lane.b32.xlu0 %v13615_v0, %s13563_s11 }
  0x35   :  { %274 = vrot.lane.b32.xlu1 %v13629_v2, %s13562_s0  ;;  %272 = vrot.lane.b32.xlu0 %v13634_v3, %s13562_s0 }
  0x39   :  { %126 = vrot.lane.b32.xlu1 %v13629_v2, %s13563_s11  ;;  %124 = vrot.lane.b32.xlu0 %v13634_v3, %s13563_s11 }
  0x3d   :  { %241 = vrot.lane.b32.xlu1 %v13624_v1, %s13564_s12  ;;  %239 = vrot.lane.b32.xlu0 %v13615_v0, %s13564_s12 }
  0x41   :  { %93 = vrot.lane.b32.xlu1 %v13624_v1, %s13565_s13  ;;  %91 = vrot.lane.b32.xlu0 %v13615_v0, %s13565_s13 }
  0x45   :  { %237 = vrot.lane.b32.xlu1 %v13629_v2, %s13564_s12  ;;  %235 = vrot.lane.b32.xlu0 %v13634_v3, %s13564_s12 }
  0x49   :  { %89 = vrot.lane.b32.xlu1 %v13629_v2, %s13565_s13  ;;  %87 = vrot.lane.b32.xlu0 %v13634_v3, %s13565_s13 }
  0x4d   :  { %204 = vrot.lane.b32.xlu1 %v13624_v1, %s13566_s14  ;;  %202 = vrot.lane.b32.xlu0 %v13615_v0, %s13566_s14 }
  0x51   :  { %56 = vrot.lane.b32.xlu1 %v13624_v1, %s13567_s15  ;;  %54 = vrot.lane.b32.xlu0 %v13615_v0, %s13567_s15 }
  0x55   :  { %200 = vrot.lane.b32.xlu1 %v13629_v2, %s13566_s14  ;;  %198 = vrot.lane.b32.xlu0 %v13634_v3, %s13566_s14 }
  0x59   :  { %52 = vrot.lane.b32.xlu1 %v13629_v2, %s13567_s15  ;;  %50 = vrot.lane.b32.xlu0 %v13634_v3, %s13567_s15 }
  0x5d   :  { %742 = vrot.lane.b32.xlu1 %v13624_v1, %s13568_s16  ;;  %740 = vrot.lane.b32.xlu0 %v13615_v0, %s13568_s16 }
  0x61   :  { %594 = vrot.lane.b32.xlu1 %v13624_v1, %s13569_s17  ;;  %592 = vrot.lane.b32.xlu0 %v13615_v0, %s13569_s17 }
  0x65   :  { %446 = vrot.lane.b32.xlu1 %v13624_v1, %s13570_s18  ;;  %444 = vrot.lane.b32.xlu0 %v13615_v0, %s13570_s18 }
  0x69   :  { %738 = vrot.lane.b32.xlu1 %v13629_v2, %s13568_s16  ;;  %736 = vrot.lane.b32.xlu0 %v13634_v3, %s13568_s16 }
  0x6d   :  { %590 = vrot.lane.b32.xlu1 %v13629_v2, %s13569_s17  ;;  %588 = vrot.lane.b32.xlu0 %v13634_v3, %s13569_s17 }
  0x71   :  { %442 = vrot.lane.b32.xlu1 %v13629_v2, %s13570_s18  ;;  %440 = vrot.lane.b32.xlu0 %v13634_v3, %s13570_s18 }
  0x75   :  { %705 = vrot.lane.b32.xlu1 %v13624_v1, %s13571_s19  ;;  %703 = vrot.lane.b32.xlu0 %v13615_v0, %s13571_s19 }
  0x79   :  { %557 = vrot.lane.b32.xlu1 %v13624_v1, %s13572_s20  ;;  %555 = vrot.lane.b32.xlu0 %v13615_v0, %s13572_s20 }
  0x7d   :  { %701 = vrot.lane.b32.xlu1 %v13629_v2, %s13571_s19  ;;  %699 = vrot.lane.b32.xlu0 %v13634_v3, %s13571_s19 }
  0x81   :  { %553 = vrot.lane.b32.xlu1 %v13629_v2, %s13572_s20  ;;  %551 = vrot.lane.b32.xlu0 %v13634_v3, %s13572_s20 }
  0x85   :  { %668 = vrot.lane.b32.xlu1 %v13624_v1, %s13573_s21  ;;  %666 = vrot.lane.b32.xlu0 %v13615_v0, %s13573_s21 }
  0x89   :  { %520 = vrot.lane.b32.xlu1 %v13624_v1, %s13574_s22  ;;  %518 = vrot.lane.b32.xlu0 %v13615_v0, %s13574_s22 }
  0x8d   :  { %389 = vrot.lane.b32.xlu1 %v13624_v1, %s13575_s23  ;;  %387 = vrot.lane.b32.xlu0 %v13615_v0, %s13575_s23 }
  0x8f   :  { %v166_v8 = vpop.permute.xlu1 %165  ;;  %v314_v9 = vpop.permute.xlu0 %313 }
  0x90   :  { %v176_v14 = vmul.f32 %v9266_v10, %v166_v8  ;;  %v324_v15 = vmul.f32 %v9286_v11, %v314_v9 }
  0x91   :  { %664 = vrot.lane.b32.xlu1 %v13629_v2, %s13573_s21  ;;  %662 = vrot.lane.b32.xlu0 %v13634_v3, %s13573_s21 }
  0x93   :  { %v168_v12 = vpop.permute.xlu1 %167  ;;  %v316_v13 = vpop.permute.xlu0 %315 }
  0x94   :  { %v177_v16 = vmul.f32 %v9266_v10, %v168_v12  ;;  %v325_v17 = vmul.f32 %v9286_v11, %v316_v13 }
  0x95   :  { %516 = vrot.lane.b32.xlu1 %v13629_v2, %s13574_s22  ;;  %514 = vrot.lane.b32.xlu0 %v13634_v3, %s13574_s22 }
  0x96   :  { %v10789_v18 = vpack.c.bf16 %v177_v16, %v176_v14  ;;  %v10829_v19 = vpack.c.bf16 %v325_v17, %v324_v15 }
  0x97   :  { %v312_v20 = vpop.permute.xlu1 %311  ;;  %v310_v21 = vpop.permute.xlu0 %309 }
  0x98   :  { %11912 = vst [vmem:[#allocation2 + $0x38] sm:$0xff] %v10789_v18   ;;  %11920 = vst [vmem:[#allocation2 + $0x78] sm:$0xff] %v10829_v19   ;;  %v323_v22 = vmul.f32 %v9286_v11, %v312_v20  ;;  %v322_v23 = vmul.f32 %v9286_v11, %v310_v21  ;;  %v9271_v20 = vld [vmem:[%s16206_s1 + $0x4] ss:$0 sm:$0xff] }
  0x99   :  { %385 = vrot.lane.b32.xlu1 %v13629_v2, %s13575_s23  ;;  %383 = vrot.lane.b32.xlu0 %v13634_v3, %s13575_s23 }
  0x9a   :  { %v10824_v24 = vpack.c.bf16 %v323_v22, %v322_v23 }
  0x9b   :  { %v164_v25 = vpop.permute.xlu1 %163  ;;  %v162_v26 = vpop.permute.xlu0 %161 }
  0x9c   :  { %11919 = vst [vmem:[#allocation2 + $0x70] sm:$0xff] %v10824_v24   ;;  %v175_v27 = vmul.f32 %v9266_v10, %v164_v25  ;;  %v174_v28 = vmul.f32 %v9266_v10, %v162_v26  ;;  %v9251_v25 = vld [vmem:[%s16206_s1] ss:$0 sm:$0xff] }
  0x9d   :  { %631 = vrot.lane.b32.xlu1 %v13624_v1, %s13576_s28  ;;  %629 = vrot.lane.b32.xlu0 %v13615_v0, %s13576_s28 }
  0x9e   :  { %v10784_v30 = vpack.c.bf16 %v175_v27, %v174_v28 }
  0x9f   :  { %v279_v31 = vpop.permute.xlu1 %278  ;;  %v277_v32 = vpop.permute.xlu0 %276  ;;  %v13088_v33 = vld [vmem:[#allocation2 + $0x78] sm:$0xff]  }
  0xa0   :  { %11911 = vst [vmem:[#allocation2 + $0x30] sm:$0xff] %v10784_v30   ;;  %v288_v34 = vmul.f32 %v9281_v29, %v279_v31  ;;  %v287_v35 = vmul.f32 %v9281_v29, %v277_v32  ;;  %v13089_v36 = vld [vmem:[#allocation2 + $0x38] sm:$0xff]   ;;  %12135 = vmatprep.subr.bf16.mxu0 %v13088_v33  ;;  %13045 = vmatprep.subr.bf16.mxu1 %v13088_v33 }
  0xa1   :  { %483 = vrot.lane.b32.xlu1 %v13624_v1, %s13577_s6  ;;  %481 = vrot.lane.b32.xlu0 %v13615_v0, %s13577_s6 }
  0xa2   :  { %v10819_v38 = vpack.c.bf16 %v288_v34, %v287_v35  ;;  %12136 = vmatpush3.bf16.msra.mxu0 %v13089_v36  ;;  %13053 = vmatpush3.bf16.msra.mxu1 %v13089_v36 }
  0xa3   :  { %v131_v39 = vpop.permute.xlu1 %130  ;;  %v129_v40 = vpop.permute.xlu0 %128  ;;  %v13090_v41 = vld [vmem:[#allocation2 + $0x70] sm:$0xff]  }
  0xa4   :  { %11918 = vst [vmem:[#allocation2 + $0x68] sm:$0xff] %v10819_v38   ;;  %v140_v42 = vmul.f32 %v9261_v37, %v131_v39  ;;  %v139_v43 = vmul.f32 %v9261_v37, %v129_v40  ;;  %12137 = vmatprep.subr.bf16.mxu0 %v13090_v41  ;;  %13046 = vmatprep.subr.bf16.mxu1 %v13090_v41 }
  0xa5   :  { %352 = vrot.lane.b32.xlu1 %v13624_v1, %s13578_s8  ;;  %350 = vrot.lane.b32.xlu0 %v13615_v0, %s13578_s8 }
  0xa6   :  { %v10779_v44 = vpack.c.bf16 %v140_v42, %v139_v43 }
  0xa7   :  { %v275_v45 = vpop.permute.xlu1 %274  ;;  %v273_v46 = vpop.permute.xlu0 %272  ;;  %v13091_v47 = vld [vmem:[#allocation2 + $0x30] sm:$0xff]  }
  0xa8   :  { %11910 = vst [vmem:[#allocation2 + $0x28] sm:$0xff] %v10779_v44   ;;  %v286_v48 = vmul.f32 %v9281_v29, %v275_v45  ;;  %v285_v49 = vmul.f32 %v9281_v29, %v273_v46  ;;  %12138 = vmatpush3.bf16.msra.mxu0 %v13091_v47  ;;  %13054 = vmatpush3.bf16.msra.mxu1 %v13091_v47  ;;  %v9345_v44 = vld [vmem:[%s16206_s1 + $0x13] ss:$0 sm:$0xff] }
  0xa9   :  { %627 = vrot.lane.b32.xlu1 %v13629_v2, %s13576_s28  ;;  %625 = vrot.lane.b32.xlu0 %v13634_v3, %s13576_s28 }
  0xaa   :  { %v10814_v50 = vpack.c.bf16 %v286_v48, %v285_v49 }
  0xab   :  { %v127_v51 = vpop.permute.xlu1 %126  ;;  %v125_v52 = vpop.permute.xlu0 %124  ;;  %v13092_v53 = vld [vmem:[#allocation2 + $0x68] sm:$0xff]  }
  0xac   :  { %11917 = vst [vmem:[#allocation2 + $0x60] sm:$0xff] %v10814_v50   ;;  %v138_v54 = vmul.f32 %v9261_v37, %v127_v51  ;;  %v137_v55 = vmul.f32 %v9261_v37, %v125_v52  ;;  %12139 = vmatprep.subr.bf16.mxu0 %v13092_v53  ;;  %13047 = vmatprep.subr.bf16.mxu1 %v13092_v53  ;;  %v9325_v51 = vld [vmem:[%s16206_s1 + $0xf] ss:$0 sm:$0xff] }
  0xad   :  { %479 = vrot.lane.b32.xlu1 %v13629_v2, %s13577_s6  ;;  %477 = vrot.lane.b32.xlu0 %v13634_v3, %s13577_s6 }
  0xae   :  { %v10774_v57 = vpack.c.bf16 %v138_v54, %v137_v55 }
  0xaf   :  { %v242_v58 = vpop.permute.xlu1 %241  ;;  %v240_v59 = vpop.permute.xlu0 %239  ;;  %v13093_v60 = vld [vmem:[#allocation2 + $0x28] sm:$0xff]  }
  0xb0   :  { %11909 = vst [vmem:[#allocation2 + $0x20] sm:$0xff] %v10774_v57   ;;  %v251_v61 = vmul.f32 %v9276_v56, %v242_v58  ;;  %v250_v62 = vmul.f32 %v9276_v56, %v240_v59  ;;  %12140 = vmatpush3.bf16.msra.mxu0 %v13093_v60  ;;  %13055 = vmatpush3.bf16.msra.mxu1 %v13093_v60  ;;  %v9305_v58 = vld [vmem:[%s16206_s1 + $0xb] ss:$0 sm:$0xff] }
  0xb1   :  { %348 = vrot.lane.b32.xlu1 %v13629_v2, %s13578_s8  ;;  %346 = vrot.lane.b32.xlu0 %v13634_v3, %s13578_s8 }
  0xb2   :  { %v10809_v4 = vpack.c.bf16 %v251_v61, %v250_v62 }
  0xb3   :  { %v94_v5 = vpop.permute.xlu1 %93  ;;  %v92_v6 = vpop.permute.xlu0 %91  ;;  %v13094_v7 = vld [vmem:[#allocation2 + $0x60] sm:$0xff]  }
  0xb4   :  { %11916 = vst [vmem:[#allocation2 + $0x58] sm:$0xff] %v10809_v4   ;;  %v103_v8 = vmul.f32 %v9256_v63, %v94_v5  ;;  %v102_v9 = vmul.f32 %v9256_v63, %v92_v6  ;;  %12141 = vmatprep.subr.bf16.mxu0 %v13094_v7  ;;  %13048 = vmatprep.subr.bf16.mxu1 %v13094_v7  ;;  %v13104_v5 = vld [vmem:[#allocation3] ss:$24 sps:$4 sm:$0xff]   ;;  %v13109_v6 = vld [vmem:[#allocation3 + $0xf0] ss:$24 sps:$4 sm:$0xff]  }
  0xb5   :  { %779 = vrot.lane.b32.xlu1 %v13624_v1, %s13579_s26  ;;  %777 = vrot.lane.b32.xlu0 %v13615_v0, %s13579_s26  ;;  %v13126_v7 = vld [vmem:[#allocation3 + $0x34] ss:$24 sps:$4 sm:$0xff]  }
  0xb6   :  { %v10769_v10 = vpack.c.bf16 %v103_v8, %v102_v9  ;;  %v13580_v9 = vmov 0  }
  0xb7   :  { %v238_v11 = vpop.permute.xlu1 %237  ;;  %v236_v12 = vpop.permute.xlu0 %235  ;;  %v13095_v13 = vld [vmem:[#allocation2 + $0x20] sm:$0xff]  }
  0xb8   :  { %11908 = vst [vmem:[#allocation2 + $0x18] sm:$0xff] %v10769_v10   ;;  %v249_v14 = vmul.f32 %v9276_v56, %v238_v11  ;;  %v248_v15 = vmul.f32 %v9276_v56, %v236_v12  ;;  %12142 = vmatpush3.bf16.msra.mxu0 %v13095_v13  ;;  %13056 = vmatpush3.bf16.msra.mxu1 %v13095_v13  ;;  %v13130_v10 = vld [vmem:[#allocation3 + $0x124] ss:$24 sps:$4 sm:$0xff]  }
  0xb9   :  { %775 = vrot.lane.b32.xlu1 %v13629_v2, %s13579_s26  ;;  %773 = vrot.lane.b32.xlu0 %v13634_v3, %s13579_s26 }
  0xba   :  { %v10804_v16 = vpack.c.bf16 %v249_v14, %v248_v15 }
  0xbb   :  { %v90_v1 = vpop.permute.xlu1 %89  ;;  %v88_v0 = vpop.permute.xlu0 %87  ;;  %v13096_v17 = vld [vmem:[#allocation2 + $0x58] sm:$0xff]  }
  0xbc   :  { %11915 = vst [vmem:[#allocation2 + $0x50] sm:$0xff] %v10804_v16   ;;  %v101_v18 = vmul.f32 %v9256_v63, %v90_v1  ;;  %v100_v19 = vmul.f32 %v9256_v63, %v88_v0  ;;  %12143 = vmatprep.subr.bf16.mxu0 %v13096_v17  ;;  %13049 = vmatprep.subr.bf16.mxu1 %v13096_v17 }
  0xbe   :  { %v10764_v21 = vpack.c.bf16 %v101_v18, %v100_v19 }
  0xbf   :  { %v205_v2 = vpop.permute.xlu1 %204  ;;  %v203_v22 = vpop.permute.xlu0 %202  ;;  %v13097_v23 = vld [vmem:[#allocation2 + $0x18] sm:$0xff]  }
  0xc0   :  { %11907 = vst [vmem:[#allocation2 + $0x10] sm:$0xff] %v10764_v21   ;;  %v214_v3 = vmul.f32 %v9271_v20, %v205_v2  ;;  %v213_v24 = vmul.f32 %v9271_v20, %v203_v22  ;;  %12144 = vmatpush3.bf16.msra.mxu0 %v13097_v23  ;;  %13057 = vmatpush3.bf16.msra.mxu1 %v13097_v23  ;;  %v13132_v21 = vld [vmem:[#allocation3 + $0x120] ss:$24 sps:$4 sm:$0xff]   ;;  %v13134_v2 = vld [vmem:[#allocation3 + $0x64] ss:$24 sps:$4 sm:$0xff]  }
  0xc1   :  { %v13138_v23 = vld [vmem:[#allocation3 + $0x154] ss:$24 sps:$4 sm:$0xff]  }
  0xc2   :  { %v10799_v26 = vpack.c.bf16 %v214_v3, %v213_v24 }
  0xc3   :  { %v57_v27 = vpop.permute.xlu1 %56  ;;  %v55_v28 = vpop.permute.xlu0 %54  ;;  %v13098_v29 = vld [vmem:[#allocation2 + $0x50] sm:$0xff]  }
  0xc4   :  { %11914 = vst [vmem:[#allocation2 + $0x48] sm:$0xff] %v10799_v26   ;;  %v66_v30 = vmul.f32 %v9251_v25, %v57_v27  ;;  %v65_v31 = vmul.f32 %v9251_v25, %v55_v28  ;;  %12145 = vmatprep.subr.bf16.mxu0 %v13098_v29  ;;  %13050 = vmatprep.subr.bf16.mxu1 %v13098_v29  ;;  %v9340_v28 = vld [vmem:[%s16206_s1 + $0x12] ss:$0 sm:$0xff] }
  0xc6   :  { %v10759_v32 = vpack.c.bf16 %v66_v30, %v65_v31 }
  0xc7   :  { %v201_v33 = vpop.permute.xlu1 %200  ;;  %v199_v34 = vpop.permute.xlu0 %198  ;;  %v13099_v35 = vld [vmem:[#allocation2 + $0x10] sm:$0xff]  }
  0xc8   :  { %11906 = vst [vmem:[#allocation2 + $0x8] sm:$0xff] %v10759_v32   ;;  %v212_v36 = vmul.f32 %v9271_v20, %v201_v33  ;;  %v211_v37 = vmul.f32 %v9271_v20, %v199_v34  ;;  %12146 = vmatpush3.bf16.msra.mxu0 %v13099_v35  ;;  %13058 = vmatpush3.bf16.msra.mxu1 %v13099_v35  ;;  %v13129_v20 = vld [vmem:[#allocation3 + $0x30] ss:$24 sps:$4 sm:$0xff]   ;;  %v13137_v35 = vld [vmem:[#allocation3 + $0x60] ss:$24 sps:$4 sm:$0xff]  }
  0xca   :  { %v10794_v38 = vpack.c.bf16 %v212_v36, %v211_v37  ;;  %v13140_v36 = vld [vmem:[#allocation3 + $0x150] ss:$24 sps:$4 sm:$0xff]   ;;  %v9320_v37 = vld [vmem:[%s16206_s1 + $0xe] ss:$0 sm:$0xff] }
  0xcb   :  { %v53_v39 = vpop.permute.xlu1 %52  ;;  %v51_v40 = vpop.permute.xlu0 %50  ;;  %v13100_v41 = vld [vmem:[#allocation2 + $0x48] sm:$0xff]  }
  0xcc   :  { %11913 = vst [vmem:[#allocation2 + $0x40] sm:$0xff] %v10794_v38   ;;  %v64_v42 = vmul.f32 %v9251_v25, %v53_v39  ;;  %v63_v43 = vmul.f32 %v9251_v25, %v51_v40  ;;  %12147 = vmatprep.subr.bf16.mxu0 %v13100_v41  ;;  %13051 = vmatprep.subr.bf16.mxu1 %v13100_v41  ;;  %v13142_v38 = vld [vmem:[#allocation3 + $0x94] ss:$24 sps:$4 sm:$0xff]   ;;  %v13146_v40 = vld [vmem:[#allocation3 + $0x184] ss:$24 sps:$4 sm:$0xff]  }
  0xce   :  { %v10754_v45 = vpack.c.bf16 %v64_v42, %v63_v43 }
  0xcf   :  { %v743_v46 = vpop.permute.xlu1 %742  ;;  %v741_v47 = vpop.permute.xlu0 %740  ;;  %v13101_v48 = vld [vmem:[#allocation2 + $0x8] sm:$0xff]  }
  0xd0   :  { %10755 = vst [vmem:[#allocation2] sm:$0xff] %v10754_v45   ;;  %v752_v49 = vmul.f32 %v9345_v44, %v743_v46  ;;  %v751_v50 = vmul.f32 %v9345_v44, %v741_v47  ;;  %12148 = vmatpush3.bf16.msra.mxu0 %v13101_v48  ;;  %13059 = vmatpush3.bf16.msra.mxu1 %v13101_v48 }
  0xd2   :  { %v10949_v52 = vpack.c.bf16 %v752_v49, %v751_v50 }
  0xd3   :  { %v595_v53 = vpop.permute.xlu1 %594  ;;  %v593_v54 = vpop.permute.xlu0 %592  ;;  %v13102_v55 = vld [vmem:[#allocation2 + $0x40] sm:$0xff]  }
  0xd4   :  { %11944 = vst [vmem:[#allocation2 + $0x138] sm:$0xff] %v10949_v52   ;;  %v604_v56 = vmul.f32 %v9325_v51, %v595_v53  ;;  %v603_v57 = vmul.f32 %v9325_v51, %v593_v54  ;;  %12149 = vmatprep.subr.bf16.mxu0 %v13102_v55  ;;  %13052 = vmatprep.subr.bf16.mxu1 %v13102_v55  ;;  %v13145_v52 = vld [vmem:[#allocation3 + $0x90] ss:$24 sps:$4 sm:$0xff]   ;;  %v13148_v53 = vld [vmem:[#allocation3 + $0x180] ss:$24 sps:$4 sm:$0xff]  }
  0xd5   :  { %v13150_v54 = vld [vmem:[#allocation3 + $0xc4] ss:$24 sps:$4 sm:$0xff]  }
  0xd6   :  { %v10909_v59 = vpack.c.bf16 %v604_v56, %v603_v57  ;;  %v13157_v56 = vld [vmem:[#allocation3 + $0xc] ss:$24 sps:$4 sm:$0xff]  }
  0xd7   :  { %v447_v60 = vpop.permute.xlu1 %446  ;;  %v445_v61 = vpop.permute.xlu0 %444  ;;  %v13103_v62 = vld [vmem:[#allocation2] sm:$0xff]  }
  0xd8   :  { %11936 = vst [vmem:[#allocation2 + $0xf8] sm:$0xff] %v10909_v59   ;;  %v456_v63 = vmul.f32 %v9305_v58, %v447_v60  ;;  %v455_v4 = vmul.f32 %v9305_v58, %v445_v61  ;;  %12150 = vmatpush3.bf16.msra.mxu0 %v13103_v62  ;;  %13060 = vmatpush3.bf16.msra.mxu1 %v13103_v62  ;;  %v9335_v62 = vld [vmem:[%s16206_s1 + $0x11] ss:$0 sm:$0xff] }
  0xd9   :  { %1699 = vmatprep.subr.bf16.mxu0 %v13580_v9 }
  0xda   :  { %v10869_v8 = vpack.c.bf16 %v456_v63, %v455_v4  ;;  %v13119_v4 = vld [vmem:[#allocation2 + $0xa8] sm:$0xff]  }
  0xdb   :  { %v739_v11 = vpop.permute.xlu1 %738  ;;  %v737_v12 = vpop.permute.xlu0 %736  ;;  %v13107_v13 = vld [vmem:[#allocation2 + $0x138] sm:$0xff]   ;;  %1522 = vmatmul.mubr.bf16.vlgmr.msra.gmra.mxu0 %v13104_v5  ;;  %1562 = vmatmul.mubr.bf16.vlgmr.msra.gmra.mxu1 %v13109_v6 }
  0xdc   :  { %11928 = vst [vmem:[#allocation2 + $0xb8] sm:$0xff] %v10869_v8   ;;  %v750_v14 = vmul.f32 %v9345_v44, %v739_v11  ;;  %v749_v15 = vmul.f32 %v9345_v44, %v737_v12  ;;  %1700 = vmatpush1.bf16.msra.mxu0 %v13107_v13  ;;  %1529 = vmatprep.mubr.bf16.mxu0 %v13126_v7  ;;  %v13153_v11 = vld [vmem:[#allocation3 + $0xc0] ss:$24 sps:$4 sm:$0xff]   ;;  %v9315_v12 = vld [vmem:[%s16206_s1 + $0xd] ss:$0 sm:$0xff] }
  0xdd   :  { %1701 = vmatprep.subr.bf16.mxu0 %v13580_v9  ;;  %1569 = vmatprep.mubr.bf16.mxu1 %v13130_v10  ;;  %v13164_v13 = vld [vmem:[#allocation3 + $0x14] ss:$24 sps:$4 sm:$0xff]  }
  0xde   :  { %v10944_v16 = vpack.c.bf16 %v750_v14, %v749_v15 }
  0xdf   :  { %v591_v1 = vpop.permute.xlu1 %590  ;;  %v589_v0 = vpop.permute.xlu0 %588  ;;  %v13108_v17 = vld [vmem:[#allocation2 + $0xf8] sm:$0xff]  }
  0xe0   :  { %11943 = vst [vmem:[#allocation2 + $0x130] sm:$0xff] %v10944_v16   ;;  %v602_v18 = vmul.f32 %v9325_v51, %v591_v1  ;;  %v601_v19 = vmul.f32 %v9325_v51, %v589_v0  ;;  %12205 = vmatprep.subr.bf16.mxu1 %v13108_v17 }
  0xe2   :  { %v10904_v22 = vpack.c.bf16 %v602_v18, %v601_v19  ;;  %v9296_v18 = vld [vmem:[%s16206_s1 + $0x9] ss:$0 sm:$0xff] }
  0xe3   :  { %v443_v3 = vpop.permute.xlu1 %442  ;;  %v441_v24 = vpop.permute.xlu0 %440  ;;  %v13112_v25 = vld [vmem:[#allocation2 + $0xb8] sm:$0xff]   ;;  %1530 = vmatmul.mubr.bf16.gmra.mxu0 %v13129_v20  ;;  %1570 = vmatmul.mubr.bf16.gmra.mxu1 %v13132_v21  ;;  %v13122_v20 = vld [vmem:[#allocation2 + $0xa0] sm:$0xff]  }
  0xe4   :  { %11935 = vst [vmem:[#allocation2 + $0xf0] sm:$0xff] %v10904_v22   ;;  %v454_v26 = vmul.f32 %v9305_v58, %v443_v3  ;;  %v453_v27 = vmul.f32 %v9305_v58, %v441_v24  ;;  %12206 = vmatpush3.bf16.msra.mxu1 %v13112_v25  ;;  %1537 = vmatprep.mubr.bf16.mxu0 %v13134_v2 }
  0xe5   :  { %1577 = vmatprep.mubr.bf16.mxu1 %v13138_v23 }
  0xe6   :  { %v10864_v29 = vpack.c.bf16 %v454_v26, %v453_v27 }
  0xe7   :  { %v706_v30 = vpop.permute.xlu1 %705  ;;  %v704_v31 = vpop.permute.xlu0 %703  ;;  %v13113_v32 = vld [vmem:[#allocation2 + $0x130] sm:$0xff]  }
  0xe8   :  { %11927 = vst [vmem:[#allocation2 + $0xb0] sm:$0xff] %v10864_v29   ;;  %v715_v33 = vmul.f32 %v9340_v28, %v706_v30  ;;  %v714_v34 = vmul.f32 %v9340_v28, %v704_v31  ;;  %1702 = vmatpush1.bf16.msra.mxu0 %v13113_v32 }
  0xe9   :  { %1703 = vmatprep.subr.bf16.mxu0 %v13580_v9 }
  0xea   :  { %v10939_v39 = vpack.c.bf16 %v715_v33, %v714_v34 }
  0xeb   :  { %v558_v41 = vpop.permute.xlu1 %557  ;;  %v556_v42 = vpop.permute.xlu0 %555  ;;  %v13114_v43 = vld [vmem:[#allocation2 + $0xf0] sm:$0xff]   ;;  %1538 = vmatmul.mubr.bf16.gmra.mxu0 %v13137_v35  ;;  %1578 = vmatmul.mubr.bf16.gmra.mxu1 %v13140_v36 }
  0xec   :  { %11942 = vst [vmem:[#allocation2 + $0x128] sm:$0xff] %v10939_v39   ;;  %v567_v44 = vmul.f32 %v9320_v37, %v558_v41  ;;  %v566_v45 = vmul.f32 %v9320_v37, %v556_v42  ;;  %12207 = vmatprep.subr.bf16.mxu1 %v13114_v43  ;;  %1545 = vmatprep.mubr.bf16.mxu0 %v13142_v38  ;;  %v9330_v42 = vld [vmem:[%s16206_s1 + $0x10] ss:$0 sm:$0xff] }
  0xed   :  { %1585 = vmatprep.mubr.bf16.mxu1 %v13146_v40 }
  0xee   :  { %v10899_v46 = vpack.c.bf16 %v567_v44, %v566_v45 }
  0xef   :  { %v702_v47 = vpop.permute.xlu1 %701  ;;  %v700_v48 = vpop.permute.xlu0 %699  ;;  %v13115_v49 = vld [vmem:[#allocation2 + $0xb0] sm:$0xff]  }
  0xf0   :  { %11934 = vst [vmem:[#allocation2 + $0xe8] sm:$0xff] %v10899_v46   ;;  %v713_v50 = vmul.f32 %v9340_v28, %v702_v47  ;;  %v712_v51 = vmul.f32 %v9340_v28, %v700_v48  ;;  %12208 = vmatpush3.bf16.msra.mxu1 %v13115_v49  ;;  %v9310_v49 = vld [vmem:[%s16206_s1 + $0xc] ss:$0 sm:$0xff] }
  0xf2   :  { %v10934_v55 = vpack.c.bf16 %v713_v50, %v712_v51 }
  0xf3   :  { %v554_v57 = vpop.permute.xlu1 %553  ;;  %v552_v58 = vpop.permute.xlu0 %551  ;;  %v13116_v59 = vld [vmem:[#allocation2 + $0x128] sm:$0xff]   ;;  %1546 = vmatmul.mubr.bf16.gmra.mxu0 %v13145_v52  ;;  %1586 = vmatmul.mubr.bf16.gmra.mxu1 %v13148_v53 }
  0xf4   :  { %11941 = vst [vmem:[#allocation2 + $0x120] sm:$0xff] %v10934_v55   ;;  %v565_v60 = vmul.f32 %v9320_v37, %v554_v57  ;;  %v564_v61 = vmul.f32 %v9320_v37, %v552_v58  ;;  %1704 = vmatpush1.bf16.msra.mxu0 %v13116_v59  ;;  %1553 = vmatprep.mubr.bf16.mxu0 %v13150_v54 }
  0xf5   :  { %1705 = vmatprep.subr.bf16.mxu0 %v13580_v9  ;;  %1626 = vmatprep.mubr.bf16.mxu1 %v13157_v56  ;;  %v9291_v56 = vld [vmem:[%s16206_s1 + $0x8] ss:$0 sm:$0xff] }
  0xf6   :  { %v10894_v63 = vpack.c.bf16 %v565_v60, %v564_v61 }
  0xf7   :  { %v669_v5 = vpop.permute.xlu1 %668  ;;  %v667_v6 = vpop.permute.xlu0 %666  ;;  %v13117_v7 = vld [vmem:[#allocation2 + $0xe8] sm:$0xff]  }
  0xf8   :  { %11933 = vst [vmem:[#allocation2 + $0xe0] sm:$0xff] %v10894_v63   ;;  %v678_v8 = vmul.f32 %v9335_v62, %v669_v5  ;;  %v677_v10 = vmul.f32 %v9335_v62, %v667_v6  ;;  %12209 = vmatprep.subr.bf16.mxu1 %v13117_v7 }
  0xf9   :  { %12210 = vmatpush3.bf16.msra.mxu1 %v13119_v4 }
  0xfa   :  { %v10929_v14 = vpack.c.bf16 %v678_v8, %v677_v10 }
  0xfb   :  { %v521_v15 = vpop.permute.xlu1 %520  ;;  %v519_v16 = vpop.permute.xlu0 %518  ;;  %v13118_v1 = vld [vmem:[#allocation2 + $0x120] sm:$0xff]   ;;  %1554 = vmatmul.mubr.bf16.gmra.mxu0 %v13153_v11 }
  0xfc   :  { %11940 = vst [vmem:[#allocation2 + $0x118] sm:$0xff] %v10929_v14   ;;  %v530_v0 = vmul.f32 %v9315_v12, %v521_v15  ;;  %v529_v17 = vmul.f32 %v9315_v12, %v519_v16  ;;  %1706 = vmatpush1.bf16.msra.mxu0 %v13118_v1  ;;  %9451 = vmatprep.mubr.msk.bf16.mxu0 %vm1461_vm0, %v13164_v13 }
  0xfd   :  { %1707 = vmatprep.subr.bf16.mxu0 %v13580_v9 }
  0xfe   :  { %v10889_v19 = vpack.c.bf16 %v530_v0, %v529_v17 }
  0xff   :  { %v390_v21 = vpop.permute.xlu1 %389  ;;  %v388_v2 = vpop.permute.xlu0 %387  ;;  %v13120_v22 = vld [vmem:[#allocation2 + $0xe0] sm:$0xff]  }
 0x100   :  { %11932 = vst [vmem:[#allocation2 + $0xd8] sm:$0xff] %v10889_v19   ;;  %v399_v23 = vmul.f32 %v9296_v18, %v390_v21  ;;  %v398_v3 = vmul.f32 %v9296_v18, %v388_v2  ;;  %12211 = vmatprep.subr.bf16.mxu1 %v13120_v22 }
 0x101   :  { %12212 = vmatpush3.bf16.msra.mxu1 %v13122_v20  ;;  %v9350_v20 = vld [vmem:[%s16206_s1 + $0x14] ss:$0 sm:$0xff] }
 0x102   :  { %v10849_v24 = vpack.c.bf16 %v399_v23, %v398_v3 }
 0x103   :  { %v665_v25 = vpop.permute.xlu1 %664  ;;  %v663_v26 = vpop.permute.xlu0 %662  ;;  %v13121_v27 = vld [vmem:[#allocation2 + $0x118] sm:$0xff]  }
 0x104   :  { %11924 = vst [vmem:[#allocation2 + $0x98] sm:$0xff] %v10849_v24   ;;  %v676_v28 = vmul.f32 %v9335_v62, %v665_v25  ;;  %v675_v29 = vmul.f32 %v9335_v62, %v663_v26  ;;  %1708 = vmatpush1.bf16.msra.mxu0 %v13121_v27 }
 0x105   :  { %1709 = vmatprep.subr.bf16.mxu0 %v13580_v9 }
 0x106   :  { %v10924_v30 = vpack.c.bf16 %v676_v28, %v675_v29 }
 0x107   :  { %v517_v31 = vpop.permute.xlu1 %516  ;;  %v515_v32 = vpop.permute.xlu0 %514  ;;  %v13123_v33 = vld [vmem:[#allocation2 + $0xd8] sm:$0xff]  }
 0x108   :  { %11939 = vst [vmem:[#allocation2 + $0x110] sm:$0xff] %v10924_v30   ;;  %v528_v34 = vmul.f32 %v9315_v12, %v517_v31  ;;  %v527_v35 = vmul.f32 %v9315_v12, %v515_v32  ;;  %12213 = vmatprep.subr.bf16.mxu1 %v13123_v33  ;;  %v13155_v33 = vld [vmem:[#allocation3 + $0x8] ss:$24 sps:$4 sm:$0xff]  }
 0x10a   :  { %v10884_v36 = vpack.c.bf16 %v528_v34, %v527_v35  ;;  %v13160_v34 = vld [vmem:[#allocation3 + $0x3c] ss:$24 sps:$4 sm:$0xff]  }
 0x10b   :  { %v386_v37 = vpop.permute.xlu1 %385  ;;  %v384_v38 = vpop.permute.xlu0 %383  ;;  %v13124_v39 = vld [vmem:[#allocation2 + $0x98] sm:$0xff]  }
 0x10c   :  { %11931 = vst [vmem:[#allocation2 + $0xd0] sm:$0xff] %v10884_v36   ;;  %v397_v40 = vmul.f32 %v9296_v18, %v386_v37  ;;  %v396_v41 = vmul.f32 %v9296_v18, %v384_v38  ;;  %12214 = vmatpush3.bf16.msra.mxu1 %v13124_v39  ;;  %v13162_v37 = vld [vmem:[#allocation3 + $0x10] ss:$24 sps:$4 sm:$0xff]   ;;  %v13166_v39 = vld [vmem:[#allocation3 + $0x6c] ss:$24 sps:$4 sm:$0xff]  }
 0x10d   :  { %v13165_v38 = vld [vmem:[#allocation3 + $0x38] ss:$24 sps:$4 sm:$0xff]  }
 0x10e   :  { %v10844_v43 = vpack.c.bf16 %v397_v40, %v396_v41  ;;  %v13168_v40 = vld [vmem:[#allocation3 + $0x44] ss:$24 sps:$4 sm:$0xff]   ;;  %v13170_v41 = vld [vmem:[#allocation3 + $0x68] ss:$24 sps:$4 sm:$0xff]  }
 0x10f   :  { %v632_v44 = vpop.permute.xlu1 %631  ;;  %v630_v45 = vpop.permute.xlu0 %629  ;;  %v13125_v46 = vld [vmem:[#allocation2 + $0x110] sm:$0xff]  }
 0x110   :  { %11923 = vst [vmem:[#allocation2 + $0x90] sm:$0xff] %v10844_v43   ;;  %v641_v47 = vmul.f32 %v9330_v42, %v632_v44  ;;  %v640_v48 = vmul.f32 %v9330_v42, %v630_v45  ;;  %1710 = vmatpush1.bf16.msra.mxu0 %v13125_v46  ;;  %v13172_v43 = vld [vmem:[#allocation3 + $0x9c] ss:$24 sps:$4 sm:$0xff]   ;;  %v13176_v45 = vld [vmem:[#allocation3 + $0x98] ss:$24 sps:$4 sm:$0xff]  }
 0x111   :  { %1711 = vmatprep.subr.bf16.mxu0 %v13580_v9  ;;  %v13174_v44 = vld [vmem:[#allocation3 + $0x74] ss:$24 sps:$4 sm:$0xff]   ;;  %v13177_v46 = vld [vmem:[#allocation3 + $0x70] ss:$24 sps:$4 sm:$0xff]  }
 0x112   :  { %v10919_v50 = vpack.c.bf16 %v641_v47, %v640_v48  ;;  %v13178_v47 = vld [vmem:[#allocation3 + $0xcc] ss:$24 sps:$4 sm:$0xff]  }
 0x113   :  { %v484_v51 = vpop.permute.xlu1 %483  ;;  %v482_v52 = vpop.permute.xlu0 %481  ;;  %v13128_v53 = vld [vmem:[#allocation2 + $0xd0] sm:$0xff]   ;;  %v13180_v48 = vld [vmem:[#allocation3 + $0xa4] ss:$24 sps:$4 sm:$0xff]  }
 0x114   :  { %11938 = vst [vmem:[#allocation2 + $0x108] sm:$0xff] %v10919_v50   ;;  %v493_v54 = vmul.f32 %v9310_v49, %v484_v51  ;;  %v492_v55 = vmul.f32 %v9310_v49, %v482_v52  ;;  %12215 = vmatprep.subr.bf16.mxu1 %v13128_v53  ;;  %v13183_v50 = vld [vmem:[#allocation3 + $0xa0] ss:$24 sps:$4 sm:$0xff]   ;;  %v13184_v51 = vld [vmem:[#allocation3 + $0xfc] ss:$24 sps:$4 sm:$0xff]  }
 0x115   :  { %v13186_v52 = vld [vmem:[#allocation3 + $0xd4] ss:$24 sps:$4 sm:$0xff]   ;;  %v13188_v53 = vld [vmem:[#allocation3 + $0xf8] ss:$24 sps:$4 sm:$0xff]  }
 0x116   :  { %v10879_v57 = vpack.c.bf16 %v493_v54, %v492_v55  ;;  %v13189_v54 = vld [vmem:[#allocation3 + $0xd0] ss:$24 sps:$4 sm:$0xff]   ;;  %v13190_v55 = vld [vmem:[#allocation3 + $0x12c] ss:$24 sps:$4 sm:$0xff]  }
 0x117   :  { %v353_v58 = vpop.permute.xlu1 %352  ;;  %v351_v59 = vpop.permute.xlu0 %350  ;;  %v13133_v60 = vld [vmem:[#allocation2 + $0x90] sm:$0xff]  }
 0x118   :  { %11930 = vst [vmem:[#allocation2 + $0xc8] sm:$0xff] %v10879_v57   ;;  %v362_v61 = vmul.f32 %v9291_v56, %v353_v58  ;;  %v361_v62 = vmul.f32 %v9291_v56, %v351_v59  ;;  %12216 = vmatpush3.bf16.msra.mxu1 %v13133_v60  ;;  %v13194_v57 = vld [vmem:[#allocation3 + $0x128] ss:$24 sps:$4 sm:$0xff]   ;;  %v13196_v59 = vld [vmem:[#allocation3 + $0x15c] ss:$24 sps:$4 sm:$0xff]  }
 0x119   :  { %v13195_v58 = vld [vmem:[#allocation3 + $0x100] ss:$24 sps:$4 sm:$0xff]   ;;  %v13198_v60 = vld [vmem:[#allocation3 + $0x134] ss:$24 sps:$4 sm:$0xff]  }
 0x11a   :  { %v10839_v63 = vpack.c.bf16 %v362_v61, %v361_v62  ;;  %v13200_v61 = vld [vmem:[#allocation3 + $0x158] ss:$24 sps:$4 sm:$0xff]  }
 0x11b   :  { %v628_v4 = vpop.permute.xlu1 %627  ;;  %v626_v5 = vpop.permute.xlu0 %625  ;;  %v13136_v6 = vld [vmem:[#allocation2 + $0x108] sm:$0xff]   ;;  %v13201_v62 = vld [vmem:[#allocation3 + $0x130] ss:$24 sps:$4 sm:$0xff]  }
 0x11c   :  { %11922 = vst [vmem:[#allocation2 + $0x88] sm:$0xff] %v10839_v63   ;;  %v639_v7 = vmul.f32 %v9330_v42, %v628_v4  ;;  %v638_v8 = vmul.f32 %v9330_v42, %v626_v5  ;;  %1712 = vmatpush1.bf16.msra.mxu0 %v13136_v6  ;;  %v13171_v42 = vld [vmem:[#allocation3 + $0x40] ss:$24 sps:$4 sm:$0xff]   ;;  %v13202_v63 = vld [vmem:[#allocation3 + $0x18c] ss:$24 sps:$4 sm:$0xff]  }
 0x11d   :  { %1713 = vmatprep.subr.bf16.mxu0 %v13580_v9  ;;  %v13204_v4 = vld [vmem:[#allocation3 + $0x164] ss:$24 sps:$4 sm:$0xff]   ;;  %v13206_v5 = vld [vmem:[#allocation3 + $0x188] ss:$24 sps:$4 sm:$0xff]  }
 0x11e   :  { %v10914_v10 = vpack.c.bf16 %v639_v7, %v638_v8  ;;  %v13207_v6 = vld [vmem:[#allocation3 + $0x160] ss:$24 sps:$4 sm:$0xff]   ;;  %v13208_v7 = vld [vmem:[#allocation3 + $0x194] ss:$24 sps:$4 sm:$0xff]   ;;  %v13210_v8 = vld [vmem:[#allocation3 + $0x190] ss:$24 sps:$4 sm:$0xff]  }
 0x11f   :  { %v480_v11 = vpop.permute.xlu1 %479  ;;  %v478_v12 = vpop.permute.xlu0 %477  ;;  %v13141_v13 = vld [vmem:[#allocation2 + $0xc8] sm:$0xff]  }
 0x120   :  { %11937 = vst [vmem:[#allocation2 + $0x100] sm:$0xff] %v10914_v10   ;;  %v491_v14 = vmul.f32 %v9310_v49, %v480_v11  ;;  %v490_v15 = vmul.f32 %v9310_v49, %v478_v12  ;;  %12217 = vmatprep.subr.bf16.mxu1 %v13141_v13  ;;  %v13182_v49 = vld [vmem:[#allocation3 + $0xc8] ss:$24 sps:$4 sm:$0xff]  }
 0x122   :  { %v10874_v16 = vpack.c.bf16 %v491_v14, %v490_v15 }
 0x123   :  { %v349_v1 = vpop.permute.xlu1 %348  ;;  %v347_v0 = vpop.permute.xlu0 %346  ;;  %v13144_v17 = vld [vmem:[#allocation2 + $0x88] sm:$0xff]  }
 0x124   :  { %11929 = vst [vmem:[#allocation2 + $0xc0] sm:$0xff] %v10874_v16   ;;  %v360_v18 = vmul.f32 %v9291_v56, %v349_v1  ;;  %v359_v19 = vmul.f32 %v9291_v56, %v347_v0  ;;  %12218 = vmatpush3.bf16.msra.mxu1 %v13144_v17  ;;  %v13192_v56 = vld [vmem:[#allocation3 + $0x104] ss:$24 sps:$4 sm:$0xff]  }
 0x126   :  { %v10834_v21 = vpack.c.bf16 %v360_v18, %v359_v19 }
 0x127   :  { %v780_v2 = vpop.permute.xlu1 %779  ;;  %v778_v22 = vpop.permute.xlu0 %777  ;;  %v13149_v23 = vld [vmem:[#allocation2 + $0x100] sm:$0xff]  }
 0x128   :  { %11921 = vst [vmem:[#allocation2 + $0x80] sm:$0xff] %v10834_v21   ;;  %v789_v3 = vmul.f32 %v9350_v20, %v780_v2  ;;  %v788_v24 = vmul.f32 %v9350_v20, %v778_v22  ;;  %1714 = vmatpush1.bf16.msra.mxu0 %v13149_v23 }
 0x129   :  { %1727 = vmatprep.subr.bf16.mxu0 %v13580_v9 }
 0x12a   :  { %v10959_v25 = vpack.c.bf16 %v789_v3, %v788_v24 }
 0x12b   :  { %v776_v26 = vpop.permute.xlu1 %775  ;;  %v774_v27 = vpop.permute.xlu0 %773  ;;  %v13152_v28 = vld [vmem:[#allocation2 + $0xc0] sm:$0xff]  }
 0x12c   :  { %11946 = vst [vmem:[#allocation2 + $0x148] sm:$0xff] %v10959_v25   ;;  %v787_v29 = vmul.f32 %v9350_v20, %v776_v26  ;;  %v786_v30 = vmul.f32 %v9350_v20, %v774_v27  ;;  %12219 = vmatprep.subr.bf16.mxu1 %v13152_v28 }
 0x12e   :  { %v10954_v31 = vpack.c.bf16 %v787_v29, %v786_v30 }
 0x12f   :  { %v13154_v32 = vld [vmem:[#allocation2 + $0x80] sm:$0xff]  }
 0x130   :  { %11945 = vst [vmem:[#allocation2 + $0x140] sm:$0xff] %v10954_v31   ;;  %12220 = vmatpush3.bf16.msra.mxu1 %v13154_v32 }
 0x133   :  { %v13158_v35 = vld [vmem:[#allocation2 + $0x148] sm:$0xff]   ;;  %1627 = vmatmul.mubr.bf16.vlgmr.msra.gmra.mxu1 %v13155_v33 }
 0x134   :  { %1728 = vmatpush2.bf16.msra.mxu0 %v13158_v35  ;;  %1634 = vmatprep.mubr.bf16.mxu1 %v13160_v34 }
 0x135   :  { %1729 = vmatprep.subr.bf16.mxu0 %v13580_v9 }
 0x137   :  { %v13159_v36 = vld [vmem:[#allocation2 + $0x140] sm:$0xff]  }
 0x138   :  { %1730 = vmatpush2.bf16.msra.mxu0 %v13159_v36 }
 0x13b   :  { %1635 = vmatmul.mubr.bf16.gmra.mxu1 %v13165_v38  ;;  %1732 = vmatmul.mubr.bf16.vlgmr.msra.gmra.mxu0 %v13162_v37 }
 0x13c   :  { %1642 = vmatprep.mubr.bf16.mxu1 %v13166_v39  ;;  %9452 = vmatprep.mubr.msk.bf16.mxu0 %vm1461_vm0, %v13168_v40 }
 0x143   :  { %1643 = vmatmul.mubr.bf16.gmra.mxu1 %v13170_v41  ;;  %1740 = vmatmul.mubr.bf16.gmra.mxu0 %v13171_v42 }
 0x144   :  { %1650 = vmatprep.mubr.bf16.mxu1 %v13172_v43  ;;  %9453 = vmatprep.mubr.msk.bf16.mxu0 %vm1461_vm0, %v13174_v44 }
 0x14b   :  { %1651 = vmatmul.mubr.bf16.gmra.mxu1 %v13176_v45  ;;  %1748 = vmatmul.mubr.bf16.gmra.mxu0 %v13177_v46 }
 0x14c   :  { %1658 = vmatprep.mubr.bf16.mxu1 %v13178_v47  ;;  %9454 = vmatprep.mubr.msk.bf16.mxu0 %vm1461_vm0, %v13180_v48 }
 0x153   :  { %1659 = vmatmul.mubr.bf16.gmra.mxu1 %v13182_v49  ;;  %1756 = vmatmul.mubr.bf16.gmra.mxu0 %v13183_v50 }
 0x154   :  { %1666 = vmatprep.mubr.bf16.mxu1 %v13184_v51  ;;  %9455 = vmatprep.mubr.msk.bf16.mxu0 %vm1461_vm0, %v13186_v52 }
 0x15b   :  { %1667 = vmatmul.mubr.bf16.gmra.mxu1 %v13188_v53  ;;  %1764 = vmatmul.mubr.bf16.gmra.mxu0 %v13189_v54 }
 0x15c   :  { %1674 = vmatprep.mubr.bf16.mxu1 %v13190_v55  ;;  %9456 = vmatprep.mubr.msk.bf16.mxu0 %vm1461_vm0, %v13192_v56 }
 0x163   :  { %1675 = vmatmul.mubr.bf16.gmra.mxu1 %v13194_v57  ;;  %1772 = vmatmul.mubr.bf16.gmra.mxu0 %v13195_v58 }
 0x164   :  { %1682 = vmatprep.mubr.bf16.mxu1 %v13196_v59  ;;  %9457 = vmatprep.mubr.msk.bf16.mxu0 %vm1461_vm0, %v13198_v60 }
 0x16b   :  { %1683 = vmatmul.mubr.bf16.gmra.mxu1 %v13200_v61  ;;  %1780 = vmatmul.mubr.bf16.gmra.mxu0 %v13201_v62 }
 0x16c   :  { %1690 = vmatprep.mubr.bf16.mxu1 %v13202_v63  ;;  %9458 = vmatprep.mubr.msk.bf16.mxu0 %vm1461_vm0, %v13204_v4 }
 0x173   :  { %1691 = vmatmul.mubr.bf16.gmra.mxu1 %v13206_v5  ;;  %1788 = vmatmul.mubr.bf16.gmra.mxu0 %v13207_v6 }
 0x174   :  { %9459 = vmatprep.mubr.msk.bf16.mxu0 %vm1461_vm0, %v13208_v7 }
 0x17b   :  { %1796 = vmatmul.mubr.bf16.gmra.mxu0 %v13210_v8 }
 0x19b   :  { %v12181_v10 = vpop.f32.mrf.mxu1  ;;  %v12151_v19 = vpop.f32.mrf.mxu0 }
 0x19d   :  { %v12182_v11 = vpop.f32.mrf.mxu1  ;;  %v12152_v22 = vpop.f32.mrf.mxu0 }
 0x19e   :  { %v13875_v12 = vadd.f32 %v12182_v11, %v12181_v10  ;;  %v12153_v49 = vadd.f32 %v12152_v22, %v12151_v19 }
 0x19f   :  { %v13877_v13 = vpop.f32.mrf.mxu1  ;;  %v12154_v24 = vpop.f32.mrf.mxu0 }
 0x1a1   :  { %v13879_v14 = vpop.f32.mrf.mxu1  ;;  %v12155_v27 = vpop.f32.mrf.mxu0 }
 0x1a2   :  { %v12156_v56 = vadd.f32 %v12155_v27, %v12154_v24 }
 0x1a3   :  { %v12187_v15 = vpop.f32.mrf.mxu1  ;;  %v12157_v28 = vpop.f32.mrf.mxu0 }
 0x1a5   :  { %v12188_v16 = vpop.f32.mrf.mxu1  ;;  %v12158_v29 = vpop.f32.mrf.mxu0 }
 0x1a6   :  { %v13881_v1 = vadd.f32 %v12188_v16, %v12187_v15  ;;  %v12159_v15 = vadd.f32 %v12158_v29, %v12157_v28 }
 0x1a7   :  { %v13883_v0 = vpop.f32.mrf.mxu1  ;;  %v12160_v30 = vpop.f32.mrf.mxu0 }
 0x1a9   :  { %v13885_v17 = vpop.f32.mrf.mxu1  ;;  %v12161_v31 = vpop.f32.mrf.mxu0 }
 0x1aa   :  { %v12162_v16 = vadd.f32 %v12161_v31, %v12160_v30 }
 0x1ab   :  { %v12193_v18 = vpop.f32.mrf.mxu1  ;;  %v13895_v32 = vpop.f32.mrf.mxu0 }
 0x1ad   :  { %v12194_v20 = vpop.f32.mrf.mxu1  ;;  %v13897_v33 = vpop.f32.mrf.mxu0 }
 0x1ae   :  { %v13887_v21 = vadd.f32 %v12194_v20, %v12193_v18 }
 0x1af   :  { %v13889_v2 = vpop.f32.mrf.mxu1  ;;  %v13899_v34 = vpop.f32.mrf.mxu0 }
 0x1b1   :  { %v13891_v23 = vpop.f32.mrf.mxu1  ;;  %v12167_v35 = vpop.f32.mrf.mxu0 }
 0x1b3   :  { %v12199_v3 = vpop.f32.mrf.mxu1  ;;  %v13901_v36 = vpop.f32.mrf.mxu0 }
 0x1b5   :  { %v12200_v25 = vpop.f32.mrf.mxu1  ;;  %v13903_v37 = vpop.f32.mrf.mxu0 }
 0x1b6   :  { %v13893_v26 = vadd.f32 %v12200_v25, %v12199_v3 }
 0x1b7   :  { %v13905_v38 = vpop.f32.mrf.mxu0  ;;  %v13909_v40 = vpop.f32.mrf.mxu1 }
 0x1b9   :  { %v13907_v39 = vpop.f32.mrf.mxu0  ;;  %v13913_v42 = vpop.f32.mrf.mxu1 }
 0x1bb   :  { %v13911_v41 = vpop.f32.mrf.mxu0 }
 0x1bd   :  { %v13915_v43 = vpop.f32.mrf.mxu0 }
 0x1bf   :  { %v13917_v45 = vpop.f32.mrf.mxu0 }
 0x1c1   :  { %v13919_v50 = vpop.f32.mrf.mxu0 }
 0x1f3   :  { %v12221_v44 = vpop.f32.mrf.mxu1 }
 0x1f5   :  { %v12222_v46 = vpop.f32.mrf.mxu1 }
 0x1f6   :  { %v12223_v47 = vadd.f32 %v12222_v46, %v12221_v44 }
 0x1f7   :  { %v12224_v48 = vpop.f32.mrf.mxu1 }
 0x1f8   :  { %v1629_v53 = vadd.f32 %v12223_v47, %v12153_v49  ;;  %v12168_v49 = vadd.f32 %v12167_v35, %v13899_v34 }
 0x1f9   :  { %v12225_v51 = vpop.f32.mrf.mxu1 }
 0x1fa   :  { %v12226_v52 = vadd.f32 %v12225_v51, %v12224_v48  ;;  %v12165_v48 = vadd.f32 %v13897_v33, %v13895_v32 }
 0x1fb   :  { %v12227_v54 = vpop.f32.mrf.mxu1  ;;  %v1733_v55 = vpop.f32.mrf.mxu0 }
 0x1fc   :  { %v13921_v57 = vadd.f32 %v1733_v55, %v1629_v53  ;;  %v1632_v60 = vadd.f32 %v12226_v52, %v12156_v56 }
 0x1fd   :  { %v12228_v58 = vpop.f32.mrf.mxu1  ;;  %v1735_v59 = vpop.f32.mrf.mxu0 }
 0x1fe   :  { %2251 = vrot.lane.b32.xlu0 %v13921_v57, %s13560_s30  ;;  %v12229_v6 = vadd.f32 %v12228_v58, %v12227_v54 }
 0x1ff   :  { %v12230_v61 = vpop.f32.mrf.mxu1  ;;  %v1736_v62 = vpop.f32.mrf.mxu0 }
 0x200   :  { %v13925_v63 = vadd.f32 %v1736_v62, %v1632_v60  ;;  %v1637_v20 = vadd.f32 %v12229_v6, %v12159_v15 }
 0x201   :  { %v12231_v4 = vpop.f32.mrf.mxu1  ;;  %v1738_v5 = vpop.f32.mrf.mxu0 }
 0x202   :  { %v12232_v7 = vadd.f32 %v12231_v4, %v12230_v61  ;;  %2253 = vrot.lane.b32.xlu1 %v13925_v63, %s13560_s30  ;;  %1953 = vrot.lane.b32.xlu0 %v13921_v57, %s13565_s13  ;;  %v11414_v8 = vpack.c.bf16 %v13925_v63, %v13921_v57  ;;  %v12171_v4 = vadd.f32 %v13903_v37, %v13901_v36 }
 0x203   :  { %v12233_v10 = vpop.f32.mrf.mxu1  ;;  %v1741_v11 = vpop.f32.mrf.mxu0  ;;  %v12174_v5 = vadd.f32 %v13907_v39, %v13905_v38 }
 0x204   :  { %12036 = vst [vmem:[#allocation2 + $0x2d0] sm:$0xff] %v11414_v8   ;;  %v1640_v22 = vadd.f32 %v12232_v7, %v12162_v16  ;;  %v13937_v25 = vadd.f32 %v1741_v11, %v1637_v20 }
 0x205   :  { %v12234_v18 = vpop.f32.mrf.mxu1  ;;  %v1743_v19 = vpop.f32.mrf.mxu0 }
 0x206   :  { %1955 = vrot.lane.b32.xlu1 %v13925_v63, %s13565_s13  ;;  %2102 = vrot.lane.b32.xlu0 %v13921_v57, %s13563_s11  ;;  %v12235_v29 = vadd.f32 %v12234_v18, %v12233_v10 }
 0x207   :  { %v12236_v3 = vpop.f32.mrf.mxu1  ;;  %v1744_v24 = vpop.f32.mrf.mxu0 }
 0x208   :  { %v13939_v27 = vadd.f32 %v1744_v24, %v1640_v22  ;;  %v1645_v53 = vadd.f32 %v12235_v29, %v12165_v48  ;;  %v12180_v24 = vadd.f32 %v13919_v50, %v13917_v45 }
 0x209   :  { %v12237_v44 = vpop.f32.mrf.mxu1  ;;  %v1746_v28 = vpop.f32.mrf.mxu0 }
 0x20a   :  { %v12238_v30 = vadd.f32 %v12237_v44, %v12236_v3  ;;  %2104 = vrot.lane.b32.xlu1 %v13925_v63, %s13563_s11  ;;  %1804 = vrot.lane.b32.xlu0 %v13921_v57, %s13567_s15  ;;  %v11419_v31 = vpack.c.bf16 %v13939_v27, %v13937_v25  ;;  %v12177_v3 = vadd.f32 %v13915_v43, %v13911_v41 }
 0x20b   :  { %v12239_v46 = vpop.f32.mrf.mxu1  ;;  %v1749_v47 = vpop.f32.mrf.mxu0 }
 0x20c   :  { %12037 = vst [vmem:[#allocation2 + $0x2d8] sm:$0xff] %v11419_v31   ;;  %v1648_v54 = vadd.f32 %v12238_v30, %v12168_v49  ;;  %v13954_v58 = vadd.f32 %v1749_v47, %v1645_v53  ;;  %v12186_v53 = vadd.f32 %v13879_v14, %v13877_v13 }
 0x20d   :  { %v12240_v51 = vpop.f32.mrf.mxu1  ;;  %v1751_v52 = vpop.f32.mrf.mxu0 }
 0x20e   :  { %1806 = vrot.lane.b32.xlu1 %v13925_v63, %s13567_s15  ;;  %2847 = vrot.lane.b32.xlu0 %v13921_v57, %s13561_s5  ;;  %v12241_v34 = vadd.f32 %v12240_v51, %v12239_v46 }
 0x20f   :  { %v12242_v55 = vpop.f32.mrf.mxu1  ;;  %v1752_v56 = vpop.f32.mrf.mxu0 }
 0x210   :  { %v13956_v59 = vadd.f32 %v1752_v56, %v1648_v54  ;;  %v1653_v8 = vadd.f32 %v12241_v34, %v12171_v4 }
 0x211   :  { %v12243_v32 = vpop.f32.mrf.mxu1  ;;  %v1754_v33 = vpop.f32.mrf.mxu0 }
 0x212   :  { %v12244_v35 = vadd.f32 %v12243_v32, %v12242_v55  ;;  %2849 = vrot.lane.b32.xlu1 %v13925_v63, %s13561_s5  ;;  %2549 = vrot.lane.b32.xlu0 %v13921_v57, %s13564_s12  ;;  %v11424_v60 = vpack.c.bf16 %v13956_v59, %v13954_v58 }
 0x213   :  { %v12245_v61 = vpop.f32.mrf.mxu1  ;;  %v1757_v62 = vpop.f32.mrf.mxu0 }
 0x214   :  { %12038 = vst [vmem:[#allocation2 + $0x2e0] sm:$0xff] %v11424_v60   ;;  %v1656_v10 = vadd.f32 %v12244_v35, %v12174_v5  ;;  %v13972_v16 = vadd.f32 %v1757_v62, %v1653_v8 }
 0x215   :  { %v12246_v6 = vpop.f32.mrf.mxu1  ;;  %v1759_v7 = vpop.f32.mrf.mxu0 }
 0x216   :  { %2551 = vrot.lane.b32.xlu1 %v13925_v63, %s13564_s12  ;;  %2698 = vrot.lane.b32.xlu0 %v13921_v57, %s13562_s0  ;;  %v12247_v38 = vadd.f32 %v12246_v6, %v12245_v61  ;;  %v12192_v6 = vadd.f32 %v13885_v17, %v13883_v0 }
 0x217   :  { %v12248_v11 = vpop.f32.mrf.mxu1  ;;  %v1760_v15 = vpop.f32.mrf.mxu0 }
 0x218   :  { %v13974_v18 = vadd.f32 %v1760_v15, %v1656_v10  ;;  %v1661_v29 = vadd.f32 %v12247_v38, %v12177_v3  ;;  %v12198_v3 = vadd.f32 %v13891_v23, %v13889_v2 }
 0x219   :  { %v12249_v36 = vpop.f32.mrf.mxu1  ;;  %v1762_v37 = vpop.f32.mrf.mxu0 }
 0x21a   :  { %v12250_v39 = vadd.f32 %v12249_v36, %v12248_v11  ;;  %2700 = vrot.lane.b32.xlu1 %v13925_v63, %s13562_s0  ;;  %2400 = vrot.lane.b32.xlu0 %v13921_v57, %s13566_s14  ;;  %v11429_v19 = vpack.c.bf16 %v13974_v18, %v13972_v16 }
 0x21b   :  { %v12251_v20 = vpop.f32.mrf.mxu1  ;;  %v1765_v22 = vpop.f32.mrf.mxu0 }
 0x21c   :  { %12039 = vst [vmem:[#allocation2 + $0x2e8] sm:$0xff] %v11429_v19   ;;  %v1664_v30 = vadd.f32 %v12250_v39, %v12180_v24  ;;  %v13990_v47 = vadd.f32 %v1765_v22, %v1661_v29 }
 0x21d   :  { %v12252_v44 = vpop.f32.mrf.mxu1  ;;  %v1767_v28 = vpop.f32.mrf.mxu0 }
 0x21e   :  { %2402 = vrot.lane.b32.xlu1 %v13925_v63, %s13566_s14  ;;  %2255 = vrot.lane.b32.xlu0 %v13937_v25, %s13560_s30  ;;  %v12253_v45 = vadd.f32 %v12252_v44, %v12251_v20 }
 0x21f   :  { %v12254_v31 = vpop.f32.mrf.mxu1  ;;  %v1768_v46 = vpop.f32.mrf.mxu0 }
 0x220   :  { %v13992_v48 = vadd.f32 %v1768_v46, %v1664_v30  ;;  %v1669_v56 = vadd.f32 %v12253_v45, %v13875_v12 }
 0x221   :  { %v12255_v41 = vpop.f32.mrf.mxu1  ;;  %v1770_v43 = vpop.f32.mrf.mxu0 }
 0x222   :  { %v12256_v50 = vadd.f32 %v12255_v41, %v12254_v31  ;;  %2257 = vrot.lane.b32.xlu1 %v13939_v27, %s13560_s30  ;;  %1957 = vrot.lane.b32.xlu0 %v13937_v25, %s13565_s13  ;;  %v11434_v49 = vpack.c.bf16 %v13992_v48, %v13990_v47 }
 0x223   :  { %v12257_v51 = vpop.f32.mrf.mxu1  ;;  %v1773_v52 = vpop.f32.mrf.mxu0 }
 0x224   :  { %12040 = vst [vmem:[#allocation2 + $0x2f0] sm:$0xff] %v11434_v49   ;;  %v1672_v32 = vadd.f32 %v12256_v50, %v12186_v53  ;;  %v14007_v35 = vadd.f32 %v1773_v52, %v1669_v56  ;;  %v12204_v49 = vadd.f32 %v13913_v42, %v13909_v40  ;;  %v14115_v42 = vld [vmem:[%s16206_s1 + $0x3] ss:$0 sm:$0xff] }
 0x225   :  { %v12258_v54 = vpop.f32.mrf.mxu1  ;;  %v1775_v55 = vpop.f32.mrf.mxu0 }
 0x226   :  { %1959 = vrot.lane.b32.xlu1 %v13939_v27, %s13565_s13  ;;  %2106 = vrot.lane.b32.xlu0 %v13937_v25, %s13563_s11  ;;  %v12259_v14 = vadd.f32 %v12258_v54, %v12257_v51 }
 0x227   :  { %v12260_v33 = vpop.f32.mrf.mxu1  ;;  %v1776_v34 = vpop.f32.mrf.mxu0 }
 0x228   :  { %v14009_v60 = vadd.f32 %v1776_v34, %v1672_v32  ;;  %v1677_v10 = vadd.f32 %v12259_v14, %v13881_v1  ;;  %v14126_v14 = vld [vmem:[%s16206_s1 + $0x1] ss:$0 sm:$0xff] }
 0x229   :  { %v12261_v61 = vpop.f32.mrf.mxu1  ;;  %v1778_v13 = vpop.f32.mrf.mxu0 }
 0x22a   :  { %v12262_v62 = vadd.f32 %v12261_v61, %v12260_v33  ;;  %2108 = vrot.lane.b32.xlu1 %v13939_v27, %s13563_s11  ;;  %1808 = vrot.lane.b32.xlu0 %v13937_v25, %s13567_s15  ;;  %v11439_v12 = vpack.c.bf16 %v14009_v60, %v14007_v35 }
 0x22b   :  { %v12263_v4 = vpop.f32.mrf.mxu1  ;;  %v1781_v5 = vpop.f32.mrf.mxu0 }
 0x22c   :  { %12041 = vst [vmem:[#allocation2 + $0x2f8] sm:$0xff] %v11439_v12   ;;  %v1680_v11 = vadd.f32 %v12262_v62, %v12192_v6  ;;  %v14024_v37 = vadd.f32 %v1781_v5, %v1677_v10 }
 0x22d   :  { %v12264_v7 = vpop.f32.mrf.mxu1  ;;  %v1783_v8 = vpop.f32.mrf.mxu0 }
 0x22e   :  { %1810 = vrot.lane.b32.xlu1 %v13939_v27, %s13567_s15  ;;  %2553 = vrot.lane.b32.xlu0 %v13937_v25, %s13564_s12  ;;  %v12265_v17 = vadd.f32 %v12264_v7, %v12263_v4  ;;  %v14137_v7 = vld [vmem:[%s16206_s1 + $0x2] ss:$0 sm:$0xff] }
 0x22f   :  { %v12266_v15 = vpop.f32.mrf.mxu1  ;;  %v1784_v36 = vpop.f32.mrf.mxu0 }
 0x230   :  { %v14026_v38 = vadd.f32 %v1784_v36, %v1680_v11  ;;  %v1685_v28 = vadd.f32 %v12265_v17, %v13887_v21 }
 0x231   :  { %v12267_v39 = vpop.f32.mrf.mxu1  ;;  %v1786_v0 = vpop.f32.mrf.mxu0 }
 0x232   :  { %v12268_v19 = vadd.f32 %v12267_v39, %v12266_v15  ;;  %2555 = vrot.lane.b32.xlu1 %v13939_v27, %s13564_s12  ;;  %2702 = vrot.lane.b32.xlu0 %v13937_v25, %s13562_s0  ;;  %v11444_v1 = vpack.c.bf16 %v14026_v38, %v14024_v37  ;;  %v14148_v39 = vld [vmem:[%s16206_s1] ss:$0 sm:$0xff] }
 0x233   :  { %v12269_v20 = vpop.f32.mrf.mxu1  ;;  %v1789_v22 = vpop.f32.mrf.mxu0 }
 0x234   :  { %12042 = vst [vmem:[#allocation2 + $0x300] sm:$0xff] %v11444_v1   ;;  %v1688_v29 = vadd.f32 %v12268_v19, %v12198_v3  ;;  %v14041_v46 = vadd.f32 %v1789_v22, %v1685_v28  ;;  %v14159_v22 = vld [vmem:[%s16206_s1 + $0x7] ss:$0 sm:$0xff] }
 0x235   :  { %v12270_v24 = vpop.f32.mrf.mxu1  ;;  %v1791_v44 = vpop.f32.mrf.mxu0 }
 0x236   :  { %2704 = vrot.lane.b32.xlu1 %v13939_v27, %s13562_s0  ;;  %2404 = vrot.lane.b32.xlu0 %v13937_v25, %s13566_s14  ;;  %v12271_v23 = vadd.f32 %v12270_v24, %v12269_v20 }
 0x237   :  { %v12272_v30 = vpop.f32.mrf.mxu1  ;;  %v1792_v31 = vpop.f32.mrf.mxu0 }
 0x238   :  { %v14043_v41 = vadd.f32 %v1792_v31, %v1688_v29  ;;  %v1693_v52 = vadd.f32 %v12271_v23, %v13893_v26 }
 0x239   :  { %v12273_v43 = vpop.f32.mrf.mxu1  ;;  %v1794_v2 = vpop.f32.mrf.mxu0 }
 0x23a   :  { %v12274_v45 = vadd.f32 %v12273_v43, %v12272_v30  ;;  %2406 = vrot.lane.b32.xlu1 %v13939_v27, %s13566_s14  ;;  %2259 = vrot.lane.b32.xlu0 %v13954_v58, %s13560_s30  ;;  %v11449_v21 = vpack.c.bf16 %v14043_v41, %v14041_v46  ;;  %v14170_v30 = vld [vmem:[%s16206_s1 + $0x5] ss:$0 sm:$0xff] }
 0x23b   :  { %v1797_v50 = vpop.f32.mrf.mxu0 }
 0x23c   :  { %12043 = vst [vmem:[#allocation2 + $0x308] sm:$0xff] %v11449_v21   ;;  %v1696_v53 = vadd.f32 %v12274_v45, %v12204_v49  ;;  %v14058_v55 = vadd.f32 %v1797_v50, %v1693_v52  ;;  %v14181_v21 = vld [vmem:[%s16206_s1 + $0x6] ss:$0 sm:$0xff] }
 0x23d   :  { %v1799_v51 = vpop.f32.mrf.mxu0 }
 0x23e   :  { %2261 = vrot.lane.b32.xlu1 %v13956_v59, %s13560_s30  ;;  %1961 = vrot.lane.b32.xlu0 %v13954_v58, %s13565_s13 }
 0x23f   :  { %v1800_v54 = vpop.f32.mrf.mxu0 }
 0x240   :  { %v14060_v56 = vadd.f32 %v1800_v54, %v1696_v53  ;;  %v14192_v54 = vld [vmem:[%s16206_s1 + $0x4] ss:$0 sm:$0xff] }
 0x241   :  { %v1802_v32 = vpop.f32.mrf.mxu0 }
 0x242   :  { %1963 = vrot.lane.b32.xlu1 %v13956_v59, %s13565_s13  ;;  %2110 = vrot.lane.b32.xlu0 %v13954_v58, %s13563_s11  ;;  %v11454_v26 = vpack.c.bf16 %v14060_v56, %v14058_v55 }
 0x244   :  { %12044 = vst [vmem:[#allocation2 + $0x310] sm:$0xff] %v11454_v26  }
 0x246   :  { %2112 = vrot.lane.b32.xlu1 %v13956_v59, %s13563_s11  ;;  %1812 = vrot.lane.b32.xlu0 %v13954_v58, %s13567_s15 }
 0x24a   :  { %1814 = vrot.lane.b32.xlu1 %v13956_v59, %s13567_s15  ;;  %2557 = vrot.lane.b32.xlu0 %v13954_v58, %s13564_s12 }
 0x24e   :  { %2559 = vrot.lane.b32.xlu1 %v13956_v59, %s13564_s12  ;;  %2408 = vrot.lane.b32.xlu0 %v13954_v58, %s13566_s14 }
 0x252   :  { %2410 = vrot.lane.b32.xlu1 %v13956_v59, %s13566_s14  ;;  %2706 = vrot.lane.b32.xlu0 %v13954_v58, %s13562_s0 }
 0x256   :  { %2708 = vrot.lane.b32.xlu1 %v13956_v59, %s13562_s0  ;;  %2263 = vrot.lane.b32.xlu0 %v13972_v16, %s13560_s30 }
 0x25a   :  { %2265 = vrot.lane.b32.xlu1 %v13974_v18, %s13560_s30  ;;  %1965 = vrot.lane.b32.xlu0 %v13972_v16, %s13565_s13 }
 0x25e   :  { %1967 = vrot.lane.b32.xlu1 %v13974_v18, %s13565_s13  ;;  %2114 = vrot.lane.b32.xlu0 %v13972_v16, %s13563_s11 }
 0x262   :  { %2116 = vrot.lane.b32.xlu1 %v13974_v18, %s13563_s11  ;;  %1816 = vrot.lane.b32.xlu0 %v13972_v16, %s13567_s15 }
 0x266   :  { %1818 = vrot.lane.b32.xlu1 %v13974_v18, %s13567_s15  ;;  %2412 = vrot.lane.b32.xlu0 %v13972_v16, %s13566_s14 }
 0x26a   :  { %2414 = vrot.lane.b32.xlu1 %v13974_v18, %s13566_s14  ;;  %2710 = vrot.lane.b32.xlu0 %v13972_v16, %s13562_s0 }
 0x26e   :  { %2712 = vrot.lane.b32.xlu1 %v13974_v18, %s13562_s0  ;;  %2561 = vrot.lane.b32.xlu0 %v13972_v16, %s13564_s12 }
 0x270   :  { %v2252_v40 = vpop.permute.xlu0 %2251 }
 0x271   :  { %v2292_v61 = vmul.f32 %v14115_v42, %v2252_v40 }
 0x272   :  { %2563 = vrot.lane.b32.xlu1 %v13974_v18, %s13564_s12  ;;  %3008 = vrot.lane.b32.xlu0 %v13972_v16, %s13578_s8 }
 0x274   :  { %v2254_v33 = vpop.permute.xlu1 %2253  ;;  %v1954_v34 = vpop.permute.xlu0 %1953 }
 0x275   :  { %v2293_v13 = vmul.f32 %v14115_v42, %v2254_v33  ;;  %v1994_v5 = vmul.f32 %v14126_v14, %v1954_v34 }
 0x276   :  { %3010 = vrot.lane.b32.xlu1 %v13974_v18, %s13578_s8  ;;  %3157 = vrot.lane.b32.xlu0 %v13972_v16, %s13575_s23 }
 0x277   :  { %v11099_v62 = vpack.c.bf16 %v2293_v13, %v2292_v61 }
 0x278   :  { %v1956_v12 = vpop.permute.xlu1 %1955  ;;  %v2103_v4 = vpop.permute.xlu0 %2102 }
 0x279   :  { %11973 = vst [vmem:[#allocation2 + $0xd8] sm:$0xff] %v11099_v62   ;;  %v1995_v6 = vmul.f32 %v14126_v14, %v1956_v12  ;;  %v2143_v15 = vmul.f32 %v14137_v7, %v2103_v4 }
 0x27a   :  { %3159 = vrot.lane.b32.xlu1 %v13974_v18, %s13575_s23  ;;  %2267 = vrot.lane.b32.xlu0 %v13990_v47, %s13560_s30 }
 0x27b   :  { %v11009_v8 = vpack.c.bf16 %v1995_v6, %v1994_v5 }
 0x27c   :  { %v2105_v10 = vpop.permute.xlu1 %2104  ;;  %v1805_v11 = vpop.permute.xlu0 %1804 }
 0x27d   :  { %11955 = vst [vmem:[#allocation2 + $0x48] sm:$0xff] %v11009_v8   ;;  %v2144_v36 = vmul.f32 %v14137_v7, %v2105_v10  ;;  %v1845_v1 = vmul.f32 %v14148_v39, %v1805_v11 }
 0x27e   :  { %2269 = vrot.lane.b32.xlu1 %v13992_v48, %s13560_s30  ;;  %1969 = vrot.lane.b32.xlu0 %v13990_v47, %s13565_s13 }
 0x27f   :  { %v11054_v0 = vpack.c.bf16 %v2144_v36, %v2143_v15 }
 0x280   :  { %v1807_v17 = vpop.permute.xlu1 %1806  ;;  %v2848_v19 = vpop.permute.xlu0 %2847 }
 0x281   :  { %11964 = vst [vmem:[#allocation2 + $0x90] sm:$0xff] %v11054_v0   ;;  %v1846_v20 = vmul.f32 %v14148_v39, %v1807_v17  ;;  %v2888_v28 = vmul.f32 %v14159_v22, %v2848_v19 }
 0x282   :  { %1971 = vrot.lane.b32.xlu1 %v13992_v48, %s13565_s13  ;;  %2118 = vrot.lane.b32.xlu0 %v13990_v47, %s13563_s11 }
 0x283   :  { %v10964_v3 = vpack.c.bf16 %v1846_v20, %v1845_v1 }
 0x284   :  { %v2850_v24 = vpop.permute.xlu1 %2849  ;;  %v2550_v44 = vpop.permute.xlu0 %2549 }
 0x285   :  { %10965 = vst [vmem:[#allocation2] sm:$0xff] %v10964_v3   ;;  %v2889_v29 = vmul.f32 %v14159_v22, %v2850_v24  ;;  %v2590_v23 = vmul.f32 %v14170_v30, %v2550_v44 }
 0x286   :  { %2120 = vrot.lane.b32.xlu1 %v13992_v48, %s13563_s11  ;;  %1820 = vrot.lane.b32.xlu0 %v13990_v47, %s13567_s15 }
 0x287   :  { %v11279_v31 = vpack.c.bf16 %v2889_v29, %v2888_v28 }
 0x288   :  { %v2552_v43 = vpop.permute.xlu1 %2551  ;;  %v2699_v2 = vpop.permute.xlu0 %2698 }
 0x289   :  { %12009 = vst [vmem:[#allocation2 + $0x1f8] sm:$0xff] %v11279_v31   ;;  %v2591_v45 = vmul.f32 %v14170_v30, %v2552_v43  ;;  %v2739_v52 = vmul.f32 %v14181_v21, %v2699_v2 }
 0x28a   :  { %1822 = vrot.lane.b32.xlu1 %v13992_v48, %s13567_s15  ;;  %2714 = vrot.lane.b32.xlu0 %v13990_v47, %s13562_s0 }
 0x28b   :  { %v11189_v50 = vpack.c.bf16 %v2591_v45, %v2590_v23 }
 0x28c   :  { %v2701_v49 = vpop.permute.xlu1 %2700  ;;  %v2401_v51 = vpop.permute.xlu0 %2400 }
 0x28d   :  { %11991 = vst [vmem:[#allocation2 + $0x168] sm:$0xff] %v11189_v50   ;;  %v2740_v53 = vmul.f32 %v14181_v21, %v2701_v49  ;;  %v2441_v33 = vmul.f32 %v14192_v54, %v2401_v51 }
 0x28e   :  { %2716 = vrot.lane.b32.xlu1 %v13992_v48, %s13562_s0  ;;  %2416 = vrot.lane.b32.xlu0 %v13990_v47, %s13566_s14 }
 0x28f   :  { %v11234_v32 = vpack.c.bf16 %v2740_v53, %v2739_v52 }
 0x290   :  { %v2403_v26 = vpop.permute.xlu1 %2402  ;;  %v2256_v40 = vpop.permute.xlu0 %2255 }
 0x291   :  { %12000 = vst [vmem:[#allocation2 + $0x1b0] sm:$0xff] %v11234_v32   ;;  %v2442_v34 = vmul.f32 %v14192_v54, %v2403_v26  ;;  %v2294_v12 = vmul.f32 %v14115_v42, %v2256_v40 }
 0x292   :  { %2418 = vrot.lane.b32.xlu1 %v13992_v48, %s13566_s14  ;;  %2565 = vrot.lane.b32.xlu0 %v13990_v47, %s13564_s12 }
 0x293   :  { %v11144_v61 = vpack.c.bf16 %v2442_v34, %v2441_v33 }
 0x294   :  { %v2258_v13 = vpop.permute.xlu1 %2257  ;;  %v1958_v62 = vpop.permute.xlu0 %1957 }
 0x295   :  { %11982 = vst [vmem:[#allocation2 + $0x120] sm:$0xff] %v11144_v61   ;;  %v2295_v4 = vmul.f32 %v14115_v42, %v2258_v13  ;;  %v1996_v10 = vmul.f32 %v14126_v14, %v1958_v62 }
 0x296   :  { %2567 = vrot.lane.b32.xlu1 %v13992_v48, %s13564_s12  ;;  %3012 = vrot.lane.b32.xlu0 %v13990_v47, %s13578_s8 }
 0x297   :  { %v11104_v5 = vpack.c.bf16 %v2295_v4, %v2294_v12 }
 0x298   :  { %v1960_v6 = vpop.permute.xlu1 %1959  ;;  %v2107_v8 = vpop.permute.xlu0 %2106 }
 0x299   :  { %11974 = vst [vmem:[#allocation2 + $0xe0] sm:$0xff] %v11104_v5   ;;  %v1997_v11 = vmul.f32 %v14126_v14, %v1960_v6  ;;  %v2145_v17 = vmul.f32 %v14137_v7, %v2107_v8 }
 0x29a   :  { %3014 = vrot.lane.b32.xlu1 %v13992_v48, %s13578_s8  ;;  %3161 = vrot.lane.b32.xlu0 %v13990_v47, %s13575_s23 }
 0x29b   :  { %v11014_v15 = vpack.c.bf16 %v1997_v11, %v1996_v10 }
 0x29c   :  { %v2109_v36 = vpop.permute.xlu1 %2108  ;;  %v1809_v0 = vpop.permute.xlu0 %1808 }
 0x29d   :  { %11956 = vst [vmem:[#allocation2 + $0x50] sm:$0xff] %v11014_v15   ;;  %v2146_v19 = vmul.f32 %v14137_v7, %v2109_v36  ;;  %v1847_v24 = vmul.f32 %v14148_v39, %v1809_v0 }
 0x29e   :  { %3163 = vrot.lane.b32.xlu1 %v13992_v48, %s13575_s23  ;;  %2863 = vrot.lane.b32.xlu0 %v13990_v47, %s13561_s5 }
 0x29f   :  { %v11059_v1 = vpack.c.bf16 %v2146_v19, %v2145_v17 }
 0x2a0   :  { %v1811_v20 = vpop.permute.xlu1 %1810  ;;  %v2554_v3 = vpop.permute.xlu0 %2553 }
 0x2a1   :  { %11965 = vst [vmem:[#allocation2 + $0x98] sm:$0xff] %v11059_v1   ;;  %v1848_v44 = vmul.f32 %v14148_v39, %v1811_v20  ;;  %v2592_v43 = vmul.f32 %v14170_v30, %v2554_v3 }
 0x2a2   :  { %2865 = vrot.lane.b32.xlu1 %v13992_v48, %s13561_s5  ;;  %1973 = vrot.lane.b32.xlu0 %v14007_v35, %s13565_s13 }
 0x2a3   :  { %v10969_v28 = vpack.c.bf16 %v1848_v44, %v1847_v24 }
 0x2a4   :  { %v2556_v29 = vpop.permute.xlu1 %2555  ;;  %v2703_v31 = vpop.permute.xlu0 %2702 }
 0x2a5   :  { %11947 = vst [vmem:[#allocation2 + $0x8] sm:$0xff] %v10969_v28   ;;  %v2593_v2 = vmul.f32 %v14170_v30, %v2556_v29  ;;  %v2741_v49 = vmul.f32 %v14181_v21, %v2703_v31 }
 0x2a6   :  { %1975 = vrot.lane.b32.xlu1 %v14009_v60, %s13565_s13  ;;  %2122 = vrot.lane.b32.xlu0 %v14007_v35, %s13563_s11 }
 0x2a7   :  { %v11194_v23 = vpack.c.bf16 %v2593_v2, %v2592_v43 }
 0x2a8   :  { %v2705_v45 = vpop.permute.xlu1 %2704  ;;  %v2405_v50 = vpop.permute.xlu0 %2404 }
 0x2a9   :  { %11992 = vst [vmem:[#allocation2 + $0x170] sm:$0xff] %v11194_v23   ;;  %v2742_v51 = vmul.f32 %v14181_v21, %v2705_v45  ;;  %v2443_v26 = vmul.f32 %v14192_v54, %v2405_v50 }
 0x2aa   :  { %2124 = vrot.lane.b32.xlu1 %v14009_v60, %s13563_s11  ;;  %1824 = vrot.lane.b32.xlu0 %v14007_v35, %s13567_s15 }
 0x2ab   :  { %v11239_v52 = vpack.c.bf16 %v2742_v51, %v2741_v49 }
 0x2ac   :  { %v2407_v53 = vpop.permute.xlu1 %2406  ;;  %v2260_v32 = vpop.permute.xlu0 %2259 }
 0x2ad   :  { %12001 = vst [vmem:[#allocation2 + $0x1b8] sm:$0xff] %v11239_v52   ;;  %v2444_v40 = vmul.f32 %v14192_v54, %v2407_v53  ;;  %v2296_v13 = vmul.f32 %v14115_v42, %v2260_v32 }
 0x2ae   :  { %1826 = vrot.lane.b32.xlu1 %v14009_v60, %s13567_s15  ;;  %2718 = vrot.lane.b32.xlu0 %v14007_v35, %s13562_s0 }
 0x2af   :  { %v11149_v33 = vpack.c.bf16 %v2444_v40, %v2443_v26 }
 0x2b0   :  { %v2262_v34 = vpop.permute.xlu1 %2261  ;;  %v1962_v61 = vpop.permute.xlu0 %1961 }
 0x2b1   :  { %11983 = vst [vmem:[#allocation2 + $0x128] sm:$0xff] %v11149_v33   ;;  %v2297_v62 = vmul.f32 %v14115_v42, %v2262_v34  ;;  %v1998_v6 = vmul.f32 %v14126_v14, %v1962_v61 }
 0x2b2   :  { %2720 = vrot.lane.b32.xlu1 %v14009_v60, %s13562_s0  ;;  %2420 = vrot.lane.b32.xlu0 %v14007_v35, %s13566_s14 }
 0x2b3   :  { %v11109_v12 = vpack.c.bf16 %v2297_v62, %v2296_v13 }
 0x2b4   :  { %v1964_v4 = vpop.permute.xlu1 %1963  ;;  %v2111_v5 = vpop.permute.xlu0 %2110 }
 0x2b5   :  { %11975 = vst [vmem:[#allocation2 + $0xe8] sm:$0xff] %v11109_v12   ;;  %v1999_v8 = vmul.f32 %v14126_v14, %v1964_v4  ;;  %v2147_v36 = vmul.f32 %v14137_v7, %v2111_v5 }
 0x2b6   :  { %2422 = vrot.lane.b32.xlu1 %v14009_v60, %s13566_s14  ;;  %2569 = vrot.lane.b32.xlu0 %v14007_v35, %s13564_s12 }
 0x2b7   :  { %v11019_v10 = vpack.c.bf16 %v1999_v8, %v1998_v6 }
 0x2b8   :  { %v2113_v11 = vpop.permute.xlu1 %2112  ;;  %v1813_v15 = vpop.permute.xlu0 %1812 }
 0x2b9   :  { %11957 = vst [vmem:[#allocation2 + $0x58] sm:$0xff] %v11019_v10   ;;  %v2148_v0 = vmul.f32 %v14137_v7, %v2113_v11  ;;  %v1849_v20 = vmul.f32 %v14148_v39, %v1813_v15 }
 0x2ba   :  { %2571 = vrot.lane.b32.xlu1 %v14009_v60, %s13564_s12  ;;  %2271 = vrot.lane.b32.xlu0 %v14007_v35, %s13560_s30 }
 0x2bb   :  { %v11064_v17 = vpack.c.bf16 %v2148_v0, %v2147_v36 }
 0x2bc   :  { %v1815_v19 = vpop.permute.xlu1 %1814  ;;  %v2558_v1 = vpop.permute.xlu0 %2557 }
 0x2bd   :  { %11966 = vst [vmem:[#allocation2 + $0xa0] sm:$0xff] %v11064_v17   ;;  %v1850_v3 = vmul.f32 %v14148_v39, %v1815_v19  ;;  %v2594_v29 = vmul.f32 %v14170_v30, %v2558_v1 }
 0x2be   :  { %2273 = vrot.lane.b32.xlu1 %v14009_v60, %s13560_s30  ;;  %3016 = vrot.lane.b32.xlu0 %v14007_v35, %s13578_s8 }
 0x2bf   :  { %v10974_v24 = vpack.c.bf16 %v1850_v3, %v1849_v20 }
 0x2c0   :  { %v2560_v44 = vpop.permute.xlu1 %2559  ;;  %v2409_v28 = vpop.permute.xlu0 %2408 }
 0x2c1   :  { %11948 = vst [vmem:[#allocation2 + $0x10] sm:$0xff] %v10974_v24   ;;  %v2595_v31 = vmul.f32 %v14170_v30, %v2560_v44  ;;  %v2445_v45 = vmul.f32 %v14192_v54, %v2409_v28 }
 0x2c2   :  { %3018 = vrot.lane.b32.xlu1 %v14009_v60, %s13578_s8  ;;  %3165 = vrot.lane.b32.xlu0 %v14007_v35, %s13575_s23 }
 0x2c3   :  { %v11199_v43 = vpack.c.bf16 %v2595_v31, %v2594_v29 }
 0x2c4   :  { %v2411_v2 = vpop.permute.xlu1 %2410  ;;  %v2707_v23 = vpop.permute.xlu0 %2706 }
 0x2c5   :  { %11993 = vst [vmem:[#allocation2 + $0x178] sm:$0xff] %v11199_v43   ;;  %v2446_v50 = vmul.f32 %v14192_v54, %v2411_v2  ;;  %v2743_v53 = vmul.f32 %v14181_v21, %v2707_v23 }
 0x2c6   :  { %3167 = vrot.lane.b32.xlu1 %v14009_v60, %s13575_s23  ;;  %2867 = vrot.lane.b32.xlu0 %v14007_v35, %s13561_s5 }
 0x2c7   :  { %v11154_v49 = vpack.c.bf16 %v2446_v50, %v2445_v45 }
 0x2c8   :  { %v2709_v51 = vpop.permute.xlu1 %2708  ;;  %v2264_v52 = vpop.permute.xlu0 %2263 }
 0x2c9   :  { %11984 = vst [vmem:[#allocation2 + $0x130] sm:$0xff] %v11154_v49   ;;  %v2744_v32 = vmul.f32 %v14181_v21, %v2709_v51  ;;  %v2298_v34 = vmul.f32 %v14115_v42, %v2264_v52 }
 0x2ca   :  { %2869 = vrot.lane.b32.xlu1 %v14009_v60, %s13561_s5  ;;  %1977 = vrot.lane.b32.xlu0 %v14024_v37, %s13565_s13 }
 0x2cb   :  { %v11244_v26 = vpack.c.bf16 %v2744_v32, %v2743_v53  ;;  %v14329_v53 = vld [vmem:[%s16206_s1 + $0x8] ss:$0 sm:$0xff] }
 0x2cc   :  { %v2266_v40 = vpop.permute.xlu1 %2265  ;;  %v1966_v33 = vpop.permute.xlu0 %1965 }
 0x2cd   :  { %12002 = vst [vmem:[#allocation2 + $0x1c0] sm:$0xff] %v11244_v26   ;;  %v2299_v61 = vmul.f32 %v14115_v42, %v2266_v40  ;;  %v2000_v4 = vmul.f32 %v14126_v14, %v1966_v33 }
 0x2ce   :  { %1979 = vrot.lane.b32.xlu1 %v14026_v38, %s13565_s13  ;;  %1828 = vrot.lane.b32.xlu0 %v14024_v37, %s13567_s15 }
 0x2cf   :  { %v11114_v13 = vpack.c.bf16 %v2299_v61, %v2298_v34  ;;  %v14340_v61 = vld [vmem:[%s16206_s1 + $0x9] ss:$0 sm:$0xff] }
 0x2d0   :  { %v1968_v62 = vpop.permute.xlu1 %1967  ;;  %v2115_v12 = vpop.permute.xlu0 %2114 }
 0x2d1   :  { %11976 = vst [vmem:[#allocation2 + $0xf0] sm:$0xff] %v11114_v13   ;;  %v2001_v5 = vmul.f32 %v14126_v14, %v1968_v62  ;;  %v2149_v11 = vmul.f32 %v14137_v7, %v2115_v12 }
 0x2d2   :  { %1830 = vrot.lane.b32.xlu1 %v14026_v38, %s13567_s15  ;;  %2126 = vrot.lane.b32.xlu0 %v14024_v37, %s13563_s11 }
 0x2d3   :  { %v11024_v6 = vpack.c.bf16 %v2001_v5, %v2000_v4 }
 0x2d4   :  { %v2117_v8 = vpop.permute.xlu1 %2116  ;;  %v1817_v10 = vpop.permute.xlu0 %1816 }
 0x2d5   :  { %11958 = vst [vmem:[#allocation2 + $0x60] sm:$0xff] %v11024_v6   ;;  %v2150_v15 = vmul.f32 %v14137_v7, %v2117_v8  ;;  %v1851_v19 = vmul.f32 %v14148_v39, %v1817_v10 }
 0x2d6   :  { %2128 = vrot.lane.b32.xlu1 %v14026_v38, %s13563_s11  ;;  %2722 = vrot.lane.b32.xlu0 %v14024_v37, %s13562_s0 }
 0x2d7   :  { %v11069_v36 = vpack.c.bf16 %v2150_v15, %v2149_v11 }
 0x2d8   :  { %v1819_v0 = vpop.permute.xlu1 %1818  ;;  %v2413_v17 = vpop.permute.xlu0 %2412 }
 0x2d9   :  { %11967 = vst [vmem:[#allocation2 + $0xa8] sm:$0xff] %v11069_v36   ;;  %v1852_v1 = vmul.f32 %v14148_v39, %v1819_v0  ;;  %v2447_v44 = vmul.f32 %v14192_v54, %v2413_v17 }
 0x2da   :  { %2724 = vrot.lane.b32.xlu1 %v14026_v38, %s13562_s0  ;;  %2424 = vrot.lane.b32.xlu0 %v14024_v37, %s13566_s14 }
 0x2db   :  { %v10979_v20 = vpack.c.bf16 %v1852_v1, %v1851_v19 }
 0x2dc   :  { %v2415_v3 = vpop.permute.xlu1 %2414  ;;  %v2711_v24 = vpop.permute.xlu0 %2710 }
 0x2dd   :  { %11949 = vst [vmem:[#allocation2 + $0x18] sm:$0xff] %v10979_v20   ;;  %v2448_v28 = vmul.f32 %v14192_v54, %v2415_v3  ;;  %v2745_v2 = vmul.f32 %v14181_v21, %v2711_v24 }
 0x2de   :  { %2426 = vrot.lane.b32.xlu1 %v14026_v38, %s13566_s14  ;;  %2573 = vrot.lane.b32.xlu0 %v14024_v37, %s13564_s12 }
 0x2df   :  { %v11159_v29 = vpack.c.bf16 %v2448_v28, %v2447_v44 }
 0x2e0   :  { %v2713_v31 = vpop.permute.xlu1 %2712  ;;  %v2562_v43 = vpop.permute.xlu0 %2561 }
 0x2e1   :  { %11985 = vst [vmem:[#allocation2 + $0x138] sm:$0xff] %v11159_v29   ;;  %v2746_v23 = vmul.f32 %v14181_v21, %v2713_v31  ;;  %v2596_v51 = vmul.f32 %v14170_v30, %v2562_v43 }
 0x2e2   :  { %2575 = vrot.lane.b32.xlu1 %v14026_v38, %s13564_s12  ;;  %2275 = vrot.lane.b32.xlu0 %v14024_v37, %s13560_s30 }
 0x2e3   :  { %v11249_v45 = vpack.c.bf16 %v2746_v23, %v2745_v2 }
 0x2e4   :  { %v2564_v50 = vpop.permute.xlu1 %2563  ;;  %v3009_v49 = vpop.permute.xlu0 %3008 }
 0x2e5   :  { %12003 = vst [vmem:[#allocation2 + $0x1c8] sm:$0xff] %v11249_v45   ;;  %v2597_v52 = vmul.f32 %v14170_v30, %v2564_v50  ;;  %v3043_v33 = vmul.f32 %v14329_v53, %v3009_v49 }
 0x2e6   :  { %2277 = vrot.lane.b32.xlu1 %v14026_v38, %s13560_s30  ;;  %3020 = vrot.lane.b32.xlu0 %v14024_v37, %s13578_s8 }
 0x2e7   :  { %v11204_v32 = vpack.c.bf16 %v2597_v52, %v2596_v51 }
 0x2e8   :  { %v3011_v26 = vpop.permute.xlu1 %3010  ;;  %v3158_v40 = vpop.permute.xlu0 %3157 }
 0x2e9   :  { %11994 = vst [vmem:[#allocation2 + $0x180] sm:$0xff] %v11204_v32   ;;  %v3044_v34 = vmul.f32 %v14329_v53, %v3011_v26  ;;  %v3192_v4 = vmul.f32 %v14340_v61, %v3158_v40 }
 0x2ea   :  { %3022 = vrot.lane.b32.xlu1 %v14026_v38, %s13578_s8  ;;  %3169 = vrot.lane.b32.xlu0 %v14024_v37, %s13575_s23 }
 0x2eb   :  { %v11339_v13 = vpack.c.bf16 %v3044_v34, %v3043_v33 }
 0x2ec   :  { %v3160_v62 = vpop.permute.xlu1 %3159  ;;  %v2268_v12 = vpop.permute.xlu0 %2267 }
 0x2ed   :  { %12021 = vst [vmem:[#allocation2 + $0x258] sm:$0xff] %v11339_v13   ;;  %v3193_v5 = vmul.f32 %v14340_v61, %v3160_v62  ;;  %v2300_v11 = vmul.f32 %v14115_v42, %v2268_v12 }
 0x2ee   :  { %3171 = vrot.lane.b32.xlu1 %v14026_v38, %s13575_s23  ;;  %2871 = vrot.lane.b32.xlu0 %v14024_v37, %s13561_s5 }
 0x2ef   :  { %v11384_v6 = vpack.c.bf16 %v3193_v5, %v3192_v4 }
 0x2f0   :  { %v2270_v8 = vpop.permute.xlu1 %2269  ;;  %v1970_v10 = vpop.permute.xlu0 %1969 }
 0x2f1   :  { %12030 = vst [vmem:[#allocation2 + $0x2a0] sm:$0xff] %v11384_v6   ;;  %v2301_v15 = vmul.f32 %v14115_v42, %v2270_v8  ;;  %v2002_v19 = vmul.f32 %v14126_v14, %v1970_v10 }
 0x2f2   :  { %2873 = vrot.lane.b32.xlu1 %v14026_v38, %s13561_s5  ;;  %1832 = vrot.lane.b32.xlu0 %v14041_v46, %s13567_s15 }
 0x2f3   :  { %v11119_v36 = vpack.c.bf16 %v2301_v15, %v2300_v11 }
 0x2f4   :  { %v1972_v0 = vpop.permute.xlu1 %1971  ;;  %v2119_v17 = vpop.permute.xlu0 %2118 }
 0x2f5   :  { %11977 = vst [vmem:[#allocation2 + $0xf8] sm:$0xff] %v11119_v36   ;;  %v2003_v1 = vmul.f32 %v14126_v14, %v1972_v0  ;;  %v2151_v44 = vmul.f32 %v14137_v7, %v2119_v17 }
 0x2f6   :  { %1834 = vrot.lane.b32.xlu1 %v14043_v41, %s13567_s15  ;;  %2130 = vrot.lane.b32.xlu0 %v14041_v46, %s13563_s11 }
 0x2f7   :  { %v11029_v20 = vpack.c.bf16 %v2003_v1, %v2002_v19 }
 0x2f8   :  { %v2121_v3 = vpop.permute.xlu1 %2120  ;;  %v1821_v24 = vpop.permute.xlu0 %1820 }
 0x2f9   :  { %11959 = vst [vmem:[#allocation2 + $0x68] sm:$0xff] %v11029_v20   ;;  %v2152_v28 = vmul.f32 %v14137_v7, %v2121_v3  ;;  %v1853_v23 = vmul.f32 %v14148_v39, %v1821_v24 }
 0x2fa   :  { %2132 = vrot.lane.b32.xlu1 %v14043_v41, %s13563_s11  ;;  %1981 = vrot.lane.b32.xlu0 %v14041_v46, %s13565_s13 }
 0x2fb   :  { %v11074_v29 = vpack.c.bf16 %v2152_v28, %v2151_v44 }
 0x2fc   :  { %v1823_v31 = vpop.permute.xlu1 %1822  ;;  %v2715_v43 = vpop.permute.xlu0 %2714  ;;  %v13211_v2 = vld [vmem:[#allocation2 + $0xf8] sm:$0xff]  }
 0x2fd   :  { %11968 = vst [vmem:[#allocation2 + $0xb0] sm:$0xff] %v11074_v29   ;;  %v1854_v45 = vmul.f32 %v14148_v39, %v1823_v31  ;;  %12345 = vmatprep.subr.bf16.mxu0 %v13211_v2  ;;  %v2747_v52 = vmul.f32 %v14181_v21, %v2715_v43 }
 0x2fe   :  { %1983 = vrot.lane.b32.xlu1 %v14043_v41, %s13565_s13  ;;  %2726 = vrot.lane.b32.xlu0 %v14041_v46, %s13562_s0 }
 0x2ff   :  { %v10984_v50 = vpack.c.bf16 %v1854_v45, %v1853_v23 }
 0x300   :  { %v2717_v49 = vpop.permute.xlu1 %2716  ;;  %v2417_v51 = vpop.permute.xlu0 %2416 }
 0x301   :  { %11950 = vst [vmem:[#allocation2 + $0x20] sm:$0xff] %v10984_v50   ;;  %v2748_v32 = vmul.f32 %v14181_v21, %v2717_v49  ;;  %v2449_v34 = vmul.f32 %v14192_v54, %v2417_v51 }
 0x302   :  { %2728 = vrot.lane.b32.xlu1 %v14043_v41, %s13562_s0  ;;  %2428 = vrot.lane.b32.xlu0 %v14041_v46, %s13566_s14 }
 0x303   :  { %v11254_v26 = vpack.c.bf16 %v2748_v32, %v2747_v52 }
 0x304   :  { %v2419_v40 = vpop.permute.xlu1 %2418  ;;  %v2566_v33 = vpop.permute.xlu0 %2565 }
 0x305   :  { %12004 = vst [vmem:[#allocation2 + $0x1d0] sm:$0xff] %v11254_v26   ;;  %v2450_v13 = vmul.f32 %v14192_v54, %v2419_v40  ;;  %v2598_v5 = vmul.f32 %v14170_v30, %v2566_v33 }
 0x306   :  { %2430 = vrot.lane.b32.xlu1 %v14043_v41, %s13566_s14  ;;  %2577 = vrot.lane.b32.xlu0 %v14041_v46, %s13564_s12 }
 0x307   :  { %v11164_v62 = vpack.c.bf16 %v2450_v13, %v2449_v34  ;;  %v14430_v13 = vld [vmem:[#allocation5] sm:$0xff] }
 0x308   :  { %v2568_v12 = vpop.permute.xlu1 %2567  ;;  %v3013_v4 = vpop.permute.xlu0 %3012 }
 0x309   :  { %11986 = vst [vmem:[#allocation2 + $0x140] sm:$0xff] %v11164_v62   ;;  %v2599_v6 = vmul.f32 %v14170_v30, %v2568_v12  ;;  %v3045_v15 = vmul.f32 %v14329_v53, %v3013_v4  ;;  %v14432_v62 = vld [vmem:[#allocation5 + $0x60] sm:$0xff] }
 0x30a   :  { %2579 = vrot.lane.b32.xlu1 %v14043_v41, %s13564_s12  ;;  %2279 = vrot.lane.b32.xlu0 %v14041_v46, %s13560_s30 }
 0x30b   :  { %v11209_v8 = vpack.c.bf16 %v2599_v6, %v2598_v5  ;;  %v9859_v5 = vcombine.high %v14430_v13, %v14432_v62 }
 0x30c   :  { %v3015_v10 = vpop.permute.xlu1 %3014  ;;  %v3162_v11 = vpop.permute.xlu0 %3161 }
 0x30d   :  { %11995 = vst [vmem:[#allocation2 + $0x188] sm:$0xff] %v11209_v8   ;;  %v3046_v36 = vmul.f32 %v14329_v53, %v3015_v10  ;;  %v3194_v1 = vmul.f32 %v14340_v61, %v3162_v11  ;;  %v9858_v8 = vcombine.low %v14430_v13, %v14432_v62  ;;  %7685 = vmatprep.mubr.bf16.mxu1 %v9859_v5 }
 0x30e   :  { %2281 = vrot.lane.b32.xlu1 %v14043_v41, %s13560_s30  ;;  %3024 = vrot.lane.b32.xlu0 %v14041_v46, %s13578_s8 }
 0x30f   :  { %v11344_v0 = vpack.c.bf16 %v3046_v36, %v3045_v15 }
 0x310   :  { %v3164_v17 = vpop.permute.xlu1 %3163  ;;  %v2864_v19 = vpop.permute.xlu0 %2863 }
 0x311   :  { %12022 = vst [vmem:[#allocation2 + $0x260] sm:$0xff] %v11344_v0   ;;  %v3195_v20 = vmul.f32 %v14340_v61, %v3164_v17  ;;  %v2896_v28 = vmul.f32 %v14159_v22, %v2864_v19  ;;  %v14450_v19 = vld [vmem:[#allocation5 + $0x8] sm:$0xff] }
 0x312   :  { %3026 = vrot.lane.b32.xlu1 %v14043_v41, %s13578_s8  ;;  %2875 = vrot.lane.b32.xlu0 %v14041_v46, %s13561_s5 }
 0x313   :  { %v11389_v3 = vpack.c.bf16 %v3195_v20, %v3194_v1  ;;  %v14452_v1 = vld [vmem:[#allocation5 + $0x68] sm:$0xff] }
 0x314   :  { %v2866_v24 = vpop.permute.xlu1 %2865  ;;  %v1974_v44 = vpop.permute.xlu0 %1973 }
 0x315   :  { %12031 = vst [vmem:[#allocation2 + $0x2a8] sm:$0xff] %v11389_v3   ;;  %v2897_v29 = vmul.f32 %v14159_v22, %v2866_v24  ;;  %v2004_v23 = vmul.f32 %v14126_v14, %v1974_v44  ;;  %v9861_v3 = vcombine.high %v14450_v19, %v14452_v1 }
 0x316   :  { %2877 = vrot.lane.b32.xlu1 %v14043_v41, %s13561_s5  ;;  %2134 = vrot.lane.b32.xlu0 %v14058_v55, %s13563_s11 }
 0x317   :  { %v11299_v31 = vpack.c.bf16 %v2897_v29, %v2896_v28  ;;  %7789 = vmatprep.mubr.bf16.mxu0 %v9861_v3 }
 0x318   :  { %v1976_v43 = vpop.permute.xlu1 %1975  ;;  %v2123_v2 = vpop.permute.xlu0 %2122 }
 0x319   :  { %12013 = vst [vmem:[#allocation2 + $0x218] sm:$0xff] %v11299_v31   ;;  %v2005_v45 = vmul.f32 %v14126_v14, %v1976_v43  ;;  %v2153_v52 = vmul.f32 %v14137_v7, %v2123_v2  ;;  %v13214_v31 = vld [vmem:[#allocation2 + $0xb0] sm:$0xff]   ;;  %v13215_v43 = vld [vmem:[#allocation2 + $0xe8] sm:$0xff]  }
 0x31a   :  { %3006 = vrot.lane.b32.xlu1 %v13956_v59, %s13578_s8  ;;  %1836 = vrot.lane.b32.xlu0 %v14058_v55, %s13567_s15 }
 0x31b   :  { %v11034_v50 = vpack.c.bf16 %v2005_v45, %v2004_v23 }
 0x31c   :  { %v2125_v49 = vpop.permute.xlu1 %2124  ;;  %v1825_v51 = vpop.permute.xlu0 %1824 }
 0x31d   :  { %11960 = vst [vmem:[#allocation2 + $0x70] sm:$0xff] %v11034_v50   ;;  %v2154_v32 = vmul.f32 %v14137_v7, %v2125_v49  ;;  %v1855_v33 = vmul.f32 %v14148_v39, %v1825_v51  ;;  %v13217_v51 = vld [vmem:[#allocation2 + $0xe0] sm:$0xff]  }
 0x31e   :  { %2136 = vrot.lane.b32.xlu1 %v14060_v56, %s13563_s11  ;;  %1985 = vrot.lane.b32.xlu0 %v14058_v55, %s13565_s13 }
 0x31f   :  { %v11079_v14 = vpack.c.bf16 %v2154_v32, %v2153_v52 }
 0x320   :  { %v1827_v26 = vpop.permute.xlu1 %1826  ;;  %v2719_v40 = vpop.permute.xlu0 %2718 }
 0x321   :  { %11969 = vst [vmem:[#allocation2 + $0xb8] sm:$0xff] %v11079_v14   ;;  %v1856_v34 = vmul.f32 %v14148_v39, %v1827_v26  ;;  %v2749_v6 = vmul.f32 %v14181_v21, %v2719_v40 }
 0x322   :  { %1838 = vrot.lane.b32.xlu1 %v14060_v56, %s13567_s15  ;;  %2730 = vrot.lane.b32.xlu0 %v14058_v55, %s13562_s0 }
 0x323   :  { %v10989_v7 = vpack.c.bf16 %v1856_v34, %v1855_v33  ;;  %v13218_v33 = vld [vmem:[#allocation2 + $0xa0] sm:$0xff]  }
 0x324   :  { %v2721_v12 = vpop.permute.xlu1 %2720  ;;  %v2421_v4 = vpop.permute.xlu0 %2420 }
 0x325   :  { %11951 = vst [vmem:[#allocation2 + $0x28] sm:$0xff] %v10989_v7   ;;  %v2750_v39 = vmul.f32 %v14181_v21, %v2721_v12  ;;  %v2451_v0 = vmul.f32 %v14192_v54, %v2421_v4  ;;  %v13213_v21 = vld [vmem:[#allocation2 + $0xf0] sm:$0xff]  }
 0x326   :  { %1987 = vrot.lane.b32.xlu1 %v14060_v56, %s13565_s13  ;;  %2432 = vrot.lane.b32.xlu0 %v14058_v55, %s13566_s14 }
 0x327   :  { %v11259_v10 = vpack.c.bf16 %v2750_v39, %v2749_v6  ;;  %v13220_v6 = vld [vmem:[#allocation2 + $0x98] sm:$0xff]  }
 0x328   :  { %v2423_v11 = vpop.permute.xlu1 %2422  ;;  %v2570_v15 = vpop.permute.xlu0 %2569  ;;  %v13212_v36 = vld [vmem:[#allocation2 + $0xb8] sm:$0xff]  }
 0x329   :  { %12005 = vst [vmem:[#allocation2 + $0x1d8] sm:$0xff] %v11259_v10   ;;  %v2452_v17 = vmul.f32 %v14192_v54, %v2423_v11  ;;  %12346 = vmatpush3.bf16.msra.mxu0 %v13212_v36  ;;  %v9860_v54 = vcombine.low %v14450_v19, %v14452_v1  ;;  %v2600_v28 = vmul.f32 %v14170_v30, %v2570_v15  ;;  %v13254_v19 = vld [vmem:[#allocation2 + $0x120] sm:$0xff]  }
 0x32a   :  { %2732 = vrot.lane.b32.xlu1 %v14060_v56, %s13562_s0  ;;  %2581 = vrot.lane.b32.xlu0 %v14058_v55, %s13564_s12  ;;  %v14723_v1 = vld [vmem:[#allocation5 + $0x188] sm:$0xff] }
 0x32b   :  { %v11169_v20 = vpack.c.bf16 %v2452_v17, %v2451_v0  ;;  %12347 = vmatprep.subr.bf16.mxu0 %v13213_v21 }
 0x32c   :  { %v2572_v24 = vpop.permute.xlu1 %2571  ;;  %v2272_v44 = vpop.permute.xlu0 %2271 }
 0x32d   :  { %11987 = vst [vmem:[#allocation2 + $0x148] sm:$0xff] %v11169_v20   ;;  %v2601_v29 = vmul.f32 %v14170_v30, %v2572_v24  ;;  %12348 = vmatpush3.bf16.msra.mxu0 %v13214_v31  ;;  %v2302_v50 = vmul.f32 %v14115_v42, %v2272_v44  ;;  %v13216_v30 = vld [vmem:[#allocation2 + $0xa8] sm:$0xff]   ;;  %v14491_v20 = vld [vmem:[%s16206_s1 + $0x1] ss:$0 sm:$0xff] }
 0x32e   :  { %2434 = vrot.lane.b32.xlu1 %v14060_v56, %s13566_s14  ;;  %2283 = vrot.lane.b32.xlu0 %v14058_v55, %s13560_s30 }
 0x32f   :  { %v11214_v2 = vpack.c.bf16 %v2601_v29, %v2600_v28  ;;  %12349 = vmatprep.subr.bf16.mxu0 %v13215_v43  ;;  %v14502_v29 = vld [vmem:[%s16206_s1] ss:$0 sm:$0xff] }
 0x330   :  { %v2274_v23 = vpop.permute.xlu1 %2273  ;;  %v3017_v45 = vpop.permute.xlu0 %3016 }
 0x331   :  { %11996 = vst [vmem:[#allocation2 + $0x190] sm:$0xff] %v11214_v2   ;;  %v2303_v49 = vmul.f32 %v14115_v42, %v2274_v23  ;;  %12350 = vmatpush3.bf16.msra.mxu0 %v13216_v30  ;;  %v3047_v26 = vmul.f32 %v14329_v53, %v3017_v45  ;;  %v13219_v42 = vld [vmem:[#allocation2 + $0xd8] sm:$0xff]  }
 0x332   :  { %2583 = vrot.lane.b32.xlu1 %v14060_v56, %s13564_s12  ;;  %2879 = vrot.lane.b32.xlu0 %v14058_v55, %s13561_s5 }
 0x333   :  { %v11124_v52 = vpack.c.bf16 %v2303_v49, %v2302_v50  ;;  %12351 = vmatprep.subr.bf16.mxu0 %v13217_v51  ;;  %v14513_v50 = vld [vmem:[%s16206_s1 + $0x2] ss:$0 sm:$0xff] }
 0x334   :  { %v3019_v32 = vpop.permute.xlu1 %3018  ;;  %v3166_v14 = vpop.permute.xlu0 %3165 }
 0x335   :  { %11978 = vst [vmem:[#allocation2 + $0x100] sm:$0xff] %v11124_v52   ;;  %v3048_v40 = vmul.f32 %v14329_v53, %v3019_v32  ;;  %12352 = vmatpush3.bf16.msra.mxu0 %v13218_v33  ;;  %v3196_v4 = vmul.f32 %v14340_v61, %v3166_v14 }
 0x336   :  { %2285 = vrot.lane.b32.xlu1 %v14060_v56, %s13560_s30  ;;  %3004 = vrot.lane.b32.xlu0 %v13954_v58, %s13578_s8 }
 0x337   :  { %v11349_v34 = vpack.c.bf16 %v3048_v40, %v3047_v26  ;;  %12353 = vmatprep.subr.bf16.mxu0 %v13219_v42  ;;  %v14524_v26 = vld [vmem:[%s16206_s1 + $0x6] ss:$0 sm:$0xff] }
 0x338   :  { %v3168_v7 = vpop.permute.xlu1 %3167  ;;  %v2868_v12 = vpop.permute.xlu0 %2867 }
 0x339   :  { %12023 = vst [vmem:[#allocation2 + $0x268] sm:$0xff] %v11349_v34   ;;  %v3197_v5 = vmul.f32 %v14340_v61, %v3168_v7  ;;  %12354 = vmatpush3.bf16.msra.mxu0 %v13220_v6  ;;  %v2898_v15 = vmul.f32 %v14159_v22, %v2868_v12  ;;  %v14535_v12 = vld [vmem:[%s16206_s1 + $0x4] ss:$0 sm:$0xff] }
 0x33a   :  { %2881 = vrot.lane.b32.xlu1 %v14060_v56, %s13561_s5  ;;  %2859 = vrot.lane.b32.xlu0 %v13972_v16, %s13561_s5 }
 0x33b   :  { %v11394_v39 = vpack.c.bf16 %v3197_v5, %v3196_v4 }
 0x33c   :  { %v2870_v10 = vpop.permute.xlu1 %2869  ;;  %v1978_v11 = vpop.permute.xlu0 %1977 }
 0x33d   :  { %12032 = vst [vmem:[#allocation2 + $0x2b0] sm:$0xff] %v11394_v39   ;;  %v2899_v36 = vmul.f32 %v14159_v22, %v2870_v10  ;;  %v2006_v3 = vmul.f32 %v14491_v20, %v1978_v11  ;;  %v14546_v11 = vld [vmem:[%s16206_s1 + $0x5] ss:$0 sm:$0xff] }
 0x33e   :  { %2861 = vrot.lane.b32.xlu1 %v13974_v18, %s13561_s5  ;;  %3153 = vrot.lane.b32.xlu0 %v13954_v58, %s13575_s23 }
 0x33f   :  { %v11304_v0 = vpack.c.bf16 %v2899_v36, %v2898_v15 }
 0x340   :  { %v1980_v17 = vpop.permute.xlu1 %1979  ;;  %v1829_v21 = vpop.permute.xlu0 %1828 }
 0x341   :  { %12014 = vst [vmem:[#allocation2 + $0x220] sm:$0xff] %v11304_v0   ;;  %v2007_v24 = vmul.f32 %v14491_v20, %v1980_v17  ;;  %v1857_v31 = vmul.f32 %v14502_v29, %v1829_v21 }
 0x342   :  { %3155 = vrot.lane.b32.xlu1 %v13956_v59, %s13575_s23  ;;  %3000 = vrot.lane.b32.xlu0 %v13937_v25, %s13578_s8 }
 0x343   :  { %v11039_v22 = vpack.c.bf16 %v2007_v24, %v2006_v3  ;;  %v14557_v3 = vld [vmem:[%s16206_s1 + $0x3] ss:$0 sm:$0xff] }
 0x344   :  { %v1831_v44 = vpop.permute.xlu1 %1830  ;;  %v2127_v28 = vpop.permute.xlu0 %2126 }
 0x345   :  { %11961 = vst [vmem:[#allocation2 + $0x78] sm:$0xff] %v11039_v22   ;;  %v1858_v43 = vmul.f32 %v14502_v29, %v1831_v44  ;;  %v2155_v49 = vmul.f32 %v14513_v50, %v2127_v28 }
 0x346   :  { %3002 = vrot.lane.b32.xlu1 %v13939_v27, %s13578_s8  ;;  %2855 = vrot.lane.b32.xlu0 %v13954_v58, %s13561_s5 }
 0x347   :  { %v10994_v2 = vpack.c.bf16 %v1858_v43, %v1857_v31 }
 0x348   :  { %v2129_v23 = vpop.permute.xlu1 %2128  ;;  %v2723_v45 = vpop.permute.xlu0 %2722 }
 0x349   :  { %11952 = vst [vmem:[#allocation2 + $0x30] sm:$0xff] %v10994_v2   ;;  %v2156_v30 = vmul.f32 %v14513_v50, %v2129_v23  ;;  %v2751_v40 = vmul.f32 %v14524_v26, %v2723_v45 }
 0x34a   :  { %2857 = vrot.lane.b32.xlu1 %v13956_v59, %s13561_s5  ;;  %3149 = vrot.lane.b32.xlu0 %v13937_v25, %s13575_s23 }
 0x34b   :  { %v11084_v51 = vpack.c.bf16 %v2156_v30, %v2155_v49 }
 0x34c   :  { %v2725_v52 = vpop.permute.xlu1 %2724  ;;  %v2425_v32 = vpop.permute.xlu0 %2424  ;;  %v13221_v14 = vld [vmem:[#allocation2 + $0x78] sm:$0xff]  }
 0x34d   :  { %11970 = vst [vmem:[#allocation2 + $0xc0] sm:$0xff] %v11084_v51   ;;  %v2752_v33 = vmul.f32 %v14524_v26, %v2725_v52  ;;  %12275 = vmatprep.subr.bf16.mxu1 %v13221_v14  ;;  %v2453_v4 = vmul.f32 %v14535_v12, %v2425_v32 }
 0x34e   :  { %3151 = vrot.lane.b32.xlu1 %v13939_v27, %s13575_s23  ;;  %2996 = vrot.lane.b32.xlu0 %v13921_v57, %s13578_s8 }
 0x34f   :  { %v11264_v42 = vpack.c.bf16 %v2752_v33, %v2751_v40  ;;  %v14580_v40 = vld [vmem:[%s16206_s1 + $0x7] ss:$0 sm:$0xff] }
 0x350   :  { %v2427_v34 = vpop.permute.xlu1 %2426  ;;  %v2574_v7 = vpop.permute.xlu0 %2573 }
 0x351   :  { %12006 = vst [vmem:[#allocation2 + $0x1e0] sm:$0xff] %v11264_v42   ;;  %v2454_v5 = vmul.f32 %v14535_v12, %v2427_v34  ;;  %v2602_v15 = vmul.f32 %v14546_v11, %v2574_v7 }
 0x352   :  { %2998 = vrot.lane.b32.xlu1 %v13925_v63, %s13578_s8  ;;  %2851 = vrot.lane.b32.xlu0 %v13937_v25, %s13561_s5 }
 0x353   :  { %v11174_v6 = vpack.c.bf16 %v2454_v5, %v2453_v4 }
 0x354   :  { %v2576_v39 = vpop.permute.xlu1 %2575  ;;  %v2276_v10 = vpop.permute.xlu0 %2275 }
 0x355   :  { %11988 = vst [vmem:[#allocation2 + $0x150] sm:$0xff] %v11174_v6   ;;  %v2603_v36 = vmul.f32 %v14546_v11, %v2576_v39  ;;  %v2304_v24 = vmul.f32 %v14557_v3, %v2276_v10 }
 0x356   :  { %2853 = vrot.lane.b32.xlu1 %v13939_v27, %s13561_s5  ;;  %3177 = vrot.lane.b32.xlu0 %v14058_v55, %s13575_s23 }
 0x357   :  { %v11219_v0 = vpack.c.bf16 %v2603_v36, %v2602_v15 }
 0x358   :  { %v2278_v17 = vpop.permute.xlu1 %2277  ;;  %v3021_v21 = vpop.permute.xlu0 %3020 }
 0x359   :  { %11997 = vst [vmem:[#allocation2 + $0x198] sm:$0xff] %v11219_v0   ;;  %v2305_v22 = vmul.f32 %v14557_v3, %v2278_v17  ;;  %v3049_v43 = vmul.f32 %v14329_v53, %v3021_v21 }
 0x35a   :  { %3179 = vrot.lane.b32.xlu1 %v14060_v56, %s13575_s23  ;;  %3145 = vrot.lane.b32.xlu0 %v13921_v57, %s13575_s23 }
 0x35b   :  { %v11129_v44 = vpack.c.bf16 %v2305_v22, %v2304_v24 }
 0x35c   :  { %v3023_v28 = vpop.permute.xlu1 %3022  ;;  %v3170_v31 = vpop.permute.xlu0 %3169 }
 0x35d   :  { %11979 = vst [vmem:[#allocation2 + $0x108] sm:$0xff] %v11129_v44   ;;  %v3050_v2 = vmul.f32 %v14329_v53, %v3023_v28  ;;  %v3198_v30 = vmul.f32 %v14340_v61, %v3170_v31 }
 0x35e   :  { %3147 = vrot.lane.b32.xlu1 %v13925_v63, %s13575_s23  ;;  %3173 = vrot.lane.b32.xlu0 %v14041_v46, %s13575_s23 }
 0x35f   :  { %v11354_v23 = vpack.c.bf16 %v3050_v2, %v3049_v43 }
 0x360   :  { %v3172_v45 = vpop.permute.xlu1 %3171  ;;  %v2872_v49 = vpop.permute.xlu0 %2871 }
 0x361   :  { %12024 = vst [vmem:[#allocation2 + $0x270] sm:$0xff] %v11354_v23   ;;  %v3199_v51 = vmul.f32 %v14340_v61, %v3172_v45  ;;  %v2900_v33 = vmul.f32 %v14580_v40, %v2872_v49  ;;  %v13223_v45 = vld [vmem:[#allocation2 + $0x70] sm:$0xff]  }
 0x362   :  { %3175 = vrot.lane.b32.xlu1 %v14043_v41, %s13575_s23  ;;  %3028 = vrot.lane.b32.xlu0 %v14058_v55, %s13578_s8 }
 0x363   :  { %v11399_v52 = vpack.c.bf16 %v3199_v51, %v3198_v30 }
 0x364   :  { %v2874_v32 = vpop.permute.xlu1 %2873  ;;  %v1833_v14 = vpop.permute.xlu0 %1832 }
 0x365   :  { %12033 = vst [vmem:[#allocation2 + $0x2b8] sm:$0xff] %v11399_v52   ;;  %v2901_v42 = vmul.f32 %v14580_v40, %v2874_v32  ;;  %v1859_v4 = vmul.f32 %v14502_v29, %v1833_v14  ;;  %v13224_v14 = vld [vmem:[#allocation2 + $0x30] sm:$0xff]  }
 0x366   :  { %3030 = vrot.lane.b32.xlu1 %v14060_v56, %s13578_s8  ;;  %3545 = vrot.lane.b32.xlu0 %v13972_v16, %s13577_s6 }
 0x367   :  { %v11309_v61 = vpack.c.bf16 %v2901_v42, %v2900_v33  ;;  %v13225_v33 = vld [vmem:[#allocation2 + $0x68] sm:$0xff]  }
 0x368   :  { %v1835_v34 = vpop.permute.xlu1 %1834  ;;  %v2131_v7 = vpop.permute.xlu0 %2130 }
 0x369   :  { %12015 = vst [vmem:[#allocation2 + $0x228] sm:$0xff] %v11309_v61   ;;  %v1860_v5 = vmul.f32 %v14502_v29, %v1835_v34  ;;  %v2157_v15 = vmul.f32 %v14513_v50, %v2131_v7 }
 0x36a   :  { %3547 = vrot.lane.b32.xlu1 %v13974_v18, %s13577_s6  ;;  %3400 = vrot.lane.b32.xlu0 %v13990_v47, %s13570_s18 }
 0x36b   :  { %v10999_v6 = vpack.c.bf16 %v1860_v5, %v1859_v4  ;;  %v13226_v5 = vld [vmem:[#allocation2 + $0x28] sm:$0xff]  }
 0x36c   :  { %v2133_v39 = vpop.permute.xlu1 %2132  ;;  %v1982_v10 = vpop.permute.xlu0 %1981 }
 0x36d   :  { %11953 = vst [vmem:[#allocation2 + $0x38] sm:$0xff] %v10999_v6   ;;  %v2158_v36 = vmul.f32 %v14513_v50, %v2133_v39  ;;  %v2008_v24 = vmul.f32 %v14491_v20, %v1982_v10  ;;  %v13227_v6 = vld [vmem:[#allocation2 + $0x60] sm:$0xff]  }
 0x36e   :  { %3402 = vrot.lane.b32.xlu1 %v13992_v48, %s13570_s18  ;;  %3541 = vrot.lane.b32.xlu0 %v13954_v58, %s13577_s6 }
 0x36f   :  { %v11089_v0 = vpack.c.bf16 %v2158_v36, %v2157_v15 }
 0x370   :  { %v1984_v17 = vpop.permute.xlu1 %1983  ;;  %v2727_v21 = vpop.permute.xlu0 %2726 }
 0x371   :  { %11971 = vst [vmem:[#allocation2 + $0xc8] sm:$0xff] %v11089_v0   ;;  %v2009_v22 = vmul.f32 %v14491_v20, %v1984_v17  ;;  %v2753_v2 = vmul.f32 %v14524_v26, %v2727_v21  ;;  %v13228_v17 = vld [vmem:[#allocation2 + $0x20] sm:$0xff]   ;;  %v13229_v21 = vld [vmem:[#allocation2 + $0x58] sm:$0xff]  }
 0x372   :  { %3543 = vrot.lane.b32.xlu1 %v13956_v59, %s13577_s6  ;;  %3396 = vrot.lane.b32.xlu0 %v13972_v16, %s13570_s18 }
 0x373   :  { %v11044_v44 = vpack.c.bf16 %v2009_v22, %v2008_v24 }
 0x374   :  { %v2729_v28 = vpop.permute.xlu1 %2728  ;;  %v2429_v31 = vpop.permute.xlu0 %2428  ;;  %v13222_v43 = vld [vmem:[#allocation2 + $0x38] sm:$0xff]  }
 0x375   :  { %11962 = vst [vmem:[#allocation2 + $0x80] sm:$0xff] %v11044_v44   ;;  %v2754_v23 = vmul.f32 %v14524_v26, %v2729_v28  ;;  %12276 = vmatpush3.bf16.msra.mxu1 %v13222_v43  ;;  %v2455_v52 = vmul.f32 %v14535_v12, %v2429_v31  ;;  %v13230_v43 = vld [vmem:[#allocation2 + $0x18] sm:$0xff]  }
 0x376   :  { %3398 = vrot.lane.b32.xlu1 %v13974_v18, %s13570_s18  ;;  %3835 = vrot.lane.b32.xlu0 %v13937_v25, %s13572_s20 }
 0x377   :  { %v11269_v49 = vpack.c.bf16 %v2754_v23, %v2753_v2  ;;  %12277 = vmatprep.subr.bf16.mxu1 %v13223_v45  ;;  %v13231_v2 = vld [vmem:[#allocation2 + $0x50] sm:$0xff]  }
 0x378   :  { %v2431_v30 = vpop.permute.xlu1 %2430  ;;  %v2578_v51 = vpop.permute.xlu0 %2577 }
 0x379   :  { %12007 = vst [vmem:[#allocation2 + $0x1e8] sm:$0xff] %v11269_v49   ;;  %v2456_v32 = vmul.f32 %v14535_v12, %v2431_v30  ;;  %12278 = vmatpush3.bf16.msra.mxu1 %v13224_v14  ;;  %v2604_v7 = vmul.f32 %v14546_v11, %v2578_v51 }
 0x37a   :  { %3837 = vrot.lane.b32.xlu1 %v13939_v27, %s13572_s20  ;;  %3690 = vrot.lane.b32.xlu0 %v13954_v58, %s13574_s22 }
 0x37b   :  { %v11179_v42 = vpack.c.bf16 %v2456_v32, %v2455_v52  ;;  %12279 = vmatprep.subr.bf16.mxu1 %v13225_v33  ;;  %v13232_v52 = vld [vmem:[#allocation2 + $0x10] sm:$0xff]  }
 0x37c   :  { %v2580_v61 = vpop.permute.xlu1 %2579  ;;  %v2280_v34 = vpop.permute.xlu0 %2279 }
 0x37d   :  { %11989 = vst [vmem:[#allocation2 + $0x158] sm:$0xff] %v11179_v42   ;;  %v2605_v4 = vmul.f32 %v14546_v11, %v2580_v61  ;;  %12280 = vmatpush3.bf16.msra.mxu1 %v13226_v5  ;;  %v2306_v36 = vmul.f32 %v14557_v3, %v2280_v34  ;;  %v13234_v42 = vld [vmem:[#allocation2 + $0x8] sm:$0xff]  }
 0x37e   :  { %3692 = vrot.lane.b32.xlu1 %v13956_v59, %s13574_s22  ;;  %3537 = vrot.lane.b32.xlu0 %v13937_v25, %s13577_s6 }
 0x37f   :  { %v11224_v39 = vpack.c.bf16 %v2605_v4, %v2604_v7  ;;  %12281 = vmatprep.subr.bf16.mxu1 %v13227_v6 }
 0x380   :  { %v2282_v10 = vpop.permute.xlu1 %2281  ;;  %v3025_v15 = vpop.permute.xlu0 %3024 }
 0x381   :  { %11998 = vst [vmem:[#allocation2 + $0x1a0] sm:$0xff] %v11224_v39   ;;  %v2307_v0 = vmul.f32 %v14557_v3, %v2282_v10  ;;  %12282 = vmatpush3.bf16.msra.mxu1 %v13228_v17  ;;  %v3051_v28 = vmul.f32 %v14329_v53, %v3025_v15 }
 0x382   :  { %3539 = vrot.lane.b32.xlu1 %v13939_v27, %s13577_s6  ;;  %3392 = vrot.lane.b32.xlu0 %v13954_v58, %s13570_s18 }
 0x383   :  { %v11134_v24 = vpack.c.bf16 %v2307_v0, %v2306_v36  ;;  %12283 = vmatprep.subr.bf16.mxu1 %v13229_v21 }
 0x384   :  { %v3027_v22 = vpop.permute.xlu1 %3026  ;;  %v2876_v44 = vpop.permute.xlu0 %2875 }
 0x385   :  { %11980 = vst [vmem:[#allocation2 + $0x110] sm:$0xff] %v11134_v24   ;;  %v3052_v31 = vmul.f32 %v14329_v53, %v3027_v22  ;;  %12284 = vmatpush3.bf16.msra.mxu1 %v13230_v43  ;;  %v2902_v30 = vmul.f32 %v14580_v40, %v2876_v44  ;;  %v13233_v53 = vld [vmem:[#allocation2 + $0x48] sm:$0xff]  }
 0x386   :  { %3394 = vrot.lane.b32.xlu1 %v13956_v59, %s13570_s18  ;;  %3831 = vrot.lane.b32.xlu0 %v13921_v57, %s13572_s20 }
 0x387   :  { %v11359_v23 = vpack.c.bf16 %v3052_v31, %v3051_v28  ;;  %12285 = vmatprep.subr.bf16.mxu1 %v13231_v2  ;;  %v13237_v2 = vld [vmem:[#allocation2 + $0xc8] sm:$0xff]  }
 0x388   :  { %v2878_v45 = vpop.permute.xlu1 %2877  ;;  %v2135_v49 = vpop.permute.xlu0 %2134 }
 0x389   :  { %12025 = vst [vmem:[#allocation2 + $0x278] sm:$0xff] %v11359_v23   ;;  %v2903_v51 = vmul.f32 %v14580_v40, %v2878_v45  ;;  %12286 = vmatpush3.bf16.msra.mxu1 %v13232_v52  ;;  %v2159_v7 = vmul.f32 %v14513_v50, %v2135_v49  ;;  %v14678_v52 = vld [vmem:[#allocation5 + $0xc0] sm:$0xff] }
 0x38a   :  { %3833 = vrot.lane.b32.xlu1 %v13925_v63, %s13572_s20  ;;  %3686 = vrot.lane.b32.xlu0 %v13937_v25, %s13574_s22 }
 0x38b   :  { %v11314_v32 = vpack.c.bf16 %v2903_v51, %v2902_v30  ;;  %12287 = vmatprep.subr.bf16.mxu1 %v13233_v53  ;;  %v4910_v53 = vld [vmem:[#allocation5 + $0x120] sm:$0xff] }
 0x38c   :  { %v14642_v14 = vpop.permute.xlu1 %3006  ;;  %v1837_v33 = vpop.permute.xlu0 %1836 }
 0x38d   :  { %12016 = vst [vmem:[#allocation2 + $0x230] sm:$0xff] %v11314_v32   ;;  %12288 = vmatpush3.bf16.msra.mxu1 %v13234_v42  ;;  %v1861_v10 = vmul.f32 %v14502_v29, %v1837_v33  ;;  %v13240_v33 = vld [vmem:[#allocation2 + $0x178] sm:$0xff]  }
 0x38e   :  { %3688 = vrot.lane.b32.xlu1 %v13939_v27, %s13574_s22  ;;  %3533 = vrot.lane.b32.xlu0 %v13921_v57, %s13577_s6 }
 0x390   :  { %v2137_v61 = vpop.permute.xlu1 %2136  ;;  %v1986_v34 = vpop.permute.xlu0 %1985 }
 0x391   :  { %v2160_v4 = vmul.f32 %v14513_v50, %v2137_v61  ;;  %v2010_v17 = vmul.f32 %v14491_v20, %v1986_v34 }
 0x392   :  { %3535 = vrot.lane.b32.xlu1 %v13925_v63, %s13577_s6  ;;  %3388 = vrot.lane.b32.xlu0 %v13937_v25, %s13570_s18 }
 0x393   :  { %v11094_v5 = vpack.c.bf16 %v2160_v4, %v2159_v7  ;;  %v9883_v4 = vcombine.high %v14678_v52, %v4910_v53 }
 0x394   :  { %v1839_v6 = vpop.permute.xlu1 %1838  ;;  %v2731_v39 = vpop.permute.xlu0 %2730 }
 0x395   :  { %11972 = vst [vmem:[#allocation2 + $0xd0] sm:$0xff] %v11094_v5   ;;  %v1862_v15 = vmul.f32 %v14502_v29, %v1839_v6  ;;  %v2755_v28 = vmul.f32 %v14524_v26, %v2731_v39  ;;  %v13242_v5 = vld [vmem:[#allocation2 + $0xc0] sm:$0xff]   ;;  %v13243_v6 = vld [vmem:[#allocation2 + $0x138] sm:$0xff]  }
 0x396   :  { %3390 = vrot.lane.b32.xlu1 %v13939_v27, %s13570_s18  ;;  %3714 = vrot.lane.b32.xlu0 %v14058_v55, %s13574_s22 }
 0x397   :  { %v11004_v50 = vpack.c.bf16 %v1862_v15, %v1861_v10  ;;  %v13244_v10 = vld [vmem:[#allocation2 + $0x170] sm:$0xff]  }
 0x398   :  { %v1988_v36 = vpop.permute.xlu1 %1987  ;;  %v2433_v0 = vpop.permute.xlu0 %2432 }
 0x399   :  { %11954 = vst [vmem:[#allocation2 + $0x40] sm:$0xff] %v11004_v50   ;;  %v2011_v21 = vmul.f32 %v14491_v20, %v1988_v36  ;;  %v13236_v20 = vld [vmem:[#allocation2 + $0x90] sm:$0xff]   ;;  %v2457_v30 = vmul.f32 %v14535_v12, %v2433_v0 }
 0x39a   :  { %3716 = vrot.lane.b32.xlu1 %v14060_v56, %s13574_s22  ;;  %3682 = vrot.lane.b32.xlu0 %v13921_v57, %s13574_s22 }
 0x39b   :  { %v11049_v29 = vpack.c.bf16 %v2011_v21, %v2010_v17  ;;  %v13247_v17 = vld [vmem:[#allocation2 + $0x1f8] sm:$0xff]   ;;  %v13248_v21 = vld [vmem:[#allocation2 + $0x168] sm:$0xff]  }
 0x39c   :  { %v2733_v24 = vpop.permute.xlu1 %2732  ;;  %v2582_v22 = vpop.permute.xlu0 %2581  ;;  %v13235_v44 = vld [vmem:[#allocation2 + $0xd0] sm:$0xff]  }
 0x39d   :  { %11963 = vst [vmem:[#allocation2 + $0x88] sm:$0xff] %v11049_v29   ;;  %v2756_v31 = vmul.f32 %v14524_v26, %v2733_v24  ;;  %12355 = vmatprep.subr.bf16.mxu0 %v13235_v44  ;;  %v13239_v26 = vld [vmem:[#allocation2] sm:$0xff]  }
 0x39e   :  { %3684 = vrot.lane.b32.xlu1 %v13925_v63, %s13574_s22  ;;  %3416 = vrot.lane.b32.xlu0 %v14058_v55, %s13570_s18  ;;  %v4911_v44 = vld [vmem:[#allocation5 + $0x128] sm:$0xff] }
 0x39f   :  { %v11274_v43 = vpack.c.bf16 %v2756_v31, %v2755_v28  ;;  %12356 = vmatpush3.bf16.msra.mxu0 %v13236_v20  ;;  %v4922_v28 = vld [vmem:[#allocation5 + $0x180] sm:$0xff] }
 0x3a0   :  { %v2435_v23 = vpop.permute.xlu1 %2434  ;;  %v2284_v45 = vpop.permute.xlu0 %2283  ;;  %v13238_v49 = vld [vmem:[#allocation2 + $0x40] sm:$0xff]   ;;  %12357 = vmatprep.subr.bf16.mxu0 %v13237_v2 }
 0x3a1   :  { %12008 = vst [vmem:[#allocation2 + $0x1f0] sm:$0xff] %v11274_v43   ;;  %v2458_v51 = vmul.f32 %v14535_v12, %v2435_v23  ;;  %12289 = vmatprep.subr.bf16.mxu1 %v13238_v49  ;;  %v2606_v12 = vmul.f32 %v14546_v11, %v2582_v22  ;;  %v2308_v0 = vmul.f32 %v14557_v3, %v2284_v45  ;;  %v4934_v43 = vld [vmem:[#allocation5 + $0x1e0] sm:$0xff]  ;;  %v13250_v49 = vld [vmem:[#allocation2 + $0x128] sm:$0xff]  }
 0x3a2   :  { %3418 = vrot.lane.b32.xlu1 %v14060_v56, %s13570_s18  ;;  %3384 = vrot.lane.b32.xlu0 %v13921_v57, %s13570_s18  ;;  %v9882_v22 = vcombine.low %v14678_v52, %v4910_v53  ;;  %v13249_v45 = vld [vmem:[#allocation2 + $0x1b8] sm:$0xff]   ;;  %v9907_v53 = vcombine.high %v4922_v28, %v4934_v43 }
 0x3a3   :  { %v11184_v32 = vpack.c.bf16 %v2458_v51, %v2457_v30  ;;  %12290 = vmatpush3.bf16.msra.mxu1 %v13239_v26 }
 0x3a4   :  { %v2584_v42 = vpop.permute.xlu1 %2583  ;;  %v2880_v61 = vpop.permute.xlu0 %2879  ;;  %v13241_v34 = vld [vmem:[#allocation2 + $0x88] sm:$0xff]   ;;  %12415 = vmatprep.subr.bf16.mxu1 %v13240_v33 }
 0x3a5   :  { %11990 = vst [vmem:[#allocation2 + $0x160] sm:$0xff] %v11184_v32   ;;  %v2607_v7 = vmul.f32 %v14546_v11, %v2584_v42  ;;  %12358 = vmatpush3.bf16.msra.mxu0 %v13241_v34  ;;  %v14693_v11 = vld [vmem:[%s16206_s1 + $0x8] ss:$0 sm:$0xff]  ;;  %v2904_v2 = vmul.f32 %v14580_v40, %v2880_v61  ;;  %v13253_v34 = vld [vmem:[#allocation2 + $0x1b0] sm:$0xff]  }
 0x3a6   :  { %3386 = vrot.lane.b32.xlu1 %v13925_v63, %s13570_s18  ;;  %3710 = vrot.lane.b32.xlu0 %v14041_v46, %s13574_s22  ;;  %v3042_v15 = vmul.f32 %v14693_v11, %v14642_v14  ;;  %v13246_v14 = vld [vmem:[#allocation2 + $0x130] sm:$0xff]  }
 0x3a7   :  { %v11229_v39 = vpack.c.bf16 %v2607_v7, %v2606_v12  ;;  %7686 = vmatmul.mubr.bf16.vlgmr.msra.gmra.mxu1 %v9858_v8  ;;  %12359 = vmatprep.subr.bf16.mxu0 %v13242_v5  ;;  %v13245_v8 = vld [vmem:[#allocation2 + $0x80] sm:$0xff]   ;;  %v14727_v12 = vld [vmem:[#allocation5 + $0x240] sm:$0xff] }
 0x3a8   :  { %v2286_v50 = vpop.permute.xlu1 %2285  ;;  %12416 = vmatpush3.bf16.msra.mxu1 %v13243_v6  ;;  %v3005_v36 = vpop.permute.xlu0 %3004  ;;  %7693 = vmatprep.mubr.bf16.mxu1 %v9883_v4  ;;  %v13251_v51 = vld [vmem:[#allocation2 + $0x1f0] sm:$0xff]   ;;  %v13255_v4 = vld [vmem:[#allocation2 + $0x1e8] sm:$0xff]   ;;  %v13256_v5 = vld [vmem:[#allocation2 + $0x158] sm:$0xff]  }
 0x3a9   :  { %11999 = vst [vmem:[#allocation2 + $0x1a8] sm:$0xff] %v11229_v39   ;;  %v2309_v13 = vmul.f32 %v14557_v3, %v2286_v50  ;;  %v3041_v62 = vmul.f32 %v14693_v11, %v3005_v36  ;;  %12417 = vmatprep.subr.bf16.mxu1 %v13244_v10  ;;  %12360 = vmatpush3.bf16.msra.mxu0 %v13245_v8  ;;  %v14705_v3 = vld [vmem:[#allocation5 + $0xc8] sm:$0xff]  ;;  %v4958_v10 = vld [vmem:[#allocation5 + $0x2a0] sm:$0xff] }
 0x3aa   :  { %3712 = vrot.lane.b32.xlu1 %v14043_v41, %s13574_s22  ;;  %3565 = vrot.lane.b32.xlu0 %v14058_v55, %s13577_s6  ;;  %v9885_v52 = vcombine.high %v14705_v3, %v4911_v44  ;;  %v9884_v6 = vcombine.low %v14705_v3, %v4911_v44  ;;  %v9906_v39 = vcombine.low %v4922_v28, %v4934_v43  ;;  %v13262_v43 = vld [vmem:[#allocation2 + $0x110] sm:$0xff]  }
 0x3ab   :  { %v11139_v29 = vpack.c.bf16 %v2309_v13, %v2308_v0  ;;  %v11334_v24 = vpack.c.bf16 %v3042_v15, %v3041_v62  ;;  %12485 = vmatprep.subr.bf16.mxu0 %v13247_v17  ;;  %v14733_v0 = vld [vmem:[%s16206_s1 + $0x9] ss:$0 sm:$0xff]  ;;  %v13259_v17 = vld [vmem:[#allocation2 + $0x1e0] sm:$0xff]  }
 0x3ac   :  { %v2882_v31 = vpop.permute.xlu1 %2881  ;;  %12418 = vmatpush3.bf16.msra.mxu1 %v13246_v14  ;;  %v2860_v20 = vpop.permute.xlu0 %2859  ;;  %7790 = vmatmul.mubr.bf16.vlgmr.msra.gmra.mxu0 %v9860_v54  ;;  %v13252_v26 = vld [vmem:[#allocation2 + $0x160] sm:$0xff]  }
 0x3ad   :  { %11981 = vst [vmem:[#allocation2 + $0x118] sm:$0xff] %v11139_v29   ;;  %12020 = vst [vmem:[#allocation2 + $0x250] sm:$0xff] %v11334_v24   ;;  %v2905_v23 = vmul.f32 %v14580_v40, %v2882_v31  ;;  %12419 = vmatprep.subr.bf16.mxu1 %v13248_v21  ;;  %12486 = vmatpush3.bf16.msra.mxu0 %v13249_v45  ;;  %v2894_v42 = vmul.f32 %v14580_v40, %v2860_v20  ;;  %v14725_v54 = vld [vmem:[#allocation5 + $0x1e8] sm:$0xff]  ;;  %v13260_v21 = vld [vmem:[#allocation2 + $0x150] sm:$0xff]  }
 0x3ae   :  { %3567 = vrot.lane.b32.xlu1 %v14060_v56, %s13577_s6  ;;  %3412 = vrot.lane.b32.xlu0 %v14041_v46, %s13570_s18  ;;  %v9909_v29 = vcombine.high %v14723_v1, %v14725_v54  ;;  %v9931_v24 = vcombine.high %v14727_v12, %v4958_v10  ;;  %v13263_v31 = vld [vmem:[#allocation2 + $0x1d8] sm:$0xff]   ;;  %v13261_v20 = vld [vmem:[#allocation2 + $0x1a0] sm:$0xff]   ;;  %v9908_v45 = vcombine.low %v14723_v1, %v14725_v54  ;;  %v13267_v1 = vld [vmem:[#allocation2 + $0x1d0] sm:$0xff]  }
 0x3af   :  { %v11319_v30 = vpack.c.bf16 %v2905_v23, %v2904_v2  ;;  %7694 = vmatmul.mubr.bf16.gmra.mxu1 %v9882_v22  ;;  %12487 = vmatprep.subr.bf16.mxu0 %v13251_v51  ;;  %v13264_v2 = vld [vmem:[#allocation2 + $0x148] sm:$0xff]   ;;  %v4959_v51 = vld [vmem:[#allocation5 + $0x2a8] sm:$0xff] }
 0x3b0   :  { %v2862_v32 = vpop.permute.xlu1 %2861  ;;  %12420 = vmatpush3.bf16.msra.mxu1 %v13250_v49  ;;  %v3154_v33 = vpop.permute.xlu0 %3153  ;;  %7797 = vmatprep.mubr.bf16.mxu0 %v9885_v52  ;;  %v13257_v8 = vld [vmem:[#allocation2 + $0x1a8] sm:$0xff]   ;;  %v9930_v49 = vcombine.low %v14727_v12, %v4958_v10  ;;  %v13268_v54 = vld [vmem:[#allocation2 + $0x140] sm:$0xff]   ;;  %v13269_v10 = vld [vmem:[#allocation2 + $0x190] sm:$0xff]  }
 0x3b1   :  { %12017 = vst [vmem:[#allocation2 + $0x238] sm:$0xff] %v11319_v30   ;;  %v2895_v61 = vmul.f32 %v14580_v40, %v2862_v32  ;;  %12421 = vmatprep.subr.bf16.mxu1 %v13252_v26  ;;  %7701 = vmatprep.mubr.bf16.mxu1 %v9907_v53  ;;  %v3190_v13 = vmul.f32 %v14733_v0, %v3154_v33  ;;  %v14753_v30 = vld [vmem:[#allocation5 + $0x248] sm:$0xff]  ;;  %v4970_v26 = vld [vmem:[#allocation5 + $0x300] sm:$0xff] }
 0x3b2   :  { %3414 = vrot.lane.b32.xlu1 %v14043_v41, %s13570_s18  ;;  %3706 = vrot.lane.b32.xlu0 %v14024_v37, %s13574_s22  ;;  %v4982_v32 = vld [vmem:[#allocation5 + $0x360] sm:$0xff]  ;;  %v9933_v12 = vcombine.high %v14753_v30, %v4959_v51 }
 0x3b3   :  { %v11294_v7 = vpack.c.bf16 %v2895_v61, %v2894_v42  ;;  %12488 = vmatpush3.bf16.msra.mxu0 %v13253_v34  ;;  %v13265_v61 = vld [vmem:[#allocation2 + $0x198] sm:$0xff]   ;;  %v13266_v34 = vld [vmem:[#allocation2 + $0x108] sm:$0xff]  }
 0x3b4   :  { %v3156_v15 = vpop.permute.xlu1 %3155  ;;  %12422 = vmatpush3.bf16.msra.mxu1 %v13254_v19  ;;  %v3001_v50 = vpop.permute.xlu0 %3000  ;;  %v13258_v36 = vld [vmem:[#allocation2 + $0x118] sm:$0xff]   ;;  %12489 = vmatprep.subr.bf16.mxu0 %v13255_v4 }
 0x3b5   :  { %12012 = vst [vmem:[#allocation2 + $0x210] sm:$0xff] %v11294_v7   ;;  %v3191_v62 = vmul.f32 %v14733_v0, %v3156_v15  ;;  %12423 = vmatprep.subr.bf16.mxu1 %v13256_v5  ;;  %7798 = vmatmul.mubr.bf16.gmra.mxu0 %v9884_v6  ;;  %v3039_v44 = vmul.f32 %v14693_v11, %v3001_v50  ;;  %v14764_v15 = vld [vmem:[#allocation5 + $0x308] sm:$0xff] }
 0x3b6   :  { %3708 = vrot.lane.b32.xlu1 %v14026_v38, %s13574_s22  ;;  %3561 = vrot.lane.b32.xlu0 %v14041_v46, %s13577_s6  ;;  %v9955_v7 = vcombine.high %v4970_v26, %v4982_v32  ;;  %v14766_v50 = vld [vmem:[#allocation5 + $0x368] sm:$0xff] }
 0x3b7   :  { %v11379_v14 = vpack.c.bf16 %v3191_v62, %v3190_v13  ;;  %7702 = vmatmul.mubr.bf16.gmra.mxu1 %v9906_v39  ;;  %12490 = vmatpush3.bf16.msra.mxu0 %v13257_v8  ;;  %v4994_v13 = vld [vmem:[#allocation5 + $0x3c0] sm:$0xff] }
 0x3b8   :  { %v3003_v22 = vpop.permute.xlu1 %3002  ;;  %12424 = vmatpush3.bf16.msra.mxu1 %v13258_v36  ;;  %v2856_v3 = vpop.permute.xlu0 %2855  ;;  %12491 = vmatprep.subr.bf16.mxu0 %v13259_v17  ;;  %v13270_v36 = vld [vmem:[#allocation2 + $0x100] sm:$0xff]   ;;  %v5006_v62 = vld [vmem:[#allocation5 + $0x420] sm:$0xff] }
 0x3b9   :  { %12029 = vst [vmem:[#allocation2 + $0x298] sm:$0xff] %v11379_v14   ;;  %v3040_v28 = vmul.f32 %v14693_v11, %v3003_v22  ;;  %12425 = vmatprep.subr.bf16.mxu1 %v13260_v21  ;;  %7805 = vmatprep.mubr.bf16.mxu0 %v9909_v29  ;;  %v2892_v33 = vmul.f32 %v14580_v40, %v2856_v3  ;;  %v13271_v14 = vld [vmem:[#allocation2 + $0x1c8] sm:$0xff]   ;;  %v13272_v17 = vld [vmem:[#allocation2 + $0x278] sm:$0xff]  }
 0x3ba   :  { %3563 = vrot.lane.b32.xlu1 %v14043_v41, %s13577_s6  ;;  %3408 = vrot.lane.b32.xlu0 %v14024_v37, %s13570_s18  ;;  %v9932_v21 = vcombine.low %v14753_v30, %v4959_v51  ;;  %v9954_v29 = vcombine.low %v4970_v26, %v4982_v32  ;;  %v9957_v3 = vcombine.high %v14764_v15, %v14766_v50  ;;  %v5007_v26 = vld [vmem:[#allocation5 + $0x428] sm:$0xff] }
 0x3bb   :  { %v11329_v23 = vpack.c.bf16 %v3040_v28, %v3039_v44  ;;  %7709 = vmatprep.mubr.bf16.mxu1 %v9931_v24  ;;  %12492 = vmatpush3.bf16.msra.mxu0 %v13261_v20  ;;  %v13273_v20 = vld [vmem:[#allocation2 + $0x188] sm:$0xff]   ;;  %v13275_v32 = vld [vmem:[#allocation2 + $0x180] sm:$0xff]  }
 0x3bc   :  { %v2858_v52 = vpop.permute.xlu1 %2857  ;;  %12426 = vmatpush3.bf16.msra.mxu1 %v13262_v43  ;;  %v3150_v53 = vpop.permute.xlu0 %3149  ;;  %12493 = vmatprep.subr.bf16.mxu0 %v13263_v31  ;;  %v9979_v31 = vcombine.high %v4994_v13, %v5006_v62 }
 0x3bd   :  { %12019 = vst [vmem:[#allocation2 + $0x248] sm:$0xff] %v11329_v23   ;;  %v2893_v42 = vmul.f32 %v14580_v40, %v2858_v52  ;;  %12427 = vmatprep.subr.bf16.mxu1 %v13264_v2  ;;  %7806 = vmatmul.mubr.bf16.gmra.mxu0 %v9908_v45  ;;  %v3188_v6 = vmul.f32 %v14733_v0, %v3150_v53  ;;  %v13274_v2 = vld [vmem:[#allocation2 + $0x1c0] sm:$0xff]   ;;  %v5018_v52 = vld [vmem:[#allocation5 + $0x480] sm:$0xff] }
 0x3be   :  { %3410 = vrot.lane.b32.xlu1 %v14026_v38, %s13570_s18  ;;  %3702 = vrot.lane.b32.xlu0 %v14007_v35, %s13574_s22  ;;  %v5030_v53 = vld [vmem:[#allocation5 + $0x4e0] sm:$0xff] }
 0x3bf   :  { %v11289_v19 = vpack.c.bf16 %v2893_v42, %v2892_v33  ;;  %7710 = vmatmul.mubr.bf16.gmra.mxu1 %v9930_v49  ;;  %12494 = vmatpush3.bf16.msra.mxu0 %v13265_v61  ;;  %v4995_v49 = vld [vmem:[#allocation5 + $0x3c8] sm:$0xff]  ;;  %v13276_v42 = vld [vmem:[#allocation2 + $0x2f8] sm:$0xff]   ;;  %v9956_v61 = vcombine.low %v14764_v15, %v14766_v50 }
 0x3c0   :  { %v3152_v4 = vpop.permute.xlu1 %3151  ;;  %12428 = vmatpush3.bf16.msra.mxu1 %v13266_v34  ;;  %v2997_v5 = vpop.permute.xlu0 %2996  ;;  %12495 = vmatprep.subr.bf16.mxu0 %v13267_v1  ;;  %v9978_v34 = vcombine.low %v4994_v13, %v5006_v62  ;;  %v9981_v1 = vcombine.high %v4995_v49, %v5007_v26  ;;  %v5031_v50 = vld [vmem:[#allocation5 + $0x4e8] sm:$0xff]  ;;  %v5054_v13 = vld [vmem:[#allocation5 + $0x5a0] sm:$0xff] }
 0x3c1   :  { %12011 = vst [vmem:[#allocation2 + $0x208] sm:$0xff] %v11289_v19   ;;  %v3189_v39 = vmul.f32 %v14733_v0, %v3152_v4  ;;  %12429 = vmatprep.subr.bf16.mxu1 %v13268_v54  ;;  %7813 = vmatprep.mubr.bf16.mxu0 %v9933_v12  ;;  %v3037_v44 = vmul.f32 %v14693_v11, %v2997_v5 }
 0x3c2   :  { %3704 = vrot.lane.b32.xlu1 %v14009_v60, %s13574_s22  ;;  %3557 = vrot.lane.b32.xlu0 %v14024_v37, %s13577_s6  ;;  %v10003_v54 = vcombine.high %v5018_v52, %v5030_v53 }
 0x3c3   :  { %v11374_v8 = vpack.c.bf16 %v3189_v39, %v3188_v6  ;;  %7717 = vmatprep.mubr.bf16.mxu1 %v9955_v7  ;;  %12496 = vmatpush3.bf16.msra.mxu0 %v13269_v10  ;;  %v5019_v39 = vld [vmem:[#allocation5 + $0x488] sm:$0xff] }
 0x3c4   :  { %v2999_v24 = vpop.permute.xlu1 %2998  ;;  %12430 = vmatpush3.bf16.msra.mxu1 %v13270_v36  ;;  %v2852_v22 = vpop.permute.xlu0 %2851  ;;  %12497 = vmatprep.subr.bf16.mxu0 %v13271_v14  ;;  %v5042_v36 = vld [vmem:[#allocation5 + $0x540] sm:$0xff]  ;;  %v10002_v14 = vcombine.low %v5018_v52, %v5030_v53 }
 0x3c5   :  { %12028 = vst [vmem:[#allocation2 + $0x290] sm:$0xff] %v11374_v8   ;;  %v3038_v28 = vmul.f32 %v14693_v11, %v2999_v24  ;;  %12555 = vmatprep.subr.bf16.mxu1 %v13272_v17  ;;  %7814 = vmatmul.mubr.bf16.gmra.mxu0 %v9932_v21  ;;  %v2890_v30 = vmul.f32 %v14580_v40, %v2852_v22 }
 0x3c6   :  { %3559 = vrot.lane.b32.xlu1 %v14026_v38, %s13577_s6  ;;  %3404 = vrot.lane.b32.xlu0 %v14007_v35, %s13570_s18  ;;  %v9980_v8 = vcombine.low %v4995_v49, %v5007_v26  ;;  %v10027_v24 = vcombine.high %v5042_v36, %v5054_v13 }
 0x3c7   :  { %v11324_v43 = vpack.c.bf16 %v3038_v28, %v3037_v44  ;;  %7718 = vmatmul.mubr.bf16.gmra.mxu1 %v9954_v29  ;;  %12498 = vmatpush3.bf16.msra.mxu0 %v13273_v20  ;;  %v10005_v29 = vcombine.high %v5019_v39, %v5031_v50 }
 0x3c8   :  { %v2854_v23 = vpop.permute.xlu1 %2853  ;;  %v3178_v45 = vpop.permute.xlu0 %3177  ;;  %7821 = vmatprep.mubr.bf16.mxu0 %v9957_v3  ;;  %12499 = vmatprep.subr.bf16.mxu0 %v13274_v2  ;;  %v5043_v2 = vld [vmem:[#allocation5 + $0x548] sm:$0xff] }
 0x3c9   :  { %12018 = vst [vmem:[#allocation2 + $0x240] sm:$0xff] %v11324_v43   ;;  %v2891_v51 = vmul.f32 %v14580_v40, %v2854_v23  ;;  %7725 = vmatprep.mubr.bf16.mxu1 %v9979_v31  ;;  %v3202_v12 = vmul.f32 %v14733_v0, %v3178_v45  ;;  %v5066_v23 = vld [vmem:[#allocation5 + $0x600] sm:$0x33]  ;;  %v14812_v45 = vld [vmem:[%s16206_s1 + $0xc] ss:$0 sm:$0xff] }
 0x3ca   :  { %3406 = vrot.lane.b32.xlu1 %v14009_v60, %s13570_s18  ;;  %3698 = vrot.lane.b32.xlu0 %v13990_v47, %s13574_s22  ;;  %v10051_v53 = vcombine.high %v5066_v23, %v5066_v23 }
 0x3cb   :  { %v11284_v33 = vpack.c.bf16 %v2891_v51, %v2890_v30  ;;  %12500 = vmatpush3.bf16.msra.mxu0 %v13275_v32  ;;  %v10004_v30 = vcombine.low %v5019_v39, %v5031_v50  ;;  %v10026_v51 = vcombine.low %v5042_v36, %v5054_v13 }
 0x3cc   :  { %v3180_v40 = vpop.permute.xlu1 %3179  ;;  %v3146_v19 = vpop.permute.xlu0 %3145  ;;  %12625 = vmatprep.subr.bf16.mxu0 %v13276_v42  ;;  %v14823_v42 = vld [vmem:[%s16206_s1 + $0xb] ss:$0 sm:$0xff] }
 0x3cd   :  { %12010 = vst [vmem:[#allocation2 + $0x200] sm:$0xff] %v11284_v33   ;;  %v3203_v7 = vmul.f32 %v14733_v0, %v3180_v40  ;;  %7822 = vmatmul.mubr.bf16.gmra.mxu0 %v9956_v61  ;;  %v3186_v10 = vmul.f32 %v14733_v0, %v3146_v19 }
 0x3ce   :  { %3700 = vrot.lane.b32.xlu1 %v13992_v48, %s13574_s22  ;;  %3553 = vrot.lane.b32.xlu0 %v14007_v35, %s13577_s6 }
 0x3cf   :  { %v11409_v4 = vpack.c.bf16 %v3203_v7, %v3202_v12  ;;  %7726 = vmatmul.mubr.bf16.gmra.mxu1 %v9978_v34  ;;  %7829 = vmatprep.mubr.bf16.mxu0 %v9981_v1  ;;  %v4876_v12 = vld [vmem:[#allocation5 + $0x10] sm:$0xff] }
 0x3d0   :  { %v3148_v5 = vpop.permute.xlu1 %3147  ;;  %v3174_v6 = vpop.permute.xlu0 %3173  ;;  %7733 = vmatprep.mubr.bf16.mxu1 %v10003_v54  ;;  %v5067_v54 = vld [vmem:[#allocation5 + $0x608] sm:$0x33]  ;;  %v4888_v7 = vld [vmem:[#allocation5 + $0x70] sm:$0xff] }
 0x3d1   :  { %12035 = vst [vmem:[#allocation2 + $0x2c8] sm:$0xff] %v11409_v4   ;;  %v3187_v15 = vmul.f32 %v14733_v0, %v3148_v5  ;;  %v3200_v22 = vmul.f32 %v14733_v0, %v3174_v6  ;;  %v10050_v6 = vcombine.low %v5066_v23, %v5066_v23  ;;  %v9863_v50 = vcombine.high %v4876_v12, %v4888_v7 }
 0x3d2   :  { %3555 = vrot.lane.b32.xlu1 %v14009_v60, %s13577_s6  ;;  %3694 = vrot.lane.b32.xlu0 %v13972_v16, %s13574_s22 }
 0x3d3   :  { %v11369_v62 = vpack.c.bf16 %v3187_v15, %v3186_v10  ;;  %v10053_v15 = vcombine.high %v5067_v54, %v5067_v54 }
 0x3d4   :  { %v3176_v17 = vpop.permute.xlu1 %3175  ;;  %v3029_v21 = vpop.permute.xlu0 %3028 }
 0x3d5   :  { %12027 = vst [vmem:[#allocation2 + $0x288] sm:$0xff] %v11369_v62   ;;  %v3201_v3 = vmul.f32 %v14733_v0, %v3176_v17  ;;  %7830 = vmatmul.mubr.bf16.gmra.mxu0 %v9980_v8  ;;  %v3053_v20 = vmul.f32 %v14693_v11, %v3029_v21  ;;  %v5055_v0 = vld [vmem:[#allocation5 + $0x5a8] sm:$0xff] }
 0x3d6   :  { %3696 = vrot.lane.b32.xlu1 %v13974_v18, %s13574_s22  ;;  %3549 = vrot.lane.b32.xlu0 %v13990_v47, %s13577_s6  ;;  %v10028_v5 = vcombine.low %v5043_v2, %v5055_v0 }
 0x3d7   :  { %v11404_v44 = vpack.c.bf16 %v3201_v3, %v3200_v22  ;;  %7734 = vmatmul.mubr.bf16.gmra.mxu1 %v10002_v14  ;;  %7837 = vmatprep.mubr.bf16.mxu0 %v10005_v29  ;;  %v4877_v29 = vld [vmem:[#allocation5 + $0x18] sm:$0xff]  ;;  %v14846_v22 = vld [vmem:[%s16206_s1 + $0xe] ss:$0 sm:$0xff] }
 0x3d8   :  { %v3031_v28 = vpop.permute.xlu1 %3030  ;;  %v3546_v31 = vpop.permute.xlu0 %3545  ;;  %7741 = vmatprep.mubr.bf16.mxu1 %v10027_v24  ;;  %v4889_v24 = vld [vmem:[#allocation5 + $0x78] sm:$0xff]  ;;  %v4900_v3 = vld [vmem:[#allocation5 + $0xd0] sm:$0xff] }
 0x3d9   :  { %12034 = vst [vmem:[#allocation2 + $0x2c0] sm:$0xff] %v11404_v44   ;;  %v3054_v43 = vmul.f32 %v14693_v11, %v3031_v28  ;;  %v10029_v11 = vcombine.high %v5043_v2, %v5055_v0  ;;  %v3580_v32 = vmul.f32 %v14812_v45, %v3546_v31  ;;  %v4912_v44 = vld [vmem:[#allocation5 + $0x130] sm:$0xff]  ;;  %v10052_v31 = vcombine.low %v5067_v54, %v5067_v54 }
 0x3da   :  { %3551 = vrot.lane.b32.xlu1 %v13992_v48, %s13577_s6  ;;  %4012 = vrot.lane.b32.xlu0 %v14058_v55, %s13569_s17  ;;  %v9865_v0 = vcombine.high %v4877_v29, %v4889_v24  ;;  %v9886_v54 = vcombine.low %v4900_v3, %v4912_v44 }
 0x3db   :  { %v11364_v49 = vpack.c.bf16 %v3054_v43, %v3053_v20  ;;  %v9862_v20 = vcombine.low %v4876_v12, %v4888_v7  ;;  %v4901_v12 = vld [vmem:[#allocation5 + $0xd8] sm:$0xff] }
 0x3dc   :  { %v3548_v26 = vpop.permute.xlu1 %3547  ;;  %v3401_v52 = vpop.permute.xlu0 %3400  ;;  %v4913_v7 = vld [vmem:[#allocation5 + $0x138] sm:$0xff] }
 0x3dd   :  { %12026 = vst [vmem:[#allocation2 + $0x280] sm:$0xff] %v11364_v49   ;;  %v3581_v33 = vmul.f32 %v14812_v45, %v3548_v26  ;;  %7838 = vmatmul.mubr.bf16.gmra.mxu0 %v10004_v30  ;;  %v3433_v19 = vmul.f32 %v14823_v42, %v3401_v52  ;;  %v9887_v30 = vcombine.high %v4900_v3, %v4912_v44  ;;  %v13281_v26 = vld [vmem:[#allocation2 + $0x238] sm:$0xff]   ;;  %v13291_v44 = vld [vmem:[#allocation2 + $0x2e8] sm:$0xff]  }
 0x3de   :  { %4014 = vrot.lane.b32.xlu1 %v14060_v56, %s13569_s17  ;;  %3980 = vrot.lane.b32.xlu0 %v13921_v57, %s13569_s17 }
 0x3df   :  { %v11519_v61 = vpack.c.bf16 %v3581_v33, %v3580_v32  ;;  %7742 = vmatmul.mubr.bf16.gmra.mxu1 %v10026_v51  ;;  %7845 = vmatprep.mubr.bf16.mxu0 %v10029_v11  ;;  %v14857_v51 = vld [vmem:[%s16206_s1 + $0xd] ss:$0 sm:$0xff]  ;;  %v13282_v11 = vld [vmem:[#allocation2 + $0x270] sm:$0xff]  }
 0x3e0   :  { %v3403_v34 = vpop.permute.xlu1 %3402  ;;  %v3542_v40 = vpop.permute.xlu0 %3541  ;;  %7749 = vmatprep.mubr.bf16.mxu1 %v10051_v53 }
 0x3e1   :  { %12057 = vst [vmem:[#allocation2 + $0x378] sm:$0xff] %v11519_v61   ;;  %v3434_v1 = vmul.f32 %v14823_v42, %v3403_v34  ;;  %v3578_v36 = vmul.f32 %v14812_v45, %v3542_v40  ;;  %v13283_v34 = vld [vmem:[#allocation2 + $0x230] sm:$0xff]   ;;  %v13284_v40 = vld [vmem:[#allocation2 + $0x268] sm:$0xff]  }
 0x3e2   :  { %3982 = vrot.lane.b32.xlu1 %v13925_v63, %s13569_s17  ;;  %4008 = vrot.lane.b32.xlu0 %v14041_v46, %s13569_s17 }
 0x3e3   :  { %v11479_v4 = vpack.c.bf16 %v3434_v1, %v3433_v19  ;;  %v9864_v1 = vcombine.low %v4877_v29, %v4889_v24 }
 0x3e4   :  { %v3544_v39 = vpop.permute.xlu1 %3543  ;;  %v3397_v10 = vpop.permute.xlu0 %3396 }
 0x3e5   :  { %12049 = vst [vmem:[#allocation2 + $0x338] sm:$0xff] %v11479_v4   ;;  %v3579_v13 = vmul.f32 %v14812_v45, %v3544_v39  ;;  %7846 = vmatmul.mubr.bf16.gmra.mxu0 %v10028_v5  ;;  %v3431_v17 = vmul.f32 %v14823_v42, %v3397_v10  ;;  %v4924_v4 = vld [vmem:[#allocation5 + $0x190] sm:$0xff] }
 0x3e6   :  { %4010 = vrot.lane.b32.xlu1 %v14043_v41, %s13569_s17  ;;  %3863 = vrot.lane.b32.xlu0 %v14058_v55, %s13572_s20  ;;  %v4936_v39 = vld [vmem:[#allocation5 + $0x1f0] sm:$0xff] }
 0x3e7   :  { %v11514_v62 = vpack.c.bf16 %v3579_v13, %v3578_v36  ;;  %7750 = vmatmul.mubr.bf16.gmra.mxu1 %v10050_v6  ;;  %7853 = vmatprep.mubr.bf16.mxu0 %v10053_v15  ;;  %v13286_v36 = vld [vmem:[#allocation2 + $0x228] sm:$0xff]  }
 0x3e8   :  { %v3399_v8 = vpop.permute.xlu1 %3398  ;;  %v3836_v14 = vpop.permute.xlu0 %3835  ;;  %7893 = vmatprep.mubr.bf16.mxu1 %v9863_v50  ;;  %v13285_v50 = vld [vmem:[#allocation2 + $0x2b8] sm:$0xff]  }
 0x3e9   :  { %12056 = vst [vmem:[#allocation2 + $0x370] sm:$0xff] %v11514_v62   ;;  %v3432_v21 = vmul.f32 %v14823_v42, %v3399_v8  ;;  %v3874_v23 = vmul.f32 %v14846_v22, %v3836_v14  ;;  %v13287_v62 = vld [vmem:[#allocation2 + $0x2f0] sm:$0xff]   ;;  %v13288_v8 = vld [vmem:[#allocation2 + $0x260] sm:$0xff]   ;;  %v9889_v14 = vcombine.high %v4901_v12, %v4913_v7 }
 0x3ea   :  { %3865 = vrot.lane.b32.xlu1 %v14060_v56, %s13572_s20  ;;  %4302 = vrot.lane.b32.xlu0 %v14024_v37, %s13573_s21 }
 0x3eb   :  { %v11474_v28 = vpack.c.bf16 %v3432_v21, %v3431_v17  ;;  %v9911_v17 = vcombine.high %v4924_v4, %v4936_v39 }
 0x3ec   :  { %v3838_v43 = vpop.permute.xlu1 %3837  ;;  %v3691_v2 = vpop.permute.xlu0 %3690 }
 0x3ed   :  { %12048 = vst [vmem:[#allocation2 + $0x330] sm:$0xff] %v11474_v28   ;;  %v3875_v49 = vmul.f32 %v14846_v22, %v3838_v43  ;;  %7854 = vmatmul.mubr.bf16.gmra.mxu0 %v10052_v31  ;;  %v3727_v33 = vmul.f32 %v14857_v51, %v3691_v2  ;;  %v13289_v28 = vld [vmem:[#allocation2 + $0x2b0] sm:$0xff]   ;;  %v13290_v31 = vld [vmem:[#allocation2 + $0x220] sm:$0xff]   ;;  %v9888_v2 = vcombine.low %v4901_v12, %v4913_v7 }
 0x3ee   :  { %4304 = vrot.lane.b32.xlu1 %v14026_v38, %s13573_s21  ;;  %4157 = vrot.lane.b32.xlu0 %v14041_v46, %s13576_s28 }
 0x3ef   :  { %v11599_v52 = vpack.c.bf16 %v3875_v49, %v3874_v23  ;;  %7894 = vmatmul.mubr.bf16.vlgmr.msra.gmra.mxu1 %v9862_v20  ;;  %7997 = vmatprep.mubr.bf16.mxu0 %v9865_v0  ;;  %v13292_v20 = vld [vmem:[#allocation2 + $0x258] sm:$0xff]   ;;  %v9910_v0 = vcombine.low %v4924_v4, %v4936_v39  ;;  %v4925_v23 = vld [vmem:[#allocation5 + $0x198] sm:$0xff] }
 0x3f0   :  { %12556 = vmatpush3.bf16.msra.mxu1 %v13281_v26  ;;  %v3693_v53 = vpop.permute.xlu1 %3692  ;;  %v3538_v32 = vpop.permute.xlu0 %3537  ;;  %7901 = vmatprep.mubr.bf16.mxu1 %v9887_v30  ;;  %v4937_v49 = vld [vmem:[#allocation5 + $0x1f8] sm:$0xff]  ;;  %v4948_v30 = vld [vmem:[#allocation5 + $0x250] sm:$0xff] }
 0x3f1   :  { %12073 = vst [vmem:[#allocation2 + $0x3f8] sm:$0xff] %v11599_v52   ;;  %v3728_v61 = vmul.f32 %v14857_v51, %v3693_v53  ;;  %12557 = vmatprep.subr.bf16.mxu1 %v13282_v11  ;;  %v3576_v10 = vmul.f32 %v14812_v45, %v3538_v32  ;;  %v4960_v11 = vld [vmem:[#allocation5 + $0x2b0] sm:$0xff]  ;;  %v13298_v39 = vld [vmem:[#allocation2 + $0x210] sm:$0xff]  }
 0x3f2   :  { %4159 = vrot.lane.b32.xlu1 %v14043_v41, %s13576_s28  ;;  %4004 = vrot.lane.b32.xlu0 %v14024_v37, %s13569_s17 }
 0x3f3   :  { %v11559_v19 = vpack.c.bf16 %v3728_v61, %v3727_v33  ;;  %v13293_v33 = vld [vmem:[#allocation2 + $0x2a8] sm:$0xff]   ;;  %v13294_v61 = vld [vmem:[#allocation2 + $0x218] sm:$0xff]  }
 0x3f4   :  { %12558 = vmatpush3.bf16.msra.mxu1 %v13283_v34  ;;  %v3540_v5 = vpop.permute.xlu1 %3539  ;;  %v3393_v6 = vpop.permute.xlu0 %3392 }
 0x3f5   :  { %12065 = vst [vmem:[#allocation2 + $0x3b8] sm:$0xff] %v11559_v19   ;;  %v3577_v15 = vmul.f32 %v14812_v45, %v3540_v5  ;;  %12559 = vmatprep.subr.bf16.mxu1 %v13284_v40  ;;  %7998 = vmatmul.mubr.bf16.vlgmr.msra.gmra.mxu0 %v9864_v1  ;;  %v3429_v24 = vmul.f32 %v14823_v42, %v3393_v6  ;;  %v13295_v40 = vld [vmem:[#allocation2 + $0x2e0] sm:$0xff]   ;;  %v13296_v19 = vld [vmem:[#allocation2 + $0x250] sm:$0xff]   ;;  %v13299_v5 = vld [vmem:[#allocation2 + $0x2d8] sm:$0xff]  }
 0x3f6   :  { %4006 = vrot.lane.b32.xlu1 %v14026_v38, %s13569_s17  ;;  %3859 = vrot.lane.b32.xlu0 %v14041_v46, %s13572_s20  ;;  %v9913_v1 = vcombine.high %v4925_v23, %v4937_v49  ;;  %v13297_v6 = vld [vmem:[#allocation2 + $0x2a0] sm:$0xff]  }
 0x3f7   :  { %v11509_v13 = vpack.c.bf16 %v3577_v15, %v3576_v10  ;;  %7902 = vmatmul.mubr.bf16.gmra.mxu1 %v9886_v54  ;;  %12626 = vmatpush3.bf16.msra.mxu0 %v13285_v50  ;;  %v9935_v54 = vcombine.high %v4948_v30, %v4960_v11  ;;  %v14893_v10 = vld [vmem:[#allocation5 + $0x258] sm:$0xff]  ;;  %v13300_v50 = vld [vmem:[#allocation2 + $0x248] sm:$0xff]  }
 0x3f8   :  { %12560 = vmatpush3.bf16.msra.mxu1 %v13286_v36  ;;  %v3395_v21 = vpop.permute.xlu1 %3394  ;;  %v3832_v29 = vpop.permute.xlu0 %3831  ;;  %12627 = vmatprep.subr.bf16.mxu0 %v13287_v62  ;;  %v9912_v36 = vcombine.low %v4925_v23, %v4937_v49  ;;  %v4961_v62 = vld [vmem:[#allocation5 + $0x2b8] sm:$0xff] }
 0x3f9   :  { %12055 = vst [vmem:[#allocation2 + $0x368] sm:$0xff] %v11509_v13   ;;  %v3430_v3 = vmul.f32 %v14823_v42, %v3395_v21  ;;  %12561 = vmatprep.subr.bf16.mxu1 %v13288_v8  ;;  %8005 = vmatprep.mubr.bf16.mxu0 %v9889_v14  ;;  %v3872_v53 = vmul.f32 %v14846_v22, %v3832_v29  ;;  %v4972_v8 = vld [vmem:[#allocation5 + $0x310] sm:$0xff] }
 0x3fa   :  { %3861 = vrot.lane.b32.xlu1 %v14043_v41, %s13572_s20  ;;  %4298 = vrot.lane.b32.xlu0 %v14007_v35, %s13573_s21  ;;  %v9934_v13 = vcombine.low %v4948_v30, %v4960_v11  ;;  %v4984_v21 = vld [vmem:[#allocation5 + $0x370] sm:$0xff] }
 0x3fb   :  { %v11469_v43 = vpack.c.bf16 %v3430_v3, %v3429_v24  ;;  %7909 = vmatprep.mubr.bf16.mxu1 %v9911_v17  ;;  %12628 = vmatpush3.bf16.msra.mxu0 %v13289_v28  ;;  %v13301_v3 = vld [vmem:[#allocation2 + $0x298] sm:$0xff]   ;;  %v14908_v11 = vld [vmem:[#allocation5 + $0x3d0] sm:$0xff] }
 0x3fc   :  { %12562 = vmatpush3.bf16.msra.mxu1 %v13290_v31  ;;  %v3834_v26 = vpop.permute.xlu1 %3833  ;;  %v3687_v52 = vpop.permute.xlu0 %3686  ;;  %12629 = vmatprep.subr.bf16.mxu0 %v13291_v44  ;;  %v13302_v44 = vld [vmem:[#allocation2 + $0x208] sm:$0xff]   ;;  %v13303_v31 = vld [vmem:[#allocation2 + $0x2d0] sm:$0xff]  }
 0x3fd   :  { %12047 = vst [vmem:[#allocation2 + $0x328] sm:$0xff] %v11469_v43   ;;  %v3873_v32 = vmul.f32 %v14846_v22, %v3834_v26  ;;  %12563 = vmatprep.subr.bf16.mxu1 %v13292_v20  ;;  %8006 = vmatmul.mubr.bf16.gmra.mxu0 %v9888_v2  ;;  %v3725_v7 = vmul.f32 %v14857_v51, %v3687_v52  ;;  %v13304_v20 = vld [vmem:[#allocation2 + $0x240] sm:$0xff]   ;;  %v14904_v26 = vld [vmem:[#allocation5 + $0x318] sm:$0xff] }
 0x3fe   :  { %4300 = vrot.lane.b32.xlu1 %v14009_v60, %s13573_s21  ;;  %4153 = vrot.lane.b32.xlu0 %v14024_v37, %s13576_s28  ;;  %v9937_v43 = vcombine.high %v14893_v10, %v4961_v62  ;;  %v9959_v2 = vcombine.high %v4972_v8, %v4984_v21  ;;  %v14906_v52 = vld [vmem:[#allocation5 + $0x378] sm:$0xff] }
 0x3ff   :  { %v11594_v34 = vpack.c.bf16 %v3873_v32, %v3872_v53  ;;  %7910 = vmatmul.mubr.bf16.gmra.mxu1 %v9910_v0  ;;  %12630 = vmatpush3.bf16.msra.mxu0 %v13293_v33  ;;  %v13305_v53 = vld [vmem:[#allocation2 + $0x290] sm:$0xff]   ;;  %v13306_v32 = vld [vmem:[#allocation2 + $0x200] sm:$0xff]   ;;  %v5008_v33 = vld [vmem:[#allocation5 + $0x430] sm:$0xff] }
 0x400   :  { %12564 = vmatpush3.bf16.msra.mxu1 %v13294_v61  ;;  %v3689_v12 = vpop.permute.xlu1 %3688  ;;  %v3534_v22 = vpop.permute.xlu0 %3533  ;;  %12631 = vmatprep.subr.bf16.mxu0 %v13295_v40  ;;  %v13308_v40 = vld [vmem:[#allocation2 + $0x378] sm:$0xff]  }
 0x401   :  { %12072 = vst [vmem:[#allocation2 + $0x3f0] sm:$0xff] %v11594_v34   ;;  %v3726_v4 = vmul.f32 %v14857_v51, %v3689_v12  ;;  %12565 = vmatprep.subr.bf16.mxu1 %v13296_v19  ;;  %8013 = vmatprep.mubr.bf16.mxu0 %v9913_v1  ;;  %v3574_v29 = vmul.f32 %v14812_v45, %v3534_v22  ;;  %v13307_v34 = vld [vmem:[#allocation2 + $0x2c8] sm:$0xff]  }
 0x402   :  { %4155 = vrot.lane.b32.xlu1 %v14026_v38, %s13576_s28  ;;  %4000 = vrot.lane.b32.xlu0 %v14007_v35, %s13569_s17  ;;  %v9936_v19 = vcombine.low %v14893_v10, %v4961_v62  ;;  %v9958_v1 = vcombine.low %v4972_v8, %v4984_v21  ;;  %v9961_v22 = vcombine.high %v14904_v26, %v14906_v52  ;;  %v13310_v10 = vld [vmem:[#allocation2 + $0x2c0] sm:$0xff]   ;;  %v5009_v8 = vld [vmem:[#allocation5 + $0x438] sm:$0xff] }
 0x403   :  { %v11554_v15 = vpack.c.bf16 %v3726_v4, %v3725_v7  ;;  %7917 = vmatprep.mubr.bf16.mxu1 %v9935_v54  ;;  %12632 = vmatpush3.bf16.msra.mxu0 %v13297_v6  ;;  %v13309_v6 = vld [vmem:[#allocation2 + $0x288] sm:$0xff]   ;;  %v13311_v21 = vld [vmem:[#allocation2 + $0x280] sm:$0xff]  }
 0x404   :  { %12566 = vmatpush3.bf16.msra.mxu1 %v13298_v39  ;;  %v3536_v14 = vpop.permute.xlu1 %3535  ;;  %v3389_v17 = vpop.permute.xlu0 %3388  ;;  %12633 = vmatprep.subr.bf16.mxu0 %v13299_v5  ;;  %v9983_v5 = vcombine.high %v14908_v11, %v5008_v33 }
 0x405   :  { %12064 = vst [vmem:[#allocation2 + $0x3b0] sm:$0xff] %v11554_v15   ;;  %v3575_v24 = vmul.f32 %v14812_v45, %v3536_v14  ;;  %12567 = vmatprep.subr.bf16.mxu1 %v13300_v50  ;;  %8014 = vmatmul.mubr.bf16.gmra.mxu0 %v9912_v36  ;;  %v3427_v49 = vmul.f32 %v14823_v42, %v3389_v17  ;;  %v4997_v36 = vld [vmem:[#allocation5 + $0x3d8] sm:$0xff]  ;;  %v5020_v14 = vld [vmem:[#allocation5 + $0x490] sm:$0xff] }
 0x406   :  { %4002 = vrot.lane.b32.xlu1 %v14009_v60, %s13569_s17  ;;  %3855 = vrot.lane.b32.xlu0 %v14024_v37, %s13572_s20  ;;  %v5032_v17 = vld [vmem:[#allocation5 + $0x4f0] sm:$0xff] }
 0x407   :  { %v11504_v28 = vpack.c.bf16 %v3575_v24, %v3574_v29  ;;  %7918 = vmatmul.mubr.bf16.gmra.mxu1 %v9934_v13  ;;  %12634 = vmatpush3.bf16.msra.mxu0 %v13301_v3  ;;  %v13312_v24 = vld [vmem:[#allocation2 + $0x3f8] sm:$0xff]   ;;  %v9960_v3 = vcombine.low %v14904_v26, %v14906_v52  ;;  %v5021_v26 = vld [vmem:[#allocation5 + $0x498] sm:$0xff] }
 0x408   :  { %12568 = vmatpush3.bf16.msra.mxu1 %v13302_v44  ;;  %v3391_v0 = vpop.permute.xlu1 %3390  ;;  %v3715_v23 = vpop.permute.xlu0 %3714  ;;  %12635 = vmatprep.subr.bf16.mxu0 %v13303_v31  ;;  %v9982_v44 = vcombine.low %v14908_v11, %v5008_v33  ;;  %v5056_v33 = vld [vmem:[#allocation5 + $0x5b0] sm:$0xff] }
 0x409   :  { %12054 = vst [vmem:[#allocation2 + $0x360] sm:$0xff] %v11504_v28   ;;  %v3428_v30 = vmul.f32 %v14823_v42, %v3391_v0  ;;  %12569 = vmatprep.subr.bf16.mxu1 %v13304_v20  ;;  %8021 = vmatprep.mubr.bf16.mxu0 %v9937_v43  ;;  %v3739_v7 = vmul.f32 %v14857_v51, %v3715_v23 }
 0x40a   :  { %3857 = vrot.lane.b32.xlu1 %v14026_v38, %s13572_s20  ;;  %4294 = vrot.lane.b32.xlu0 %v13990_v47, %s13573_s21  ;;  %v9985_v20 = vcombine.high %v4997_v36, %v5009_v8  ;;  %v10007_v43 = vcombine.high %v5020_v14, %v5032_v17 }
 0x40b   :  { %v11464_v61 = vpack.c.bf16 %v3428_v30, %v3427_v49  ;;  %7925 = vmatprep.mubr.bf16.mxu1 %v9959_v2  ;;  %12636 = vmatpush3.bf16.msra.mxu0 %v13305_v53  ;;  %v5033_v53 = vld [vmem:[#allocation5 + $0x4f8] sm:$0xff] }
 0x40c   :  { %12570 = vmatpush3.bf16.msra.mxu1 %v13306_v32  ;;  %v3717_v54 = vpop.permute.xlu1 %3716  ;;  %v3683_v12 = vpop.permute.xlu0 %3682  ;;  %12637 = vmatprep.subr.bf16.mxu0 %v13307_v34  ;;  %v5044_v32 = vld [vmem:[#allocation5 + $0x550] sm:$0xff]  ;;  %v9984_v34 = vcombine.low %v4997_v36, %v5009_v8 }
 0x40d   :  { %12046 = vst [vmem:[#allocation2 + $0x320] sm:$0xff] %v11464_v61   ;;  %v3740_v4 = vmul.f32 %v14857_v51, %v3717_v54  ;;  %12695 = vmatprep.subr.bf16.mxu1 %v13308_v40  ;;  %8022 = vmatmul.mubr.bf16.gmra.mxu0 %v9936_v19  ;;  %v3723_v13 = vmul.f32 %v14857_v51, %v3683_v12  ;;  %v5068_v36 = vld [vmem:[#allocation5 + $0x610] sm:$0x33] }
 0x40e   :  { %4296 = vrot.lane.b32.xlu1 %v13992_v48, %s13573_s21  ;;  %4149 = vrot.lane.b32.xlu0 %v14007_v35, %s13576_s28  ;;  %v10006_v40 = vcombine.low %v5020_v14, %v5032_v17  ;;  %v10009_v54 = vcombine.high %v5021_v26, %v5033_v53  ;;  %v10031_v12 = vcombine.high %v5044_v32, %v5056_v33 }
 0x40f   :  { %v11589_v39 = vpack.c.bf16 %v3740_v4, %v3739_v7  ;;  %7926 = vmatmul.mubr.bf16.gmra.mxu1 %v9958_v1  ;;  %12638 = vmatpush3.bf16.msra.mxu0 %v13309_v6  ;;  %v10030_v8 = vcombine.low %v5044_v32, %v5056_v33 }
 0x410   :  { %v3685_v15 = vpop.permute.xlu1 %3684  ;;  %v3417_v50 = vpop.permute.xlu0 %3416  ;;  %8029 = vmatprep.mubr.bf16.mxu0 %v9961_v22  ;;  %12639 = vmatprep.subr.bf16.mxu0 %v13310_v10 }
 0x411   :  { %12071 = vst [vmem:[#allocation2 + $0x3e8] sm:$0xff] %v11589_v39   ;;  %v3724_v62 = vmul.f32 %v14857_v51, %v3685_v15  ;;  %7933 = vmatprep.mubr.bf16.mxu1 %v9983_v5  ;;  %v3441_v2 = vmul.f32 %v14823_v42, %v3417_v50  ;;  %v5045_v15 = vld [vmem:[#allocation5 + $0x558] sm:$0xff] }
 0x412   :  { %4151 = vrot.lane.b32.xlu1 %v14009_v60, %s13576_s28  ;;  %3996 = vrot.lane.b32.xlu0 %v13990_v47, %s13569_s17  ;;  %v5057_v50 = vld [vmem:[#allocation5 + $0x5b8] sm:$0xff] }
 0x413   :  { %v11549_v29 = vpack.c.bf16 %v3724_v62, %v3723_v13  ;;  %12640 = vmatpush3.bf16.msra.mxu0 %v13311_v21  ;;  %v10008_v62 = vcombine.low %v5021_v26, %v5033_v53  ;;  %v10033_v21 = vcombine.high %v5045_v15, %v5057_v50  ;;  %v10054_v26 = vcombine.low %v5068_v36, %v5068_v36 }
 0x414   :  { %v3419_v28 = vpop.permute.xlu1 %3418  ;;  %v3385_v31 = vpop.permute.xlu0 %3384  ;;  %12765 = vmatprep.subr.bf16.mxu0 %v13312_v24 }
 0x415   :  { %12063 = vst [vmem:[#allocation2 + $0x3a8] sm:$0xff] %v11549_v29   ;;  %v3442_v0 = vmul.f32 %v14823_v42, %v3419_v28  ;;  %8030 = vmatmul.mubr.bf16.gmra.mxu0 %v9960_v3  ;;  %v3425_v52 = vmul.f32 %v14823_v42, %v3385_v31  ;;  %v10055_v29 = vcombine.high %v5068_v36, %v5068_v36 }
 0x416   :  { %3998 = vrot.lane.b32.xlu1 %v13992_v48, %s13569_s17  ;;  %3851 = vrot.lane.b32.xlu0 %v14007_v35, %s13572_s20 }
 0x417   :  { %v11499_v23 = vpack.c.bf16 %v3442_v0, %v3441_v2  ;;  %7934 = vmatmul.mubr.bf16.gmra.mxu1 %v9982_v44  ;;  %8037 = vmatprep.mubr.bf16.mxu0 %v9985_v20  ;;  %v5069_v2 = vld [vmem:[#allocation5 + $0x618] sm:$0x33]  ;;  %v4878_v0 = vld [vmem:[#allocation5 + $0x20] sm:$0xff] }
 0x418   :  { %v3387_v49 = vpop.permute.xlu1 %3386  ;;  %v3711_v30 = vpop.permute.xlu0 %3710  ;;  %7941 = vmatprep.mubr.bf16.mxu1 %v10007_v43  ;;  %v10057_v53 = vcombine.high %v5069_v2, %v5069_v2 }
 0x419   :  { %12053 = vst [vmem:[#allocation2 + $0x358] sm:$0xff] %v11499_v23   ;;  %v3426_v11 = vmul.f32 %v14823_v42, %v3387_v49  ;;  %v3737_v22 = vmul.f32 %v14857_v51, %v3711_v30  ;;  %v4890_v23 = vld [vmem:[#allocation5 + $0x80] sm:$0xff]  ;;  %v10032_v30 = vcombine.low %v5045_v15, %v5057_v50 }
 0x41a   :  { %3853 = vrot.lane.b32.xlu1 %v14009_v60, %s13572_s20  ;;  %4290 = vrot.lane.b32.xlu0 %v13972_v16, %s13573_s21  ;;  %v9867_v32 = vcombine.high %v4878_v0, %v4890_v23 }
 0x41b   :  { %v11459_v61 = vpack.c.bf16 %v3426_v11, %v3425_v52 }
 0x41c   :  { %v3713_v19 = vpop.permute.xlu1 %3712  ;;  %v3566_v1 = vpop.permute.xlu0 %3565 }
 0x41d   :  { %12045 = vst [vmem:[#allocation2 + $0x318] sm:$0xff] %v11459_v61   ;;  %v3738_v7 = vmul.f32 %v14857_v51, %v3713_v19  ;;  %8038 = vmatmul.mubr.bf16.gmra.mxu0 %v9984_v34  ;;  %v3590_v39 = vmul.f32 %v14812_v45, %v3566_v1 }
 0x41e   :  { %4292 = vrot.lane.b32.xlu1 %v13974_v18, %s13573_s21  ;;  %4145 = vrot.lane.b32.xlu0 %v13990_v47, %s13576_s28 }
 0x41f   :  { %v11584_v4 = vpack.c.bf16 %v3738_v7, %v3737_v22  ;;  %7942 = vmatmul.mubr.bf16.gmra.mxu1 %v10006_v40  ;;  %8045 = vmatprep.mubr.bf16.mxu0 %v10009_v54  ;;  %v4891_v22 = vld [vmem:[#allocation5 + $0x88] sm:$0xff]  ;;  %v4902_v7 = vld [vmem:[#allocation5 + $0xe0] sm:$0xff] }
 0x420   :  { %v3568_v5 = vpop.permute.xlu1 %3567  ;;  %v3413_v6 = vpop.permute.xlu0 %3412  ;;  %7949 = vmatprep.mubr.bf16.mxu1 %v10031_v12  ;;  %v4879_v12 = vld [vmem:[#allocation5 + $0x28] sm:$0xff] }
 0x421   :  { %12070 = vst [vmem:[#allocation2 + $0x3e0] sm:$0xff] %v11584_v4   ;;  %v3591_v10 = vmul.f32 %v14812_v45, %v3568_v5  ;;  %v3439_v24 = vmul.f32 %v14823_v42, %v3413_v6  ;;  %v4914_v4 = vld [vmem:[#allocation5 + $0x140] sm:$0xff]  ;;  %v10056_v6 = vcombine.low %v5069_v2, %v5069_v2  ;;  %v9869_v50 = vcombine.high %v4879_v12, %v4891_v22 }
 0x422   :  { %4147 = vrot.lane.b32.xlu1 %v13992_v48, %s13576_s28  ;;  %3992 = vrot.lane.b32.xlu0 %v13972_v16, %s13569_s17  ;;  %v9890_v2 = vcombine.low %v4902_v7, %v4914_v4 }
 0x423   :  { %v11544_v13 = vpack.c.bf16 %v3591_v10, %v3590_v39  ;;  %v9866_v39 = vcombine.low %v4878_v0, %v4890_v23  ;;  %v4915_v0 = vld [vmem:[#allocation5 + $0x148] sm:$0xff]  ;;  %v4926_v23 = vld [vmem:[#allocation5 + $0x1a0] sm:$0xff] }
 0x424   :  { %v3415_v14 = vpop.permute.xlu1 %3414  ;;  %v3707_v17 = vpop.permute.xlu0 %3706 }
 0x425   :  { %12062 = vst [vmem:[#allocation2 + $0x3a0] sm:$0xff] %v11544_v13   ;;  %v3440_v3 = vmul.f32 %v14823_v42, %v3415_v14  ;;  %8046 = vmatmul.mubr.bf16.gmra.mxu0 %v10008_v62  ;;  %v3735_v20 = vmul.f32 %v14857_v51, %v3707_v17  ;;  %v9891_v62 = vcombine.high %v4902_v7, %v4914_v4  ;;  %v13318_v17 = vld [vmem:[#allocation2 + $0x370] sm:$0xff]   ;;  %v15008_v7 = vld [vmem:[#allocation5 + $0x1a8] sm:$0xff] }
 0x426   :  { %3994 = vrot.lane.b32.xlu1 %v13974_v18, %s13569_s17  ;;  %3847 = vrot.lane.b32.xlu0 %v13990_v47, %s13572_s20  ;;  %v15010_v4 = vld [vmem:[#allocation5 + $0x208] sm:$0xff] }
 0x427   :  { %v11494_v44 = vpack.c.bf16 %v3440_v3, %v3439_v24  ;;  %7950 = vmatmul.mubr.bf16.gmra.mxu1 %v10030_v8  ;;  %8053 = vmatprep.mubr.bf16.mxu0 %v10033_v21  ;;  %v13317_v8 = vld [vmem:[#allocation2 + $0x338] sm:$0xff]  }
 0x428   :  { %v3709_v28 = vpop.permute.xlu1 %3708  ;;  %v3562_v31 = vpop.permute.xlu0 %3561  ;;  %7957 = vmatprep.mubr.bf16.mxu1 %v10055_v29 }
 0x429   :  { %12052 = vst [vmem:[#allocation2 + $0x350] sm:$0xff] %v11494_v44   ;;  %v3736_v43 = vmul.f32 %v14857_v51, %v3709_v28  ;;  %v3588_v33 = vmul.f32 %v14812_v45, %v3562_v31  ;;  %v13319_v44 = vld [vmem:[#allocation2 + $0x330] sm:$0xff]   ;;  %v14993_v28 = vld [vmem:[#allocation5 + $0xe8] sm:$0xff] }
 0x42a   :  { %3849 = vrot.lane.b32.xlu1 %v13992_v48, %s13572_s20  ;;  %4286 = vrot.lane.b32.xlu0 %v13954_v58, %s13573_s21 }
 0x42b   :  { %v11579_v49 = vpack.c.bf16 %v3736_v43, %v3735_v20  ;;  %v13320_v20 = vld [vmem:[#allocation2 + $0x368] sm:$0xff]   ;;  %v9868_v43 = vcombine.low %v4879_v12, %v4891_v22  ;;  %v13325_v12 = vld [vmem:[#allocation2 + $0x3b0] sm:$0xff]   ;;  %v13326_v22 = vld [vmem:[#allocation2 + $0x320] sm:$0xff]  }
 0x42c   :  { %v3564_v52 = vpop.permute.xlu1 %3563  ;;  %v3409_v11 = vpop.permute.xlu0 %3408 }
 0x42d   :  { %12069 = vst [vmem:[#allocation2 + $0x3d8] sm:$0xff] %v11579_v49   ;;  %v3589_v61 = vmul.f32 %v14812_v45, %v3564_v52  ;;  %8054 = vmatmul.mubr.bf16.gmra.mxu0 %v10032_v30  ;;  %v3437_v1 = vmul.f32 %v14823_v42, %v3409_v11  ;;  %v4938_v30 = vld [vmem:[#allocation5 + $0x200] sm:$0xff] }
 0x42e   :  { %4288 = vrot.lane.b32.xlu1 %v13956_v59, %s13573_s21  ;;  %4141 = vrot.lane.b32.xlu0 %v13972_v16, %s13576_s28  ;;  %v13321_v11 = vld [vmem:[#allocation2 + $0x3b8] sm:$0xff]  }
 0x42f   :  { %v11539_v34 = vpack.c.bf16 %v3589_v61, %v3588_v33  ;;  %7958 = vmatmul.mubr.bf16.gmra.mxu1 %v10054_v26  ;;  %8061 = vmatprep.mubr.bf16.mxu0 %v10057_v53  ;;  %v13322_v53 = vld [vmem:[#allocation2 + $0x328] sm:$0xff]   ;;  %v13323_v33 = vld [vmem:[#allocation2 + $0x3f0] sm:$0xff]   ;;  %v13324_v61 = vld [vmem:[#allocation2 + $0x360] sm:$0xff]  }
 0x430   :  { %v3411_v40 = vpop.permute.xlu1 %3410  ;;  %v3703_v19 = vpop.permute.xlu0 %3702  ;;  %8101 = vmatprep.mubr.bf16.mxu1 %v9867_v32 }
 0x431   :  { %12061 = vst [vmem:[#allocation2 + $0x398] sm:$0xff] %v11539_v34   ;;  %v3438_v54 = vmul.f32 %v14823_v42, %v3411_v40  ;;  %v3733_v36 = vmul.f32 %v14857_v51, %v3703_v19  ;;  %v9893_v34 = vcombine.high %v14993_v28, %v4915_v0  ;;  %v9915_v40 = vcombine.high %v4926_v23, %v4938_v30 }
 0x432   :  { %4143 = vrot.lane.b32.xlu1 %v13974_v18, %s13576_s28  ;;  %3988 = vrot.lane.b32.xlu0 %v13954_v58, %s13569_s17 }
 0x433   :  { %v11489_v5 = vpack.c.bf16 %v3438_v54, %v3437_v1 }
 0x434   :  { %v3705_v10 = vpop.permute.xlu1 %3704  ;;  %v3558_v15 = vpop.permute.xlu0 %3557 }
 0x435   :  { %12051 = vst [vmem:[#allocation2 + $0x348] sm:$0xff] %v11489_v5   ;;  %v3734_v13 = vmul.f32 %v14857_v51, %v3705_v10  ;;  %8062 = vmatmul.mubr.bf16.gmra.mxu0 %v10056_v6  ;;  %v3586_v24 = vmul.f32 %v14812_v45, %v3558_v15  ;;  %v13327_v6 = vld [vmem:[#allocation2 + $0x3e8] sm:$0xff]   ;;  %v9892_v10 = vcombine.low %v14993_v28, %v4915_v0 }
 0x436   :  { %3990 = vrot.lane.b32.xlu1 %v13956_v59, %s13569_s17  ;;  %3843 = vrot.lane.b32.xlu0 %v13972_v16, %s13572_s20  ;;  %v9914_v15 = vcombine.low %v4926_v23, %v4938_v30  ;;  %v9917_v28 = vcombine.high %v15008_v7, %v15010_v4  ;;  %v13334_v23 = vld [vmem:[#allocation2 + $0x310] sm:$0xff]   ;;  %v15033_v30 = vld [vmem:[#allocation5 + $0x2c8] sm:$0xff] }
 0x437   :  { %v11574_v14 = vpack.c.bf16 %v3734_v13, %v3733_v36  ;;  %8102 = vmatmul.mubr.bf16.vlgmr.msra.gmra.mxu1 %v9866_v39  ;;  %8205 = vmatprep.mubr.bf16.mxu0 %v9869_v50  ;;  %v13328_v39 = vld [vmem:[#allocation2 + $0x358] sm:$0xff]  }
 0x438   :  { %12696 = vmatpush3.bf16.msra.mxu1 %v13317_v8  ;;  %v3560_v21 = vpop.permute.xlu1 %3559  ;;  %v3405_v29 = vpop.permute.xlu0 %3404  ;;  %8109 = vmatprep.mubr.bf16.mxu1 %v9891_v62  ;;  %v15013_v50 = vld [vmem:[#allocation5 + $0x260] sm:$0xff]  ;;  %v13502_v8 = vld [vmem:[%s16206_s1 + $0xc] ss:$0 sm:$0xff] }
 0x439   :  { %12068 = vst [vmem:[#allocation2 + $0x3d0] sm:$0xff] %v11574_v14   ;;  %v3587_v3 = vmul.f32 %v14812_v45, %v3560_v21  ;;  %12697 = vmatprep.subr.bf16.mxu1 %v13318_v17  ;;  %v3435_v26 = vmul.f32 %v14823_v42, %v3405_v29  ;;  %v4962_v62 = vld [vmem:[#allocation5 + $0x2c0] sm:$0xff]  ;;  %v13329_v21 = vld [vmem:[#allocation2 + $0x3a8] sm:$0xff]  }
 0x43a   :  { %3845 = vrot.lane.b32.xlu1 %v13974_v18, %s13572_s20  ;;  %4282 = vrot.lane.b32.xlu0 %v13937_v25, %s13573_s21  ;;  %v13330_v29 = vld [vmem:[#allocation2 + $0x318] sm:$0xff]  }
 0x43b   :  { %v11534_v31 = vpack.c.bf16 %v3587_v3, %v3586_v24  ;;  %v13331_v3 = vld [vmem:[#allocation2 + $0x3e0] sm:$0xff]  }
 0x43c   :  { %12698 = vmatpush3.bf16.msra.mxu1 %v13319_v44  ;;  %v3407_v49 = vpop.permute.xlu1 %3406  ;;  %v3699_v45 = vpop.permute.xlu0 %3698  ;;  %v13332_v44 = vld [vmem:[#allocation2 + $0x350] sm:$0xff]  }
 0x43d   :  { %12060 = vst [vmem:[#allocation2 + $0x390] sm:$0xff] %v11534_v31   ;;  %v3436_v52 = vmul.f32 %v14823_v42, %v3407_v49  ;;  %12699 = vmatprep.subr.bf16.mxu1 %v13320_v20  ;;  %8206 = vmatmul.mubr.bf16.vlgmr.msra.gmra.mxu0 %v9868_v43  ;;  %v3731_v1 = vmul.f32 %v14857_v51, %v3699_v45  ;;  %v13333_v49 = vld [vmem:[#allocation2 + $0x3a0] sm:$0xff]  }
 0x43e   :  { %4284 = vrot.lane.b32.xlu1 %v13939_v27, %s13573_s21  ;;  %4137 = vrot.lane.b32.xlu0 %v13954_v58, %s13576_s28  ;;  %v9939_v31 = vcombine.high %v15013_v50, %v4962_v62  ;;  %v15031_v45 = vld [vmem:[#allocation5 + $0x268] sm:$0xff] }
 0x43f   :  { %v11484_v32 = vpack.c.bf16 %v3436_v52, %v3435_v26  ;;  %8110 = vmatmul.mubr.bf16.gmra.mxu1 %v9890_v2  ;;  %12766 = vmatpush3.bf16.msra.mxu0 %v13321_v11  ;;  %v13335_v52 = vld [vmem:[#allocation2 + $0x3d8] sm:$0xff]   ;;  %v13336_v11 = vld [vmem:[#allocation2 + $0x348] sm:$0xff]  }
 0x440   :  { %12700 = vmatpush3.bf16.msra.mxu1 %v13322_v53  ;;  %v3701_v42 = vpop.permute.xlu1 %3700  ;;  %v3554_v19 = vpop.permute.xlu0 %3553  ;;  %12767 = vmatprep.subr.bf16.mxu0 %v13323_v33  ;;  %v9916_v53 = vcombine.low %v15008_v7, %v15010_v4  ;;  %v9941_v4 = vcombine.high %v15031_v45, %v15033_v30 }
 0x441   :  { %12050 = vst [vmem:[#allocation2 + $0x340] sm:$0xff] %v11484_v32   ;;  %v3732_v54 = vmul.f32 %v14857_v51, %v3701_v42  ;;  %12701 = vmatprep.subr.bf16.mxu1 %v13324_v61  ;;  %8213 = vmatprep.mubr.bf16.mxu0 %v9893_v34  ;;  %v3584_v14 = vmul.f32 %v13502_v8, %v3554_v19  ;;  %v4974_v32 = vld [vmem:[#allocation5 + $0x320] sm:$0xff]  ;;  %v15041_v19 = vld [vmem:[%s16206_s1 + $0xf] ss:$0 sm:$0xff] }
 0x442   :  { %4139 = vrot.lane.b32.xlu1 %v13956_v59, %s13576_s28  ;;  %3984 = vrot.lane.b32.xlu0 %v13937_v25, %s13569_s17  ;;  %v4986_v34 = vld [vmem:[#allocation5 + $0x380] sm:$0xff] }
 0x443   :  { %v11569_v5 = vpack.c.bf16 %v3732_v54, %v3731_v1  ;;  %8117 = vmatprep.mubr.bf16.mxu1 %v9915_v40  ;;  %12768 = vmatpush3.bf16.msra.mxu0 %v13325_v12  ;;  %v13337_v1 = vld [vmem:[#allocation2 + $0x398] sm:$0xff]   ;;  %v13338_v54 = vld [vmem:[#allocation2 + $0x308] sm:$0xff]  }
 0x444   :  { %12702 = vmatpush3.bf16.msra.mxu1 %v13326_v22  ;;  %v3556_v36 = vpop.permute.xlu1 %3555  ;;  %v3695_v13 = vpop.permute.xlu0 %3694  ;;  %12769 = vmatprep.subr.bf16.mxu0 %v13327_v6  ;;  %v13339_v22 = vld [vmem:[#allocation2 + $0x3d0] sm:$0xff]  }
 0x445   :  { %12067 = vst [vmem:[#allocation2 + $0x3c8] sm:$0xff] %v11569_v5   ;;  %v3585_v17 = vmul.f32 %v13502_v8, %v3556_v36  ;;  %12703 = vmatprep.subr.bf16.mxu1 %v13328_v39  ;;  %8214 = vmatmul.mubr.bf16.gmra.mxu0 %v9892_v10  ;;  %v3729_v2 = vmul.f32 %v14857_v51, %v3695_v13  ;;  %v15051_v36 = vld [vmem:[#allocation5 + $0x328] sm:$0xff] }
 0x446   :  { %3986 = vrot.lane.b32.xlu1 %v13939_v27, %s13569_s17  ;;  %3839 = vrot.lane.b32.xlu0 %v13954_v58, %s13572_s20  ;;  %v9963_v5 = vcombine.high %v4974_v32, %v4986_v34  ;;  %v4987_v13 = vld [vmem:[#allocation5 + $0x388] sm:$0xff] }
 0x447   :  { %v11529_v24 = vpack.c.bf16 %v3585_v17, %v3584_v14  ;;  %8118 = vmatmul.mubr.bf16.gmra.mxu1 %v9914_v15  ;;  %12770 = vmatpush3.bf16.msra.mxu0 %v13329_v21  ;;  %v5010_v14 = vld [vmem:[#allocation5 + $0x440] sm:$0xff] }
 0x448   :  { %12704 = vmatpush3.bf16.msra.mxu1 %v13330_v29  ;;  %v3697_v20 = vpop.permute.xlu1 %3696  ;;  %v3550_v43 = vpop.permute.xlu0 %3549  ;;  %12771 = vmatprep.subr.bf16.mxu0 %v13331_v3  ;;  %v13340_v7 = vld [vmem:[#allocation2 + $0x340] sm:$0xff]   ;;  %v9940_v29 = vcombine.low %v15031_v45, %v15033_v30 }
 0x449   :  { %12059 = vst [vmem:[#allocation2 + $0x388] sm:$0xff] %v11529_v24   ;;  %v3730_v0 = vmul.f32 %v14857_v51, %v3697_v20  ;;  %12705 = vmatprep.subr.bf16.mxu1 %v13332_v44  ;;  %8221 = vmatprep.mubr.bf16.mxu0 %v9917_v28  ;;  %v9938_v51 = vcombine.low %v15013_v50, %v4962_v62  ;;  %v13342_v50 = vld [vmem:[#allocation2 + $0x300] sm:$0xff]   ;;  %v13341_v62 = vld [vmem:[#allocation2 + $0x390] sm:$0xff]  }
 0x44a   :  { %3841 = vrot.lane.b32.xlu1 %v13956_v59, %s13572_s20  ;;  %4278 = vrot.lane.b32.xlu0 %v13921_v57, %s13573_s21  ;;  %v3582_v40 = vmul.f32 %v13502_v8, %v3550_v43  ;;  %v9962_v24 = vcombine.low %v4974_v32, %v4986_v34  ;;  %v9965_v28 = vcombine.high %v15051_v36, %v4987_v13  ;;  %v5034_v32 = vld [vmem:[#allocation5 + $0x500] sm:$0xff] }
 0x44b   :  { %v11564_v26 = vpack.c.bf16 %v3730_v0, %v3729_v2  ;;  %8125 = vmatprep.mubr.bf16.mxu1 %v9939_v31  ;;  %12772 = vmatpush3.bf16.msra.mxu0 %v13333_v49 }
 0x44c   :  { %12706 = vmatpush3.bf16.msra.mxu1 %v13334_v23  ;;  %v3552_v33 = vpop.permute.xlu1 %3551  ;;  %v4013_v61 = vpop.permute.xlu0 %4012  ;;  %12773 = vmatprep.subr.bf16.mxu0 %v13335_v52  ;;  %v13343_v21 = vld [vmem:[#allocation2 + $0x3c8] sm:$0xff]  }
 0x44d   :  { %12066 = vst [vmem:[#allocation2 + $0x3c0] sm:$0xff] %v11564_v26   ;;  %v3583_v42 = vmul.f32 %v13502_v8, %v3552_v33  ;;  %12707 = vmatprep.subr.bf16.mxu1 %v13336_v11  ;;  %8222 = vmatmul.mubr.bf16.gmra.mxu0 %v9916_v53  ;;  %v4037_v10 = vmul.f32 %v15041_v19, %v4013_v61  ;;  %v4998_v8 = vld [vmem:[#allocation5 + $0x3e0] sm:$0xff]  ;;  %v4999_v11 = vld [vmem:[#allocation5 + $0x3e8] sm:$0xff] }
 0x44e   :  { %4280 = vrot.lane.b32.xlu1 %v13925_v63, %s13573_s21  ;;  %4133 = vrot.lane.b32.xlu0 %v13937_v25, %s13576_s28  ;;  %v9987_v2 = vcombine.high %v4998_v8, %v5010_v14  ;;  %v5011_v53 = vld [vmem:[#allocation5 + $0x448] sm:$0xff]  ;;  %v9964_v61 = vcombine.low %v15051_v36, %v4987_v13  ;;  %v9986_v34 = vcombine.low %v4998_v8, %v5010_v14  ;;  %v5058_v8 = vld [vmem:[#allocation5 + $0x5c0] sm:$0xff]  ;;  %v15094_v14 = vld [vmem:[%s16206_s1 + $0x10] ss:$0 sm:$0xff] }
 0x44f   :  { %v11524_v12 = vpack.c.bf16 %v3583_v42, %v3582_v40  ;;  %8126 = vmatmul.mubr.bf16.gmra.mxu1 %v9938_v51  ;;  %12774 = vmatpush3.bf16.msra.mxu0 %v13337_v1  ;;  %v5022_v51 = vld [vmem:[#allocation5 + $0x4a0] sm:$0xff]  ;;  %v5035_v13 = vld [vmem:[#allocation5 + $0x508] sm:$0xff] }
 0x450   :  { %12708 = vmatpush3.bf16.msra.mxu1 %v13338_v54  ;;  %v4015_v6 = vpop.permute.xlu1 %4014  ;;  %v3981_v39 = vpop.permute.xlu0 %3980  ;;  %12775 = vmatprep.subr.bf16.mxu0 %v13339_v22  ;;  %v13344_v0 = vld [vmem:[#allocation2 + $0x388] sm:$0xff]   ;;  %v9989_v54 = vcombine.high %v4999_v11, %v5011_v53 }
 0x451   :  { %12058 = vst [vmem:[#allocation2 + $0x380] sm:$0xff] %v11524_v12   ;;  %v4038_v15 = vmul.f32 %v15041_v19, %v4015_v6  ;;  %12709 = vmatprep.subr.bf16.mxu1 %v13340_v7  ;;  %8229 = vmatprep.mubr.bf16.mxu0 %v9941_v4  ;;  %v4021_v31 = vmul.f32 %v15041_v19, %v3981_v39  ;;  %v15076_v12 = vld [vmem:[%s16206_s1 + $0xe] ss:$0 sm:$0xff] }
 0x452   :  { %4135 = vrot.lane.b32.xlu1 %v13939_v27, %s13576_s28  ;;  %4161 = vrot.lane.b32.xlu0 %v14058_v55, %s13576_s28  ;;  %v10011_v4 = vcombine.high %v5022_v51, %v5034_v32 }
 0x453   :  { %v11679_v17 = vpack.c.bf16 %v4038_v15, %v4037_v10  ;;  %8133 = vmatprep.mubr.bf16.mxu1 %v9963_v5  ;;  %12776 = vmatpush3.bf16.msra.mxu0 %v13341_v62  ;;  %v15083_v5 = vld [vmem:[%s16206_s1 + $0x11] ss:$0 sm:$0xff]  ;;  %v5023_v15 = vld [vmem:[#allocation5 + $0x4a8] sm:$0xff]  ;;  %v5046_v62 = vld [vmem:[#allocation5 + $0x560] sm:$0xff] }
 0x454   :  { %12710 = vmatpush3.bf16.msra.mxu1 %v13342_v50  ;;  %v3983_v3 = vpop.permute.xlu1 %3982  ;;  %v4009_v44 = vpop.permute.xlu0 %4008  ;;  %12777 = vmatprep.subr.bf16.mxu0 %v13343_v21  ;;  %v13345_v43 = vld [vmem:[#allocation2 + $0x3c0] sm:$0xff]   ;;  %v9988_v21 = vcombine.low %v4999_v11, %v5011_v53  ;;  %v5070_v53 = vld [vmem:[#allocation5 + $0x620] sm:$0x33] }
 0x455   :  { %12089 = vst [vmem:[#allocation2 + $0x478] sm:$0xff] %v11679_v17   ;;  %v4022_v20 = vmul.f32 %v15041_v19, %v3983_v3  ;;  %8230 = vmatmul.mubr.bf16.gmra.mxu0 %v9940_v29  ;;  %v4035_v26 = vmul.f32 %v15041_v19, %v4009_v44  ;;  %v10010_v29 = vcombine.low %v5022_v51, %v5034_v32 }
 0x456   :  { %4163 = vrot.lane.b32.xlu1 %v14060_v56, %s13576_s28  ;;  %4129 = vrot.lane.b32.xlu0 %v13921_v57, %s13576_s28  ;;  %v10013_v44 = vcombine.high %v5023_v15, %v5035_v13 }
 0x457   :  { %v11639_v23 = vpack.c.bf16 %v4022_v20, %v4021_v31  ;;  %8134 = vmatmul.mubr.bf16.gmra.mxu1 %v9962_v24  ;;  %12778 = vmatpush3.bf16.msra.mxu0 %v13344_v0 }
 0x458   :  { %v4011_v49 = vpop.permute.xlu1 %4010  ;;  %v3864_v45 = vpop.permute.xlu0 %3863  ;;  %v13346_v30 = vld [vmem:[#allocation2 + $0x380] sm:$0xff]   ;;  %8237 = vmatprep.mubr.bf16.mxu0 %v9965_v28  ;;  %12779 = vmatprep.subr.bf16.mxu0 %v13345_v43  ;;  %v10035_v28 = vcombine.high %v5046_v62, %v5058_v8 }
 0x459   :  { %12081 = vst [vmem:[#allocation2 + $0x438] sm:$0xff] %v11639_v23   ;;  %v4036_v52 = vmul.f32 %v15041_v19, %v4011_v49  ;;  %8141 = vmatprep.mubr.bf16.mxu1 %v9987_v2  ;;  %v3888_v22 = vmul.f32 %v15076_v12, %v3864_v45 }
 0x45a   :  { %4131 = vrot.lane.b32.xlu1 %v13925_v63, %s13576_s28  ;;  %4737 = vrot.lane.b32.xlu0 %v13972_v16, %s13579_s26 }
 0x45b   :  { %v11674_v33 = vpack.c.bf16 %v4036_v52, %v4035_v26  ;;  %12780 = vmatpush3.bf16.msra.mxu0 %v13346_v30  ;;  %v15108_v26 = vld [vmem:[#allocation5 + $0x568] sm:$0xff] }
 0x45c   :  { %v3866_v40 = vpop.permute.xlu1 %3865  ;;  %v4303_v42 = vpop.permute.xlu0 %4302  ;;  %v13347_v1 = vld [vmem:[#allocation2 + $0x478] sm:$0xff]   ;;  %v15110_v52 = vld [vmem:[#allocation5 + $0x5c8] sm:$0xff] }
 0x45d   :  { %12088 = vst [vmem:[#allocation2 + $0x470] sm:$0xff] %v11674_v33   ;;  %v3889_v7 = vmul.f32 %v15076_v12, %v3866_v40  ;;  %8238 = vmatmul.mubr.bf16.gmra.mxu0 %v9964_v61  ;;  %12835 = vmatprep.subr.bf16.mxu1 %v13347_v1  ;;  %v4331_v50 = vmul.f32 %v15083_v5, %v4303_v42 }
 0x45e   :  { %4739 = vrot.lane.b32.xlu1 %v13974_v18, %s13579_s26  ;;  %4733 = vrot.lane.b32.xlu0 %v13954_v58, %s13579_s26  ;;  %v10012_v33 = vcombine.low %v5023_v15, %v5035_v13  ;;  %v10034_v61 = vcombine.low %v5046_v62, %v5058_v8  ;;  %v10037_v1 = vcombine.high %v15108_v26, %v15110_v52 }
 0x45f   :  { %v11634_v6 = vpack.c.bf16 %v3889_v7, %v3888_v22  ;;  %8142 = vmatmul.mubr.bf16.gmra.mxu1 %v9986_v34  ;;  %8245 = vmatprep.mubr.bf16.mxu0 %v9989_v54 }
 0x460   :  { %v4305_v39 = vpop.permute.xlu1 %4304  ;;  %v4158_v10 = vpop.permute.xlu0 %4157  ;;  %8149 = vmatprep.mubr.bf16.mxu1 %v10011_v4  ;;  %v10059_v4 = vcombine.high %v5070_v53, %v5070_v53 }
 0x461   :  { %12080 = vst [vmem:[#allocation2 + $0x430] sm:$0xff] %v11634_v6   ;;  %v4332_v36 = vmul.f32 %v15083_v5, %v4305_v39  ;;  %v4184_v31 = vmul.f32 %v15094_v14, %v4158_v10 }
 0x462   :  { %4735 = vrot.lane.b32.xlu1 %v13956_v59, %s13579_s26  ;;  %4729 = vrot.lane.b32.xlu0 %v13937_v25, %s13579_s26 }
 0x463   :  { %v11759_v17 = vpack.c.bf16 %v4332_v36, %v4331_v50 }
 0x464   :  { %v4160_v24 = vpop.permute.xlu1 %4159  ;;  %v4005_v3 = vpop.permute.xlu0 %4004 }
 0x465   :  { %12105 = vst [vmem:[#allocation2 + $0x4f8] sm:$0xff] %v11759_v17   ;;  %v4185_v20 = vmul.f32 %v15094_v14, %v4160_v24  ;;  %8246 = vmatmul.mubr.bf16.gmra.mxu0 %v9988_v21  ;;  %v4033_v49 = vmul.f32 %v15041_v19, %v4005_v3  ;;  %v15126_v21 = vld [vmem:[#allocation5 + $0x628] sm:$0x33]  ;;  %v15130_v24 = vld [vmem:[#allocation5 + $0x90] sm:$0xff] }
 0x466   :  { %4731 = vrot.lane.b32.xlu1 %v13939_v27, %s13579_s26  ;;  %4725 = vrot.lane.b32.xlu0 %v13921_v57, %s13579_s26 }
 0x467   :  { %v11719_v43 = vpack.c.bf16 %v4185_v20, %v4184_v31  ;;  %v12291_v2 = vpop.f32.mrf.mxu1  ;;  %8150 = vmatmul.mubr.bf16.gmra.mxu1 %v10010_v29  ;;  %8253 = vmatprep.mubr.bf16.mxu0 %v10013_v44  ;;  %v15128_v29 = vld [vmem:[#allocation5 + $0x30] sm:$0xff] }
 0x468   :  { %v4007_v0 = vpop.permute.xlu1 %4006  ;;  %v3860_v23 = vpop.permute.xlu0 %3859  ;;  %8157 = vmatprep.mubr.bf16.mxu1 %v10035_v28 }
 0x469   :  { %12097 = vst [vmem:[#allocation2 + $0x4b8] sm:$0xff] %v11719_v43   ;;  %v4034_v45 = vmul.f32 %v15041_v19, %v4007_v0  ;;  %v12292_v30 = vpop.f32.mrf.mxu1  ;;  %v3886_v54 = vmul.f32 %v15076_v12, %v3860_v23  ;;  %v10036_v43 = vcombine.low %v15108_v26, %v15110_v52 }
 0x46a   :  { %v12293_v11 = vadd.f32 %v12292_v30, %v12291_v2  ;;  %4727 = vrot.lane.b32.xlu1 %v13925_v63, %s13579_s26  ;;  %4592 = vrot.lane.b32.xlu0 %v13990_v47, %s13568_s16  ;;  %v10058_v2 = vcombine.low %v5070_v53, %v5070_v53  ;;  %v9871_v30 = vcombine.high %v15128_v29, %v15130_v24 }
 0x46b   :  { %v11669_v51 = vpack.c.bf16 %v4034_v45, %v4033_v49  ;;  %v12294_v32 = vpop.f32.mrf.mxu1  ;;  %v10061_v45 = vcombine.high %v15126_v21, %v15126_v21 }
 0x46c   :  { %v3862_v34 = vpop.permute.xlu1 %3861  ;;  %v4299_v40 = vpop.permute.xlu0 %4298  ;;  %v13348_v42 = vld [vmem:[#allocation2 + $0x4f8] sm:$0xff]  }
 0x46d   :  { %12087 = vst [vmem:[#allocation2 + $0x468] sm:$0xff] %v11669_v51   ;;  %v3887_v22 = vmul.f32 %v15076_v12, %v3862_v34  ;;  %v12295_v7 = vpop.f32.mrf.mxu1  ;;  %v12361_v10 = vpop.f32.mrf.mxu0  ;;  %8254 = vmatmul.mubr.bf16.gmra.mxu0 %v10012_v33  ;;  %12905 = vmatprep.subr.bf16.mxu0 %v13348_v42  ;;  %v4329_v13 = vmul.f32 %v15083_v5, %v4299_v40 }
 0x46e   :  { %v12296_v6 = vadd.f32 %v12295_v7, %v12294_v32  ;;  %4594 = vrot.lane.b32.xlu1 %v13992_v48, %s13568_s16  ;;  %4447 = vrot.lane.b32.xlu0 %v14007_v35, %s13571_s19 }
 0x46f   :  { %v11629_v39 = vpack.c.bf16 %v3887_v22, %v3886_v54  ;;  %v12297_v15 = vpop.f32.mrf.mxu1  ;;  %8158 = vmatmul.mubr.bf16.gmra.mxu1 %v10034_v61  ;;  %8261 = vmatprep.mubr.bf16.mxu0 %v10037_v1  ;;  %v12362_v8 = vpop.f32.mrf.mxu0 }
 0x470   :  { %v4301_v50 = vpop.permute.xlu1 %4300  ;;  %v4154_v36 = vpop.permute.xlu0 %4153  ;;  %8165 = vmatprep.mubr.bf16.mxu1 %v10059_v4  ;;  %v12363_v3 = vadd.f32 %v12362_v8, %v12361_v10  ;;  %v15156_v10 = vld [vmem:[#allocation5 + $0x98] sm:$0xff] }
 0x471   :  { %12079 = vst [vmem:[#allocation2 + $0x428] sm:$0xff] %v11629_v39   ;;  %v4330_v62 = vmul.f32 %v15083_v5, %v4301_v50  ;;  %v12298_v17 = vpop.f32.mrf.mxu1  ;;  %v12364_v31 = vpop.f32.mrf.mxu0  ;;  %v4182_v51 = vmul.f32 %v15094_v14, %v4154_v36  ;;  %v15154_v39 = vld [vmem:[#allocation5 + $0x38] sm:$0xff]  ;;  %v15164_v36 = vld [vmem:[#allocation5 + $0x150] sm:$0xff] }
 0x472   :  { %v12299_v44 = vadd.f32 %v12298_v17, %v12297_v15  ;;  %4449 = vrot.lane.b32.xlu1 %v14009_v60, %s13571_s19  ;;  %4608 = vrot.lane.b32.xlu0 %v14058_v55, %s13568_s16  ;;  %v15138_v0 = vadd.f32 %v12363_v3, %v12293_v11  ;;  %v10060_v17 = vcombine.low %v15126_v21, %v15126_v21 }
 0x473   :  { %v11754_v28 = vpack.c.bf16 %v4330_v62, %v4329_v13  ;;  %v12300_v20 = vpop.f32.mrf.mxu1  ;;  %v12365_v33 = vpop.f32.mrf.mxu0  ;;  %v9870_v3 = vcombine.low %v15128_v29, %v15130_v24  ;;  %v13353_v29 = vld [vmem:[#allocation2 + $0x438] sm:$0xff]  }
 0x474   :  { %v4156_v23 = vpop.permute.xlu1 %4155  ;;  %v4001_v49 = vpop.permute.xlu0 %4000  ;;  %v12366_v34 = vadd.f32 %v12365_v33, %v12364_v31  ;;  %v13354_v33 = vld [vmem:[#allocation2 + $0x470] sm:$0xff]  }
 0x475   :  { %12104 = vst [vmem:[#allocation2 + $0x4f0] sm:$0xff] %v11754_v28   ;;  %v4183_v32 = vmul.f32 %v15094_v14, %v4156_v23  ;;  %v12301_v61 = vpop.f32.mrf.mxu1  ;;  %v12367_v11 = vpop.f32.mrf.mxu0  ;;  %8262 = vmatmul.mubr.bf16.gmra.mxu0 %v10036_v43  ;;  %v4031_v54 = vmul.f32 %v15041_v19, %v4001_v49  ;;  %v9873_v43 = vcombine.high %v15154_v39, %v15156_v10 }
 0x476   :  { %v12302_v26 = vadd.f32 %v12301_v61, %v12300_v20  ;;  %4610 = vrot.lane.b32.xlu1 %v14060_v56, %s13568_s16  ;;  %4588 = vrot.lane.b32.xlu0 %v13972_v16, %s13568_s16  ;;  %v15150_v40 = vadd.f32 %v12366_v34, %v12296_v6  ;;  %v15162_v6 = vld [vmem:[#allocation5 + $0xf0] sm:$0xff] }
 0x477   :  { %v11714_v52 = vpack.c.bf16 %v4183_v32, %v4182_v51  ;;  %v12303_v53 = vpop.f32.mrf.mxu1  ;;  %8166 = vmatmul.mubr.bf16.gmra.mxu1 %v10058_v2  ;;  %8269 = vmatprep.mubr.bf16.mxu0 %v10061_v45  ;;  %v12368_v7 = vpop.f32.mrf.mxu0  ;;  %v9895_v21 = vcombine.high %v15162_v6, %v15164_v36 }
 0x478   :  { %v4003_v42 = vpop.permute.xlu1 %4002  ;;  %v3856_v1 = vpop.permute.xlu0 %3855  ;;  %8309 = vmatprep.mubr.bf16.mxu1 %v9871_v30  ;;  %v12369_v15 = vadd.f32 %v12368_v7, %v12367_v11  ;;  %v15192_v7 = vld [vmem:[#allocation5 + $0xf8] sm:$0xff] }
 0x479   :  { %12096 = vst [vmem:[#allocation2 + $0x4b0] sm:$0xff] %v11714_v52   ;;  %v4032_v22 = vmul.f32 %v15041_v19, %v4003_v42  ;;  %v12304_v4 = vpop.f32.mrf.mxu1  ;;  %v12370_v62 = vpop.f32.mrf.mxu0  ;;  %v3884_v2 = vmul.f32 %v15076_v12, %v3856_v1 }
 0x47a   :  { %v12305_v50 = vadd.f32 %v12304_v4, %v12303_v53  ;;  %4590 = vrot.lane.b32.xlu1 %v13974_v18, %s13568_s16  ;;  %4443 = vrot.lane.b32.xlu0 %v13990_v47, %s13571_s19  ;;  %v15170_v28 = vadd.f32 %v12369_v15, %v12299_v44 }
 0x47b   :  { %v11664_v13 = vpack.c.bf16 %v4032_v22, %v4031_v54  ;;  %v12306_v8 = vpop.f32.mrf.mxu1  ;;  %v12371_v49 = vpop.f32.mrf.mxu0 }
 0x47c   :  { %v3858_v31 = vpop.permute.xlu1 %3857  ;;  %v4295_v20 = vpop.permute.xlu0 %4294  ;;  %v12372_v30 = vadd.f32 %v12371_v49, %v12370_v62  ;;  %v13356_v62 = vld [vmem:[#allocation2 + $0x468] sm:$0xff]  }
 0x47d   :  { %12086 = vst [vmem:[#allocation2 + $0x460] sm:$0xff] %v11664_v13   ;;  %v3885_v23 = vmul.f32 %v15076_v12, %v3858_v31  ;;  %v12307_v45 = vpop.f32.mrf.mxu1  ;;  %v12373_v44 = vpop.f32.mrf.mxu0  ;;  %8270 = vmatmul.mubr.bf16.gmra.mxu0 %v10060_v17  ;;  %v4327_v11 = vmul.f32 %v15083_v5, %v4295_v20  ;;  %v9894_v17 = vcombine.low %v15162_v6, %v15164_v36  ;;  %v15200_v31 = vld [vmem:[#allocation5 + $0x1b0] sm:$0xff] }
 0x47e   :  { %v12308_v51 = vadd.f32 %v12307_v45, %v12306_v8  ;;  %4445 = vrot.lane.b32.xlu1 %v13992_v48, %s13571_s19  ;;  %4604 = vrot.lane.b32.xlu0 %v14041_v46, %s13568_s16  ;;  %v15182_v61 = vadd.f32 %v12372_v30, %v12302_v26  ;;  %v13355_v26 = vld [vmem:[#allocation2 + $0x430] sm:$0xff]   ;;  %v9872_v8 = vcombine.low %v15154_v39, %v15156_v10  ;;  %v13358_v30 = vld [vmem:[#allocation2 + $0x428] sm:$0xff]  }
 0x47f   :  { %v11624_v24 = vpack.c.bf16 %v3885_v23, %v3884_v2  ;;  %v12309_v32 = vpop.f32.mrf.mxu1  ;;  %8310 = vmatmul.mubr.bf16.vlgmr.msra.gmra.mxu1 %v9870_v3  ;;  %8413 = vmatprep.mubr.bf16.mxu0 %v9873_v43  ;;  %v12374_v42 = vpop.f32.mrf.mxu0  ;;  %v15198_v3 = vld [vmem:[#allocation5 + $0x158] sm:$0xff]  ;;  %v15204_v23 = vld [vmem:[#allocation5 + $0x210] sm:$0xff] }
 0x480   :  { %12836 = vmatpush3.bf16.msra.mxu1 %v13353_v29  ;;  %v4297_v34 = vpop.permute.xlu1 %4296  ;;  %v4150_v52 = vpop.permute.xlu0 %4149  ;;  %8317 = vmatprep.mubr.bf16.mxu1 %v9895_v21  ;;  %v12375_v54 = vadd.f32 %v12374_v42, %v12373_v44 }
 0x481   :  { %12078 = vst [vmem:[#allocation2 + $0x420] sm:$0xff] %v11624_v24   ;;  %v4328_v53 = vmul.f32 %v15083_v5, %v4297_v34  ;;  %12837 = vmatprep.subr.bf16.mxu1 %v13354_v33  ;;  %v12310_v1 = vpop.f32.mrf.mxu1  ;;  %v12376_v15 = vpop.f32.mrf.mxu0  ;;  %v4180_v49 = vmul.f32 %v15094_v14, %v4150_v52  ;;  %v9897_v33 = vcombine.high %v15192_v7, %v15198_v3 }
 0x482   :  { %v15186_v22 = vadd.f32 %v12310_v1, %v12309_v32  ;;  %4606 = vrot.lane.b32.xlu1 %v14043_v41, %s13568_s16  ;;  %4584 = vrot.lane.b32.xlu0 %v13954_v58, %s13568_s16  ;;  %v15202_v20 = vadd.f32 %v12375_v54, %v12305_v50  ;;  %v13357_v50 = vld [vmem:[#allocation2 + $0x4b8] sm:$0xff]   ;;  %v13359_v32 = vld [vmem:[#allocation2 + $0x4f0] sm:$0xff]   ;;  %v9919_v34 = vcombine.high %v15200_v31, %v15204_v23 }
 0x483   :  { %v11749_v4 = vpack.c.bf16 %v4328_v53, %v4327_v11  ;;  %v12312_v13 = vpop.f32.mrf.mxu1  ;;  %v12377_v39 = vpop.f32.mrf.mxu0 }
 0x484   :  { %12838 = vmatpush3.bf16.msra.mxu1 %v13355_v26  ;;  %v4152_v43 = vpop.permute.xlu1 %4151  ;;  %v3997_v2 = vpop.permute.xlu0 %3996  ;;  %v13360_v6 = vld [vmem:[#allocation2 + $0x460] sm:$0xff]   ;;  %v12378_v36 = vadd.f32 %v12377_v39, %v12376_v15  ;;  %v15224_v15 = vld [vmem:[#allocation5 + $0x218] sm:$0xff]  ;;  %v9918_v39 = vcombine.low %v15200_v31, %v15204_v23 }
 0x485   :  { %12103 = vst [vmem:[#allocation2 + $0x4e8] sm:$0xff] %v11749_v4   ;;  %v4181_v45 = vmul.f32 %v15094_v14, %v4152_v43  ;;  %12839 = vmatprep.subr.bf16.mxu1 %v13356_v62  ;;  %v12313_v10 = vpop.f32.mrf.mxu1  ;;  %v12379_v24 = vpop.f32.mrf.mxu0  ;;  %8414 = vmatmul.mubr.bf16.vlgmr.msra.gmra.mxu0 %v9872_v8  ;;  %v4029_v42 = vmul.f32 %v15041_v19, %v3997_v2  ;;  %v15222_v4 = vld [vmem:[#allocation5 + $0x1b8] sm:$0xff]  ;;  %v15230_v8 = vld [vmem:[#allocation5 + $0x270] sm:$0xff] }
 0x486   :  { %v15208_v21 = vadd.f32 %v12313_v10, %v12312_v13  ;;  %4586 = vrot.lane.b32.xlu1 %v13956_v59, %s13568_s16  ;;  %4439 = vrot.lane.b32.xlu0 %v13972_v16, %s13571_s19  ;;  %v15218_v52 = vadd.f32 %v12378_v36, %v12308_v51  ;;  %v13361_v62 = vld [vmem:[#allocation2 + $0x4b0] sm:$0xff]  }
 0x487   :  { %v11709_v29 = vpack.c.bf16 %v4181_v45, %v4180_v49  ;;  %v12315_v44 = vpop.f32.mrf.mxu1  ;;  %8318 = vmatmul.mubr.bf16.gmra.mxu1 %v9894_v17  ;;  %12906 = vmatpush3.bf16.msra.mxu0 %v13357_v50  ;;  %v12380_v54 = vpop.f32.mrf.mxu0  ;;  %v15232_v17 = vld [vmem:[#allocation5 + $0x2d0] sm:$0xff]  ;;  %v9896_v45 = vcombine.low %v15192_v7, %v15198_v3  ;;  %v9921_v50 = vcombine.high %v15222_v4, %v15224_v15 }
 0x488   :  { %12840 = vmatpush3.bf16.msra.mxu1 %v13358_v30  ;;  %v3999_v11 = vpop.permute.xlu1 %3998  ;;  %v3852_v16 = vpop.permute.xlu0 %3851  ;;  %v13362_v53 = vld [vmem:[#allocation2 + $0x420] sm:$0xff]   ;;  %12907 = vmatprep.subr.bf16.mxu0 %v13359_v32  ;;  %v12381_v51 = vadd.f32 %v12380_v54, %v12379_v24  ;;  %v9943_v31 = vcombine.high %v15230_v8, %v15232_v17 }
 0x489   :  { %12095 = vst [vmem:[#allocation2 + $0x4a8] sm:$0xff] %v11709_v29   ;;  %v4030_v1 = vmul.f32 %v15041_v19, %v3999_v11  ;;  %12841 = vmatprep.subr.bf16.mxu1 %v13360_v6  ;;  %v12316_v26 = vpop.f32.mrf.mxu1  ;;  %v12382_v2 = vpop.f32.mrf.mxu0  ;;  %8421 = vmatprep.mubr.bf16.mxu0 %v9897_v33  ;;  %v3882_v30 = vmul.f32 %v15076_v12, %v3852_v16 }
 0x48a   :  { %v12317_v13 = vadd.f32 %v12316_v26, %v12315_v44  ;;  %4441 = vrot.lane.b32.xlu1 %v13974_v18, %s13571_s19  ;;  %4600 = vrot.lane.b32.xlu0 %v14024_v37, %s13568_s16  ;;  %v15239_v18 = vadd.f32 %v12381_v51, %v15186_v22  ;;  %v15256_v26 = vld [vmem:[#allocation5 + $0x278] sm:$0xff] }
 0x48b   :  { %v11659_v43 = vpack.c.bf16 %v4030_v1, %v4029_v42  ;;  %v12318_v49 = vpop.f32.mrf.mxu1  ;;  %8325 = vmatprep.mubr.bf16.mxu1 %v9919_v34  ;;  %12908 = vmatpush3.bf16.msra.mxu0 %v13361_v62  ;;  %v12383_v3 = vpop.f32.mrf.mxu0  ;;  %v15258_v51 = vld [vmem:[#allocation5 + $0x2d8] sm:$0xff] }
 0x48c   :  { %12842 = vmatpush3.bf16.msra.mxu1 %v13362_v53  ;;  %v3854_v10 = vpop.permute.xlu1 %3853  ;;  %v4291_v6 = vpop.permute.xlu0 %4290  ;;  %v13363_v36 = vld [vmem:[#allocation2 + $0x4e8] sm:$0xff]   ;;  %v12384_v22 = vadd.f32 %v12383_v3, %v12382_v2 }
 0x48d   :  { %12085 = vst [vmem:[#allocation2 + $0x458] sm:$0xff] %v11659_v43   ;;  %v3883_v7 = vmul.f32 %v15076_v12, %v3854_v10  ;;  %v12319_v29 = vpop.f32.mrf.mxu1  ;;  %v12385_v44 = vpop.f32.mrf.mxu0  ;;  %8422 = vmatmul.mubr.bf16.gmra.mxu0 %v9896_v45  ;;  %12909 = vmatprep.subr.bf16.mxu0 %v13363_v36  ;;  %v4325_v53 = vmul.f32 %v15083_v5, %v4291_v6  ;;  %v15264_v43 = vld [vmem:[#allocation5 + $0x330] sm:$0xff] }
 0x48e   :  { %v12320_v23 = vadd.f32 %v12319_v29, %v12318_v49  ;;  %4602 = vrot.lane.b32.xlu1 %v14026_v38, %s13568_s16  ;;  %4580 = vrot.lane.b32.xlu0 %v13937_v25, %s13568_s16  ;;  %v15252_v33 = vadd.f32 %v12384_v22, %v15208_v21  ;;  %v15266_v2 = vld [vmem:[#allocation5 + $0x390] sm:$0xff]  ;;  %v9920_v10 = vcombine.low %v15222_v4, %v15224_v15 }
 0x48f   :  { %v11619_v24 = vpack.c.bf16 %v3883_v7, %v3882_v30  ;;  %v12321_v32 = vpop.f32.mrf.mxu1  ;;  %8326 = vmatmul.mubr.bf16.gmra.mxu1 %v9918_v39  ;;  %8429 = vmatprep.mubr.bf16.mxu0 %v9921_v50  ;;  %v12386_v1 = vpop.f32.mrf.mxu0  ;;  %v9942_v6 = vcombine.low %v15230_v8, %v15232_v17  ;;  %v9967_v4 = vcombine.high %v15264_v43, %v15266_v2 }
 0x490   :  { %v4293_v34 = vpop.permute.xlu1 %4292  ;;  %v4146_v11 = vpop.permute.xlu0 %4145  ;;  %v13364_v16 = vld [vmem:[#allocation2 + $0x4a8] sm:$0xff]   ;;  %8333 = vmatprep.mubr.bf16.mxu1 %v9943_v31  ;;  %v12387_v62 = vadd.f32 %v12386_v1, %v12385_v44  ;;  %v15288_v1 = vld [vmem:[#allocation5 + $0x338] sm:$0xff] }
 0x491   :  { %12077 = vst [vmem:[#allocation2 + $0x418] sm:$0xff] %v11619_v24   ;;  %v4326_v42 = vmul.f32 %v15083_v5, %v4293_v34  ;;  %v12322_v54 = vpop.f32.mrf.mxu1  ;;  %v12388_v45 = vpop.f32.mrf.mxu0  ;;  %12910 = vmatpush3.bf16.msra.mxu0 %v13364_v16  ;;  %v4178_v3 = vmul.f32 %v15094_v14, %v4146_v11 }
 0x492   :  { %v12323_v21 = vadd.f32 %v12322_v54, %v12321_v32  ;;  %4582 = vrot.lane.b32.xlu1 %v13939_v27, %s13568_s16  ;;  %4435 = vrot.lane.b32.xlu0 %v13954_v58, %s13571_s19  ;;  %v15272_v36 = vadd.f32 %v12387_v62, %v12317_v13  ;;  %v9945_v58 = vcombine.high %v15256_v26, %v15258_v51  ;;  %v15290_v54 = vld [vmem:[#allocation5 + $0x398] sm:$0xff] }
 0x493   :  { %v11744_v49 = vpack.c.bf16 %v4326_v42, %v4325_v53  ;;  %v12324_v39 = vpop.f32.mrf.mxu1  ;;  %v12389_v31 = vpop.f32.mrf.mxu0 }
 0x494   :  { %v4148_v50 = vpop.permute.xlu1 %4147  ;;  %v3993_v30 = vpop.permute.xlu0 %3992  ;;  %v13365_v7 = vld [vmem:[#allocation2 + $0x458] sm:$0xff]   ;;  %v12390_v15 = vadd.f32 %v12389_v31, %v12388_v45  ;;  %v15298_v45 = vld [vmem:[#allocation5 + $0x450] sm:$0xff] }
 0x495   :  { %12102 = vst [vmem:[#allocation2 + $0x4e0] sm:$0xff] %v11744_v49   ;;  %v4179_v29 = vmul.f32 %v15094_v14, %v4148_v50  ;;  %v12325_v22 = vpop.f32.mrf.mxu1  ;;  %v12391_v17 = vpop.f32.mrf.mxu0  ;;  %8430 = vmatmul.mubr.bf16.gmra.mxu0 %v9920_v10  ;;  %12843 = vmatprep.subr.bf16.mxu1 %v13365_v7  ;;  %v4027_v16 = vmul.f32 %v15041_v19, %v3993_v30  ;;  %v15296_v49 = vld [vmem:[#allocation5 + $0x3f0] sm:$0xff] }
 0x496   :  { %v12326_v8 = vadd.f32 %v12325_v22, %v12324_v39  ;;  %4437 = vrot.lane.b32.xlu1 %v13956_v59, %s13571_s19  ;;  %4596 = vrot.lane.b32.xlu0 %v14007_v35, %s13568_s16  ;;  %v15284_v44 = vadd.f32 %v12390_v15, %v12320_v23  ;;  %v9966_v50 = vcombine.low %v15264_v43, %v15266_v2 }
 0x497   :  { %v11704_v13 = vpack.c.bf16 %v4179_v29, %v4178_v3  ;;  %v12327_v24 = vpop.f32.mrf.mxu1  ;;  %8334 = vmatmul.mubr.bf16.gmra.mxu1 %v9942_v6  ;;  %8437 = vmatprep.mubr.bf16.mxu0 %v9945_v58  ;;  %v12392_v53 = vpop.f32.mrf.mxu0  ;;  %v9944_v6 = vcombine.low %v15256_v26, %v15258_v51  ;;  %v9969_v29 = vcombine.high %v15288_v1, %v15290_v54 }
 0x498   :  { %v3995_v32 = vpop.permute.xlu1 %3994  ;;  %v3848_v34 = vpop.permute.xlu0 %3847  ;;  %v13366_v11 = vld [vmem:[#allocation2 + $0x418] sm:$0xff]   ;;  %8341 = vmatprep.mubr.bf16.mxu1 %v9967_v4  ;;  %v12393_v62 = vadd.f32 %v12392_v53, %v12391_v17  ;;  %v9991_v26 = vcombine.high %v15296_v49, %v15298_v45 }
 0x499   :  { %12094 = vst [vmem:[#allocation2 + $0x4a0] sm:$0xff] %v11704_v13   ;;  %v4028_v59 = vmul.f32 %v15041_v19, %v3995_v32  ;;  %v12328_v42 = vpop.f32.mrf.mxu1  ;;  %v12394_v39 = vpop.f32.mrf.mxu0  ;;  %12844 = vmatpush3.bf16.msra.mxu1 %v13366_v11  ;;  %v3880_v31 = vmul.f32 %v15076_v12, %v3848_v34 }
 0x49a   :  { %v12329_v23 = vadd.f32 %v12328_v42, %v12327_v24  ;;  %4598 = vrot.lane.b32.xlu1 %v14009_v60, %s13568_s16  ;;  %4576 = vrot.lane.b32.xlu0 %v13921_v57, %s13568_s16  ;;  %v15304_v30 = vadd.f32 %v12393_v62, %v12323_v21  ;;  %v15322_v42 = vld [vmem:[#allocation5 + $0x458] sm:$0xff] }
 0x49b   :  { %v11654_v19 = vpack.c.bf16 %v4028_v59, %v4027_v16  ;;  %v12330_v10 = vpop.f32.mrf.mxu1  ;;  %v12395_v4 = vpop.f32.mrf.mxu0 }
 0x49c   :  { %v3850_v7 = vpop.permute.xlu1 %3849  ;;  %v4287_v58 = vpop.permute.xlu0 %4286  ;;  %v13367_v3 = vld [vmem:[#allocation2 + $0x4e0] sm:$0xff]   ;;  %v12396_v51 = vadd.f32 %v12395_v4, %v12394_v39  ;;  %v15330_v39 = vld [vmem:[#allocation5 + $0x510] sm:$0xff] }
 0x49d   :  { %12084 = vst [vmem:[#allocation2 + $0x450] sm:$0xff] %v11654_v19   ;;  %v3881_v22 = vmul.f32 %v15076_v12, %v3850_v7  ;;  %v12331_v15 = vpop.f32.mrf.mxu1  ;;  %v12397_v2 = vpop.f32.mrf.mxu0  ;;  %8438 = vmatmul.mubr.bf16.gmra.mxu0 %v9944_v6  ;;  %12911 = vmatprep.subr.bf16.mxu0 %v13367_v3  ;;  %v4323_v11 = vmul.f32 %v15083_v5, %v4287_v58  ;;  %v15328_v19 = vld [vmem:[#allocation5 + $0x4b0] sm:$0xff] }
 0x49e   :  { %v12332_v43 = vadd.f32 %v12331_v15, %v12330_v10  ;;  %4578 = vrot.lane.b32.xlu1 %v13925_v63, %s13568_s16  ;;  %4431 = vrot.lane.b32.xlu0 %v13937_v25, %s13571_s19  ;;  %v15316_v17 = vadd.f32 %v12396_v51, %v12326_v8  ;;  %v15320_v25 = vld [vmem:[#allocation5 + $0x3f8] sm:$0xff]  ;;  %v9968_v7 = vcombine.low %v15288_v1, %v15290_v54 }
 0x49f   :  { %v11614_v21 = vpack.c.bf16 %v3881_v22, %v3880_v31  ;;  %v12333_v13 = vpop.f32.mrf.mxu1  ;;  %8342 = vmatmul.mubr.bf16.gmra.mxu1 %v9966_v50  ;;  %8445 = vmatprep.mubr.bf16.mxu0 %v9969_v29  ;;  %v12398_v59 = vpop.f32.mrf.mxu0  ;;  %v9990_v58 = vcombine.low %v15296_v49, %v15298_v45  ;;  %v9993_v22 = vcombine.high %v15320_v25, %v15322_v42 }
 0x4a0   :  { %v4289_v24 = vpop.permute.xlu1 %4288  ;;  %v4142_v32 = vpop.permute.xlu0 %4141  ;;  %v13368_v34 = vld [vmem:[#allocation2 + $0x4a0] sm:$0xff]   ;;  %8349 = vmatprep.mubr.bf16.mxu1 %v9991_v26  ;;  %v12399_v62 = vadd.f32 %v12398_v59, %v12397_v2  ;;  %v10015_v1 = vcombine.high %v15328_v19, %v15330_v39 }
 0x4a1   :  { %12076 = vst [vmem:[#allocation2 + $0x410] sm:$0xff] %v11614_v21   ;;  %v4324_v16 = vmul.f32 %v15083_v5, %v4289_v24  ;;  %v12334_v53 = vpop.f32.mrf.mxu1  ;;  %v12400_v6 = vpop.f32.mrf.mxu0  ;;  %12912 = vmatpush3.bf16.msra.mxu0 %v13368_v34  ;;  %v4176_v4 = vmul.f32 %v15094_v14, %v4142_v32  ;;  %v15353_v34 = vld [vmem:[%s16206_s1 + $0xf] ss:$0 sm:$0xff] }
 0x4a2   :  { %v12335_v8 = vadd.f32 %v12334_v53, %v12333_v13  ;;  %4433 = vrot.lane.b32.xlu1 %v13939_v27, %s13571_s19  ;;  %4757 = vrot.lane.b32.xlu0 %v14058_v55, %s13579_s26  ;;  %v15336_v3 = vadd.f32 %v12399_v62, %v12329_v23  ;;  %v15359_v62 = vld [vmem:[#allocation5 + $0x518] sm:$0xff] }
 0x4a3   :  { %v11739_v10 = vpack.c.bf16 %v4324_v16, %v4323_v11  ;;  %v12336_v50 = vpop.f32.mrf.mxu1  ;;  %v12401_v26 = vpop.f32.mrf.mxu0 }
 0x4a4   :  { %v4144_v27 = vpop.permute.xlu1 %4143  ;;  %v3989_v29 = vpop.permute.xlu0 %3988  ;;  %v13369_v31 = vld [vmem:[#allocation2 + $0x450] sm:$0xff]   ;;  %v12402_v54 = vadd.f32 %v12401_v26, %v12400_v6 }
 0x4a5   :  { %12101 = vst [vmem:[#allocation2 + $0x4d8] sm:$0xff] %v11739_v10   ;;  %v4177_v15 = vmul.f32 %v15094_v14, %v4144_v27  ;;  %v12337_v51 = vpop.f32.mrf.mxu1  ;;  %v12403_v45 = vpop.f32.mrf.mxu0  ;;  %8446 = vmatmul.mubr.bf16.gmra.mxu0 %v9968_v7  ;;  %12845 = vmatprep.subr.bf16.mxu1 %v13369_v31  ;;  %v4025_v11 = vmul.f32 %v15353_v34, %v3989_v29  ;;  %v15367_v7 = vld [vmem:[#allocation5 + $0x5d0] sm:$0xff] }
 0x4a6   :  { %v12338_v49 = vadd.f32 %v12337_v51, %v12336_v50  ;;  %4759 = vrot.lane.b32.xlu1 %v14060_v56, %s13579_s26  ;;  %4459 = vrot.lane.b32.xlu0 %v14058_v55, %s13571_s19  ;;  %v15348_v2 = vadd.f32 %v12402_v54, %v12332_v43  ;;  %v15357_v43 = vld [vmem:[#allocation5 + $0x4b8] sm:$0xff]  ;;  %v15365_v50 = vld [vmem:[#allocation5 + $0x570] sm:$0xff]  ;;  %v9992_v31 = vcombine.low %v15320_v25, %v15322_v42 }
 0x4a7   :  { %v11699_v23 = vpack.c.bf16 %v4177_v15, %v4176_v4  ;;  %v12339_v21 = vpop.f32.mrf.mxu1  ;;  %8350 = vmatmul.mubr.bf16.gmra.mxu1 %v9990_v58  ;;  %8453 = vmatprep.mubr.bf16.mxu0 %v9993_v22  ;;  %v12404_v59 = vpop.f32.mrf.mxu0  ;;  %v10014_v22 = vcombine.low %v15328_v19, %v15330_v39  ;;  %v10039_v25 = vcombine.high %v15365_v50, %v15367_v7 }
 0x4a8   :  { %v3991_v13 = vpop.permute.xlu1 %3990  ;;  %v3844_v24 = vpop.permute.xlu0 %3843  ;;  %v13370_v32 = vld [vmem:[#allocation2 + $0x410] sm:$0xff]   ;;  %8357 = vmatprep.mubr.bf16.mxu1 %v10015_v1  ;;  %v12405_v10 = vadd.f32 %v12404_v59, %v12403_v45 }
 0x4a9   :  { %12093 = vst [vmem:[#allocation2 + $0x498] sm:$0xff] %v11699_v23   ;;  %v4026_v16 = vmul.f32 %v15353_v34, %v3991_v13  ;;  %v12340_v53 = vpop.f32.mrf.mxu1  ;;  %v12406_v27 = vpop.f32.mrf.mxu0  ;;  %12846 = vmatpush3.bf16.msra.mxu1 %v13370_v32  ;;  %v3878_v1 = vmul.f32 %v15076_v12, %v3844_v24  ;;  %v15389_v59 = vld [vmem:[#allocation5 + $0x578] sm:$0xff] }
 0x4aa   :  { %v12341_v6 = vadd.f32 %v12340_v53, %v12339_v21  ;;  %4461 = vrot.lane.b32.xlu1 %v14060_v56, %s13571_s19  ;;  %4427 = vrot.lane.b32.xlu0 %v13921_v57, %s13571_s19  ;;  %v15373_v4 = vadd.f32 %v12405_v10, %v12335_v8  ;;  %v10017_v57 = vcombine.high %v15357_v43, %v15359_v62  ;;  %v15391_v53 = vld [vmem:[#allocation5 + $0x5d8] sm:$0xff] }
 0x4ab   :  { %v11649_v58 = vpack.c.bf16 %v4026_v16, %v4025_v11  ;;  %v12342_v29 = vpop.f32.mrf.mxu1  ;;  %v12407_v23 = vpop.f32.mrf.mxu0 }
 0x4ac   :  { %v3846_v15 = vpop.permute.xlu1 %3845  ;;  %v4283_v26 = vpop.permute.xlu0 %4282  ;;  %v13371_v51 = vld [vmem:[#allocation2 + $0x4d8] sm:$0xff]   ;;  %v12408_v42 = vadd.f32 %v12407_v23, %v12406_v27 }
 0x4ad   :  { %12083 = vst [vmem:[#allocation2 + $0x448] sm:$0xff] %v11649_v58   ;;  %v3879_v54 = vmul.f32 %v15076_v12, %v3846_v15  ;;  %v12343_v45 = vpop.f32.mrf.mxu1  ;;  %v12409_v19 = vpop.f32.mrf.mxu0  ;;  %8454 = vmatmul.mubr.bf16.gmra.mxu0 %v9992_v31  ;;  %12913 = vmatprep.subr.bf16.mxu0 %v13371_v51  ;;  %v4321_v32 = vmul.f32 %v15083_v5, %v4283_v26  ;;  %v15397_v58 = vld [vmem:[#allocation5 + $0x630] sm:$0x33] }
 0x4ae   :  { %4429 = vrot.lane.b32.xlu1 %v13925_v63, %s13571_s19  ;;  %4753 = vrot.lane.b32.xlu0 %v14041_v46, %s13579_s26  ;;  %v15385_v21 = vadd.f32 %v12408_v42, %v12338_v49  ;;  %v10016_v31 = vcombine.low %v15357_v43, %v15359_v62  ;;  %v10063_v62 = vcombine.high %v15397_v58, %v15397_v58 }
 0x4af   :  { %v11609_v8 = vpack.c.bf16 %v3879_v54, %v3878_v1  ;;  %v12431_v39 = vpop.f32.mrf.mxu1  ;;  %8358 = vmatmul.mubr.bf16.gmra.mxu1 %v10014_v22  ;;  %8461 = vmatprep.mubr.bf16.mxu0 %v10017_v57  ;;  %v12410_v11 = vpop.f32.mrf.mxu0  ;;  %v10038_v22 = vcombine.low %v15365_v50, %v15367_v7  ;;  %v10041_v54 = vcombine.high %v15389_v59, %v15391_v53 }
 0x4b0   :  { %v4285_v12 = vpop.permute.xlu1 %4284  ;;  %v4138_v13 = vpop.permute.xlu0 %4137  ;;  %v13372_v24 = vld [vmem:[#allocation2 + $0x498] sm:$0xff]   ;;  %8365 = vmatprep.mubr.bf16.mxu1 %v10039_v25  ;;  %v12411_v10 = vadd.f32 %v12410_v11, %v12409_v19 }
 0x4b1   :  { %12075 = vst [vmem:[#allocation2 + $0x408] sm:$0xff] %v11609_v8   ;;  %v4322_v63 = vmul.f32 %v15083_v5, %v4285_v12  ;;  %v12432_v16 = vpop.f32.mrf.mxu1  ;;  %v12412_v29 = vpop.f32.mrf.mxu0  ;;  %12914 = vmatpush3.bf16.msra.mxu0 %v13372_v24  ;;  %v4174_v23 = vmul.f32 %v15094_v14, %v4138_v13  ;;  %v15427_v11 = vld [vmem:[#allocation5 + $0xa0] sm:$0xff] }
 0x4b2   :  { %v12433_v49 = vadd.f32 %v12432_v16, %v12431_v39  ;;  %4755 = vrot.lane.b32.xlu1 %v14043_v41, %s13579_s26  ;;  %4455 = vrot.lane.b32.xlu0 %v14041_v46, %s13571_s19  ;;  %v15403_v15 = vadd.f32 %v12411_v10, %v12341_v6 }
 0x4b3   :  { %v11734_v27 = vpack.c.bf16 %v4322_v63, %v4321_v32  ;;  %v12434_v5 = vpop.f32.mrf.mxu1  ;;  %v12413_v25 = vpop.f32.mrf.mxu0 }
 0x4b4   :  { %v7896_v26 = vadd.f32 %v12433_v49, %v15138_v0  ;;  %v4140_v51 = vpop.permute.xlu1 %4139  ;;  %v3985_v57 = vpop.permute.xlu0 %3984  ;;  %v13373_v1 = vld [vmem:[#allocation2 + $0x448] sm:$0xff]   ;;  %v10040_v49 = vcombine.low %v15389_v59, %v15391_v53 }
 0x4b5   :  { %12100 = vst [vmem:[#allocation2 + $0x4d0] sm:$0xff] %v11734_v27   ;;  %v4175_v45 = vmul.f32 %v15094_v14, %v4140_v51  ;;  %v12435_v43 = vpop.f32.mrf.mxu1  ;;  %v12501_v50 = vpop.f32.mrf.mxu0  ;;  %8462 = vmatmul.mubr.bf16.gmra.mxu0 %v10016_v31  ;;  %12847 = vmatprep.subr.bf16.mxu1 %v13373_v1  ;;  %v4023_v39 = vmul.f32 %v15353_v34, %v3985_v57  ;;  %v13505_v57 = vld [vmem:[%s16206_s1 + $0xe] ss:$0 sm:$0xff] }
 0x4b6   :  { %v12436_v6 = vadd.f32 %v12435_v43, %v12434_v5  ;;  %4457 = vrot.lane.b32.xlu1 %v14043_v41, %s13571_s19  ;;  %4310 = vrot.lane.b32.xlu0 %v14058_v55, %s13573_s21  ;;  %v15419_v55 = vld [vmem:[#allocation5 + $0x638] sm:$0x33]  ;;  %v10062_v27 = vcombine.low %v15397_v58, %v15397_v58 }
 0x4b7   :  { %v11694_v0 = vpack.c.bf16 %v4175_v45, %v4174_v23  ;;  %v12437_v7 = vpop.f32.mrf.mxu1  ;;  %8366 = vmatmul.mubr.bf16.gmra.mxu1 %v10038_v22  ;;  %8469 = vmatprep.mubr.bf16.mxu0 %v10041_v54  ;;  %v12502_v13 = vpop.f32.mrf.mxu0  ;;  %v10065_v51 = vcombine.high %v15419_v55, %v15419_v55 }
 0x4b8   :  { %v7899_v42 = vadd.f32 %v12436_v6, %v15150_v40  ;;  %v3987_v14 = vpop.permute.xlu1 %3986  ;;  %v3840_v8 = vpop.permute.xlu0 %3839  ;;  %v13374_v19 = vld [vmem:[#allocation2 + $0x408] sm:$0xff]   ;;  %8373 = vmatprep.mubr.bf16.mxu1 %v10063_v62  ;;  %v12503_v32 = vadd.f32 %v12502_v13, %v12501_v50  ;;  %v15425_v40 = vld [vmem:[#allocation5 + $0x40] sm:$0xff] }
 0x4b9   :  { %12092 = vst [vmem:[#allocation2 + $0x490] sm:$0xff] %v11694_v0   ;;  %v4024_v12 = vmul.f32 %v15353_v34, %v3987_v14  ;;  %v12438_v24 = vpop.f32.mrf.mxu1  ;;  %v12504_v10 = vpop.f32.mrf.mxu0  ;;  %12848 = vmatpush3.bf16.msra.mxu1 %v13374_v19  ;;  %v3876_v1 = vmul.f32 %v13505_v57, %v3840_v8  ;;  %v9875_v58 = vcombine.high %v15425_v40, %v15427_v11 }
 0x4ba   :  { %v12439_v63 = vadd.f32 %v12438_v24, %v12437_v7  ;;  %4312 = vrot.lane.b32.xlu1 %v14060_v56, %s13573_s21  ;;  %4749 = vrot.lane.b32.xlu0 %v14024_v37, %s13579_s26  ;;  %v15433_v29 = vadd.f32 %v12503_v32, %v7896_v26  ;;  %v13506_v7 = vld [vmem:[%s16206_s1 + $0x11] ss:$0 sm:$0xff] }
 0x4bb   :  { %v11644_v16 = vpack.c.bf16 %v4024_v12, %v4023_v39  ;;  %v12440_v34 = vpop.f32.mrf.mxu1  ;;  %v12505_v53 = vpop.f32.mrf.mxu0  ;;  %v15453_v39 = vld [vmem:[#allocation5 + $0x48] sm:$0xff] }
 0x4bc   :  { %v7904_v56 = vadd.f32 %v12439_v63, %v15170_v28  ;;  %v3842_v5 = vpop.permute.xlu1 %3841  ;;  %v4279_v31 = vpop.permute.xlu0 %4278  ;;  %v13377_v22 = vld [vmem:[#allocation2 + $0x4d0] sm:$0xff]   ;;  %v12506_v26 = vadd.f32 %v12505_v53, %v12504_v10  ;;  %v10064_v63 = vcombine.low %v15419_v55, %v15419_v55  ;;  %v15477_v53 = vld [vmem:[#allocation5 + $0x160] sm:$0xff] }
 0x4bd   :  { %12082 = vst [vmem:[#allocation2 + $0x440] sm:$0xff] %v11644_v16   ;;  %v3877_v59 = vmul.f32 %v13505_v57, %v3842_v5  ;;  %v12441_v54 = vpop.f32.mrf.mxu1  ;;  %v12507_v45 = vpop.f32.mrf.mxu0  ;;  %8470 = vmatmul.mubr.bf16.gmra.mxu0 %v10040_v49  ;;  %12915 = vmatprep.subr.bf16.mxu0 %v13377_v22 }
 0x4be   :  { %v12442_v28 = vadd.f32 %v12441_v54, %v12440_v34  ;;  %4751 = vrot.lane.b32.xlu1 %v14026_v38, %s13579_s26  ;;  %4451 = vrot.lane.b32.xlu0 %v14024_v37, %s13571_s19  ;;  %v15447_v43 = vadd.f32 %v12506_v26, %v7899_v42  ;;  %v4319_v37 = vmul.f32 %v13506_v7, %v4279_v31  ;;  %v15455_v42 = vld [vmem:[#allocation5 + $0xa8] sm:$0xff] }
 0x4bf   :  { %v11604_v23 = vpack.c.bf16 %v3877_v59, %v3876_v1  ;;  %v12443_v25 = vpop.f32.mrf.mxu1  ;;  %8374 = vmatmul.mubr.bf16.gmra.mxu1 %v10062_v27  ;;  %8477 = vmatprep.mubr.bf16.mxu0 %v10065_v51  ;;  %v12508_v8 = vpop.f32.mrf.mxu0  ;;  %v15475_v59 = vld [vmem:[#allocation5 + $0x100] sm:$0xff] }
 0x4c0   :  { %v7907_v62 = vadd.f32 %v12442_v28, %v15182_v61  ;;  %v4281_v6 = vpop.permute.xlu1 %4280  ;;  %v4134_v0 = vpop.permute.xlu0 %4133  ;;  %v13378_v50 = vld [vmem:[#allocation2 + $0x490] sm:$0xff]   ;;  %8517 = vmatprep.mubr.bf16.mxu1 %v9875_v58  ;;  %v12509_v61 = vadd.f32 %v12508_v8, %v12507_v45 }
 0x4c1   :  { %12074 = vst [vmem:[#allocation2 + $0x400] sm:$0xff] %v11604_v23   ;;  %v4320_v14 = vmul.f32 %v13506_v7, %v4281_v6  ;;  %v12444_v19 = vpop.f32.mrf.mxu1  ;;  %v12510_v24 = vpop.f32.mrf.mxu0  ;;  %12916 = vmatpush3.bf16.msra.mxu0 %v13378_v50 }
 0x4c2   :  { %v12445_v12 = vadd.f32 %v12444_v19, %v12443_v25  ;;  %4453 = vrot.lane.b32.xlu1 %v14026_v38, %s13571_s19  ;;  %4306 = vrot.lane.b32.xlu0 %v14041_v46, %s13573_s21  ;;  %v15463_v16 = vadd.f32 %v12509_v61, %v7904_v56  ;;  %v9877_v38 = vcombine.high %v15453_v39, %v15455_v42  ;;  %v13507_v46 = vld [vmem:[%s16206_s1 + $0x10] ss:$0 sm:$0xff] }
 0x4c3   :  { %v11729_v13 = vpack.c.bf16 %v4320_v14, %v4319_v37  ;;  %v12446_v32 = vpop.f32.mrf.mxu1  ;;  %v4172_v5 = vmul.f32 %v13507_v46, %v4134_v0  ;;  %v12511_v22 = vpop.f32.mrf.mxu0  ;;  %v9899_v37 = vcombine.high %v15475_v59, %v15477_v53 }
 0x4c4   :  { %v7912_v10 = vadd.f32 %v12445_v12, %v15202_v20  ;;  %v4136_v34 = vpop.permute.xlu1 %4135  ;;  %v4162_v49 = vpop.permute.xlu0 %4161  ;;  %v13381_v27 = vld [vmem:[#allocation2 + $0x440] sm:$0xff]   ;;  %v12512_v55 = vadd.f32 %v12511_v22, %v12510_v24 }
 0x4c5   :  { %12099 = vst [vmem:[#allocation2 + $0x4c8] sm:$0xff] %v11729_v13   ;;  %v4173_v31 = vmul.f32 %v13507_v46, %v4136_v34  ;;  %v12447_v51 = vpop.f32.mrf.mxu1  ;;  %v12513_v57 = vpop.f32.mrf.mxu0  ;;  %8478 = vmatmul.mubr.bf16.gmra.mxu0 %v10064_v63  ;;  %12849 = vmatprep.subr.bf16.mxu1 %v13381_v27  ;;  %v15500_v34 = vld [vmem:[#allocation5 + $0x1c0] sm:$0xff] }
 0x4c6   :  { %v12448_v56 = vadd.f32 %v12447_v51, %v12446_v32  ;;  %4308 = vrot.lane.b32.xlu1 %v14043_v41, %s13573_s21  ;;  %4745 = vrot.lane.b32.xlu0 %v14007_v35, %s13579_s26  ;;  %v15479_v54 = vadd.f32 %v12512_v55, %v7907_v62  ;;  %v4186_v41 = vmul.f32 %v13507_v46, %v4162_v49  ;;  %v15502_v49 = vld [vmem:[#allocation5 + $0x220] sm:$0xff] }
 0x4c7   :  { %v11689_v20 = vpack.c.bf16 %v4173_v31, %v4172_v5  ;;  %v12449_v1 = vpop.f32.mrf.mxu1  ;;  %8621 = vmatprep.mubr.bf16.mxu0 %v9877_v38  ;;  %v12514_v45 = vpop.f32.mrf.mxu0 }
 0x4c8   :  { %v7915_v58 = vadd.f32 %v12448_v56, %v15218_v52  ;;  %v4164_v26 = vpop.permute.xlu1 %4163  ;;  %v4130_v28 = vpop.permute.xlu0 %4129  ;;  %v13382_v23 = vld [vmem:[#allocation2 + $0x400] sm:$0xff]   ;;  %v12515_v6 = vadd.f32 %v12514_v45, %v12513_v57  ;;  %v9874_v52 = vcombine.low %v15425_v40, %v15427_v11  ;;  %v15496_v11 = vld [vmem:[%s16206_s1 + $0x14] ss:$0 sm:$0xff]  ;;  %v9898_v57 = vcombine.low %v15475_v59, %v15477_v53 }
 0x4c9   :  { %12091 = vst [vmem:[#allocation2 + $0x488] sm:$0xff] %v11689_v20   ;;  %v4187_v35 = vmul.f32 %v13507_v46, %v4164_v26  ;;  %v12450_v25 = vpop.f32.mrf.mxu1  ;;  %v12516_v50 = vpop.f32.mrf.mxu0  ;;  %12850 = vmatpush3.bf16.msra.mxu1 %v13382_v23  ;;  %v4170_v12 = vmul.f32 %v13507_v46, %v4130_v28 }
 0x4ca   :  { %v12451_v0 = vadd.f32 %v12450_v25, %v12449_v1  ;;  %4747 = vrot.lane.b32.xlu1 %v14009_v60, %s13579_s26  ;;  %4741 = vrot.lane.b32.xlu0 %v13990_v47, %s13579_s26  ;;  %v15490_v14 = vadd.f32 %v12515_v6, %v7912_v10 }
 0x4cb   :  { %v11724_v62 = vpack.c.bf16 %v4187_v35, %v4186_v41  ;;  %v12452_v7 = vpop.f32.mrf.mxu1  ;;  %v12517_v13 = vpop.f32.mrf.mxu0 }
 0x4cc   :  { %v7920_v8 = vadd.f32 %v12451_v0, %v15239_v18  ;;  %v4132_v19 = vpop.permute.xlu1 %4131  ;;  %v4738_v61 = vpop.permute.xlu0 %4737  ;;  %v13383_v60 = vld [vmem:[#allocation2 + $0x4c8] sm:$0xff]   ;;  %v12518_v40 = vadd.f32 %v12517_v13, %v12516_v50  ;;  %8518 = vmatmul.mubr.bf16.vlgmr.msra.gmra.mxu1 %v9874_v52 }
 0x4cd   :  { %12098 = vst [vmem:[#allocation2 + $0x4c0] sm:$0xff] %v11724_v62   ;;  %v4171_v47 = vmul.f32 %v13507_v46, %v4132_v19  ;;  %v12453_v24 = vpop.f32.mrf.mxu1  ;;  %v12519_v63 = vpop.f32.mrf.mxu0  ;;  %12917 = vmatprep.subr.bf16.mxu0 %v13383_v60  ;;  %8525 = vmatprep.mubr.bf16.mxu1 %v9899_v37  ;;  %v15518_v37 = vld [vmem:[#allocation5 + $0x280] sm:$0xff] }
 0x4ce   :  { %v12454_v32 = vadd.f32 %v12453_v24, %v12452_v7  ;;  %4743 = vrot.lane.b32.xlu1 %v13992_v48, %s13579_s26  ;;  %v15504_v27 = vadd.f32 %v12518_v40, %v7915_v58  ;;  %v4772_v48 = vmul.f32 %v15496_v11, %v4738_v61 }
 0x4cf   :  { %v11684_v18 = vpack.c.bf16 %v4171_v47, %v4170_v12  ;;  %v12455_v10 = vpop.f32.mrf.mxu1  ;;  %v12520_v51 = vpop.f32.mrf.mxu0 }
 0x4d0   :  { %v7923_v38 = vadd.f32 %v12454_v32, %v15252_v33  ;;  %v4740_v46 = vpop.permute.xlu1 %4739  ;;  %v4734_v5 = vpop.permute.xlu0 %4733  ;;  %v13384_v31 = vld [vmem:[#allocation2 + $0x488] sm:$0xff]   ;;  %v12521_v56 = vadd.f32 %v12520_v51, %v12519_v63  ;;  %v9923_v33 = vcombine.high %v15500_v34, %v15502_v49  ;;  %v9876_v32 = vcombine.low %v15453_v39, %v15455_v42  ;;  %v15531_v63 = vld [vmem:[#allocation5 + $0x168] sm:$0xff] }
 0x4d1   :  { %12090 = vst [vmem:[#allocation2 + $0x480] sm:$0xff] %v11684_v18   ;;  %v4773_v22 = vmul.f32 %v15496_v11, %v4740_v46  ;;  %v12456_v55 = vpop.f32.mrf.mxu1  ;;  %12918 = vmatpush3.bf16.msra.mxu0 %v13384_v31  ;;  %v12522_v58 = vpop.f32.mrf.mxu0  ;;  %v4770_v25 = vmul.f32 %v15496_v11, %v4734_v5  ;;  %v15529_v18 = vld [vmem:[#allocation5 + $0x108] sm:$0xff] }
 0x4d2   :  { %v12457_v20 = vadd.f32 %v12456_v55, %v12455_v10  ;;  %v15513_v28 = vadd.f32 %v12521_v56, %v7920_v8  ;;  %v9901_v56 = vcombine.high %v15529_v18, %v15531_v63 }
 0x4d3   :  { %v11879_v1 = vpack.c.bf16 %v4773_v22, %v4772_v48  ;;  %v12458_v26 = vpop.f32.mrf.mxu1  ;;  %v12523_v0 = vpop.f32.mrf.mxu0 }
 0x4d4   :  { %v7928_v23 = vadd.f32 %v12457_v20, %v15272_v36  ;;  %v4736_v41 = vpop.permute.xlu1 %4735  ;;  %v4730_v35 = vpop.permute.xlu0 %4729  ;;  %v13385_v45 = vld [vmem:[#allocation2 + $0x4c0] sm:$0xff]   ;;  %v12524_v53 = vadd.f32 %v12523_v0, %v12522_v58  ;;  %8526 = vmatmul.mubr.bf16.gmra.mxu1 %v9898_v57  ;;  %v15520_v36 = vld [vmem:[#allocation5 + $0x2e0] sm:$0xff]  ;;  %v15548_v58 = vld [vmem:[%s16206_s1 + $0x13] ss:$0 sm:$0xff] }
 0x4d5   :  { %12129 = vst [vmem:[#allocation2 + $0x5b8] sm:$0xff] %v11879_v1   ;;  %v4771_v6 = vmul.f32 %v15496_v11, %v4736_v41  ;;  %v12459_v59 = vpop.f32.mrf.mxu1  ;;  %12919 = vmatprep.subr.bf16.mxu0 %v13385_v45  ;;  %v12525_v50 = vpop.f32.mrf.mxu0  ;;  %8533 = vmatprep.mubr.bf16.mxu1 %v9923_v33  ;;  %v4768_v47 = vmul.f32 %v15496_v11, %v4730_v35  ;;  %v15551_v41 = vld [vmem:[#allocation5 + $0x340] sm:$0xff] }
 0x4d6   :  { %v12460_v52 = vadd.f32 %v12459_v59, %v12458_v26  ;;  %v15522_v8 = vadd.f32 %v12524_v53, %v7923_v38  ;;  %v9947_v48 = vcombine.high %v15518_v37, %v15520_v36  ;;  %v15553_v35 = vld [vmem:[#allocation5 + $0x3a0] sm:$0xff] }
 0x4d7   :  { %v11874_v62 = vpack.c.bf16 %v4771_v6, %v4770_v25  ;;  %v12461_v7 = vpop.f32.mrf.mxu1  ;;  %v12526_v24 = vpop.f32.mrf.mxu0 }
 0x4d8   :  { %v7931_v19 = vadd.f32 %v12460_v52, %v15284_v44  ;;  %v4732_v61 = vpop.permute.xlu1 %4731  ;;  %v4726_v60 = vpop.permute.xlu0 %4725  ;;  %v13386_v12 = vld [vmem:[#allocation2 + $0x480] sm:$0xff]   ;;  %v12527_v10 = vadd.f32 %v12526_v24, %v12525_v50  ;;  %v9922_v44 = vcombine.low %v15500_v34, %v15502_v49 }
 0x4d9   :  { %12128 = vst [vmem:[#allocation2 + $0x5b0] sm:$0xff] %v11874_v62   ;;  %v4769_v13 = vmul.f32 %v15496_v11, %v4732_v61  ;;  %v12462_v40 = vpop.f32.mrf.mxu1  ;;  %12920 = vmatpush3.bf16.msra.mxu0 %v13386_v12  ;;  %v12528_v5 = vpop.f32.mrf.mxu0  ;;  %v4766_v34 = vmul.f32 %v15496_v11, %v4726_v60  ;;  %v15562_v61 = vld [vmem:[#allocation5 + $0x1c8] sm:$0xff] }
 0x4da   :  { %v12463_v38 = vadd.f32 %v12462_v40, %v12461_v7  ;;  %8797 = vmatprep.subr.bf16.mxu0 %v13580_v9  ;;  %v15538_v22 = vadd.f32 %v12527_v10, %v7928_v23  ;;  %v9900_v7 = vcombine.low %v15529_v18, %v15531_v63 }
 0x4db   :  { %v11869_v46 = vpack.c.bf16 %v4769_v13, %v4768_v47  ;;  %v12464_v31 = vpop.f32.mrf.mxu1  ;;  %v12529_v20 = vpop.f32.mrf.mxu0  ;;  %v9946_v47 = vcombine.low %v15518_v37, %v15520_v36 }
 0x4dc   :  { %v7936_v39 = vadd.f32 %v12463_v38, %v15304_v30  ;;  %v4728_v42 = vpop.permute.xlu1 %4727  ;;  %v4593_v51 = vpop.permute.xlu0 %4592  ;;  %v13387_v55 = vld [vmem:[#allocation2 + $0x5b8] sm:$0xff]   ;;  %8622 = vmatmul.mubr.bf16.vlgmr.msra.gmra.mxu0 %v9876_v32  ;;  %v12530_v1 = vadd.f32 %v12529_v20, %v12528_v5  ;;  %8534 = vmatmul.mubr.bf16.gmra.mxu1 %v9922_v44  ;;  %v9971_v32 = vcombine.high %v15551_v41, %v15553_v35 }
 0x4dd   :  { %12127 = vst [vmem:[#allocation2 + $0x5a8] sm:$0xff] %v11869_v46   ;;  %v4767_v49 = vmul.f32 %v15496_v11, %v4728_v42  ;;  %v12465_v57 = vpop.f32.mrf.mxu1  ;;  %8798 = vmatpush1.bf16.msra.mxu0 %v13387_v55  ;;  %v12531_v33 = vpop.f32.mrf.mxu0  ;;  %8541 = vmatprep.mubr.bf16.mxu1 %v9947_v48  ;;  %v4625_v53 = vmul.f32 %v15548_v58, %v4593_v51 }
 0x4de   :  { %v12466_v30 = vadd.f32 %v12465_v57, %v12464_v31  ;;  %8799 = vmatprep.subr.bf16.mxu0 %v13580_v9  ;;  %v15555_v45 = vadd.f32 %v12530_v1, %v7931_v19  ;;  %8629 = vmatprep.mubr.bf16.mxu0 %v9901_v56  ;;  %v15564_v19 = vld [vmem:[#allocation5 + $0x228] sm:$0xff]  ;;  %v15586_v56 = vld [vmem:[#allocation5 + $0x460] sm:$0xff] }
 0x4df   :  { %v11864_v26 = vpack.c.bf16 %v4767_v49, %v4766_v34  ;;  %v12467_v23 = vpop.f32.mrf.mxu1  ;;  %v12532_v62 = vpop.f32.mrf.mxu0  ;;  %v9925_v46 = vcombine.high %v15562_v61, %v15564_v19  ;;  %v15588_v34 = vld [vmem:[#allocation5 + $0x288] sm:$0xff] }
 0x4e0   :  { %v7939_v25 = vadd.f32 %v12466_v30, %v15316_v17  ;;  %v4595_v6 = vpop.permute.xlu1 %4594  ;;  %v4448_v0 = vpop.permute.xlu0 %4447  ;;  %v13388_v59 = vld [vmem:[#allocation2 + $0x5b0] sm:$0xff]   ;;  %v12533_v60 = vadd.f32 %v12532_v62, %v12531_v33  ;;  %v15590_v49 = vld [vmem:[#allocation5 + $0x2e8] sm:$0xff] }
 0x4e1   :  { %12126 = vst [vmem:[#allocation2 + $0x5a0] sm:$0xff] %v11864_v26   ;;  %v4626_v52 = vmul.f32 %v15548_v58, %v4595_v6  ;;  %v12468_v50 = vpop.f32.mrf.mxu1  ;;  %v15569_v17 = vld [vmem:[%s16206_s1 + $0x12] ss:$0 sm:$0xff]  ;;  %8800 = vmatpush1.bf16.msra.mxu0 %v13388_v59  ;;  %v12534_v24 = vpop.f32.mrf.mxu0  ;;  %v9924_v59 = vcombine.low %v15562_v61, %v15564_v19 }
 0x4e2   :  { %v12469_v12 = vadd.f32 %v12468_v50, %v12467_v23  ;;  %8801 = vmatprep.subr.bf16.mxu0 %v13580_v9  ;;  %v15576_v18 = vadd.f32 %v12533_v60, %v7936_v39  ;;  %v4478_v37 = vmul.f32 %v15569_v17, %v4448_v0  ;;  %v15583_v39 = vld [vmem:[#allocation5 + $0x400] sm:$0xff]  ;;  %v9949_v60 = vcombine.high %v15588_v34, %v15590_v49 }
 0x4e3   :  { %v11839_v13 = vpack.c.bf16 %v4626_v52, %v4625_v53  ;;  %v12470_v40 = vpop.f32.mrf.mxu1  ;;  %v12535_v5 = vpop.f32.mrf.mxu0 }
 0x4e4   :  { %v7944_v63 = vadd.f32 %v12469_v12, %v15336_v3  ;;  %v4450_v10 = vpop.permute.xlu1 %4449  ;;  %v4609_v38 = vpop.permute.xlu0 %4608  ;;  %v13389_v44 = vld [vmem:[#allocation2 + $0x5a8] sm:$0xff]   ;;  %8630 = vmatmul.mubr.bf16.gmra.mxu0 %v9900_v7  ;;  %v12536_v48 = vadd.f32 %v12535_v5, %v12534_v24  ;;  %8542 = vmatmul.mubr.bf16.gmra.mxu1 %v9946_v47  ;;  %v9995_v7 = vcombine.high %v15583_v39, %v15586_v56 }
 0x4e5   :  { %12121 = vst [vmem:[#allocation2 + $0x578] sm:$0xff] %v11839_v13   ;;  %v4479_v36 = vmul.f32 %v15569_v17, %v4450_v10  ;;  %v12471_v31 = vpop.f32.mrf.mxu1  ;;  %8802 = vmatpush1.bf16.msra.mxu0 %v13389_v44  ;;  %v12537_v51 = vpop.f32.mrf.mxu0  ;;  %8549 = vmatprep.mubr.bf16.mxu1 %v9971_v32  ;;  %v4633_v33 = vmul.f32 %v15548_v58, %v4609_v38  ;;  %v15611_v38 = vld [vmem:[#allocation5 + $0x4c0] sm:$0xff] }
 0x4e6   :  { %v12472_v42 = vadd.f32 %v12471_v31, %v12470_v40  ;;  %8803 = vmatprep.subr.bf16.mxu0 %v13580_v9  ;;  %v15592_v20 = vadd.f32 %v12536_v48, %v7939_v25  ;;  %8637 = vmatprep.mubr.bf16.mxu0 %v9925_v46  ;;  %v15613_v46 = vld [vmem:[#allocation5 + $0x520] sm:$0xff] }
 0x4e7   :  { %v11799_v3 = vpack.c.bf16 %v4479_v36, %v4478_v37  ;;  %v12473_v55 = vpop.f32.mrf.mxu1  ;;  %v12538_v6 = vpop.f32.mrf.mxu0  ;;  %v15615_v37 = vld [vmem:[#allocation5 + $0x348] sm:$0xff] }
 0x4e8   :  { %v7947_v57 = vadd.f32 %v12472_v42, %v15348_v2  ;;  %v4611_v1 = vpop.permute.xlu1 %4610  ;;  %v4589_v30 = vpop.permute.xlu0 %4588  ;;  %v13390_v26 = vld [vmem:[#allocation2 + $0x5a0] sm:$0xff]   ;;  %v12539_v53 = vadd.f32 %v12538_v6, %v12537_v51  ;;  %v9970_v2 = vcombine.low %v15551_v41, %v15553_v35 }
 0x4e9   :  { %12113 = vst [vmem:[#allocation2 + $0x538] sm:$0xff] %v11799_v3   ;;  %v4634_v23 = vmul.f32 %v15548_v58, %v4611_v1  ;;  %v12474_v0 = vpop.f32.mrf.mxu1  ;;  %8804 = vmatpush1.bf16.msra.mxu0 %v13390_v26  ;;  %v12540_v62 = vpop.f32.mrf.mxu0  ;;  %v4623_v41 = vmul.f32 %v15548_v58, %v4589_v30  ;;  %v15617_v36 = vld [vmem:[#allocation5 + $0x3a8] sm:$0xff]  ;;  %v9948_v26 = vcombine.low %v15588_v34, %v15590_v49 }
 0x4ea   :  { %v12475_v52 = vadd.f32 %v12474_v0, %v12473_v55  ;;  %8805 = vmatprep.subr.bf16.mxu0 %v13580_v9  ;;  %v15606_v12 = vadd.f32 %v12539_v53, %v7944_v63  ;;  %v9973_v53 = vcombine.high %v15615_v37, %v15617_v36 }
 0x4eb   :  { %v11859_v25 = vpack.c.bf16 %v4634_v23, %v4633_v33  ;;  %v12476_v50 = vpop.f32.mrf.mxu1  ;;  %v12541_v24 = vpop.f32.mrf.mxu0 }
 0x4ec   :  { %v7952_v61 = vadd.f32 %v12475_v52, %v15373_v4  ;;  %v4591_v19 = vpop.permute.xlu1 %4590  ;;  %v4444_v47 = vpop.permute.xlu0 %4443  ;;  %v13391_v13 = vld [vmem:[#allocation2 + $0x578] sm:$0xff]   ;;  %8638 = vmatmul.mubr.bf16.gmra.mxu0 %v9924_v59  ;;  %v12542_v32 = vadd.f32 %v12541_v24, %v12540_v62  ;;  %8550 = vmatmul.mubr.bf16.gmra.mxu1 %v9970_v2  ;;  %v10019_v59 = vcombine.high %v15611_v38, %v15613_v46 }
 0x4ed   :  { %12125 = vst [vmem:[#allocation2 + $0x598] sm:$0xff] %v11859_v25   ;;  %v4624_v35 = vmul.f32 %v15548_v58, %v4591_v19  ;;  %v12477_v40 = vpop.f32.mrf.mxu1  ;;  %12975 = vmatprep.subr.bf16.mxu1 %v13391_v13  ;;  %v12543_v44 = vpop.f32.mrf.mxu0  ;;  %8557 = vmatprep.mubr.bf16.mxu1 %v9995_v7  ;;  %v4476_v51 = vmul.f32 %v15569_v17, %v4444_v47  ;;  %v15641_v13 = vld [vmem:[#allocation5 + $0x408] sm:$0xff] }
 0x4ee   :  { %v12478_v10 = vadd.f32 %v12477_v40, %v12476_v50  ;;  %8645 = vmatprep.mubr.bf16.mxu0 %v9949_v60  ;;  %v15619_v5 = vadd.f32 %v12542_v32, %v7947_v57  ;;  %v9994_v57 = vcombine.low %v15583_v39, %v15586_v56  ;;  %v15637_v60 = vld [vmem:[#allocation5 + $0x580] sm:$0xff] }
 0x4ef   :  { %v11834_v63 = vpack.c.bf16 %v4624_v35, %v4623_v41  ;;  %v12479_v4 = vpop.f32.mrf.mxu1  ;;  %v12544_v1 = vpop.f32.mrf.mxu0  ;;  %v15643_v41 = vld [vmem:[#allocation5 + $0x468] sm:$0xff] }
 0x4f0   :  { %v7955_v31 = vadd.f32 %v12478_v10, %v15385_v21  ;;  %v4446_v48 = vpop.permute.xlu1 %4445  ;;  %v4605_v42 = vpop.permute.xlu0 %4604  ;;  %v13392_v3 = vld [vmem:[#allocation2 + $0x538] sm:$0xff]   ;;  %v12545_v33 = vadd.f32 %v12544_v1, %v12543_v44 }
 0x4f1   :  { %12120 = vst [vmem:[#allocation2 + $0x570] sm:$0xff] %v11834_v63   ;;  %v4477_v55 = vmul.f32 %v15569_v17, %v4446_v48  ;;  %v12480_v30 = vpop.f32.mrf.mxu1  ;;  %12976 = vmatpush3.bf16.msra.mxu1 %v13392_v3  ;;  %v12546_v6 = vpop.f32.mrf.mxu0  ;;  %v4631_v62 = vmul.f32 %v15548_v58, %v4605_v42  ;;  %v9972_v48 = vcombine.low %v15615_v37, %v15617_v36 }
 0x4f2   :  { %v12481_v23 = vadd.f32 %v12480_v30, %v12479_v4  ;;  %v15632_v52 = vadd.f32 %v12545_v33, %v7952_v61 }
 0x4f3   :  { %v11794_v21 = vpack.c.bf16 %v4477_v55, %v4476_v51  ;;  %v12482_v0 = vpop.f32.mrf.mxu1  ;;  %v12547_v56 = vpop.f32.mrf.mxu0  ;;  %v9997_v51 = vcombine.high %v15641_v13, %v15643_v41 }
 0x4f4   :  { %v7960_v2 = vadd.f32 %v12481_v23, %v15403_v15  ;;  %v4607_v34 = vpop.permute.xlu1 %4606  ;;  %v4585_v49 = vpop.permute.xlu0 %4584  ;;  %v13393_v25 = vld [vmem:[#allocation2 + $0x598] sm:$0xff]   ;;  %8646 = vmatmul.mubr.bf16.gmra.mxu0 %v9948_v26  ;;  %v12548_v7 = vadd.f32 %v12547_v56, %v12546_v6  ;;  %8558 = vmatmul.mubr.bf16.gmra.mxu1 %v9994_v57 }
 0x4f5   :  { %12112 = vst [vmem:[#allocation2 + $0x530] sm:$0xff] %v11794_v21   ;;  %v4632_v39 = vmul.f32 %v15548_v58, %v4607_v34  ;;  %v12483_v50 = vpop.f32.mrf.mxu1  ;;  %8806 = vmatpush1.bf16.msra.mxu0 %v13393_v25  ;;  %v12549_v19 = vpop.f32.mrf.mxu0  ;;  %8565 = vmatprep.mubr.bf16.mxu1 %v10019_v59  ;;  %v15639_v15 = vld [vmem:[#allocation5 + $0x5e0] sm:$0xff]  ;;  %v4621_v10 = vmul.f32 %v15548_v58, %v4585_v49  ;;  %v15665_v34 = vld [vmem:[#allocation5 + $0x4c8] sm:$0xff] }
 0x4f6   :  { %8653 = vmatprep.mubr.bf16.mxu0 %v9973_v53  ;;  %v15645_v35 = vadd.f32 %v12548_v7, %v7955_v31  ;;  %8807 = vmatprep.subr.bf16.mxu0 %v13580_v9  ;;  %v10018_v31 = vcombine.low %v15611_v38, %v15613_v46  ;;  %v10043_v26 = vcombine.high %v15637_v60, %v15639_v15  ;;  %v15667_v49 = vld [vmem:[#allocation5 + $0x528] sm:$0xff] }
 0x4f7   :  { %v11854_v61 = vpack.c.bf16 %v4632_v39, %v4631_v62  ;;  %v12571_v47 = vpop.f32.mrf.mxu1  ;;  %v12550_v44 = vpop.f32.mrf.mxu0 }
 0x4f8   :  { %v4587_v24 = vpop.permute.xlu1 %4586  ;;  %v4440_v40 = vpop.permute.xlu0 %4439  ;;  %v13394_v32 = vld [vmem:[#allocation2 + $0x570] sm:$0xff]   ;;  %v12551_v42 = vadd.f32 %v12550_v44, %v12549_v19 }
 0x4f9   :  { %12124 = vst [vmem:[#allocation2 + $0x590] sm:$0xff] %v11854_v61   ;;  %v4622_v63 = vmul.f32 %v15548_v58, %v4587_v24  ;;  %v12572_v4 = vpop.f32.mrf.mxu1  ;;  %12977 = vmatprep.subr.bf16.mxu1 %v13394_v32  ;;  %v12552_v1 = vpop.f32.mrf.mxu0  ;;  %v4474_v21 = vmul.f32 %v15569_v17, %v4440_v40  ;;  %v10042_v32 = vcombine.low %v15637_v60, %v15639_v15 }
 0x4fa   :  { %v12573_v3 = vadd.f32 %v12572_v4, %v12571_v47  ;;  %v15658_v33 = vadd.f32 %v12551_v42, %v7960_v2  ;;  %v9996_v47 = vcombine.low %v15641_v13, %v15643_v41  ;;  %v10021_v4 = vcombine.high %v15665_v34, %v15667_v49 }
 0x4fb   :  { %v11829_v55 = vpack.c.bf16 %v4622_v63, %v4621_v10  ;;  %v12574_v30 = vpop.f32.mrf.mxu1  ;;  %v12553_v46 = vpop.f32.mrf.mxu0 }
 0x4fc   :  { %v8104_v23 = vadd.f32 %v12573_v3, %v15433_v29  ;;  %v4442_v37 = vpop.permute.xlu1 %4441  ;;  %v4601_v36 = vpop.permute.xlu0 %4600  ;;  %v13395_v57 = vld [vmem:[#allocation2 + $0x530] sm:$0xff]   ;;  %8654 = vmatmul.mubr.bf16.gmra.mxu0 %v9972_v48  ;;  %8566 = vmatmul.mubr.bf16.gmra.mxu1 %v10018_v31  ;;  %v15663_v29 = vld [vmem:[#allocation5 + $0x640] sm:$0x33] }
 0x4fd   :  { %12119 = vst [vmem:[#allocation2 + $0x568] sm:$0xff] %v11829_v55   ;;  %v4475_v38 = vmul.f32 %v15569_v17, %v4442_v37  ;;  %v12575_v6 = vpop.f32.mrf.mxu1  ;;  %8661 = vmatprep.mubr.bf16.mxu0 %v9997_v51  ;;  %v12641_v53 = vpop.f32.mrf.mxu0  ;;  %12978 = vmatpush3.bf16.msra.mxu1 %v13395_v57  ;;  %v4629_v50 = vmul.f32 %v15548_v58, %v4601_v36  ;;  %v15688_v37 = vld [vmem:[#allocation5 + $0x5e8] sm:$0xff] }
 0x4fe   :  { %v12576_v0 = vadd.f32 %v12575_v6, %v12574_v30  ;;  %8573 = vmatprep.mubr.bf16.mxu1 %v10043_v26  ;;  %v10067_v44 = vcombine.high %v15663_v29, %v15663_v29 }
 0x4ff   :  { %v11789_v59 = vpack.c.bf16 %v4475_v38, %v4474_v21  ;;  %v12577_v2 = vpop.f32.mrf.mxu1  ;;  %v12642_v61 = vpop.f32.mrf.mxu0 }
 0x500   :  { %v8107_v25 = vadd.f32 %v12576_v0, %v15447_v43  ;;  %v4603_v62 = vpop.permute.xlu1 %4602  ;;  %v4581_v39 = vpop.permute.xlu0 %4580  ;;  %v13396_v56 = vld [vmem:[#allocation2 + $0x590] sm:$0xff]   ;;  %v12643_v24 = vadd.f32 %v12642_v61, %v12641_v53 }
 0x501   :  { %12111 = vst [vmem:[#allocation2 + $0x528] sm:$0xff] %v11789_v59   ;;  %v4630_v7 = vmul.f32 %v15548_v58, %v4603_v62  ;;  %v12578_v19 = vpop.f32.mrf.mxu1  ;;  %8808 = vmatpush1.bf16.msra.mxu0 %v13396_v56  ;;  %v12644_v10 = vpop.f32.mrf.mxu0  ;;  %v4619_v60 = vmul.f32 %v15548_v58, %v4581_v39  ;;  %v15697_v62 = vld [vmem:[#allocation5 + $0x50] sm:$0xff] }
 0x502   :  { %v12579_v40 = vadd.f32 %v12578_v19, %v12577_v2  ;;  %8809 = vmatprep.subr.bf16.mxu0 %v13580_v9  ;;  %v15681_v48 = vadd.f32 %v12643_v24, %v8104_v23  ;;  %v10020_v2 = vcombine.low %v15665_v34, %v15667_v49  ;;  %v15699_v39 = vld [vmem:[#allocation5 + $0xb0] sm:$0xff] }
 0x503   :  { %v11849_v43 = vpack.c.bf16 %v4630_v7, %v4629_v50  ;;  %v12580_v63 = vpop.f32.mrf.mxu1  ;;  %v12645_v31 = vpop.f32.mrf.mxu0 }
 0x504   :  { %v8112_v13 = vadd.f32 %v12579_v40, %v15463_v16  ;;  %v4583_v41 = vpop.permute.xlu1 %4582  ;;  %v4436_v42 = vpop.permute.xlu0 %4435  ;;  %v13397_v3 = vld [vmem:[#allocation2 + $0x568] sm:$0xff]   ;;  %8662 = vmatmul.mubr.bf16.gmra.mxu0 %v9996_v47  ;;  %v12646_v55 = vadd.f32 %v12645_v31, %v12644_v10  ;;  %8574 = vmatmul.mubr.bf16.gmra.mxu1 %v10042_v32  ;;  %v15686_v16 = vld [vmem:[#allocation5 + $0x588] sm:$0xff]  ;;  %v9879_v32 = vcombine.high %v15697_v62, %v15699_v39 }
 0x505   :  { %12123 = vst [vmem:[#allocation2 + $0x588] sm:$0xff] %v11849_v43   ;;  %v4620_v15 = vmul.f32 %v15548_v58, %v4583_v41  ;;  %v12581_v51 = vpop.f32.mrf.mxu1  ;;  %12979 = vmatprep.subr.bf16.mxu1 %v13397_v3  ;;  %v12647_v26 = vpop.f32.mrf.mxu0  ;;  %8581 = vmatprep.mubr.bf16.mxu1 %v10067_v44  ;;  %v4472_v6 = vmul.f32 %v15569_v17, %v4436_v42  ;;  %v15713_v42 = vld [vmem:[#allocation5 + $0x648] sm:$0x33] }
 0x506   :  { %v12582_v1 = vadd.f32 %v12581_v51, %v12580_v63  ;;  %8669 = vmatprep.mubr.bf16.mxu0 %v10021_v4  ;;  %v15690_v36 = vadd.f32 %v12646_v55, %v8107_v25  ;;  %v10045_v19 = vcombine.high %v15686_v16, %v15688_v37 }
 0x507   :  { %v11824_v30 = vpack.c.bf16 %v4620_v15, %v4619_v60  ;;  %v12583_v23 = vpop.f32.mrf.mxu1  ;;  %v12648_v59 = vpop.f32.mrf.mxu0 }
 0x508   :  { %v8115_v57 = vadd.f32 %v12582_v1, %v15479_v54  ;;  %v4438_v21 = vpop.permute.xlu1 %4437  ;;  %v4597_v38 = vpop.permute.xlu0 %4596  ;;  %v13398_v46 = vld [vmem:[#allocation2 + $0x528] sm:$0xff]   ;;  %v12649_v25 = vadd.f32 %v12648_v59, %v12647_v26  ;;  %v10066_v54 = vcombine.low %v15663_v29, %v15663_v29 }
 0x509   :  { %12118 = vst [vmem:[#allocation2 + $0x560] sm:$0xff] %v11824_v30   ;;  %v4473_v0 = vmul.f32 %v15569_v17, %v4438_v21  ;;  %v12584_v53 = vpop.f32.mrf.mxu1  ;;  %12980 = vmatpush3.bf16.msra.mxu1 %v13398_v46  ;;  %v12650_v7 = vpop.f32.mrf.mxu0  ;;  %v4627_v43 = vmul.f32 %v15548_v58, %v4597_v38 }
 0x50a   :  { %v12585_v56 = vadd.f32 %v12584_v53, %v12583_v23  ;;  %v15705_v47 = vadd.f32 %v12649_v25, %v8112_v13  ;;  %v10044_v23 = vcombine.low %v15686_v16, %v15688_v37 }
 0x50b   :  { %v11784_v50 = vpack.c.bf16 %v4473_v0, %v4472_v6  ;;  %v12586_v61 = vpop.f32.mrf.mxu1  ;;  %v12651_v10 = vpop.f32.mrf.mxu0 }
 0x50c   :  { %v8120_v34 = vadd.f32 %v12585_v56, %v15490_v14  ;;  %v4599_v49 = vpop.permute.xlu1 %4598  ;;  %v4577_v24 = vpop.permute.xlu0 %4576  ;;  %v13401_v40 = vld [vmem:[#allocation2 + $0x588] sm:$0xff]   ;;  %8670 = vmatmul.mubr.bf16.gmra.mxu0 %v10020_v2  ;;  %v12652_v44 = vadd.f32 %v12651_v10, %v12650_v7  ;;  %8582 = vmatmul.mubr.bf16.gmra.mxu1 %v10066_v54 }
 0x50d   :  { %12110 = vst [vmem:[#allocation2 + $0x520] sm:$0xff] %v11784_v50   ;;  %v4628_v29 = vmul.f32 %v15548_v58, %v4599_v49  ;;  %v12587_v63 = vpop.f32.mrf.mxu1  ;;  %8810 = vmatpush1.bf16.msra.mxu0 %v13401_v40  ;;  %v12653_v14 = vpop.f32.mrf.mxu0  ;;  %8677 = vmatprep.mubr.bf16.mxu0 %v10045_v19  ;;  %v4617_v55 = vmul.f32 %v15548_v58, %v4577_v24 }
 0x50e   :  { %v12588_v4 = vadd.f32 %v12587_v63, %v12586_v61  ;;  %8811 = vmatprep.subr.bf16.mxu0 %v13580_v9  ;;  %v15715_v3 = vadd.f32 %v12652_v44, %v8115_v57  ;;  %8725 = vmatprep.mubr.bf16.mxu1 %v9879_v32 }
 0x50f   :  { %v11844_v13 = vpack.c.bf16 %v4628_v29, %v4627_v43  ;;  %v12589_v41 = vpop.f32.mrf.mxu1  ;;  %v12654_v30 = vpop.f32.mrf.mxu0 }
 0x510   :  { %v8123_v60 = vadd.f32 %v12588_v4, %v15504_v27  ;;  %v4579_v15 = vpop.permute.xlu1 %4578  ;;  %v4432_v31 = vpop.permute.xlu0 %4431  ;;  %v13402_v51 = vld [vmem:[#allocation2 + $0x560] sm:$0xff]   ;;  %v12655_v21 = vadd.f32 %v12654_v30, %v12653_v14  ;;  %v10069_v27 = vcombine.high %v15713_v42, %v15713_v42  ;;  %v10068_v4 = vcombine.low %v15713_v42, %v15713_v42 }
 0x511   :  { %12122 = vst [vmem:[#allocation2 + $0x580] sm:$0xff] %v11844_v13   ;;  %v4618_v1 = vmul.f32 %v15548_v58, %v4579_v15  ;;  %v12590_v26 = vpop.f32.mrf.mxu1  ;;  %12981 = vmatprep.subr.bf16.mxu1 %v13402_v51  ;;  %v12656_v46 = vpop.f32.mrf.mxu0  ;;  %v4470_v25 = vmul.f32 %v15569_v17, %v4432_v31 }
 0x512   :  { %v12591_v38 = vadd.f32 %v12590_v26, %v12589_v41  ;;  %v15724_v0 = vadd.f32 %v12655_v21, %v8120_v34  ;;  %v15729_v34 = vld [vmem:[#allocation5 + $0x58] sm:$0xff] }
 0x513   :  { %v11819_v57 = vpack.c.bf16 %v4618_v1, %v4617_v55  ;;  %v12592_v6 = vpop.f32.mrf.mxu1  ;;  %v12657_v37 = vpop.f32.mrf.mxu0 }
 0x514   :  { %v8128_v59 = vadd.f32 %v12591_v38, %v15513_v28  ;;  %v4434_v53 = vpop.permute.xlu1 %4433  ;;  %v4758_v58 = vpop.permute.xlu0 %4757  ;;  %v13403_v2 = vld [vmem:[#allocation2 + $0x520] sm:$0xff]   ;;  %8678 = vmatmul.mubr.bf16.gmra.mxu0 %v10044_v23  ;;  %v12658_v54 = vadd.f32 %v12657_v37, %v12656_v46  ;;  %v15731_v28 = vld [vmem:[#allocation5 + $0xb8] sm:$0xff] }
 0x515   :  { %12117 = vst [vmem:[#allocation2 + $0x558] sm:$0xff] %v11819_v57   ;;  %v4471_v16 = vmul.f32 %v15569_v17, %v4434_v53  ;;  %v12593_v56 = vpop.f32.mrf.mxu1  ;;  %12982 = vmatpush3.bf16.msra.mxu1 %v13403_v2  ;;  %8685 = vmatprep.mubr.bf16.mxu0 %v10069_v27  ;;  %v12659_v61 = vpop.f32.mrf.mxu0  ;;  %v4782_v29 = vmul.f32 %v15496_v11, %v4758_v58 }
 0x516   :  { %v12594_v50 = vadd.f32 %v12593_v56, %v12592_v6  ;;  %v15733_v49 = vadd.f32 %v12658_v54, %v8123_v60  ;;  %v9881_v41 = vcombine.high %v15729_v34, %v15731_v28 }
 0x517   :  { %v11779_v7 = vpack.c.bf16 %v4471_v16, %v4470_v25  ;;  %v12595_v19 = vpop.f32.mrf.mxu1  ;;  %v12660_v63 = vpop.f32.mrf.mxu0 }
 0x518   :  { %v8131_v24 = vadd.f32 %v12594_v50, %v15522_v8  ;;  %v4760_v40 = vpop.permute.xlu1 %4759  ;;  %v4460_v32 = vpop.permute.xlu0 %4459  ;;  %v13404_v43 = vld [vmem:[#allocation2 + $0x580] sm:$0xff]   ;;  %v12661_v13 = vadd.f32 %v12660_v63, %v12659_v61 }
 0x519   :  { %12109 = vst [vmem:[#allocation2 + $0x518] sm:$0xff] %v11779_v7   ;;  %v4783_v10 = vmul.f32 %v15496_v11, %v4760_v40  ;;  %v12596_v44 = vpop.f32.mrf.mxu1  ;;  %8812 = vmatpush1.bf16.msra.mxu0 %v13404_v43  ;;  %v12662_v60 = vpop.f32.mrf.mxu0  ;;  %v4484_v42 = vmul.f32 %v15569_v17, %v4460_v32 }
 0x51a   :  { %v12597_v14 = vadd.f32 %v12596_v44, %v12595_v19  ;;  %8819 = vmatprep.subr.bf16.mxu0 %v13580_v9  ;;  %v15743_v31 = vadd.f32 %v12661_v13, %v8128_v59 }
 0x51b   :  { %v11904_v8 = vpack.c.bf16 %v4783_v10, %v4782_v29  ;;  %v12598_v15 = vpop.f32.mrf.mxu1  ;;  %v12663_v23 = vpop.f32.mrf.mxu0 }
 0x51c   :  { %v8136_v51 = vadd.f32 %v12597_v14, %v15538_v22  ;;  %v4462_v55 = vpop.permute.xlu1 %4461  ;;  %v4428_v1 = vpop.permute.xlu0 %4427  ;;  %v13407_v30 = vld [vmem:[#allocation2 + $0x558] sm:$0xff]   ;;  %8686 = vmatmul.mubr.bf16.gmra.mxu0 %v10068_v4  ;;  %v12664_v38 = vadd.f32 %v12663_v23, %v12662_v60 }
 0x51d   :  { %12134 = vst [vmem:[#allocation2 + $0x5e0] sm:$0xff] %v11904_v8   ;;  %v4485_v26 = vmul.f32 %v15569_v17, %v4462_v55  ;;  %v12599_v21 = vpop.f32.mrf.mxu1  ;;  %12983 = vmatprep.subr.bf16.mxu1 %v13407_v30  ;;  %10263 = vmatprep.mubr.msk.bf16.mxu0 %vm7625_vm1, %v9881_v41  ;;  %v12665_v46 = vpop.f32.mrf.mxu0  ;;  %v4468_v25 = vmul.f32 %v15569_v17, %v4428_v1 }
 0x51e   :  { %v12600_v27 = vadd.f32 %v12599_v21, %v12598_v15  ;;  %v15749_v22 = vadd.f32 %v12664_v38, %v8131_v24 }
 0x51f   :  { %v11814_v57 = vpack.c.bf16 %v4485_v26, %v4484_v42  ;;  %v12601_v6 = vpop.f32.mrf.mxu1  ;;  %v12666_v37 = vpop.f32.mrf.mxu0 }
 0x520   :  { %v8139_v59 = vadd.f32 %v12600_v27, %v15555_v45  ;;  %v4430_v53 = vpop.permute.xlu1 %4429  ;;  %v4754_v58 = vpop.permute.xlu0 %4753  ;;  %v13408_v2 = vld [vmem:[#allocation2 + $0x518] sm:$0xff]   ;;  %v12667_v54 = vadd.f32 %v12666_v37, %v12665_v46 }
 0x521   :  { %12116 = vst [vmem:[#allocation2 + $0x550] sm:$0xff] %v11814_v57   ;;  %v4469_v16 = vmul.f32 %v15569_v17, %v4430_v53  ;;  %v12602_v56 = vpop.f32.mrf.mxu1  ;;  %12984 = vmatpush3.bf16.msra.mxu1 %v13408_v2  ;;  %v12668_v61 = vpop.f32.mrf.mxu0  ;;  %v4780_v29 = vmul.f32 %v15496_v11, %v4754_v58  ;;  %v13508_v53 = vld [vmem:[%s16206_s1 + $0x11] ss:$0 sm:$0xff] }
 0x522   :  { %v12603_v50 = vadd.f32 %v12602_v56, %v12601_v6  ;;  %v15754_v24 = vadd.f32 %v12667_v54, %v8136_v51 }
 0x523   :  { %v11774_v7 = vpack.c.bf16 %v4469_v16, %v4468_v25  ;;  %v12604_v19 = vpop.f32.mrf.mxu1  ;;  %v12669_v63 = vpop.f32.mrf.mxu0 }
 0x524   :  { %v8144_v45 = vadd.f32 %v12603_v50, %v15576_v18  ;;  %v4756_v40 = vpop.permute.xlu1 %4755  ;;  %v4456_v32 = vpop.permute.xlu0 %4455  ;;  %v13409_v43 = vld [vmem:[#allocation2 + $0x5e0] sm:$0xff]   ;;  %v12670_v4 = vadd.f32 %v12669_v63, %v12668_v61 }
 0x525   :  { %12108 = vst [vmem:[#allocation2 + $0x510] sm:$0xff] %v11774_v7   ;;  %v4781_v10 = vmul.f32 %v15496_v11, %v4756_v40  ;;  %v12605_v44 = vpop.f32.mrf.mxu1  ;;  %8820 = vmatpush2.bf16.msra.mxu0 %v13409_v43  ;;  %v12671_v41 = vpop.f32.mrf.mxu0  ;;  %v4482_v11 = vmul.f32 %v15569_v17, %v4456_v32  ;;  %v15777_v32 = vld [vmem:[%s16206_s1 + $0x14] ss:$0 sm:$0xff] }
 0x526   :  { %v12606_v13 = vadd.f32 %v12605_v44, %v12604_v19  ;;  %8821 = vmatprep.subr.bf16.mxu0 %v13580_v9  ;;  %v15760_v60 = vadd.f32 %v12670_v4, %v8139_v59 }
 0x527   :  { %v11899_v14 = vpack.c.bf16 %v4781_v10, %v4780_v29  ;;  %v12607_v8 = vpop.f32.mrf.mxu1  ;;  %v12672_v30 = vpop.f32.mrf.mxu0 }
 0x528   :  { %v8147_v18 = vadd.f32 %v12606_v13, %v15592_v20  ;;  %v4458_v15 = vpop.permute.xlu1 %4457  ;;  %v4311_v51 = vpop.permute.xlu0 %4310  ;;  %v13410_v55 = vld [vmem:[#allocation2 + $0x550] sm:$0xff]   ;;  %v12673_v26 = vadd.f32 %v12672_v30, %v12671_v41 }
 0x529   :  { %12133 = vst [vmem:[#allocation2 + $0x5d8] sm:$0xff] %v11899_v14   ;;  %v4483_v1 = vmul.f32 %v15569_v17, %v4458_v15  ;;  %v12608_v42 = vpop.f32.mrf.mxu1  ;;  %12985 = vmatprep.subr.bf16.mxu1 %v13410_v55  ;;  %v12674_v38 = vpop.f32.mrf.mxu0  ;;  %v4335_v58 = vmul.f32 %v13508_v53, %v4311_v51 }
 0x52a   :  { %v12609_v23 = vadd.f32 %v12608_v42, %v12607_v8  ;;  %v15765_v57 = vadd.f32 %v12673_v26, %v8144_v45 }
 0x52b   :  { %v11809_v21 = vpack.c.bf16 %v4483_v1, %v4482_v11  ;;  %v12610_v27 = vpop.f32.mrf.mxu1  ;;  %v12675_v25 = vpop.f32.mrf.mxu0 }
 0x52c   :  { %v8152_v20 = vadd.f32 %v12609_v23, %v15606_v12  ;;  %v4313_v46 = vpop.permute.xlu1 %4312  ;;  %v4750_v6 = vpop.permute.xlu0 %4749  ;;  %v13411_v59 = vld [vmem:[#allocation2 + $0x510] sm:$0xff]   ;;  %v12676_v37 = vadd.f32 %v12675_v25, %v12674_v38 }
 0x52d   :  { %12115 = vst [vmem:[#allocation2 + $0x548] sm:$0xff] %v11809_v21   ;;  %v4336_v2 = vmul.f32 %v13508_v53, %v4313_v46  ;;  %v12611_v16 = vpop.f32.mrf.mxu1  ;;  %12986 = vmatpush3.bf16.msra.mxu1 %v13411_v59  ;;  %v12677_v50 = vpop.f32.mrf.mxu0  ;;  %v4778_v43 = vmul.f32 %v15777_v32, %v4750_v6 }
 0x52e   :  { %v12612_v56 = vadd.f32 %v12611_v16, %v12610_v27  ;;  %v15771_v61 = vadd.f32 %v12676_v37, %v8147_v18 }
 0x52f   :  { %v11769_v54 = vpack.c.bf16 %v4336_v2, %v4335_v58  ;;  %v12613_v7 = vpop.f32.mrf.mxu1  ;;  %v12678_v10 = vpop.f32.mrf.mxu0 }
 0x530   :  { %v8155_v12 = vadd.f32 %v12612_v56, %v15619_v5  ;;  %v4752_v19 = vpop.permute.xlu1 %4751  ;;  %v4452_v45 = vpop.permute.xlu0 %4451  ;;  %v13412_v40 = vld [vmem:[#allocation2 + $0x5d8] sm:$0xff]   ;;  %v12679_v44 = vadd.f32 %v12678_v10, %v12677_v50 }
 0x531   :  { %12107 = vst [vmem:[#allocation2 + $0x508] sm:$0xff] %v11769_v54   ;;  %v4779_v29 = vmul.f32 %v15777_v32, %v4752_v19  ;;  %v12614_v63 = vpop.f32.mrf.mxu1  ;;  %8822 = vmatpush2.bf16.msra.mxu0 %v13412_v40  ;;  %v12680_v5 = vpop.f32.mrf.mxu0  ;;  %v4480_v55 = vmul.f32 %v15569_v17, %v4452_v45 }
 0x532   :  { %v12615_v4 = vadd.f32 %v12614_v63, %v12613_v7  ;;  %8823 = vmatprep.subr.bf16.mxu0 %v13580_v9  ;;  %v15782_v41 = vadd.f32 %v12679_v44, %v8152_v20 }
 0x533   :  { %v11894_v13 = vpack.c.bf16 %v4779_v29, %v4778_v43  ;;  %v12616_v14 = vpop.f32.mrf.mxu1  ;;  %v12681_v1 = vpop.f32.mrf.mxu0 }
 0x534   :  { %v8160_v8 = vadd.f32 %v12615_v4, %v15632_v52  ;;  %v4454_v18 = vpop.permute.xlu1 %4453  ;;  %v4307_v15 = vpop.permute.xlu0 %4306  ;;  %v13413_v51 = vld [vmem:[#allocation2 + $0x548] sm:$0xff]   ;;  %v12682_v42 = vadd.f32 %v12681_v1, %v12680_v5 }
 0x535   :  { %12132 = vst [vmem:[#allocation2 + $0x5d0] sm:$0xff] %v11894_v13   ;;  %v4481_v11 = vmul.f32 %v15569_v17, %v4454_v18  ;;  %v12617_v30 = vpop.f32.mrf.mxu1  ;;  %12987 = vmatprep.subr.bf16.mxu1 %v13413_v51  ;;  %v12683_v21 = vpop.f32.mrf.mxu0  ;;  %v4333_v59 = vmul.f32 %v13508_v53, %v4307_v15 }
 0x536   :  { %v12618_v26 = vadd.f32 %v12617_v30, %v12616_v14  ;;  %v15787_v27 = vadd.f32 %v12682_v42, %v8155_v12  ;;  %v4908_v30 = vld [vmem:[#allocation5 + $0x110] sm:$0xff] }
 0x537   :  { %v11804_v23 = vpack.c.bf16 %v4481_v11, %v4480_v55  ;;  %v12619_v38 = vpop.f32.mrf.mxu1  ;;  %v12684_v2 = vpop.f32.mrf.mxu0  ;;  %v4920_v42 = vld [vmem:[#allocation5 + $0x170] sm:$0xff] }
 0x538   :  { %v8163_v52 = vadd.f32 %v12618_v26, %v15645_v35  ;;  %v4309_v20 = vpop.permute.xlu1 %4308  ;;  %v4746_v46 = vpop.permute.xlu0 %4745  ;;  %v13414_v6 = vld [vmem:[#allocation2 + $0x508] sm:$0xff]   ;;  %v12685_v25 = vadd.f32 %v12684_v2, %v12683_v21 }
 0x539   :  { %12114 = vst [vmem:[#allocation2 + $0x540] sm:$0xff] %v11804_v23   ;;  %v4334_v58 = vmul.f32 %v13508_v53, %v4309_v20  ;;  %v12620_v17 = vpop.f32.mrf.mxu1  ;;  %12988 = vmatpush3.bf16.msra.mxu1 %v13414_v6  ;;  %v12686_v56 = vpop.f32.mrf.mxu0  ;;  %v4776_v19 = vmul.f32 %v15777_v32, %v4746_v46  ;;  %v9903_v46 = vcombine.high %v4908_v30, %v4920_v42 }
 0x53a   :  { %v12621_v16 = vadd.f32 %v12620_v17, %v12619_v38  ;;  %v15790_v50 = vadd.f32 %v12685_v25, %v8160_v8 }
 0x53b   :  { %v11764_v37 = vpack.c.bf16 %v4334_v58, %v4333_v59  ;;  %v12622_v54 = vpop.f32.mrf.mxu1  ;;  %v12687_v53 = vpop.f32.mrf.mxu0 }
 0x53c   :  { %v8168_v7 = vadd.f32 %v12621_v16, %v15658_v33  ;;  %v4748_v12 = vpop.permute.xlu1 %4747  ;;  %v13415_v35 = vld [vmem:[#allocation2 + $0x5d0] sm:$0xff]   ;;  %v4742_v43 = vpop.permute.xlu0 %4741  ;;  %v12688_v29 = vadd.f32 %v12687_v53, %v12686_v56  ;;  %v9902_v53 = vcombine.low %v4908_v30, %v4920_v42 }
 0x53d   :  { %12106 = vst [vmem:[#allocation2 + $0x500] sm:$0xff] %v11764_v37   ;;  %v4777_v45 = vmul.f32 %v15777_v32, %v4748_v12  ;;  %v12623_v40 = vpop.f32.mrf.mxu1  ;;  %8824 = vmatpush2.bf16.msra.mxu0 %v13415_v35  ;;  %v12689_v63 = vpop.f32.mrf.mxu0  ;;  %v4774_v5 = vmul.f32 %v15777_v32, %v4742_v43  ;;  %v4932_v37 = vld [vmem:[#allocation5 + $0x1d0] sm:$0xff] }
 0x53e   :  { %8825 = vmatprep.subr.bf16.mxu0 %v13580_v9  ;;  %v15796_v4 = vadd.f32 %v12688_v29, %v8163_v52  ;;  %v9880_v40 = vcombine.low %v15729_v34, %v15731_v28  ;;  %v4956_v34 = vld [vmem:[#allocation5 + $0x290] sm:$0xff] }
 0x53f   :  { %v11889_v10 = vpack.c.bf16 %v4777_v45, %v4776_v19  ;;  %v12711_v44 = vpop.f32.mrf.mxu1  ;;  %v12690_v8 = vpop.f32.mrf.mxu0 }
 0x540   :  { %v4744_v33 = vpop.permute.xlu1 %4743  ;;  %v13416_v13 = vld [vmem:[#allocation2 + $0x540] sm:$0xff]   ;;  %v12691_v15 = vadd.f32 %v12690_v8, %v12689_v63 }
 0x541   :  { %12131 = vst [vmem:[#allocation2 + $0x5c8] sm:$0xff] %v11889_v10   ;;  %v4775_v14 = vmul.f32 %v15777_v32, %v4744_v33  ;;  %v12712_v18 = vpop.f32.mrf.mxu1  ;;  %12989 = vmatprep.subr.bf16.mxu1 %v13416_v13  ;;  %v12692_v11 = vpop.f32.mrf.mxu0  ;;  %v9878_v32 = vcombine.low %v15697_v62, %v15699_v39  ;;  %v4944_v62 = vld [vmem:[#allocation5 + $0x230] sm:$0xff]  ;;  %v4909_v39 = vld [vmem:[#allocation5 + $0x118] sm:$0xff] }
 0x542   :  { %v12713_v51 = vadd.f32 %v12712_v18, %v12711_v44  ;;  %v15800_v26 = vadd.f32 %v12691_v15, %v8168_v7  ;;  %v4921_v7 = vld [vmem:[#allocation5 + $0x178] sm:$0xff]  ;;  %v9927_v10 = vcombine.high %v4932_v37, %v4944_v62  ;;  %v4968_v15 = vld [vmem:[#allocation5 + $0x2f0] sm:$0xff]  ;;  %v9926_v42 = vcombine.low %v4932_v37, %v4944_v62 }
 0x543   :  { %v11884_v55 = vpack.c.bf16 %v4775_v14, %v4774_v5  ;;  %v12714_v1 = vpop.f32.mrf.mxu1  ;;  %v12693_v38 = vpop.f32.mrf.mxu0  ;;  %v9905_v63 = vcombine.high %v4909_v39, %v4921_v7  ;;  %v4992_v37 = vld [vmem:[#allocation5 + $0x3b0] sm:$0xff] }
 0x544   :  { %v8312_v23 = vadd.f32 %v12713_v51, %v15681_v48  ;;  %v13417_v21 = vld [vmem:[#allocation2 + $0x500] sm:$0xff]   ;;  %v4933_v51 = vld [vmem:[#allocation5 + $0x1d8] sm:$0xff] }
 0x545   :  { %12130 = vst [vmem:[#allocation2 + $0x5c0] sm:$0xff] %v11884_v55   ;;  %v12715_v52 = vpop.f32.mrf.mxu1  ;;  %12990 = vmatpush3.bf16.msra.mxu1 %v13417_v21  ;;  %v12781_v6 = vpop.f32.mrf.mxu0  ;;  %v4945_v55 = vld [vmem:[#allocation5 + $0x238] sm:$0xff] }
 0x546   :  { %v12716_v20 = vadd.f32 %v12715_v52, %v12714_v1  ;;  %v9951_v52 = vcombine.high %v4956_v34, %v4968_v15 }
 0x547   :  { %v12717_v59 = vpop.f32.mrf.mxu1  ;;  %v12782_v17 = vpop.f32.mrf.mxu0 }
 0x548   :  { %v8315_v58 = vadd.f32 %v12716_v20, %v15690_v36  ;;  %v13418_v2 = vld [vmem:[#allocation2 + $0x5c8] sm:$0xff]   ;;  %8726 = vmatmul.mubr.bf16.vlgmr.msra.gmra.mxu1 %v9878_v32  ;;  %v12783_v16 = vadd.f32 %v12782_v17, %v12781_v6  ;;  %v9929_v32 = vcombine.high %v4933_v51, %v4945_v55 }
 0x549   :  { %v12718_v25 = vpop.f32.mrf.mxu1  ;;  %8826 = vmatpush2.bf16.msra.mxu0 %v13418_v2  ;;  %8733 = vmatprep.mubr.bf16.mxu1 %v9903_v46  ;;  %v12784_v56 = vpop.f32.mrf.mxu0 }
 0x54a   :  { %v12719_v48 = vadd.f32 %v12718_v25, %v12717_v59  ;;  %8827 = vmatprep.subr.bf16.mxu0 %v13580_v9  ;;  %v15807_v12 = vadd.f32 %v12783_v16, %v8312_v23  ;;  %v9904_v23 = vcombine.low %v4909_v39, %v4921_v7  ;;  %v4980_v25 = vld [vmem:[#allocation5 + $0x350] sm:$0xff] }
 0x54b   :  { %v12720_v54 = vpop.f32.mrf.mxu1  ;;  %v12785_v19 = vpop.f32.mrf.mxu0 }
 0x54c   :  { %v8320_v36 = vadd.f32 %v12719_v48, %v15705_v47  ;;  %v13419_v35 = vld [vmem:[#allocation2 + $0x5c0] sm:$0xff]   ;;  %v12786_v43 = vadd.f32 %v12785_v19, %v12784_v56  ;;  %v4957_v56 = vld [vmem:[#allocation5 + $0x298] sm:$0xff] }
 0x54d   :  { %v12721_v45 = vpop.f32.mrf.mxu1  ;;  %8828 = vmatpush2.bf16.msra.mxu0 %v13419_v35  ;;  %v12787_v9 = vpop.f32.mrf.mxu0  ;;  %v9928_v35 = vcombine.low %v4933_v51, %v4945_v55  ;;  %v9974_v55 = vcombine.low %v4980_v25, %v4992_v37 }
 0x54e   :  { %v12722_v29 = vadd.f32 %v12721_v45, %v12720_v54  ;;  %v15812_v33 = vadd.f32 %v12786_v43, %v8315_v58  ;;  %v4969_v54 = vld [vmem:[#allocation5 + $0x2f8] sm:$0xff] }
 0x54f   :  { %v12723_v44 = vpop.f32.mrf.mxu1  ;;  %v12788_v5 = vpop.f32.mrf.mxu0 }
 0x550   :  { %v8323_v13 = vadd.f32 %v12722_v29, %v15715_v3  ;;  %8734 = vmatmul.mubr.bf16.gmra.mxu1 %v9902_v53  ;;  %8830 = vmatmul.mubr.bf16.vlgmr.msra.gmra.mxu0 %v9880_v40  ;;  %v12789_v14 = vadd.f32 %v12788_v5, %v12787_v9  ;;  %v9975_v53 = vcombine.high %v4980_v25, %v4992_v37  ;;  %v5004_v5 = vld [vmem:[#allocation5 + $0x410] sm:$0xff]  ;;  %v5005_v25 = vld [vmem:[#allocation5 + $0x418] sm:$0xff] }
 0x551   :  { %v12724_v47 = vpop.f32.mrf.mxu1  ;;  %8741 = vmatprep.mubr.bf16.mxu1 %v9927_v10  ;;  %10264 = vmatprep.mubr.msk.bf16.mxu0 %vm7625_vm1, %v9905_v63  ;;  %v12790_v28 = vpop.f32.mrf.mxu0  ;;  %v9953_v40 = vcombine.high %v4957_v56, %v4969_v54 }
 0x552   :  { %v12725_v8 = vadd.f32 %v12724_v47, %v12723_v44  ;;  %v15816_v11 = vadd.f32 %v12789_v14, %v8320_v36  ;;  %v9950_v36 = vcombine.low %v4956_v34, %v4968_v15  ;;  %v4981_v34 = vld [vmem:[#allocation5 + $0x358] sm:$0xff] }
 0x553   :  { %v12726_v18 = vpop.f32.mrf.mxu1  ;;  %v12791_v3 = vpop.f32.mrf.mxu0 }
 0x554   :  { %v8328_v1 = vadd.f32 %v12725_v8, %v15724_v0  ;;  %v12792_v21 = vadd.f32 %v12791_v3, %v12790_v28  ;;  %v5016_v8 = vld [vmem:[#allocation5 + $0x470] sm:$0xff]  ;;  %v4993_v28 = vld [vmem:[#allocation5 + $0x3b8] sm:$0xff] }
 0x555   :  { %v12727_v30 = vpop.f32.mrf.mxu1  ;;  %v12793_v20 = vpop.f32.mrf.mxu0 }
 0x556   :  { %v12728_v38 = vadd.f32 %v12727_v30, %v12726_v18  ;;  %v15819_v6 = vadd.f32 %v12792_v21, %v8323_v13 }
 0x557   :  { %v12729_v46 = vpop.f32.mrf.mxu1  ;;  %v12794_v58 = vpop.f32.mrf.mxu0 }
 0x558   :  { %v8331_v59 = vadd.f32 %v12728_v38, %v15733_v49  ;;  %8742 = vmatmul.mubr.bf16.gmra.mxu1 %v9926_v42  ;;  %8838 = vmatmul.mubr.bf16.gmra.mxu0 %v9904_v23  ;;  %v12795_v17 = vadd.f32 %v12794_v58, %v12793_v20  ;;  %v9999_v42 = vcombine.high %v5004_v5, %v5016_v8  ;;  %v5028_v58 = vld [vmem:[#allocation5 + $0x4d0] sm:$0xff] }
 0x559   :  { %v12730_v2 = vpop.f32.mrf.mxu1  ;;  %8749 = vmatprep.mubr.bf16.mxu1 %v9951_v52  ;;  %10265 = vmatprep.mubr.msk.bf16.mxu0 %vm7625_vm1, %v9929_v32  ;;  %v12796_v16 = vpop.f32.mrf.mxu0  ;;  %v9977_v23 = vcombine.high %v4981_v34, %v4993_v28 }
 0x55a   :  { %v12731_v0 = vadd.f32 %v12730_v2, %v12729_v46  ;;  %v15823_v62 = vadd.f32 %v12795_v17, %v8328_v1  ;;  %v9952_v1 = vcombine.low %v4957_v56, %v4969_v54  ;;  %v9998_v54 = vcombine.low %v5004_v5, %v5016_v8  ;;  %v5029_v5 = vld [vmem:[#allocation5 + $0x4d8] sm:$0xff] }
 0x55b   :  { %v12732_v48 = vpop.f32.mrf.mxu1  ;;  %v12797_v49 = vpop.f32.mrf.mxu0 }
 0x55c   :  { %v8336_v39 = vadd.f32 %v12731_v0, %v15743_v31  ;;  %v12798_v19 = vadd.f32 %v12797_v49, %v12796_v16  ;;  %v5040_v0 = vld [vmem:[#allocation5 + $0x530] sm:$0xff]  ;;  %v5017_v16 = vld [vmem:[#allocation5 + $0x478] sm:$0xff] }
 0x55d   :  { %v12733_v7 = vpop.f32.mrf.mxu1  ;;  %v12799_v43 = vpop.f32.mrf.mxu0 }
 0x55e   :  { %v12734_v45 = vadd.f32 %v12733_v7, %v12732_v48  ;;  %v15826_v10 = vadd.f32 %v12798_v19, %v8331_v59 }
 0x55f   :  { %v12735_v29 = vpop.f32.mrf.mxu1  ;;  %v12800_v9 = vpop.f32.mrf.mxu0 }
 0x560   :  { %v8339_v63 = vadd.f32 %v12734_v45, %v15749_v22  ;;  %8750 = vmatmul.mubr.bf16.gmra.mxu1 %v9950_v36  ;;  %8846 = vmatmul.mubr.bf16.gmra.mxu0 %v9928_v35  ;;  %v12801_v13 = vadd.f32 %v12800_v9, %v12799_v43  ;;  %v10023_v36 = vcombine.high %v5028_v58, %v5040_v0  ;;  %v5052_v9 = vld [vmem:[#allocation5 + $0x590] sm:$0xff] }
 0x561   :  { %v12736_v44 = vpop.f32.mrf.mxu1  ;;  %8757 = vmatprep.mubr.bf16.mxu1 %v9975_v53  ;;  %10266 = vmatprep.mubr.msk.bf16.mxu0 %vm7625_vm1, %v9953_v40  ;;  %v12802_v47 = vpop.f32.mrf.mxu0  ;;  %v10001_v35 = vcombine.high %v5005_v25, %v5017_v16 }
 0x562   :  { %v12737_v31 = vadd.f32 %v12736_v44, %v12735_v29  ;;  %v15830_v18 = vadd.f32 %v12801_v13, %v8336_v39  ;;  %v9976_v39 = vcombine.low %v4981_v34, %v4993_v28  ;;  %v10022_v28 = vcombine.low %v5028_v58, %v5040_v0  ;;  %v5065_v58 = vld [vmem:[#allocation5 + $0x5f8] sm:$0xff] }
 0x563   :  { %v12738_v14 = vpop.f32.mrf.mxu1  ;;  %v12803_v22 = vpop.f32.mrf.mxu0 }
 0x564   :  { %v8344_v15 = vadd.f32 %v12737_v31, %v15754_v24  ;;  %v12804_v3 = vadd.f32 %v12803_v22, %v12802_v47  ;;  %v5064_v31 = vld [vmem:[#allocation5 + $0x5f0] sm:$0xff]  ;;  %v5041_v47 = vld [vmem:[#allocation5 + $0x538] sm:$0xff] }
 0x565   :  { %v12739_v51 = vpop.f32.mrf.mxu1  ;;  %v12805_v21 = vpop.f32.mrf.mxu0 }
 0x566   :  { %v12740_v30 = vadd.f32 %v12739_v51, %v12738_v14  ;;  %v15833_v52 = vadd.f32 %v12804_v3, %v8339_v63 }
 0x567   :  { %v12741_v38 = vpop.f32.mrf.mxu1  ;;  %v12806_v20 = vpop.f32.mrf.mxu0 }
 0x568   :  { %v8347_v32 = vadd.f32 %v12740_v30, %v15760_v60  ;;  %8758 = vmatmul.mubr.bf16.gmra.mxu1 %v9974_v55  ;;  %8854 = vmatmul.mubr.bf16.gmra.mxu0 %v9952_v1  ;;  %v12807_v59 = vadd.f32 %v12806_v20, %v12805_v21  ;;  %v10047_v55 = vcombine.high %v5052_v9, %v5064_v31 }
 0x569   :  { %v12742_v46 = vpop.f32.mrf.mxu1  ;;  %8765 = vmatprep.mubr.bf16.mxu1 %v9999_v42  ;;  %10267 = vmatprep.mubr.msk.bf16.mxu0 %vm7625_vm1, %v9977_v23  ;;  %v12808_v2 = vpop.f32.mrf.mxu0  ;;  %v10025_v1 = vcombine.high %v5029_v5, %v5041_v47 }
 0x56a   :  { %v12743_v24 = vadd.f32 %v12742_v46, %v12741_v38  ;;  %v15837_v48 = vadd.f32 %v12807_v59, %v8344_v15  ;;  %v10000_v15 = vcombine.low %v5005_v25, %v5017_v16  ;;  %v5076_v59 = vld [vmem:[#allocation5 + $0x650] sm:$0x33]  ;;  %v10046_v25 = vcombine.low %v5052_v9, %v5064_v31 }
 0x56b   :  { %v12744_v17 = vpop.f32.mrf.mxu1  ;;  %v12809_v60 = vpop.f32.mrf.mxu0  ;;  %v10024_v16 = vcombine.low %v5029_v5, %v5041_v47 }
 0x56c   :  { %v8352_v37 = vadd.f32 %v12743_v24, %v15765_v57  ;;  %v12810_v49 = vadd.f32 %v12809_v60, %v12808_v2  ;;  %v5053_v24 = vld [vmem:[#allocation5 + $0x598] sm:$0xff] }
 0x56d   :  { %v12745_v56 = vpop.f32.mrf.mxu1  ;;  %v12811_v19 = vpop.f32.mrf.mxu0 }
 0x56e   :  { %v12746_v7 = vadd.f32 %v12745_v56, %v12744_v17  ;;  %v15840_v53 = vadd.f32 %v12810_v49, %v8347_v32  ;;  %v10071_v56 = vcombine.high %v5076_v59, %v5076_v59 }
 0x56f   :  { %v12747_v45 = vpop.f32.mrf.mxu1  ;;  %v12812_v43 = vpop.f32.mrf.mxu0 }
 0x570   :  { %v8355_v40 = vadd.f32 %v12746_v7, %v15771_v61  ;;  %8766 = vmatmul.mubr.bf16.gmra.mxu1 %v9998_v54  ;;  %8862 = vmatmul.mubr.bf16.gmra.mxu0 %v9976_v39  ;;  %v12813_v63 = vadd.f32 %v12812_v43, %v12811_v19  ;;  %v10049_v54 = vcombine.high %v5053_v24, %v5065_v58 }
 0x571   :  { %v12748_v29 = vpop.f32.mrf.mxu1  ;;  %8773 = vmatprep.mubr.bf16.mxu1 %v10023_v36  ;;  %10268 = vmatprep.mubr.msk.bf16.mxu0 %vm7625_vm1, %v10001_v35  ;;  %v12814_v44 = vpop.f32.mrf.mxu0 }
 0x572   :  { %v12749_v57 = vadd.f32 %v12748_v29, %v12747_v45  ;;  %v15844_v14 = vadd.f32 %v12813_v63, %v8352_v37  ;;  %v5077_v29 = vld [vmem:[#allocation5 + $0x658] sm:$0x33] }
 0x573   :  { %v12750_v13 = vpop.f32.mrf.mxu1  ;;  %v12815_v61 = vpop.f32.mrf.mxu0  ;;  %v10073_v5 = vcombine.high %v5077_v29, %v5077_v29 }
 0x574   :  { %v8360_v8 = vadd.f32 %v12749_v57, %v15782_v41  ;;  %v12816_v22 = vadd.f32 %v12815_v61, %v12814_v44  ;;  %v10070_v44 = vcombine.low %v5076_v59, %v5076_v59 }
 0x575   :  { %v12751_v34 = vpop.f32.mrf.mxu1  ;;  %v12817_v3 = vpop.f32.mrf.mxu0 }
 0x576   :  { %v12752_v51 = vadd.f32 %v12751_v34, %v12750_v13  ;;  %v15847_v42 = vadd.f32 %v12816_v22, %v8355_v40  ;;  %v10048_v13 = vcombine.low %v5053_v24, %v5065_v58  ;;  %v10072_v22 = vcombine.low %v5077_v29, %v5077_v29 }
 0x577   :  { %v12753_v30 = vpop.f32.mrf.mxu1  ;;  %v12818_v21 = vpop.f32.mrf.mxu0 }
 0x578   :  { %v8363_v23 = vadd.f32 %v12752_v51, %v15787_v27  ;;  %8774 = vmatmul.mubr.bf16.gmra.mxu1 %v10022_v28  ;;  %8870 = vmatmul.mubr.bf16.gmra.mxu0 %v10000_v15  ;;  %v12819_v32 = vadd.f32 %v12818_v21, %v12817_v3 }
 0x579   :  { %v12754_v38 = vpop.f32.mrf.mxu1  ;;  %8781 = vmatprep.mubr.bf16.mxu1 %v10047_v55  ;;  %10269 = vmatprep.mubr.msk.bf16.mxu0 %vm7625_vm1, %v10025_v1  ;;  %v12820_v20 = vpop.f32.mrf.mxu0 }
 0x57a   :  { %v12755_v41 = vadd.f32 %v12754_v38, %v12753_v30  ;;  %v15851_v2 = vadd.f32 %v12819_v32, %v8360_v8 }
 0x57b   :  { %v12756_v46 = vpop.f32.mrf.mxu1  ;;  %v12821_v0 = vpop.f32.mrf.mxu0 }
 0x57c   :  { %v8368_v17 = vadd.f32 %v12755_v41, %v15790_v50  ;;  %v12822_v37 = vadd.f32 %v12821_v0, %v12820_v20 }
 0x57d   :  { %v12757_v27 = vpop.f32.mrf.mxu1  ;;  %v12823_v39 = vpop.f32.mrf.mxu0 }
 0x57e   :  { %v12758_v60 = vadd.f32 %v12757_v27, %v12756_v46  ;;  %v15854_v7 = vadd.f32 %v12822_v37, %v8363_v23 }
 0x57f   :  { %v12759_v49 = vpop.f32.mrf.mxu1  ;;  %v12824_v35 = vpop.f32.mrf.mxu0 }
 0x580   :  { %v8371_v36 = vadd.f32 %v12758_v60, %v15796_v4  ;;  %8782 = vmatmul.mubr.bf16.gmra.mxu1 %v10046_v25  ;;  %8878 = vmatmul.mubr.bf16.gmra.mxu0 %v10024_v16  ;;  %v12825_v45 = vadd.f32 %v12824_v35, %v12823_v39 }
 0x581   :  { %v12760_v19 = vpop.f32.mrf.mxu1  ;;  %8789 = vmatprep.mubr.bf16.mxu1 %v10071_v56  ;;  %10270 = vmatprep.mubr.msk.bf16.mxu0 %vm7625_vm1, %v10049_v54  ;;  %v12826_v40 = vpop.f32.mrf.mxu0 }
 0x582   :  { %v12761_v50 = vadd.f32 %v12760_v19, %v12759_v49  ;;  %v15858_v63 = vadd.f32 %v12825_v45, %v8368_v17 }
 0x583   :  { %v12762_v43 = vpop.f32.mrf.mxu1  ;;  %v12827_v9 = vpop.f32.mrf.mxu0 }
 0x584   :  { %v8376_v57 = vadd.f32 %v12761_v50, %v15800_v26  ;;  %v12828_v31 = vadd.f32 %v12827_v9, %v12826_v40 }
 0x585   :  { %v12763_v4 = vpop.f32.mrf.mxu1  ;;  %v12829_v47 = vpop.f32.mrf.mxu0 }
 0x586   :  { %v15861_v8 = vadd.f32 %v12828_v31, %v8371_v36 }
 0x587   :  { %v12830_v61 = vpop.f32.mrf.mxu0 }
 0x588   :  { %8790 = vmatmul.mubr.bf16.gmra.mxu1 %v10070_v44  ;;  %8886 = vmatmul.mubr.bf16.gmra.mxu0 %v10048_v13  ;;  %v12831_v34 = vadd.f32 %v12830_v61, %v12829_v47 }
 0x589   :  { %10271 = vmatprep.mubr.msk.bf16.mxu0 %vm7625_vm1, %v10073_v5  ;;  %v12832_v28 = vpop.f32.mrf.mxu0 }
 0x58a   :  { %v15864_v15 = vadd.f32 %v12831_v34, %v8376_v57 }
 0x58b   :  { %v12833_v26 = vpop.f32.mrf.mxu0 }
 0x58c   :  { %v12851_v51 = vpop.f32.mrf.mxu1 }
 0x58e   :  { %v12852_v55 = vpop.f32.mrf.mxu1 }
 0x58f   :  { %v12853_v1 = vadd.f32 %v12852_v55, %v12851_v51 }
 0x590   :  { %8894 = vmatmul.mubr.bf16.gmra.mxu0 %v10072_v22  ;;  %v12854_v3 = vpop.f32.mrf.mxu1 }
 0x591   :  { %v8520_v30 = vadd.f32 %v12853_v1, %v15807_v12 }
 0x592   :  { %v12855_v23 = vpop.f32.mrf.mxu1 }
 0x593   :  { %v12856_v21 = vadd.f32 %v12855_v23, %v12854_v3 }
 0x594   :  { %v12857_v38 = vpop.f32.mrf.mxu1 }
 0x595   :  { %v8523_v32 = vadd.f32 %v12856_v21, %v15812_v33 }
 0x596   :  { %v12858_v41 = vpop.f32.mrf.mxu1 }
 0x597   :  { %v12859_v20 = vadd.f32 %v12858_v41, %v12857_v38 }
 0x598   :  { %v12860_v46 = vpop.f32.mrf.mxu1 }
 0x599   :  { %v8528_v59 = vadd.f32 %v12859_v20, %v15816_v11 }
 0x59a   :  { %v12861_v24 = vpop.f32.mrf.mxu1 }
 0x59b   :  { %v12862_v58 = vadd.f32 %v12861_v24, %v12860_v46 }
 0x59c   :  { %v12921_v17 = vpop.f32.mrf.mxu0  ;;  %v12863_v0 = vpop.f32.mrf.mxu1 }
 0x59d   :  { %v8531_v27 = vadd.f32 %v12862_v58, %v15819_v6 }
 0x59e   :  { %v12922_v25 = vpop.f32.mrf.mxu0  ;;  %v12864_v16 = vpop.f32.mrf.mxu1 }
 0x59f   :  { %v12923_v37 = vadd.f32 %v12922_v25, %v12921_v17  ;;  %v12865_v12 = vadd.f32 %v12864_v16, %v12863_v0 }
 0x5a0   :  { %v12924_v60 = vpop.f32.mrf.mxu0  ;;  %v12866_v54 = vpop.f32.mrf.mxu1 }
 0x5a1   :  { %v15870_v56 = vadd.f32 %v12923_v37, %v8520_v30  ;;  %v8536_v33 = vadd.f32 %v12865_v12, %v15823_v62 }
 0x5a2   :  { %v12925_v39 = vpop.f32.mrf.mxu0  ;;  %v12867_v49 = vpop.f32.mrf.mxu1 }
 0x5a3   :  { %v12926_v36 = vadd.f32 %v12925_v39, %v12924_v60  ;;  %v12868_v11 = vadd.f32 %v12867_v49, %v12866_v54 }
 0x5a4   :  { %v12927_v35 = vpop.f32.mrf.mxu0  ;;  %v12869_v45 = vpop.f32.mrf.mxu1 }
 0x5a5   :  { %v15873_v19 = vadd.f32 %v12926_v36, %v8523_v32  ;;  %v8539_v6 = vadd.f32 %v12868_v11, %v15826_v10 }
 0x5a6   :  { %v12928_v50 = vpop.f32.mrf.mxu0  ;;  %v12870_v40 = vpop.f32.mrf.mxu1 }
 0x5a7   :  { %v12929_v43 = vadd.f32 %v12928_v50, %v12927_v35  ;;  %v12871_v29 = vadd.f32 %v12870_v40, %v12869_v45 }
 0x5a8   :  { %v12930_v57 = vpop.f32.mrf.mxu0  ;;  %v12872_v44 = vpop.f32.mrf.mxu1 }
 0x5a9   :  { %v15876_v9 = vadd.f32 %v12929_v43, %v8528_v59  ;;  %v8544_v62 = vadd.f32 %v12871_v29, %v15830_v18 }
 0x5aa   :  { %v12931_v13 = vpop.f32.mrf.mxu0  ;;  %v12873_v4 = vpop.f32.mrf.mxu1 }
 0x5ab   :  { %v12932_v31 = vadd.f32 %v12931_v13, %v12930_v57  ;;  %v12874_v5 = vadd.f32 %v12873_v4, %v12872_v44 }
 0x5ac   :  { %v12933_v47 = vpop.f32.mrf.mxu0  ;;  %v12875_v34 = vpop.f32.mrf.mxu1 }
 0x5ad   :  { %v15879_v61 = vadd.f32 %v12932_v31, %v8531_v27  ;;  %v8547_v10 = vadd.f32 %v12874_v5, %v15833_v52 }
 0x5ae   :  { %v12934_v28 = vpop.f32.mrf.mxu0  ;;  %v12876_v22 = vpop.f32.mrf.mxu1 }
 0x5af   :  { %v12935_v26 = vadd.f32 %v12934_v28, %v12933_v47  ;;  %v12877_v51 = vadd.f32 %v12876_v22, %v12875_v34 }
 0x5b0   :  { %v12936_v55 = vpop.f32.mrf.mxu0  ;;  %v12878_v3 = vpop.f32.mrf.mxu1 }
 0x5b1   :  { %v15882_v1 = vadd.f32 %v12935_v26, %v8536_v33  ;;  %v8552_v18 = vadd.f32 %v12877_v51, %v15837_v48 }
 0x5b2   :  { %v12937_v30 = vpop.f32.mrf.mxu0  ;;  %v12879_v23 = vpop.f32.mrf.mxu1 }
 0x5b3   :  { %v12938_v21 = vadd.f32 %v12937_v30, %v12936_v55  ;;  %v12880_v38 = vadd.f32 %v12879_v23, %v12878_v3 }
 0x5b4   :  { %v12939_v32 = vpop.f32.mrf.mxu0  ;;  %v12881_v20 = vpop.f32.mrf.mxu1 }
 0x5b5   :  { %v15885_v41 = vadd.f32 %v12938_v21, %v8539_v6  ;;  %v8555_v52 = vadd.f32 %v12880_v38, %v15840_v53 }
 0x5b6   :  { %v12940_v46 = vpop.f32.mrf.mxu0  ;;  %v12882_v59 = vpop.f32.mrf.mxu1 }
 0x5b7   :  { %v12941_v24 = vadd.f32 %v12940_v46, %v12939_v32  ;;  %v12883_v58 = vadd.f32 %v12882_v59, %v12881_v20 }
 0x5b8   :  { %v12942_v17 = vpop.f32.mrf.mxu0  ;;  %v12884_v27 = vpop.f32.mrf.mxu1 }
 0x5b9   :  { %v15888_v0 = vadd.f32 %v12941_v24, %v8544_v62  ;;  %v8560_v48 = vadd.f32 %v12883_v58, %v15844_v14 }
 0x5ba   :  { %v12943_v25 = vpop.f32.mrf.mxu0  ;;  %v12885_v16 = vpop.f32.mrf.mxu1 }
 0x5bb   :  { %v12944_v37 = vadd.f32 %v12943_v25, %v12942_v17  ;;  %v12886_v12 = vadd.f32 %v12885_v16, %v12884_v27 }
 0x5bc   :  { %v12945_v60 = vpop.f32.mrf.mxu0  ;;  %v12887_v33 = vpop.f32.mrf.mxu1 }
 0x5bd   :  { %v15891_v54 = vadd.f32 %v12944_v37, %v8547_v10  ;;  %v8563_v53 = vadd.f32 %v12886_v12, %v15847_v42 }
 0x5be   :  { %v12946_v39 = vpop.f32.mrf.mxu0  ;;  %v12888_v49 = vpop.f32.mrf.mxu1 }
 0x5bf   :  { %v12947_v36 = vadd.f32 %v12946_v39, %v12945_v60  ;;  %v12889_v11 = vadd.f32 %v12888_v49, %v12887_v33 }
 0x5c0   :  { %v12948_v35 = vpop.f32.mrf.mxu0  ;;  %v12890_v6 = vpop.f32.mrf.mxu1 }
 0x5c1   :  { %v15894_v45 = vadd.f32 %v12947_v36, %v8552_v18  ;;  %v8568_v14 = vadd.f32 %v12889_v11, %v15851_v2 }
 0x5c2   :  { %v12949_v50 = vpop.f32.mrf.mxu0  ;;  %v12891_v40 = vpop.f32.mrf.mxu1 }
 0x5c3   :  { %v12950_v43 = vadd.f32 %v12949_v50, %v12948_v35  ;;  %v12892_v29 = vadd.f32 %v12891_v40, %v12890_v6 }
 0x5c4   :  { %v12951_v57 = vpop.f32.mrf.mxu0  ;;  %v12893_v62 = vpop.f32.mrf.mxu1 }
 0x5c5   :  { %v15897_v44 = vadd.f32 %v12950_v43, %v8555_v52  ;;  %v8571_v42 = vadd.f32 %v12892_v29, %v15854_v7 }
 0x5c6   :  { %v12952_v13 = vpop.f32.mrf.mxu0  ;;  %v12894_v4 = vpop.f32.mrf.mxu1 }
 0x5c7   :  { %v12953_v31 = vadd.f32 %v12952_v13, %v12951_v57  ;;  %v12895_v5 = vadd.f32 %v12894_v4, %v12893_v62 }
 0x5c8   :  { %v12954_v47 = vpop.f32.mrf.mxu0  ;;  %v12896_v10 = vpop.f32.mrf.mxu1 }
 0x5c9   :  { %v15900_v34 = vadd.f32 %v12953_v31, %v8560_v48  ;;  %v8576_v2 = vadd.f32 %v12895_v5, %v15858_v63 }
 0x5ca   :  { %v12955_v28 = vpop.f32.mrf.mxu0  ;;  %v12897_v22 = vpop.f32.mrf.mxu1 }
 0x5cb   :  { %v12956_v26 = vadd.f32 %v12955_v28, %v12954_v47  ;;  %v12898_v51 = vadd.f32 %v12897_v22, %v12896_v10 }
 0x5cc   :  { %v12957_v55 = vpop.f32.mrf.mxu0  ;;  %v12899_v18 = vpop.f32.mrf.mxu1 }
 0x5cd   :  { %v15903_v3 = vadd.f32 %v12956_v26, %v8563_v53  ;;  %v8579_v7 = vadd.f32 %v12898_v51, %v15861_v8 }
 0x5ce   :  { %v12958_v30 = vpop.f32.mrf.mxu0  ;;  %v12900_v23 = vpop.f32.mrf.mxu1 }
 0x5cf   :  { %v12959_v21 = vadd.f32 %v12958_v30, %v12957_v55  ;;  %v12901_v38 = vadd.f32 %v12900_v23, %v12899_v18 }
 0x5d0   :  { %v12960_v32 = vpop.f32.mrf.mxu0  ;;  %v12902_v52 = vpop.f32.mrf.mxu1 }
 0x5d1   :  { %v15906_v20 = vadd.f32 %v12959_v21, %v8568_v14  ;;  %v8584_v63 = vadd.f32 %v12901_v38, %v15864_v15 }
 0x5d2   :  { %v12961_v46 = vpop.f32.mrf.mxu0  ;;  %v12903_v24 = vpop.f32.mrf.mxu1 }
 0x5d3   :  { %v12962_v59 = vadd.f32 %v12961_v46, %v12960_v32 }
 0x5d4   :  { %v12963_v58 = vpop.f32.mrf.mxu0 }
 0x5d5   :  { %v15909_v17 = vadd.f32 %v12962_v59, %v8571_v42 }
 0x5d6   :  { %v12964_v27 = vpop.f32.mrf.mxu0 }
 0x5d7   :  { %v12965_v48 = vadd.f32 %v12964_v27, %v12963_v58 }
 0x5d8   :  { %v12966_v25 = vpop.f32.mrf.mxu0 }
 0x5d9   :  { %v15911_v8 = vadd.f32 %v12965_v48, %v8576_v2 }
 0x5da   :  { %v12967_v16 = vpop.f32.mrf.mxu0 }
 0x5db   :  { %v12968_v37 = vadd.f32 %v12967_v16, %v12966_v25 }
 0x5dc   :  { %v12969_v12 = vpop.f32.mrf.mxu0 }
 0x5dd   :  { %v15913_v60 = vadd.f32 %v12968_v37, %v8579_v7 }
 0x5de   :  { %v12970_v33 = vpop.f32.mrf.mxu0 }
 0x5df   :  { %v12971_v53 = vadd.f32 %v12970_v33, %v12969_v12 }
 0x5e0   :  { %v12972_v39 = vpop.f32.mrf.mxu0 }
 0x5e1   :  { %v15915_v15 = vadd.f32 %v12971_v53, %v8584_v63 }
 0x5e2   :  { %v12973_v49 = vpop.f32.mrf.mxu0 }
 0x608   :  { %v12991_v36 = vpop.f32.mrf.mxu1 }
 0x60a   :  { %v12992_v11 = vpop.f32.mrf.mxu1 }
 0x60b   :  { %v12993_v35 = vadd.f32 %v12992_v11, %v12991_v36 }
 0x60c   :  { %v12994_v6 = vpop.f32.mrf.mxu1 }
 0x60d   :  { %v8728_v40 = vadd.f32 %v12993_v35, %v15870_v56 }
 0x60e   :  { %v12995_v14 = vpop.f32.mrf.mxu1 }
 0x60f   :  { %v12996_v50 = vadd.f32 %v12995_v14, %v12994_v6 }
 0x610   :  { %v12997_v43 = vpop.f32.mrf.mxu1  ;;  %v8831_v29 = vpop.f32.mrf.mxu0 }
 0x611   :  { %v15918_v57 = vadd.f32 %v8831_v29, %v8728_v40  ;;  %v8731_v4 = vadd.f32 %v12996_v50, %v15873_v19 }
 0x612   :  { %v12998_v62 = vpop.f32.mrf.mxu1  ;;  %v8833_v42 = vpop.f32.mrf.mxu0 }
 0x613   :  { %v12999_v13 = vadd.f32 %v12998_v62, %v12997_v43  ;;  %8901 = vadd.xlane.f32.xlu1 %v15918_v57 }
 0x614   :  { %v13000_v31 = vpop.f32.mrf.mxu1  ;;  %v8834_v5 = vpop.f32.mrf.mxu0 }
 0x615   :  { %v15922_v47 = vadd.f32 %v8834_v5, %v8731_v4  ;;  %v8736_v56 = vadd.f32 %v12999_v13, %v15876_v9 }
 0x616   :  { %v13001_v10 = vpop.f32.mrf.mxu1  ;;  %v8836_v2 = vpop.f32.mrf.mxu0 }
 0x617   :  { %v13002_v28 = vadd.f32 %v13001_v10, %v13000_v31  ;;  %8903 = vadd.xlane.f32.xlu0 %v15922_v47 }
 0x618   :  { %v13003_v22 = vpop.f32.mrf.mxu1  ;;  %v8839_v26 = vpop.f32.mrf.mxu0 }
 0x619   :  { %v15926_v51 = vadd.f32 %v8839_v26, %v8736_v56  ;;  %v8739_v19 = vadd.f32 %v13002_v28, %v15879_v61 }
 0x61a   :  { %v13004_v55 = vpop.f32.mrf.mxu1  ;;  %v8841_v18 = vpop.f32.mrf.mxu0 }
 0x61b   :  { %v13005_v7 = vadd.f32 %v13004_v55, %v13003_v22  ;;  %8905 = vadd.xlane.f32.xlu0 %v15926_v51 }
 0x61c   :  { %v13006_v30 = vpop.f32.mrf.mxu1  ;;  %v8842_v23 = vpop.f32.mrf.mxu0 }
 0x61d   :  { %v15930_v21 = vadd.f32 %v8842_v23, %v8739_v19  ;;  %v8744_v9 = vadd.f32 %v13005_v7, %v15882_v1 }
 0x61e   :  { %v13007_v38 = vpop.f32.mrf.mxu1  ;;  %v8844_v32 = vpop.f32.mrf.mxu0 }
 0x61f   :  { %v13008_v52 = vadd.f32 %v13007_v38, %v13006_v30  ;;  %8907 = vadd.xlane.f32.xlu1 %v15930_v21 }
 0x620   :  { %v13009_v63 = vpop.f32.mrf.mxu1  ;;  %v8847_v46 = vpop.f32.mrf.mxu0 }
 0x621   :  { %v15934_v59 = vadd.f32 %v8847_v46, %v8744_v9  ;;  %v8747_v61 = vadd.f32 %v13008_v52, %v15885_v41 }
 0x622   :  { %v13010_v24 = vpop.f32.mrf.mxu1  ;;  %v8849_v58 = vpop.f32.mrf.mxu0 }
 0x623   :  { %v13011_v27 = vadd.f32 %v13010_v24, %v13009_v63  ;;  %8909 = vadd.xlane.f32.xlu0 %v15934_v59 }
 0x624   :  { %v13012_v48 = vpop.f32.mrf.mxu1  ;;  %v8850_v25 = vpop.f32.mrf.mxu0 }
 0x625   :  { %v15938_v16 = vadd.f32 %v8850_v25, %v8747_v61  ;;  %v8752_v1 = vadd.f32 %v13011_v27, %v15888_v0 }
 0x626   :  { %v13013_v37 = vpop.f32.mrf.mxu1  ;;  %v8852_v12 = vpop.f32.mrf.mxu0 }
 0x627   :  { %v13014_v33 = vadd.f32 %v13013_v37, %v13012_v48  ;;  %8911 = vadd.xlane.f32.xlu1 %v15938_v16 }
 0x628   :  { %v13015_v53 = vpop.f32.mrf.mxu1  ;;  %v8855_v39 = vpop.f32.mrf.mxu0 }
 0x629   :  { %v15942_v49 = vadd.f32 %v8855_v39, %v8752_v1  ;;  %v8755_v41 = vadd.f32 %v13014_v33, %v15891_v54 }
 0x62a   :  { %v13016_v36 = vpop.f32.mrf.mxu1  ;;  %v8857_v11 = vpop.f32.mrf.mxu0 }
 0x62b   :  { %v13017_v35 = vadd.f32 %v13016_v36, %v13015_v53  ;;  %8913 = vadd.xlane.f32.xlu0 %v15942_v49 }
 0x62c   :  { %v13018_v6 = vpop.f32.mrf.mxu1  ;;  %v8858_v14 = vpop.f32.mrf.mxu0 }
 0x62d   :  { %v15946_v50 = vadd.f32 %v8858_v14, %v8755_v41  ;;  %v8760_v0 = vadd.f32 %v13017_v35, %v15894_v45 }
 0x62e   :  { %v13019_v40 = vpop.f32.mrf.mxu1  ;;  %v8860_v43 = vpop.f32.mrf.mxu0 }
 0x62f   :  { %v13020_v29 = vadd.f32 %v13019_v40, %v13018_v6  ;;  %8915 = vadd.xlane.f32.xlu1 %v15946_v50 }
 0x630   :  { %v13021_v62 = vpop.f32.mrf.mxu1  ;;  %v8863_v42 = vpop.f32.mrf.mxu0 }
 0x631   :  { %v15950_v13 = vadd.f32 %v8863_v42, %v8760_v0  ;;  %v8763_v54 = vadd.f32 %v13020_v29, %v15897_v44 }
 0x632   :  { %v13022_v4 = vpop.f32.mrf.mxu1  ;;  %v8865_v31 = vpop.f32.mrf.mxu0 }
 0x633   :  { %v13023_v5 = vadd.f32 %v13022_v4, %v13021_v62  ;;  %8917 = vadd.xlane.f32.xlu0 %v15950_v13 }
 0x634   :  { %v13024_v10 = vpop.f32.mrf.mxu1  ;;  %v8866_v2 = vpop.f32.mrf.mxu0 }
 0x635   :  { %v15954_v28 = vadd.f32 %v8866_v2, %v8763_v54  ;;  %v8768_v45 = vadd.f32 %v13023_v5, %v15900_v34 }
 0x636   :  { %v13025_v56 = vpop.f32.mrf.mxu1  ;;  %v8868_v22 = vpop.f32.mrf.mxu0 }
 0x637   :  { %v13026_v26 = vadd.f32 %v13025_v56, %v13024_v10  ;;  %8919 = vadd.xlane.f32.xlu1 %v15954_v28 }
 0x638   :  { %v13027_v55 = vpop.f32.mrf.mxu1  ;;  %v8871_v18 = vpop.f32.mrf.mxu0 }
 0x639   :  { %v15958_v7 = vadd.f32 %v8871_v18, %v8768_v45  ;;  %v8771_v44 = vadd.f32 %v13026_v26, %v15903_v3 }
 0x63a   :  { %v13028_v19 = vpop.f32.mrf.mxu1  ;;  %v8873_v30 = vpop.f32.mrf.mxu0 }
 0x63b   :  { %v13029_v23 = vadd.f32 %v13028_v19, %v13027_v55  ;;  %8921 = vadd.xlane.f32.xlu0 %v15958_v7 }
 0x63c   :  { %v13030_v38 = vpop.f32.mrf.mxu1  ;;  %v8874_v32 = vpop.f32.mrf.mxu0 }
 0x63d   :  { %v15962_v52 = vadd.f32 %v8874_v32, %v8771_v44  ;;  %v8776_v34 = vadd.f32 %v13029_v23, %v15906_v20 }
 0x63e   :  { %v13031_v9 = vpop.f32.mrf.mxu1  ;;  %v8876_v63 = vpop.f32.mrf.mxu0 }
 0x63f   :  { %v13032_v46 = vadd.f32 %v13031_v9, %v13030_v38  ;;  %8923 = vadd.xlane.f32.xlu1 %v15962_v52 }
 0x640   :  { %v13033_v24 = vpop.f32.mrf.mxu1  ;;  %v8879_v58 = vpop.f32.mrf.mxu0 }
 0x641   :  { %v15966_v27 = vadd.f32 %v8879_v58, %v8776_v34  ;;  %v8779_v3 = vadd.f32 %v13032_v46, %v15909_v17 }
 0x642   :  { %v13034_v61 = vpop.f32.mrf.mxu1  ;;  %v8881_v48 = vpop.f32.mrf.mxu0 }
 0x643   :  { %8925 = vadd.xlane.f32.xlu0 %v15966_v27  ;;  %v13035_v0 = vadd.f32 %v13034_v61, %v13033_v24 }
 0x644   :  { %v13036_v25 = vpop.f32.mrf.mxu1  ;;  %v8882_v37 = vpop.f32.mrf.mxu0 }
 0x645   :  { %v15970_v12 = vadd.f32 %v8882_v37, %v8779_v3 }
 0x646   :  { %v13037_v33 = vpop.f32.mrf.mxu1  ;;  %v8884_v1 = vpop.f32.mrf.mxu0 }
 0x647   :  { %v13038_v53 = vadd.f32 %v13037_v33, %v13036_v25  ;;  %8927 = vadd.xlane.f32.xlu1 %v15970_v12 }
 0x648   :  { %v13039_v20 = vpop.f32.mrf.mxu1  ;;  %v8887_v39 = vpop.f32.mrf.mxu0 }
 0x649   :  { %v8787_v41 = vadd.f32 %v13038_v53, %v15913_v60  ;;  %v8784_v60 = vadd.f32 %v13035_v0, %v15911_v8 }
 0x64a   :  { %v13040_v36 = vpop.f32.mrf.mxu1  ;;  %v8889_v11 = vpop.f32.mrf.mxu0 }
 0x64b   :  { %v13041_v35 = vadd.f32 %v13040_v36, %v13039_v20  ;;  %v15983_v54 = vadd.f32 %v8887_v39, %v8784_v60 }
 0x64c   :  { %v13042_v6 = vpop.f32.mrf.mxu1  ;;  %v8890_v14 = vpop.f32.mrf.mxu0 }
 0x64d   :  { %v15974_v40 = vadd.f32 %v8890_v14, %v8787_v41  ;;  %v8792_v29 = vadd.f32 %v13041_v35, %v15915_v15 }
 0x64e   :  { %v13043_v17 = vpop.f32.mrf.mxu1  ;;  %v8892_v43 = vpop.f32.mrf.mxu0 }
 0x64f   :  { %8931 = vadd.xlane.f32.xlu1 %v15974_v40 }
 0x650   :  { %v8895_v62 = vpop.f32.mrf.mxu0 }
 0x651   :  { %v15978_v42 = vadd.f32 %v8895_v62, %v8792_v29 }
 0x652   :  { %v8897_v4 = vpop.f32.mrf.mxu0 }
 0x653   :  { %v8934_v31 = vsel %vm8933_vm2, %v15978_v42, 0.0 }
 0x654   :  { %v8898_v5 = vpop.f32.mrf.mxu0  ;;  %8935 = vadd.xlane.f32.xlu0 %v8934_v31 }
 0x656   :  { %v8899_v10 = vpop.f32.mrf.mxu0 }
 0x658   :  { %8929 = vadd.xlane.f32.xlu0 %v15983_v54 }
 0x69c   :  { %v8902_v2 = vpop.xlane.xlu1 %8901 }
 0x69d   :  { %v8938_v15 = vmul.f32 0.0078125, %v8902_v2 }
 0x69f   :  { %v15987_v56 = vsub.f32 %v15918_v57, %v8938_v15 }
 0x6a0   :  { %v8904_v22 = vpop.xlane.xlu0 %8903 }
 0x6a1   :  { %v8939_v26 = vmul.f32 0.0078125, %v8904_v22  ;;  %v8972_v45 = vmul.f32 %v15987_v56, %v15987_v56 }
 0x6a3   :  { %v15992_v55 = vsub.f32 %v15922_v47, %v8939_v26  ;;  %8989 = vadd.xlane.f32.xlu0 %v8972_v45 }
 0x6a4   :  { %v8906_v8 = vpop.xlane.xlu0 %8905 }
 0x6a5   :  { %v8940_v18 = vmul.f32 0.0078125, %v8906_v8  ;;  %v8973_v19 = vmul.f32 %v15992_v55, %v15992_v55 }
 0x6a7   :  { %v15997_v30 = vsub.f32 %v15926_v51, %v8940_v18  ;;  %8991 = vadd.xlane.f32.xlu1 %v8973_v19 }
 0x6a8   :  { %v8908_v57 = vpop.xlane.xlu1 %8907 }
 0x6a9   :  { %v8941_v23 = vmul.f32 0.0078125, %v8908_v57  ;;  %v8974_v44 = vmul.f32 %v15997_v30, %v15997_v30 }
 0x6ab   :  { %v16002_v38 = vsub.f32 %v15930_v21, %v8941_v23  ;;  %8993 = vadd.xlane.f32.xlu0 %v8974_v44 }
 0x6ac   :  { %v8910_v47 = vpop.xlane.xlu0 %8909 }
 0x6ad   :  { %v8942_v32 = vmul.f32 0.0078125, %v8910_v47  ;;  %v8975_v9 = vmul.f32 %v16002_v38, %v16002_v38 }
 0x6af   :  { %v16007_v63 = vsub.f32 %v15934_v59, %v8942_v32  ;;  %8995 = vadd.xlane.f32.xlu1 %v8975_v9 }
 0x6b0   :  { %v8912_v51 = vpop.xlane.xlu1 %8911 }
 0x6b1   :  { %v8943_v46 = vmul.f32 0.0078125, %v8912_v51  ;;  %v8976_v34 = vmul.f32 %v16007_v63, %v16007_v63 }
 0x6b3   :  { %v16012_v24 = vsub.f32 %v15938_v16, %v8943_v46  ;;  %8997 = vadd.xlane.f32.xlu0 %v8976_v34 }
 0x6b4   :  { %v8914_v21 = vpop.xlane.xlu0 %8913 }
 0x6b5   :  { %v8944_v58 = vmul.f32 0.0078125, %v8914_v21  ;;  %v8977_v61 = vmul.f32 %v16012_v24, %v16012_v24 }
 0x6b7   :  { %v16017_v48 = vsub.f32 %v15942_v49, %v8944_v58  ;;  %8999 = vadd.xlane.f32.xlu1 %v8977_v61 }
 0x6b8   :  { %v8916_v59 = vpop.xlane.xlu1 %8915 }
 0x6b9   :  { %v8945_v3 = vmul.f32 0.0078125, %v8916_v59  ;;  %v8978_v25 = vmul.f32 %v16017_v48, %v16017_v48 }
 0x6bb   :  { %v16022_v37 = vsub.f32 %v15946_v50, %v8945_v3  ;;  %9001 = vadd.xlane.f32.xlu0 %v8978_v25 }
 0x6bc   :  { %v8918_v16 = vpop.xlane.xlu0 %8917 }
 0x6bd   :  { %v8946_v33 = vmul.f32 0.0078125, %v8918_v16  ;;  %v8979_v1 = vmul.f32 %v16022_v37, %v16022_v37 }
 0x6bf   :  { %v16027_v53 = vsub.f32 %v15950_v13, %v8946_v33  ;;  %9003 = vadd.xlane.f32.xlu1 %v8979_v1 }
 0x6c0   :  { %v8920_v49 = vpop.xlane.xlu1 %8919 }
 0x6c1   :  { %v8947_v20 = vmul.f32 0.0078125, %v8920_v49  ;;  %v8980_v39 = vmul.f32 %v16027_v53, %v16027_v53 }
 0x6c3   :  { %v16032_v36 = vsub.f32 %v15954_v28, %v8947_v20  ;;  %9005 = vadd.xlane.f32.xlu0 %v8980_v39 }
 0x6c4   :  { %v8922_v50 = vpop.xlane.xlu0 %8921 }
 0x6c5   :  { %v8948_v11 = vmul.f32 0.0078125, %v8922_v50  ;;  %v8981_v35 = vmul.f32 %v16032_v36, %v16032_v36 }
 0x6c7   :  { %v16037_v41 = vsub.f32 %v15958_v7, %v8948_v11  ;;  %9007 = vadd.xlane.f32.xlu1 %v8981_v35 }
 0x6c8   :  { %v8924_v13 = vpop.xlane.xlu1 %8923 }
 0x6c9   :  { %v8949_v6 = vmul.f32 0.0078125, %v8924_v13  ;;  %v8982_v14 = vmul.f32 %v16037_v41, %v16037_v41 }
 0x6cb   :  { %v16042_v17 = vsub.f32 %v15962_v52, %v8949_v6  ;;  %9009 = vadd.xlane.f32.xlu0 %v8982_v14 }
 0x6cc   :  { %v8926_v28 = vpop.xlane.xlu0 %8925 }
 0x6cd   :  { %v8950_v43 = vmul.f32 0.0078125, %v8926_v28  ;;  %v8983_v29 = vmul.f32 %v16042_v17, %v16042_v17 }
 0x6cf   :  { %v16047_v0 = vsub.f32 %v15966_v27, %v8950_v43  ;;  %9011 = vadd.xlane.f32.xlu1 %v8983_v29 }
 0x6d0   :  { %v8928_v7 = vpop.xlane.xlu1 %8927 }
 0x6d1   :  { %v8951_v62 = vmul.f32 0.0078125, %v8928_v7  ;;  %v8984_v4 = vmul.f32 %v16047_v0, %v16047_v0 }
 0x6d3   :  { %v16052_v31 = vsub.f32 %v15970_v12, %v8951_v62  ;;  %9013 = vadd.xlane.f32.xlu0 %v8984_v4 }
 0x6d5   :  { %v8985_v52 = vmul.f32 %v16052_v31, %v16052_v31 }
 0x6d7   :  { %9015 = vadd.xlane.f32.xlu1 %v8985_v52 }
 0x6d8   :  { %v8932_v60 = vpop.xlane.xlu1 %8931 }
 0x6d9   :  { %v8953_v5 = vmul.f32 0.0078125, %v8932_v60 }
 0x6db   :  { %v16057_v10 = vsub.f32 %v15974_v40, %v8953_v5 }
 0x6dd   :  { %v8936_v27 = vpop.xlane.xlu0 %8935  ;;  %v8987_v2 = vmul.f32 %v16057_v10, %v16057_v10 }
 0x6de   :  { %v8954_v15 = vmul.f32 0.0078125, %v8936_v27 }
 0x6df   :  { %9019 = vadd.xlane.f32.xlu1 %v8987_v2 }
 0x6e0   :  { %v16062_v12 = vsub.f32 %v15978_v42, %v8954_v15 }
 0x6e1   :  { %v8930_v22 = vpop.xlane.xlu0 %8929 }
 0x6e2   :  { %v8952_v26 = vmul.f32 0.0078125, %v8930_v22  ;;  %v8988_v40 = vmul.f32 %v16062_v12, %v16062_v12 }
 0x6e4   :  { %v16065_v45 = vsub.f32 %v15983_v54, %v8952_v26  ;;  %v9021_v18 = vsel %vm8933_vm2, %v8988_v40, 0.0 }
 0x6e6   :  { %v8986_v8 = vmul.f32 %v16065_v45, %v16065_v45 }
 0x6e8   :  { %9017 = vadd.xlane.f32.xlu0 %v8986_v8 }
 0x6ec   :  { %9022 = vadd.xlane.f32.xlu0 %v9021_v18 }
 0x72c   :  { %v8990_v19 = vpop.xlane.xlu0 %8989 }
 0x72d   :  { %v9024_v57 = vmul.f32 0.0078125, %v8990_v19 }
 0x72f   :  { %v9041_v23 = vadd.f32 1e-05, %v9024_v57 }
 0x730   :  { %v8992_v44 = vpop.xlane.xlu1 %8991 }
 0x731   :  { %13424 = vrsqrt.f32 %v9041_v23  ;;  %v9025_v42 = vmul.f32 0.0078125, %v8992_v44 }
 0x733   :  { %v9042_v47 = vadd.f32 1e-05, %v9025_v42 }
 0x734   :  { %v8994_v32 = vpop.xlane.xlu0 %8993 }
 0x735   :  { %13426 = vrsqrt.f32 %v9042_v47  ;;  %v9026_v54 = vmul.f32 0.0078125, %v8994_v32 }
 0x737   :  { %v9043_v9 = vadd.f32 1e-05, %v9026_v54 }
 0x738   :  { %v8996_v51 = vpop.xlane.xlu1 %8995 }
 0x739   :  { %13428 = vrsqrt.f32 %v9043_v9  ;;  %v9027_v46 = vmul.f32 0.0078125, %v8996_v51 }
 0x73b   :  { %v9044_v34 = vadd.f32 1e-05, %v9027_v46 }
 0x73c   :  { %v8998_v21 = vpop.xlane.xlu0 %8997 }
 0x73d   :  { %13430 = vrsqrt.f32 %v9044_v34  ;;  %v9028_v58 = vmul.f32 0.0078125, %v8998_v21 }
 0x73e   :  { %v13425_v61 = vpop.eup %13424 }
 0x73f   :  { %v9075_v59 = vmul.f32 %v13425_v61, %v15987_v56  ;;  %v9045_v3 = vadd.f32 1e-05, %v9028_v58 }
 0x740   :  { %v9000_v25 = vpop.xlane.xlu1 %8999 }
 0x741   :  { %v9092_v16 = vmin.f32 %v9075_v59, 0.0  ;;  %13432 = vrsqrt.f32 %v9045_v3  ;;  %v9029_v33 = vmul.f32 0.0078125, %v9000_v25  ;;  %vm9177_vm3 = vcmp.gt.f32.partialorder %v9075_v59, 0.0 }
 0x742   :  { %v13427_v1 = vpop.eup %13426 }
 0x743   :  { %v9109_v49 = vmul.f32 1.442695, %v9092_v16  ;;  %v16074_v20 = vmul.f32 %v13427_v1, %v15992_v55  ;;  %v9046_v39 = vadd.f32 1e-05, %v9029_v33 }
 0x744   :  { %v9002_v50 = vpop.xlane.xlu0 %9001 }
 0x745   :  { %13434 = vpow2.f32 %v9109_v49  ;;  %v9093_v11 = vmin.f32 %v16074_v20, 0.0  ;;  %v9030_v35 = vmul.f32 0.0078125, %v9002_v50  ;;  %vm9178_vm4 = vcmp.gt.f32.partialorder %v16074_v20, 0.0 }
 0x746   :  { %v13429_v13 = vpop.eup %13428  ;;  %13436 = vrsqrt.f32 %v9046_v39 }
 0x747   :  { %v9111_v6 = vmul.f32 1.442695, %v9093_v11  ;;  %v16078_v56 = vmul.f32 %v13429_v13, %v15997_v30  ;;  %v9047_v14 = vadd.f32 1e-05, %v9030_v35 }
 0x748   :  { %v9004_v28 = vpop.xlane.xlu1 %9003 }
 0x749   :  { %13438 = vpow2.f32 %v9111_v6  ;;  %v9094_v43 = vmin.f32 %v16078_v56, 0.0  ;;  %v9031_v29 = vmul.f32 0.0078125, %v9004_v28  ;;  %vm9179_vm5 = vcmp.gt.f32.partialorder %v16078_v56, 0.0 }
 0x74a   :  { %v13431_v55 = vpop.eup %13430  ;;  %13440 = vrsqrt.f32 %v9047_v14 }
 0x74b   :  { %v9113_v7 = vmul.f32 1.442695, %v9094_v43  ;;  %v16082_v62 = vmul.f32 %v13431_v55, %v16002_v38  ;;  %v9048_v4 = vadd.f32 1e-05, %v9031_v29 }
 0x74c   :  { %v9006_v52 = vpop.xlane.xlu0 %9005 }
 0x74d   :  { %13442 = vpow2.f32 %v9113_v7  ;;  %v9095_v60 = vmin.f32 %v16082_v62, 0.0  ;;  %v9032_v5 = vmul.f32 0.0078125, %v9006_v52  ;;  %vm9180_vm6 = vcmp.gt.f32.partialorder %v16082_v62, 0.0 }
 0x74e   :  { %v13433_v30 = vpop.eup %13432  ;;  %13444 = vrsqrt.f32 %v9048_v4 }
 0x74f   :  { %v9115_v27 = vmul.f32 1.442695, %v9095_v60  ;;  %v16086_v2 = vmul.f32 %v13433_v30, %v16007_v63  ;;  %v9049_v15 = vadd.f32 1e-05, %v9032_v5 }
 0x750   :  { %v9008_v22 = vpop.xlane.xlu1 %9007 }
 0x751   :  { %13446 = vpow2.f32 %v9115_v27  ;;  %v9096_v26 = vmin.f32 %v16086_v2, 0.0  ;;  %v9033_v8 = vmul.f32 0.0078125, %v9008_v22  ;;  %vm9181_vm7 = vcmp.gt.f32.partialorder %v16086_v2, 0.0 }
 0x752   :  { %v13435_v38 = vpop.eup %13434  ;;  %13448 = vrsqrt.f32 %v9049_v15 }
 0x753   :  { %v13437_v40 = vpop.eup %13436  ;;  %v10272_v18 = vadd.f32 -1.0, %v13435_v38  ;;  %v9117_v19 = vmul.f32 1.442695, %v9096_v26  ;;  %v9050_v57 = vadd.f32 1e-05, %v9033_v8 }
 0x754   :  { %v16090_v23 = vmul.f32 %v13437_v40, %v16012_v24  ;;  %v9010_v44 = vpop.xlane.xlu0 %9009 }
 0x755   :  { %v9160_v42 = vmul.f32 1.6732632, %v10272_v18  ;;  %13450 = vpow2.f32 %v9117_v19  ;;  %v9034_v63 = vmul.f32 0.0078125, %v9010_v44 }
 0x756   :  { %v13439_v47 = vpop.eup %13438  ;;  %v9097_v32 = vmin.f32 %v16090_v23, 0.0  ;;  %13452 = vrsqrt.f32 %v9050_v57  ;;  %vm9182_vm8 = vcmp.gt.f32.partialorder %v16090_v23, 0.0 }
 0x757   :  { %v13441_v54 = vpop.eup %13440  ;;  %v9194_v9 = vsel %vm9177_vm3, %v9075_v59, %v9160_v42  ;;  %v10273_v51 = vadd.f32 -1.0, %v13439_v47  ;;  %v9051_v46 = vadd.f32 1e-05, %v9034_v63 }
 0x758   :  { %v9211_v34 = vmul.f32 1.050701, %v9194_v9  ;;  %v9119_v21 = vmul.f32 1.442695, %v9097_v32  ;;  %v16094_v58 = vmul.f32 %v13441_v54, %v16017_v48  ;;  %v9012_v24 = vpop.xlane.xlu1 %9011 }
 0x759   :  { %v9161_v61 = vmul.f32 1.6732632, %v10273_v51  ;;  %13454 = vrsqrt.f32 %v9051_v46  ;;  %v9035_v3 = vmul.f32 0.0078125, %v9012_v24 }
 0x75a   :  { %v13443_v25 = vpop.eup %13442  ;;  %9228 = vst [vmem:[%s16209_s4] sm:$0xff] %v9211_v34  ;;  %13456 = vpow2.f32 %v9119_v21  ;;  %v9098_v59 = vmin.f32 %v16094_v58, 0.0  ;;  %vm9183_vm9 = vcmp.gt.f32.partialorder %v16094_v58, 0.0 }
 0x75b   :  { %v13445_v16 = vpop.eup %13444  ;;  %v9195_v33 = vsel %vm9178_vm4, %v16074_v20, %v9161_v61  ;;  %v10274_v1 = vadd.f32 -1.0, %v13443_v25  ;;  %v9052_v48 = vadd.f32 1e-05, %v9035_v3 }
 0x75c   :  { %v9212_v49 = vmul.f32 1.050701, %v9195_v33  ;;  %v9121_v39 = vmul.f32 1.442695, %v9098_v59  ;;  %v16103_v50 = vmul.f32 %v13445_v16, %v16022_v37  ;;  %v9014_v11 = vpop.xlane.xlu0 %9013 }
 0x75d   :  { %v9162_v35 = vmul.f32 1.6732632, %v10274_v1  ;;  %13458 = vrsqrt.f32 %v9052_v48  ;;  %v9036_v13 = vmul.f32 0.0078125, %v9014_v11 }
 0x75e   :  { %v13447_v6 = vpop.eup %13446  ;;  %9229 = vst [vmem:[%s16209_s4 + $0x8] sm:$0xff] %v9212_v49  ;;  %13460 = vpow2.f32 %v9121_v39  ;;  %v9099_v20 = vmin.f32 %v16103_v50, 0.0  ;;  %vm9184_vm10 = vcmp.gt.f32.partialorder %v16103_v50, 0.0 }
 0x75f   :  { %v13449_v14 = vpop.eup %13448  ;;  %v9196_v28 = vsel %vm9179_vm5, %v16078_v56, %v9162_v35  ;;  %v10275_v43 = vadd.f32 -1.0, %v13447_v6  ;;  %v9053_v37 = vadd.f32 1e-05, %v9036_v13 }
 0x760   :  { %v9213_v29 = vmul.f32 1.050701, %v9196_v28  ;;  %v9123_v55 = vmul.f32 1.442695, %v9099_v20  ;;  %v16112_v7 = vmul.f32 %v13449_v14, %v16027_v53  ;;  %v9016_v4 = vpop.xlane.xlu1 %9015 }
 0x761   :  { %v9163_v52 = vmul.f32 1.6732632, %v10275_v43  ;;  %13462 = vrsqrt.f32 %v9053_v37  ;;  %v9037_v60 = vmul.f32 0.0078125, %v9016_v4 }
 0x762   :  { %v13451_v5 = vpop.eup %13450  ;;  %9230 = vst [vmem:[%s16209_s4 + $0x10] sm:$0xff] %v9213_v29  ;;  %13464 = vpow2.f32 %v9123_v55  ;;  %v9100_v56 = vmin.f32 %v16112_v7, 0.0  ;;  %vm9185_vm11 = vcmp.gt.f32.partialorder %v16112_v7, 0.0 }
 0x763   :  { %v13453_v30 = vpop.eup %13452  ;;  %v9197_v27 = vsel %vm9180_vm6, %v16082_v62, %v9163_v52  ;;  %v10276_v15 = vadd.f32 -1.0, %v13451_v5  ;;  %v9054_v53 = vadd.f32 1e-05, %v9037_v60 }
 0x764   :  { %v9214_v22 = vmul.f32 1.050701, %v9197_v27  ;;  %v9125_v26 = vmul.f32 1.442695, %v9100_v56  ;;  %v16121_v8 = vmul.f32 %v13453_v30, %v16032_v36 }
 0x765   :  { %v9164_v38 = vmul.f32 1.6732632, %v10276_v15  ;;  %13466 = vrsqrt.f32 %v9054_v53 }
 0x766   :  { %v13455_v40 = vpop.eup %13454  ;;  %9231 = vst [vmem:[%s16209_s4 + $0x18] sm:$0xff] %v9214_v22  ;;  %13468 = vpow2.f32 %v9125_v26  ;;  %v9101_v18 = vmin.f32 %v16121_v8, 0.0  ;;  %vm9186_vm12 = vcmp.gt.f32.partialorder %v16121_v8, 0.0 }
 0x767   :  { %v13457_v62 = vpop.eup %13456  ;;  %v9198_v19 = vsel %vm9181_vm7, %v16086_v2, %v9164_v38  ;;  %v16130_v57 = vmul.f32 %v13455_v40, %v16037_v41 }
 0x768   :  { %v9215_v36 = vmul.f32 1.050701, %v9198_v19  ;;  %v10277_v44 = vadd.f32 -1.0, %v13457_v62  ;;  %v9127_v42 = vmul.f32 1.442695, %v9101_v18  ;;  %v9020_v63 = vpop.xlane.xlu1 %9019 }
 0x769   :  { %v9102_v47 = vmin.f32 %v16130_v57, 0.0  ;;  %v9039_v32 = vmul.f32 0.0078125, %v9020_v63  ;;  %vm9187_vm13 = vcmp.gt.f32.partialorder %v16130_v57, 0.0 }
 0x76a   :  { %v13459_v54 = vpop.eup %13458  ;;  %9232 = vst [vmem:[%s16209_s4 + $0x20] sm:$0xff] %v9215_v36  ;;  %v9165_v9 = vmul.f32 1.6732632, %v10277_v44  ;;  %13470 = vpow2.f32 %v9127_v42 }
 0x76b   :  { %v13461_v51 = vpop.eup %13460  ;;  %v9129_v2 = vmul.f32 1.442695, %v9102_v47  ;;  %v16138_v41 = vmul.f32 %v13459_v54, %v16042_v17  ;;  %v9056_v46 = vadd.f32 1e-05, %v9039_v32 }
 0x76c   :  { %v9199_v34 = vsel %vm9182_vm8, %v16090_v23, %v9165_v9  ;;  %v10278_v21 = vadd.f32 -1.0, %v13461_v51 }
 0x76d   :  { %v9216_v24 = vmul.f32 1.050701, %v9199_v34  ;;  %13472 = vpow2.f32 %v9129_v2  ;;  %v9103_v61 = vmin.f32 %v16138_v41, 0.0  ;;  %vm9188_vm14 = vcmp.gt.f32.partialorder %v16138_v41, 0.0 }
 0x76e   :  { %v13463_v3 = vpop.eup %13462  ;;  %v9166_v25 = vmul.f32 1.6732632, %v10278_v21  ;;  %13474 = vrsqrt.f32 %v9056_v46 }
 0x76f   :  { %v13465_v59 = vpop.eup %13464  ;;  %9233 = vst [vmem:[%s16209_s4 + $0x28] sm:$0xff] %v9216_v24  ;;  %v9131_v17 = vmul.f32 1.442695, %v9103_v61  ;;  %v16147_v16 = vmul.f32 %v13463_v3, %v16047_v0 }
 0x770   :  { %v9200_v23 = vsel %vm9183_vm9, %v16094_v58, %v9166_v25  ;;  %v10279_v33 = vadd.f32 -1.0, %v13465_v59 }
 0x771   :  { %v9217_v1 = vmul.f32 1.050701, %v9200_v23  ;;  %13476 = vpow2.f32 %v9131_v17  ;;  %v9104_v48 = vmin.f32 %v16147_v16, 0.0  ;;  %v9018_v49 = vpop.xlane.xlu0 %9017  ;;  %vm9189_vm15 = vcmp.gt.f32.partialorder %v16147_v16, 0.0 }
 0x772   :  { %v13467_v39 = vpop.eup %13466  ;;  %v9167_v11 = vmul.f32 1.6732632, %v10279_v33  ;;  %v9038_v35 = vmul.f32 0.0078125, %v9018_v49 }
 0x773   :  { %v13469_v13 = vpop.eup %13468  ;;  %9234 = vst [vmem:[%s16209_s4 + $0x30] sm:$0xff] %v9217_v1  ;;  %v9133_v0 = vmul.f32 1.442695, %v9104_v48  ;;  %v16156_v6 = vmul.f32 %v13467_v39, %v16052_v31 }
 0x774   :  { %v9201_v58 = vsel %vm9184_vm10, %v16103_v50, %v9167_v11  ;;  %v10280_v20 = vadd.f32 -1.0, %v13469_v13  ;;  %v9055_v14 = vadd.f32 1e-05, %v9038_v35 }
 0x775   :  { %v9218_v28 = vmul.f32 1.050701, %v9201_v58  ;;  %13478 = vpow2.f32 %v9133_v0  ;;  %v9105_v43 = vmin.f32 %v16156_v6, 0.0  ;;  %v9023_v37 = vpop.xlane.xlu0 %9022  ;;  %vm9190_vm0 = vcmp.gt.f32.partialorder %v16156_v6, 0.0 }
 0x776   :  { %v9168_v29 = vmul.f32 1.6732632, %v10280_v20  ;;  %13480 = vrsqrt.f32 %v9055_v14  ;;  %v9040_v55 = vmul.f32 0.0078125, %v9023_v37 }
 0x777   :  { %v13471_v4 = vpop.eup %13470  ;;  %9235 = vst [vmem:[%s16209_s4 + $0x38] sm:$0xff] %v9218_v28  ;;  %v9135_v31 = vmul.f32 1.442695, %v9105_v43 }
 0x778   :  { %v9202_v50 = vsel %vm9185_vm11, %v16112_v7, %v9168_v29  ;;  %v10281_v52 = vadd.f32 -1.0, %v13471_v4  ;;  %v9057_v60 = vadd.f32 1e-05, %v9040_v55 }
 0x779   :  { %v9219_v5 = vmul.f32 1.050701, %v9202_v50  ;;  %13482 = vpow2.f32 %v9135_v31 }
 0x77a   :  { %v13473_v56 = vpop.eup %13472  ;;  %v9169_v30 = vmul.f32 1.6732632, %v10281_v52  ;;  %13484 = vrsqrt.f32 %v9057_v60 }
 0x77b   :  { %v13475_v27 = vpop.eup %13474  ;;  %9236 = vst [vmem:[%s16209_s4 + $0x40] sm:$0xff] %v9219_v5  ;;  %v10282_v15 = vadd.f32 -1.0, %v13473_v56 }
 0x77c   :  { %v9203_v53 = vsel %vm9186_vm12, %v16121_v8, %v9169_v30  ;;  %v9090_v22 = vmul.f32 %v13475_v27, %v16057_v10 }
 0x77d   :  { %v9220_v7 = vmul.f32 1.050701, %v9203_v53  ;;  %v9170_v26 = vmul.f32 1.6732632, %v10282_v15 }
 0x77e   :  { %v13477_v38 = vpop.eup %13476  ;;  %v9107_v40 = vmin.f32 %v9090_v22, 0.0  ;;  %vm9192_vm1 = vcmp.gt.f32.partialorder %v9090_v22, 0.0 }
 0x77f   :  { %9237 = vst [vmem:[%s16209_s4 + $0x48] sm:$0xff] %v9220_v7  ;;  %v9204_v18 = vsel %vm9187_vm13, %v16130_v57, %v9170_v26  ;;  %v10283_v62 = vadd.f32 -1.0, %v13477_v38 }
 0x780   :  { %v9221_v19 = vmul.f32 1.050701, %v9204_v18  ;;  %v9139_v36 = vmul.f32 1.442695, %v9107_v40 }
 0x781   :  { %v9171_v44 = vmul.f32 1.6732632, %v10283_v62 }
 0x782   :  { %v13479_v42 = vpop.eup %13478  ;;  %9238 = vst [vmem:[%s16209_s4 + $0x50] sm:$0xff] %v9221_v19  ;;  %13486 = vpow2.f32 %v9139_v36 }
 0x783   :  { %v13481_v10 = vpop.eup %13480  ;;  %v9205_v8 = vsel %vm9188_vm14, %v16138_v41, %v9171_v44  ;;  %v10284_v63 = vadd.f32 -1.0, %v13479_v42 }
 0x784   :  { %v9222_v47 = vmul.f32 1.050701, %v9205_v8  ;;  %v9089_v32 = vmul.f32 %v13481_v10, %v16065_v45 }
 0x785   :  { %v9172_v57 = vmul.f32 1.6732632, %v10284_v63 }
 0x786   :  { %v13483_v54 = vpop.eup %13482  ;;  %9239 = vst [vmem:[%s16209_s4 + $0x58] sm:$0xff] %v9222_v47  ;;  %v9106_v9 = vmin.f32 %v9089_v32, 0.0  ;;  %vm9191_vm2 = vcmp.gt.f32.partialorder %v9089_v32, 0.0 }
 0x787   :  { %v13485_v51 = vpop.eup %13484  ;;  %v9206_v2 = vsel %vm9189_vm15, %v16147_v16, %v9172_v57  ;;  %v10285_v46 = vadd.f32 -1.0, %v13483_v54 }
 0x788   :  { %v9223_v34 = vmul.f32 1.050701, %v9206_v2  ;;  %v9137_v21 = vmul.f32 1.442695, %v9106_v9  ;;  %v9091_v41 = vmul.f32 %v13485_v51, %v16062_v12 }
 0x789   :  { %v9173_v24 = vmul.f32 1.6732632, %v10285_v46 }
 0x78a   :  { %9240 = vst [vmem:[%s16209_s4 + $0x60] sm:$0xff] %v9223_v34  ;;  %13488 = vpow2.f32 %v9137_v21  ;;  %v9108_v45 = vmin.f32 %v9091_v41, 0.0  ;;  %vm9193_vm3 = vcmp.gt.f32.partialorder %v9091_v41, 0.0 }
 0x78b   :  { %v9207_v61 = vsel %vm9190_vm0, %v16156_v6, %v9173_v24 }
 0x78c   :  { %v9224_v3 = vmul.f32 1.050701, %v9207_v61  ;;  %v9141_v25 = vmul.f32 1.442695, %v9108_v45 }
 0x78e   :  { %9241 = vst [vmem:[%s16209_s4 + $0x68] sm:$0xff] %v9224_v3  ;;  %13490 = vpow2.f32 %v9141_v25 }
 0x78f   :  { %v13487_v59 = vpop.eup %13486 }
 0x790   :  { %v10287_v12 = vadd.f32 -1.0, %v13487_v59 }
 0x792   :  { %v9175_v17 = vmul.f32 1.6732632, %v10287_v12 }
 0x794   :  { %v9209_v16 = vsel %vm9192_vm1, %v9090_v22, %v9175_v17 }
 0x795   :  { %v9226_v23 = vmul.f32 1.050701, %v9209_v16 }
 0x797   :  { %v13489_v33 = vpop.eup %13488  ;;  %9243 = vst [vmem:[%s16209_s4 + $0x78] sm:$0xff] %v9226_v23 }
 0x798   :  { %v10286_v1 = vadd.f32 -1.0, %v13489_v33 }
 0x79a   :  { %v9174_v48 = vmul.f32 1.6732632, %v10286_v1 }
 0x79b   :  { %v13491_v49 = vpop.eup %13490 }
 0x79c   :  { %v9208_v39 = vsel %vm9191_vm2, %v9089_v32, %v9174_v48  ;;  %v10288_v11 = vadd.f32 -1.0, %v13491_v49 }
 0x79d   :  { %v9225_v35 = vmul.f32 1.050701, %v9208_v39 }
 0x79e   :  { %v9176_v13 = vmul.f32 1.6732632, %v10288_v11 }
 0x79f   :  { %9242 = vst [vmem:[%s16209_s4 + $0x70] sm:$0xff] %v9225_v35 }
 0x7a0   :  { %v9210_v0 = vsel %vm9193_vm3, %v9091_v41, %v9176_v13 }
 0x7a1   :  { %v9227_v6 = vmul.f32 1.050701, %v9210_v0 }
 0x7a3   :  { %9244 = vst [vmem:[%s16209_s4 + $0x80] sm:$0xf] %v9227_v6 }
 0x7a4   :  { %9249 = vsyncpa [#allocation4], 1 }
 0x7a5   :  { %9250 = vsyncpa [#allocation6], 1 }

</bundles_post_ra>
